<compile_context>
chip_gen: v6e
topology: v6e:2x2x1
jax: 0.10.0
libtpu: 0.0.40
codegen_flags: <defaults>
</compile_context>

<pallas_src>
from functools import partial

import jax
import jax.numpy as jnp
from jax.experimental import pallas as pl
from jax.experimental.pallas import tpu as pltpu

KH = KW = 3  # SPADE conv kernel size (padding = 1)


# ----------------------------- kernels --------------------------------------


def _stats_kernel(x_ref, s_ref):
    """Tiled per-channel sum / sum-of-squares reduction.

    x_ref: (1, C, TM) tile of the NCHW-flat input; s_ref: (C, 2) resident accumulator
    (column 0 = sum, column 1 = sum of squares)."""
    @pl.when((pl.program_id(0) == 0) & (pl.program_id(1) == 0))
    def _init():
        s_ref[...] = jnp.zeros_like(s_ref)

    xb = x_ref[0].astype(jnp.float32)                      # (C, TM)
    s = jnp.sum(xb, axis=1, keepdims=True)                 # (C, 1)
    sq = jnp.sum(xb * xb, axis=1, keepdims=True)           # (C, 1)
    s_ref[...] += jnp.concatenate([s, sq], axis=1)


def _spade_fused_kernel(x_ref, body_ref, halo_ref, w1_ref, b1_ref,
                        w2g_ref, w2b_ref, bg_ref, bb_ref, mean_ref, inv_ref,
                        o_ref, hid_ref, *, H):
    """Fused conv1+ReLU -> conv2 -> (batch-norm apply + SPADE affine) for one row tile.

    x_ref    : (1, C, TH*W)        current output / input tile, NCHW-flat (lane dense)
    body_ref : (1, TH, W+2, K1)    conv1 im2col taps for the tile's own rows (bf16)
    halo_ref : (1, 1, 2, W+2, K1)  taps for hidden rows r0-1 and r0+TH (bf16)
    w1_ref   : (K1, F) bf16, b1_ref: (1, F) f32
    w2g/w2b  : (9F, C) bf16 (gamma / beta halves), bg/bb: (1, C) f32
    mean/inv : (C, 1) f32 per-channel batch-norm statistics
    o_ref    : (1, C, TH*W)
    hid_ref  : VMEM scratch (TH+2, W+2, F) bf16 -- hidden never leaves VMEM.
    """
    i = pl.program_id(1)
    C = x_ref.shape[1]
    _, TH, Wp, K1 = body_ref.shape
    W = Wp - 2
    F = w1_ref.shape[1]
    Hh = TH + 2
    M = TH * W
    r0 = i * TH

    # --- conv1 input: body rows + 1-row halo on each side (auto-pipelined DMA) ----
    body = body_ref[...].reshape(TH, Wp, K1)
    halo = halo_ref[...].reshape(2, Wp, K1)
    taps1 = jnp.concatenate([halo[0:1], body, halo[1:2]], axis=0)     # (Hh, Wp, K1)

    # --- conv1 (+bias, ReLU): ONE MXU matmul, bf16 operands, f32 accumulate -------
    h = jnp.dot(taps1.reshape(Hh * Wp, K1), w1_ref[...],
                preferred_element_type=jnp.float32)
    h = jnp.maximum(h + b1_ref[...], 0.0).reshape(Hh, Wp, F)          # f32 VPU math

    # zero hidden positions that fall outside the image (conv2 zero padding)
    rows = jax.lax.broadcasted_iota(jnp.int32, (Hh, Wp, 1), 0) + (r0 - 1)
    cols = jax.lax.broadcasted_iota(jnp.int32, (Hh, Wp, 1), 1) - 1
    valid = (rows >= 0) & (rows < H) & (cols >= 0) & (cols < W)
    hid_ref[...] = jnp.where(valid, h, 0.0).astype(hid_ref.dtype)     # bf16 VMEM scratch

    # --- conv2: im2col the 9 hidden taps (VMEM only) -> gamma / beta matmuls ------
    # (note: with small C, padding the output channels to 128 would raise MXU
    #  utilisation further; kept un-padded here since C is tiny in this demo)
    taps2 = jnp.concatenate(
        [hid_ref[dy:dy + TH, dx:dx + W, :].reshape(M, F)
         for dy in range(KH) for dx in range(KW)], axis=-1)           # (M, 9F) bf16
    gamma = jnp.dot(taps2, w2g_ref[...],
                    preferred_element_type=jnp.float32) + bg_ref[...]  # (M, C) f32
    beta = jnp.dot(taps2, w2b_ref[...],
                   preferred_element_type=jnp.float32) + bb_ref[...]   # (M, C) f32

    # --- fused batch-norm apply + SPADE affine, NCHW-flat (lane-dense) output -----
    x_cm = x_ref[0].astype(jnp.float32)                               # (C, M)
    out = (x_cm - mean_ref[...]) * inv_ref[...] * (1.0 + gamma.T) + beta.T
    o_ref[0] = out.astype(o_ref.dtype)


# --------------------------- wrapper / glue ----------------------------------


def _round_up(a, b):
    return (a + b - 1) // b * b


def _row_tile(h, w):
    """Row tile size: divides H and makes the flattened (TH*W) block lane-aligned."""
    for t in (8, 16, 32, 64):
        if h % t == 0 and (t * w) % 128 == 0:
            return t
    return h  # fall back: whole image height in one tile


def _nearest_resize_nchw(x, out_h, out_w):
    # F.interpolate(mode='nearest'): src = floor(dst * in / out)  (pure indexing glue)
    _, _, h, w = x.shape
    ridx = (jnp.arange(out_h) * h) // out_h
    cidx = (jnp.arange(out_w) * w) // out_w
    return x[:, :, ridx][:, :, :, cidx]


def _prepare_cond(cond_nchw, w1, b1, w2, b2, H, W, C, TH):
    """XLA glue on the *tiny* cond tensor: nearest resize, conv1 im2col, halo rows,
    weight re-layout + bf16 cast of MXU operands (biases stay f32)."""
    Cc = cond_nchw.shape[1]
    F = w1.shape[-1]
    nI = H // TH
    K0 = KH * KW * Cc
    K1 = _round_up(K0, 8)            # pad K so the (K1, F) weight is sublane aligned

    label = _nearest_resize_nchw(cond_nchw.astype(jnp.float32), H, W)
    label = jnp.transpose(label, (0, 2, 3, 1))                         # (N, H, W, Cc)
    lp = jnp.pad(label, ((0, 0), (1, 1), (1, 1), (0, 0)))
    taps = jnp.concatenate(
        [lp[:, dy:dy + H, dx:dx + W, :] for dy in range(KH) for dx in range(KW)],
        axis=-1)                                                       # (N, H, W, 9*Cc)
    taps = jnp.pad(taps, ((0, 0), (0, 0), (1, 1), (0, K1 - K0)))       # W halo + K pad
    taps = taps.astype(jnp.bfloat16)                                   # (N, H, W+2, K1)

    # halo rows (hidden rows r0-1 / r0+TH for every row tile; zeros at image border)
    taps_h = jnp.pad(taps, ((0, 0), (1, 1), (0, 0), (0, 0)))
    top = taps_h[:, jnp.arange(nI) * TH]
    bot = taps_h[:, jnp.arange(nI) * TH + TH + 1]
    halo = jnp.stack([top, bot], axis=2)                               # (N, nI, 2, W+2, K1)

    w1f = jnp.pad(w1.reshape(K0, F), ((0, K1 - K0), (0, 0))).astype(jnp.bfloat16)
    b1r = b1.reshape(1, F).astype(jnp.float32)
    w2g = w2[:, :, :C].reshape(KH * KW * F, C).astype(jnp.bfloat16)    # gamma half
    w2b = w2[:, :, C:].reshape(KH * KW * F, C).astype(jnp.bfloat16)    # beta half
    bg = b2[:, :C].reshape(1, C).astype(jnp.float32)
    bb = b2[:, C:].reshape(1, C).astype(jnp.float32)
    return taps, halo, w1f, b1r, w2g, w2b, bg, bb


def _spade_apply(out2, body, halo, w1, b1, w2g, w2b, bg, bb, mean, invstd,
                 *, H, W, TH, alias_input):
    N, C, HW = out2.shape
    nI = H // TH
    M = TH * W
    Wp = W + 2
    K1, F = w1.shape

    call_kwargs = dict(input_output_aliases={0: 0}) if alias_input else {}
    return pl.pallas_call(
        partial(_spade_fused_kernel, H=H),
        out_shape=jax.ShapeDtypeStruct((N, C, HW), jnp.float32),
        grid_spec=pltpu.PrefetchScalarGridSpec(
            num_scalar_prefetch=0,
            grid=(N, nI),
            in_specs=[
                pl.BlockSpec((1, C, M), lambda n, i: (n, 0, i)),            # x / output
                pl.BlockSpec((1, TH, Wp, K1), lambda n, i: (n, i, 0, 0)),   # conv1 taps
                pl.BlockSpec((1, 1, 2, Wp, K1), lambda n, i: (n, i, 0, 0, 0)),  # halo
                pl.BlockSpec((K1, F), lambda n, i: (0, 0)),                 # w1
                pl.BlockSpec((1, F), lambda n, i: (0, 0)),                  # b1
                pl.BlockSpec((KH * KW * F, C), lambda n, i: (0, 0)),        # w2 gamma
                pl.BlockSpec((KH * KW * F, C), lambda n, i: (0, 0)),        # w2 beta
                pl.BlockSpec((1, C), lambda n, i: (0, 0)),                  # b gamma
                pl.BlockSpec((1, C), lambda n, i: (0, 0)),                  # b beta
                pl.BlockSpec((C, 1), lambda n, i: (0, 0)),                  # mean
                pl.BlockSpec((C, 1), lambda n, i: (0, 0)),                  # invstd
            ],
            out_specs=pl.BlockSpec((1, C, M), lambda n, i: (n, 0, i)),
            scratch_shapes=[pltpu.VMEM((TH + 2, Wp, F), jnp.bfloat16)],     # hidden
        ),
        compiler_params=pltpu.CompilerParams(
            dimension_semantics=("parallel", "parallel")),
        **call_kwargs,
    )(out2, body, halo, w1, b1, w2g, w2b, bg, bb, mean, invstd)


def spatially_adaptive_norm(x_nchw, cond_inputs_nchw, mlp_params, eps=1e-5):
    """SPADE forward.  x_nchw: (N, C, H, W); cond inputs: list of (N, Cc_i, h_i, w_i);
    mlp_params: list of (w1 (9,Cc,F), b1 (1,F), w2 (9,F,2C), b2 (1,2C))."""
    N, C, H, W = x_nchw.shape
    TH = _row_tile(H, W)
    nI = H // TH
    M = TH * W

    # NCHW-flat layout: last dim H*W maps to lanes; reshape is a free bitcast.
    x2 = x_nchw.astype(jnp.float32).reshape(N, C, H * W)

    # --- stage 1: per-channel batch statistics (tiled Pallas sum/sumsq reduction) ---
    sums = pl.pallas_call(
        _stats_kernel,
        out_shape=jax.ShapeDtypeStruct((C, 2), jnp.float32),
        grid_spec=pltpu.PrefetchScalarGridSpec(
            num_scalar_prefetch=0,
            grid=(N, nI),
            in_specs=[pl.BlockSpec((1, C, M), lambda n, i: (n, 0, i))],
            out_specs=pl.BlockSpec((C, 2), lambda n, i: (0, 0)),
        ),
        compiler_params=pltpu.CompilerParams(
            dimension_semantics=("arbitrary", "arbitrary")),
    )(x2)
    cnt = float(N * H * W)
    mean = sums[:, 0:1] / cnt                       # (C, 1)
    var = sums[:, 1:2] / cnt - mean * mean          # biased variance
    invstd = jax.lax.rsqrt(var + eps)               # (C, 1)

    # --- stage 2: per cond input, one fused conv1->conv2->normalize->affine kernel --
    output = x2
    first = True
    for cond, (w1, b1, w2, b2) in zip(cond_inputs_nchw, mlp_params):
        if cond is None:
            continue
        body, halo, w1f, b1r, w2g, w2b, bg, bb = _prepare_cond(
            cond, w1, b1, w2, b2, H, W, C, TH)
        if first:
            mu, iv = mean, invstd                   # fold the batch-norm apply in
        else:
            mu = jnp.zeros((C, 1), jnp.float32)     # identity norm for later conds
            iv = jnp.ones((C, 1), jnp.float32)
        output = _spade_apply(output, body, halo, w1f, b1r, w2g, w2b, bg, bb,
                              mu, iv, H=H, W=W, TH=TH, alias_input=not first)
        first = False

    if first:  # no conditional inputs at all: plain (affine-free) batch norm
        output = (x2 - mean.reshape(1, C, 1)) * invstd.reshape(1, C, 1)

    return output.reshape(N, C, H, W)


# --------------------------- pure-JAX reference -------------------------------


def _bf16(a):
    # match the kernel's precision policy (bf16 MXU operands, f32 accumulate)
    return a.astype(jnp.bfloat16).astype(jnp.float32)


def _reference(x_nchw, cond_inputs, mlp_params, eps=1e-5):
    N, C, H, W = x_nchw.shape
    x = jnp.transpose(x_nchw, (0, 2, 3, 1)).astype(jnp.float32)
    mean = jnp.mean(x, axis=(0, 1, 2), keepdims=True)
    var = jnp.mean((x - mean) ** 2, axis=(0, 1, 2), keepdims=True)
    out = (x - mean) * jax.lax.rsqrt(var + eps)
    dn = ("NHWC", "HWIO", "NHWC")
    for cond, (w1, b1, w2, b2) in zip(cond_inputs, mlp_params):
        if cond is None:
            continue
        label = _nearest_resize_nchw(cond.astype(jnp.float32), H, W)
        label = jnp.transpose(label, (0, 2, 3, 1))
        w1_hwio = _bf16(w1).reshape(KH, KW, w1.shape[1], w1.shape[2])
        w2_hwio = _bf16(w2).reshape(KH, KW, w2.shape[1], w2.shape[2])
        hid = jax.lax.conv_general_dilated(_bf16(label), w1_hwio, (1, 1),
                                           [(1, 1), (1, 1)], dimension_numbers=dn)
        hid = jnp.maximum(hid + b1.reshape(1, 1, 1, -1), 0.0)
        aff = jax.lax.conv_general_dilated(_bf16(hid), w2_hwio, (1, 1),
                                           [(1, 1), (1, 1)], dimension_numbers=dn)
        aff = aff + b2.reshape(1, 1, 1, -1)
        gamma, beta = aff[..., :C], aff[..., C:]
        out = out * (1.0 + gamma) + beta
    return jnp.transpose(out, (0, 3, 1, 2))


# ------------------------------- main -----------------------------------------

if __name__ == "__main__":
    key = jax.random.PRNGKey(0)
    N, C, H, W = 2, 4, 16, 16
    Cc1, F1 = 3, 128          # first SPADE branch (default num_filters=128)
    Cc2, F2 = 5, 64           # second branch (exercises the multi-cond / alias path)
    ks = jax.random.split(key, 11)

    x = jax.random.normal(ks[0], (N, C, H, W), jnp.float32)
    cond1 = jax.random.normal(ks[1], (N, Cc1, 8, 8), jnp.float32)
    cond2 = jax.random.normal(ks[2], (N, Cc2, 32, 32), jnp.float32)

    # torch conv weight (Cout, Cin, kh, kw) re-laid-out as (kh*kw, Cin, Cout)
    w1_1 = jax.random.normal(ks[3], (KH * KW, Cc1, F1), jnp.float32) * 0.15
    b1_1 = jax.random.normal(ks[4], (1, F1), jnp.float32) * 0.1
    w2_1 = jax.random.normal(ks[5], (KH * KW, F1, 2 * C), jnp.float32) * 0.03
    b2_1 = jax.random.normal(ks[6], (1, 2 * C), jnp.float32) * 0.1

    w1_2 = jax.random.normal(ks[7], (KH * KW, Cc2, F2), jnp.float32) * 0.15
    b1_2 = jax.random.normal(ks[8], (1, F2), jnp.float32) * 0.1
    w2_2 = jax.random.normal(ks[9], (KH * KW, F2, 2 * C), jnp.float32) * 0.03
    b2_2 = jax.random.normal(ks[10], (1, 2 * C), jnp.float32) * 0.1

    conds = [cond1, cond2]
    params = [(w1_1, b1_1, w2_1, b2_1), (w1_2, b1_2, w2_2, b2_2)]

    fn = jax.jit(spatially_adaptive_norm)
    out = jax.block_until_ready(fn(x, conds, params))
    ref = jax.block_until_ready(_reference(x, conds, params))

    assert out.shape == (N, C, H, W)
    max_err = float(jnp.max(jnp.abs(out - ref)))
    assert jnp.allclose(out, ref, rtol=5e-3, atol=5e-3), f"mismatch vs reference: {max_err}"

    print("KERNEL_OK")
</pallas_src>

<mosaic_0001>
module attributes {stable_mosaic.version = 11 : i64} {
  func.func @_stats_kernel(%arg0: i32, %arg1: i32, %arg2: memref<1x4x128xf32, #tpu.memory_space<vmem>>, %arg3: memref<4x2xf32, #tpu.memory_space<vmem>>) attributes {dimension_semantics = [#tpu.dimension_semantics<arbitrary>, #tpu.dimension_semantics<arbitrary>], iteration_bounds = array<i64: 2, 2>, scalar_prefetch = 0 : i64, scratch_operands = 0 : i64, tpu.core_type = #tpu.core_type<tc>, window_params = [{transform_indices = @transform_0, window_bounds = array<i64: 1, 4, 128>}, {pipeline_mode = #tpu.pipeline_mode<synchronous>, transform_indices = @transform_1, window_bounds = array<i64: 4, 2>}]} {
    %c0_i32 = arith.constant 0 : i32
    %0 = arith.cmpi eq, %arg0, %c0_i32 : i32
    %c0_i32_0 = arith.constant 0 : i32
    %1 = arith.cmpi eq, %arg1, %c0_i32_0 : i32
    %2 = arith.andi %0, %1 : i1
    %3 = arith.extui %2 : i1 to i32
    %c0_i32_1 = arith.constant 0 : i32
    %4 = arith.cmpi ne, %3, %c0_i32_1 : i32
    scf.if %4 {
      %cst_9 = arith.constant 0.000000e+00 : f32
      %16 = vector.broadcast %cst_9 : f32 to vector<4x2xf32>
      %c0_10 = arith.constant 0 : index
      %c0_11 = arith.constant 0 : index
      %17 = vector.load %arg3[%c0_10, %c0_11] : memref<4x2xf32, #tpu.memory_space<vmem>>, vector<4x2xf32>
      tpu.vector_store %arg3[%c0_10, %c0_11], %16 {strides = array<i32>} : memref<4x2xf32, #tpu.memory_space<vmem>>, vector<4x2xf32>,
    } else {
    }
    %c0 = arith.constant 0 : index
    %c0_2 = arith.constant 0 : index
    %c0_3 = arith.constant 0 : index
    %5 = vector.load %arg2[%c0, %c0_2, %c0_3] : memref<1x4x128xf32, #tpu.memory_space<vmem>>, vector<1x4x128xf32>
    %6 = vector.shape_cast %5 : vector<1x4x128xf32> to vector<4x128xf32>
    %cst = arith.constant dense<0.000000e+00> : vector<4xf32>
    %7 = vector.multi_reduction <add>, %6, %cst [1] : vector<4x128xf32> to vector<4xf32>
    %8 = vector.shape_cast %7 : vector<4xf32> to vector<4x1xf32>
    %9 = arith.mulf %6, %6 : vector<4x128xf32>
    %cst_4 = arith.constant dense<0.000000e+00> : vector<4xf32>
    %10 = vector.multi_reduction <add>, %9, %cst_4 [1] : vector<4x128xf32> to vector<4xf32>
    %11 = vector.shape_cast %10 : vector<4xf32> to vector<4x1xf32>
    %c0_5 = arith.constant 0 : index
    %c0_6 = arith.constant 0 : index
    %12 = vector.load %arg3[%c0_5, %c0_6] : memref<4x2xf32, #tpu.memory_space<vmem>>, vector<4x2xf32>
    %13 = tpu.concatenate %8, %11 in 1 : vector<4x1xf32>, vector<4x1xf32> -> vector<4x2xf32>
    %14 = arith.addf %12, %13 : vector<4x2xf32>
    %c0_7 = arith.constant 0 : index
    %c0_8 = arith.constant 0 : index
    %15 = vector.load %arg3[%c0_7, %c0_8] : memref<4x2xf32, #tpu.memory_space<vmem>>, vector<4x2xf32>
    tpu.vector_store %arg3[%c0_7, %c0_8], %14 {strides = array<i32>} : memref<4x2xf32, #tpu.memory_space<vmem>>, vector<4x2xf32>,
    return
  }
  func.func @transform_0(%arg0: i32, %arg1: i32) -> (i32, i32, i32) {
    %c0_i32 = arith.constant 0 : i32
    %c0_i32_0 = arith.constant 0 : i32
    return %arg0, %c0_i32, %arg1 : i32, i32, i32
  }
  func.func @transform_1(%arg0: i32, %arg1: i32) -> (i32, i32) {
    %c0_i32 = arith.constant 0 : i32
    %c0_i32_0 = arith.constant 0 : i32
    %c0_i32_1 = arith.constant 0 : i32
    return %c0_i32, %c0_i32_0 : i32, i32
  }
}

module attributes {stable_mosaic.version = 11 : i64} {
  func.func @_spade_fused_kernel(%arg0: i32, %arg1: i32, %arg2: memref<1x4x128xf32, #tpu.memory_space<vmem>>, %arg3: memref<1x8x18x32xbf16, #tpu.memory_space<vmem>>, %arg4: memref<1x1x2x18x32xbf16, #tpu.memory_space<vmem>>, %arg5: memref<32x128xbf16, #tpu.memory_space<vmem>>, %arg6: memref<1x128xf32, #tpu.memory_space<vmem>>, %arg7: memref<1152x4xbf16, #tpu.memory_space<vmem>>, %arg8: memref<1152x4xbf16, #tpu.memory_space<vmem>>, %arg9: memref<1x4xf32, #tpu.memory_space<vmem>>, %arg10: memref<1x4xf32, #tpu.memory_space<vmem>>, %arg11: memref<4x1xf32, #tpu.memory_space<vmem>>, %arg12: memref<4x1xf32, #tpu.memory_space<vmem>>, %arg13: memref<1x4x128xf32, #tpu.memory_space<vmem>>, %arg14: memref<10x18x128xbf16, #tpu.memory_space<vmem>>) attributes {dimension_semantics = [#tpu.dimension_semantics<parallel>, #tpu.dimension_semantics<parallel>], iteration_bounds = array<i64: 2, 2>, scalar_prefetch = 0 : i64, scratch_operands = 1 : i64, tpu.core_type = #tpu.core_type<tc>, window_params = [{transform_indices = @transform_0, window_bounds = array<i64: 1, 4, 128>}, {transform_indices = @transform_1, window_bounds = array<i64: 1, 8, 18, 32>}, {transform_indices = @transform_2, window_bounds = array<i64: 1, 1, 2, 18, 32>}, {pipeline_mode = #tpu.pipeline_mode<synchronous>, transform_indices = @transform_3, window_bounds = array<i64: 32, 128>}, {pipeline_mode = #tpu.pipeline_mode<synchronous>, transform_indices = @transform_4, window_bounds = array<i64: 1, 128>}, {pipeline_mode = #tpu.pipeline_mode<synchronous>, transform_indices = @transform_5, window_bounds = array<i64: 1152, 4>}, {pipeline_mode = #tpu.pipeline_mode<synchronous>, transform_indices = @transform_6, window_bounds = array<i64: 1152, 4>}, {pipeline_mode = #tpu.pipeline_mode<synchronous>, transform_indices = @transform_7, window_bounds = array<i64: 1, 4>}, {pipeline_mode = #tpu.pipeline_mode<synchronous>, transform_indices = @transform_8, window_bounds = array<i64: 1, 4>}, {pipeline_mode = #tpu.pipeline_mode<synchronous>, transform_indices = @transform_9, window_bounds = array<i64: 4, 1>}, {pipeline_mode = #tpu.pipeline_mode<synchronous>, transform_indices = @transform_10, window_bounds = array<i64: 4, 1>}, {transform_indices = @transform_11, window_bounds = array<i64: 1, 4, 128>}]} {
    %c8_i32 = arith.constant 8 : i32
    %0 = arith.muli %arg1, %c8_i32 : i32
    %c0 = arith.constant 0 : index
    %c0_0 = arith.constant 0 : index
    %c0_1 = arith.constant 0 : index
    %c0_2 = arith.constant 0 : index
    %1 = vector.load %arg3[%c0, %c0_0, %c0_1, %c0_2] : memref<1x8x18x32xbf16, #tpu.memory_space<vmem>>, vector<1x8x18x32xbf16>
    %2 = vector.shape_cast %1 : vector<1x8x18x32xbf16> to vector<8x18x32xbf16>
    %c0_3 = arith.constant 0 : index
    %c0_4 = arith.constant 0 : index
    %c0_5 = arith.constant 0 : index
    %c0_6 = arith.constant 0 : index
    %c0_7 = arith.constant 0 : index
    %3 = vector.load %arg4[%c0_3, %c0_4, %c0_5, %c0_6, %c0_7] : memref<1x1x2x18x32xbf16, #tpu.memory_space<vmem>>, vector<1x1x2x18x32xbf16>
    %4 = vector.shape_cast %3 : vector<1x1x2x18x32xbf16> to vector<2x18x32xbf16>
    %5 = vector.extract_strided_slice %4 {offsets = [0, 0, 0], sizes = [1, 18, 32], strides = [1, 1, 1]} : vector<2x18x32xbf16> to vector<1x18x32xbf16>
    %6 = vector.extract_strided_slice %4 {offsets = [1, 0, 0], sizes = [1, 18, 32], strides = [1, 1, 1]} : vector<2x18x32xbf16> to vector<1x18x32xbf16>
    %7 = tpu.concatenate %5, %2, %6 in 0 : vector<1x18x32xbf16>, vector<8x18x32xbf16>, vector<1x18x32xbf16> -> vector<10x18x32xbf16>
    %8 = vector.shape_cast %7 : vector<10x18x32xbf16> to vector<180x32xbf16>
    %c0_8 = arith.constant 0 : index
    %c0_9 = arith.constant 0 : index
    %9 = vector.load %arg5[%c0_8, %c0_9] : memref<32x128xbf16, #tpu.memory_space<vmem>>, vector<32x128xbf16>
    %cst = arith.constant dense<0.000000e+00> : vector<180x128xf32>
    %10 = tpu.matmul %8, %9, %cst {dimension_numbers = #tpu.dot_dimension_numbers<[1], [0], [0], [1], [0, 0, 1, 1], [], []>} : vector<180x32xbf16>, vector<32x128xbf16>, vector<180x128xf32> -> vector<180x128xf32>
    %c0_10 = arith.constant 0 : index
    %c0_11 = arith.constant 0 : index
    %11 = vector.load %arg6[%c0_10, %c0_11] : memref<1x128xf32, #tpu.memory_space<vmem>>, vector<1x128xf32>
    %12 = vector.broadcast %11 : vector<1x128xf32> to vector<180x128xf32>
    %13 = arith.addf %10, %12 : vector<180x128xf32>
    %cst_12 = arith.constant 0.000000e+00 : f32
    %14 = vector.broadcast %cst_12 : f32 to vector<180x128xf32>
    %15 = arith.maximumf %13, %14 : vector<180x128xf32>
    %16 = vector.shape_cast %15 : vector<180x128xf32> to vector<10x18x128xf32>
    %17 = tpu.iota {dimensions = array<i32: 0>} : vector<10x18x1xi32>
    %c1_i32 = arith.constant 1 : i32
    %18 = arith.subi %0, %c1_i32 : i32
    %19 = vector.broadcast %18 : i32 to vector<10x18x1xi32>
    %20 = arith.addi %17, %19 : vector<10x18x1xi32>
    %21 = tpu.iota {dimensions = array<i32: 1>} : vector<10x18x1xi32>
    %c1_i32_13 = arith.constant 1 : i32
    %22 = vector.broadcast %c1_i32_13 : i32 to vector<10x18x1xi32>
    %23 = arith.subi %21, %22 : vector<10x18x1xi32>
    %c0_i32 = arith.constant 0 : i32
    %24 = vector.broadcast %c0_i32 : i32 to vector<10x18x1xi32>
    %25 = arith.cmpi sge, %20, %24 : vector<10x18x1xi32>
    %c16_i32 = arith.constant 16 : i32
    %26 = vector.broadcast %c16_i32 : i32 to vector<10x18x1xi32>
    %27 = arith.cmpi slt, %20, %26 : vector<10x18x1xi32>
    %28 = arith.andi %25, %27 : vector<10x18x1xi1>
    %c0_i32_14 = arith.constant 0 : i32
    %29 = vector.broadcast %c0_i32_14 : i32 to vector<10x18x1xi32>
    %30 = arith.cmpi sge, %23, %29 : vector<10x18x1xi32>
    %31 = arith.andi %28, %30 : vector<10x18x1xi1>
    %c16_i32_15 = arith.constant 16 : i32
    %32 = vector.broadcast %c16_i32_15 : i32 to vector<10x18x1xi32>
    %33 = arith.cmpi slt, %23, %32 : vector<10x18x1xi32>
    %34 = arith.andi %31, %33 : vector<10x18x1xi1>
    %cst_16 = arith.constant 0.000000e+00 : f32
    %35 = vector.shape_cast %34 : vector<10x18x1xi1> to vector<10x18x1xi1>
    %36 = vector.broadcast %35 : vector<10x18x1xi1> to vector<10x18x128xi1>
    %37 = vector.broadcast %cst_16 : f32 to vector<10x18x128xf32>
    %38 = arith.select %36, %16, %37 : vector<10x18x128xi1>, vector<10x18x128xf32>
    %39 = arith.truncf %38 : vector<10x18x128xf32> to vector<10x18x128xbf16>
    %c0_17 = arith.constant 0 : index
    %c0_18 = arith.constant 0 : index
    %c0_19 = arith.constant 0 : index
    %40 = vector.load %arg14[%c0_17, %c0_18, %c0_19] : memref<10x18x128xbf16, #tpu.memory_space<vmem>>, vector<10x18x128xbf16>
    tpu.vector_store %arg14[%c0_17, %c0_18, %c0_19], %39 {strides = array<i32>} : memref<10x18x128xbf16, #tpu.memory_space<vmem>>, vector<10x18x128xbf16>,
    %c0_20 = arith.constant 0 : index
    %c0_21 = arith.constant 0 : index
    %c0_22 = arith.constant 0 : index
    %41 = vector.load %arg14[%c0_20, %c0_21, %c0_22] : memref<10x18x128xbf16, #tpu.memory_space<vmem>>, vector<8x16x128xbf16>
    %42 = vector.shape_cast %41 : vector<8x16x128xbf16> to vector<128x128xbf16>
    %c0_23 = arith.constant 0 : index
    %c1 = arith.constant 1 : index
    %c0_24 = arith.constant 0 : index
    %43 = vector.load %arg14[%c0_23, %c1, %c0_24] : memref<10x18x128xbf16, #tpu.memory_space<vmem>>, vector<8x16x128xbf16>
    %44 = vector.shape_cast %43 : vector<8x16x128xbf16> to vector<128x128xbf16>
    %c0_25 = arith.constant 0 : index
    %c2 = arith.constant 2 : index
    %c0_26 = arith.constant 0 : index
    %45 = vector.load %arg14[%c0_25, %c2, %c0_26] : memref<10x18x128xbf16, #tpu.memory_space<vmem>>, vector<8x16x128xbf16>
    %46 = vector.shape_cast %45 : vector<8x16x128xbf16> to vector<128x128xbf16>
    %c1_27 = arith.constant 1 : index
    %c0_28 = arith.constant 0 : index
    %c0_29 = arith.constant 0 : index
    %47 = vector.load %arg14[%c1_27, %c0_28, %c0_29] : memref<10x18x128xbf16, #tpu.memory_space<vmem>>, vector<8x16x128xbf16>
    %48 = vector.shape_cast %47 : vector<8x16x128xbf16> to vector<128x128xbf16>
    %c1_30 = arith.constant 1 : index
    %c1_31 = arith.constant 1 : index
    %c0_32 = arith.constant 0 : index
    %49 = vector.load %arg14[%c1_30, %c1_31, %c0_32] : memref<10x18x128xbf16, #tpu.memory_space<vmem>>, vector<8x16x128xbf16>
    %50 = vector.shape_cast %49 : vector<8x16x128xbf16> to vector<128x128xbf16>
    %c1_33 = arith.constant 1 : index
    %c2_34 = arith.constant 2 : index
    %c0_35 = arith.constant 0 : index
    %51 = vector.load %arg14[%c1_33, %c2_34, %c0_35] : memref<10x18x128xbf16, #tpu.memory_space<vmem>>, vector<8x16x128xbf16>
    %52 = vector.shape_cast %51 : vector<8x16x128xbf16> to vector<128x128xbf16>
    %c2_36 = arith.constant 2 : index
    %c0_37 = arith.constant 0 : index
    %c0_38 = arith.constant 0 : index
    %53 = vector.load %arg14[%c2_36, %c0_37, %c0_38] : memref<10x18x128xbf16, #tpu.memory_space<vmem>>, vector<8x16x128xbf16>
    %54 = vector.shape_cast %53 : vector<8x16x128xbf16> to vector<128x128xbf16>
    %c2_39 = arith.constant 2 : index
    %c1_40 = arith.constant 1 : index
    %c0_41 = arith.constant 0 : index
    %55 = vector.load %arg14[%c2_39, %c1_40, %c0_41] : memref<10x18x128xbf16, #tpu.memory_space<vmem>>, vector<8x16x128xbf16>
    %56 = vector.shape_cast %55 : vector<8x16x128xbf16> to vector<128x128xbf16>
    %c2_42 = arith.constant 2 : index
    %c2_43 = arith.constant 2 : index
    %c0_44 = arith.constant 0 : index
    %57 = vector.load %arg14[%c2_42, %c2_43, %c0_44] : memref<10x18x128xbf16, #tpu.memory_space<vmem>>, vector<8x16x128xbf16>
    %58 = vector.shape_cast %57 : vector<8x16x128xbf16> to vector<128x128xbf16>
    %59 = tpu.concatenate %42, %44, %46, %48, %50, %52, %54, %56, %58 in 1 : vector<128x128xbf16>, vector<128x128xbf16>, vector<128x128xbf16>, vector<128x128xbf16>, vector<128x128xbf16>, vector<128x128xbf16>, vector<128x128xbf16>, vector<128x128xbf16>, vector<128x128xbf16> -> vector<128x1152xbf16>
    %c0_45 = arith.constant 0 : index
    %c0_46 = arith.constant 0 : index
    %60 = vector.load %arg7[%c0_45, %c0_46] : memref<1152x4xbf16, #tpu.memory_space<vmem>>, vector<1152x4xbf16>
    %cst_47 = arith.constant dense<0.000000e+00> : vector<128x4xf32>
    %61 = tpu.matmul %59, %60, %cst_47 {dimension_numbers = #tpu.dot_dimension_numbers<[1], [0], [0], [1], [0, 0, 1, 1], [], []>} : vector<128x1152xbf16>, vector<1152x4xbf16>, vector<128x4xf32> -> vector<128x4xf32>
    %c0_48 = arith.constant 0 : index
    %c0_49 = arith.constant 0 : index
    %62 = vector.load %arg9[%c0_48, %c0_49] : memref<1x4xf32, #tpu.memory_space<vmem>>, vector<1x4xf32>
    %63 = vector.broadcast %62 : vector<1x4xf32> to vector<128x4xf32>
    %64 = arith.addf %61, %63 : vector<128x4xf32>
    %c0_50 = arith.constant 0 : index
    %c0_51 = arith.constant 0 : index
    %65 = vector.load %arg8[%c0_50, %c0_51] : memref<1152x4xbf16, #tpu.memory_space<vmem>>, vector<1152x4xbf16>
    %cst_52 = arith.constant dense<0.000000e+00> : vector<128x4xf32>
    %66 = tpu.matmul %59, %65, %cst_52 {dimension_numbers = #tpu.dot_dimension_numbers<[1], [0], [0], [1], [0, 0, 1, 1], [], []>} : vector<128x1152xbf16>, vector<1152x4xbf16>, vector<128x4xf32> -> vector<128x4xf32>
    %c0_53 = arith.constant 0 : index
    %c0_54 = arith.constant 0 : index
    %67 = vector.load %arg10[%c0_53, %c0_54] : memref<1x4xf32, #tpu.memory_space<vmem>>, vector<1x4xf32>
    %68 = vector.broadcast %67 : vector<1x4xf32> to vector<128x4xf32>
    %69 = arith.addf %66, %68 : vector<128x4xf32>
    %c0_55 = arith.constant 0 : index
    %c0_56 = arith.constant 0 : index
    %c0_57 = arith.constant 0 : index
    %70 = vector.load %arg2[%c0_55, %c0_56, %c0_57] : memref<1x4x128xf32, #tpu.memory_space<vmem>>, vector<1x4x128xf32>
    %71 = vector.shape_cast %70 : vector<1x4x128xf32> to vector<4x128xf32>
    %c0_58 = arith.constant 0 : index
    %c0_59 = arith.constant 0 : index
    %72 = vector.load %arg11[%c0_58, %c0_59] : memref<4x1xf32, #tpu.memory_space<vmem>>, vector<4x1xf32>
    %73 = vector.broadcast %72 : vector<4x1xf32> to vector<4x128xf32>
    %74 = arith.subf %71, %73 : vector<4x128xf32>
    %c0_60 = arith.constant 0 : index
    %c0_61 = arith.constant 0 : index
    %75 = vector.load %arg12[%c0_60, %c0_61] : memref<4x1xf32, #tpu.memory_space<vmem>>, vector<4x1xf32>
    %76 = vector.broadcast %75 : vector<4x1xf32> to vector<4x128xf32>
    %77 = arith.mulf %74, %76 : vector<4x128xf32>
    %78 = tpu.transpose %64, [1, 0] : vector<128x4xf32> -> vector<4x128xf32>
    %cst_62 = arith.constant 1.000000e+00 : f32
    %79 = vector.broadcast %cst_62 : f32 to vector<4x128xf32>
    %80 = arith.addf %79, %78 : vector<4x128xf32>
    %81 = arith.mulf %77, %80 : vector<4x128xf32>
    %82 = tpu.transpose %69, [1, 0] : vector<128x4xf32> -> vector<4x128xf32>
    %83 = arith.addf %81, %82 : vector<4x128xf32>
    %c0_63 = arith.constant 0 : index
    %c0_64 = arith.constant 0 : index
    %c0_65 = arith.constant 0 : index
    %84 = vector.load %arg13[%c0_63, %c0_64, %c0_65] : memref<1x4x128xf32, #tpu.memory_space<vmem>>, vector<1x4x128xf32>
    %85 = vector.shape_cast %84 : vector<1x4x128xf32> to vector<4x128xf32>
    %86 = vector.shape_cast %83 : vector<4x128xf32> to vector<1x4x128xf32>
    tpu.vector_store %arg13[%c0_63, %c0_64, %c0_65], %86 {strides = array<i32>} : memref<1x4x128xf32, #tpu.memory_space<vmem>>, vector<1x4x128xf32>,
    return
  }
  func.func @transform_0(%arg0: i32, %arg1: i32) -> (i32, i32, i32) {
    %c0_i32 = arith.constant 0 : i32
    %c0_i32_0 = arith.constant 0 : i32
    return %arg0, %c0_i32, %arg1 : i32, i32, i32
  }
  func.func @transform_1(%arg0: i32, %arg1: i32) -> (i32, i32, i32, i32) {
    %c0_i32 = arith.constant 0 : i32
    %c0_i32_0 = arith.constant 0 : i32
    %c0_i32_1 = arith.constant 0 : i32
    return %arg0, %arg1, %c0_i32, %c0_i32_0 : i32, i32, i32, i32
  }
  func.func @transform_2(%arg0: i32, %arg1: i32) -> (i32, i32, i32, i32, i32) {
    %c0_i32 = arith.constant 0 : i32
    %c0_i32_0 = arith.constant 0 : i32
    %c0_i32_1 = arith.constant 0 : i32
    %c0_i32_2 = arith.constant 0 : i32
    return %arg0, %arg1, %c0_i32, %c0_i32_0, %c0_i32_1 : i32, i32, i32, i32, i32
  }
  func.func @transform_3(%arg0: i32, %arg1: i32) -> (i32, i32) {
    %c0_i32 = arith.constant 0 : i32
    %c0_i32_0 = arith.constant 0 : i32
    %c0_i32_1 = arith.constant 0 : i32
    return %c0_i32, %c0_i32_0 : i32, i32
  }
  func.func @transform_4(%arg0: i32, %arg1: i32) -> (i32, i32) {
    %c0_i32 = arith.constant 0 : i32
    %c0_i32_0 = arith.constant 0 : i32
    %c0_i32_1 = arith.constant 0 : i32
    return %c0_i32, %c0_i32_0 : i32, i32
  }
  func.func @transform_5(%arg0: i32, %arg1: i32) -> (i32, i32) {
    %c0_i32 = arith.constant 0 : i32
    %c0_i32_0 = arith.constant 0 : i32
    %c0_i32_1 = arith.constant 0 : i32
    return %c0_i32, %c0_i32_0 : i32, i32
  }
  func.func @transform_6(%arg0: i32, %arg1: i32) -> (i32, i32) {
    %c0_i32 = arith.constant 0 : i32
    %c0_i32_0 = arith.constant 0 : i32
    %c0_i32_1 = arith.constant 0 : i32
    return %c0_i32, %c0_i32_0 : i32, i32
  }
  func.func @transform_7(%arg0: i32, %arg1: i32) -> (i32, i32) {
    %c0_i32 = arith.constant 0 : i32
    %c0_i32_0 = arith.constant 0 : i32
    %c0_i32_1 = arith.constant 0 : i32
    return %c0_i32, %c0_i32_0 : i32, i32
  }
  func.func @transform_8(%arg0: i32, %arg1: i32) -> (i32, i32) {
    %c0_i32 = arith.constant 0 : i32
    %c0_i32_0 = arith.constant 0 : i32
    %c0_i32_1 = arith.constant 0 : i32
    return %c0_i32, %c0_i32_0 : i32, i32
  }
  func.func @transform_9(%arg0: i32, %arg1: i32) -> (i32, i32) {
    %c0_i32 = arith.constant 0 : i32
    %c0_i32_0 = arith.constant 0 : i32
    %c0_i32_1 = arith.constant 0 : i32
    return %c0_i32, %c0_i32_0 : i32, i32
  }
  func.func @transform_10(%arg0: i32, %arg1: i32) -> (i32, i32) {
    %c0_i32 = arith.constant 0 : i32
    %c0_i32_0 = arith.constant 0 : i32
    %c0_i32_1 = arith.constant 0 : i32
    return %c0_i32, %c0_i32_0 : i32, i32
  }
  func.func @transform_11(%arg0: i32, %arg1: i32) -> (i32, i32, i32) {
    %c0_i32 = arith.constant 0 : i32
    %c0_i32_0 = arith.constant 0 : i32
    return %arg0, %c0_i32, %arg1 : i32, i32, i32
  }
}

module attributes {stable_mosaic.version = 11 : i64} {
  func.func @_spade_fused_kernel(%arg0: i32, %arg1: i32, %arg2: memref<1x4x128xf32, #tpu.memory_space<vmem>>, %arg3: memref<1x8x18x48xbf16, #tpu.memory_space<vmem>>, %arg4: memref<1x1x2x18x48xbf16, #tpu.memory_space<vmem>>, %arg5: memref<48x64xbf16, #tpu.memory_space<vmem>>, %arg6: memref<1x64xf32, #tpu.memory_space<vmem>>, %arg7: memref<576x4xbf16, #tpu.memory_space<vmem>>, %arg8: memref<576x4xbf16, #tpu.memory_space<vmem>>, %arg9: memref<1x4xf32, #tpu.memory_space<vmem>>, %arg10: memref<1x4xf32, #tpu.memory_space<vmem>>, %arg11: memref<4x1xf32, #tpu.memory_space<vmem>>, %arg12: memref<4x1xf32, #tpu.memory_space<vmem>>, %arg13: memref<1x4x128xf32, #tpu.memory_space<vmem>>, %arg14: memref<10x18x64xbf16, #tpu.memory_space<vmem>>) attributes {dimension_semantics = [#tpu.dimension_semantics<parallel>, #tpu.dimension_semantics<parallel>], iteration_bounds = array<i64: 2, 2>, scalar_prefetch = 0 : i64, scratch_operands = 1 : i64, tpu.core_type = #tpu.core_type<tc>, window_params = [{transform_indices = @transform_0, window_bounds = array<i64: 1, 4, 128>}, {transform_indices = @transform_1, window_bounds = array<i64: 1, 8, 18, 48>}, {transform_indices = @transform_2, window_bounds = array<i64: 1, 1, 2, 18, 48>}, {pipeline_mode = #tpu.pipeline_mode<synchronous>, transform_indices = @transform_3, window_bounds = array<i64: 48, 64>}, {pipeline_mode = #tpu.pipeline_mode<synchronous>, transform_indices = @transform_4, window_bounds = array<i64: 1, 64>}, {pipeline_mode = #tpu.pipeline_mode<synchronous>, transform_indices = @transform_5, window_bounds = array<i64: 576, 4>}, {pipeline_mode = #tpu.pipeline_mode<synchronous>, transform_indices = @transform_6, window_bounds = array<i64: 576, 4>}, {pipeline_mode = #tpu.pipeline_mode<synchronous>, transform_indices = @transform_7, window_bounds = array<i64: 1, 4>}, {pipeline_mode = #tpu.pipeline_mode<synchronous>, transform_indices = @transform_8, window_bounds = array<i64: 1, 4>}, {pipeline_mode = #tpu.pipeline_mode<synchronous>, transform_indices = @transform_9, window_bounds = array<i64: 4, 1>}, {pipeline_mode = #tpu.pipeline_mode<synchronous>, transform_indices = @transform_10, window_bounds = array<i64: 4, 1>}, {transform_indices = @transform_11, window_bounds = array<i64: 1, 4, 128>}]} {
    %c8_i32 = arith.constant 8 : i32
    %0 = arith.muli %arg1, %c8_i32 : i32
    %c0 = arith.constant 0 : index
    %c0_0 = arith.constant 0 : index
    %c0_1 = arith.constant 0 : index
    %c0_2 = arith.constant 0 : index
    %1 = vector.load %arg3[%c0, %c0_0, %c0_1, %c0_2] : memref<1x8x18x48xbf16, #tpu.memory_space<vmem>>, vector<1x8x18x48xbf16>
    %2 = vector.shape_cast %1 : vector<1x8x18x48xbf16> to vector<8x18x48xbf16>
    %c0_3 = arith.constant 0 : index
    %c0_4 = arith.constant 0 : index
    %c0_5 = arith.constant 0 : index
    %c0_6 = arith.constant 0 : index
    %c0_7 = arith.constant 0 : index
    %3 = vector.load %arg4[%c0_3, %c0_4, %c0_5, %c0_6, %c0_7] : memref<1x1x2x18x48xbf16, #tpu.memory_space<vmem>>, vector<1x1x2x18x48xbf16>
    %4 = vector.shape_cast %3 : vector<1x1x2x18x48xbf16> to vector<2x18x48xbf16>
    %5 = vector.extract_strided_slice %4 {offsets = [0, 0, 0], sizes = [1, 18, 48], strides = [1, 1, 1]} : vector<2x18x48xbf16> to vector<1x18x48xbf16>
    %6 = vector.extract_strided_slice %4 {offsets = [1, 0, 0], sizes = [1, 18, 48], strides = [1, 1, 1]} : vector<2x18x48xbf16> to vector<1x18x48xbf16>
    %7 = tpu.concatenate %5, %2, %6 in 0 : vector<1x18x48xbf16>, vector<8x18x48xbf16>, vector<1x18x48xbf16> -> vector<10x18x48xbf16>
    %8 = vector.shape_cast %7 : vector<10x18x48xbf16> to vector<180x48xbf16>
    %c0_8 = arith.constant 0 : index
    %c0_9 = arith.constant 0 : index
    %9 = vector.load %arg5[%c0_8, %c0_9] : memref<48x64xbf16, #tpu.memory_space<vmem>>, vector<48x64xbf16>
    %cst = arith.constant dense<0.000000e+00> : vector<180x64xf32>
    %10 = tpu.matmul %8, %9, %cst {dimension_numbers = #tpu.dot_dimension_numbers<[1], [0], [0], [1], [0, 0, 1, 1], [], []>} : vector<180x48xbf16>, vector<48x64xbf16>, vector<180x64xf32> -> vector<180x64xf32>
    %c0_10 = arith.constant 0 : index
    %c0_11 = arith.constant 0 : index
    %11 = vector.load %arg6[%c0_10, %c0_11] : memref<1x64xf32, #tpu.memory_space<vmem>>, vector<1x64xf32>
    %12 = vector.broadcast %11 : vector<1x64xf32> to vector<180x64xf32>
    %13 = arith.addf %10, %12 : vector<180x64xf32>
    %cst_12 = arith.constant 0.000000e+00 : f32
    %14 = vector.broadcast %cst_12 : f32 to vector<180x64xf32>
    %15 = arith.maximumf %13, %14 : vector<180x64xf32>
    %16 = vector.shape_cast %15 : vector<180x64xf32> to vector<10x18x64xf32>
    %17 = tpu.iota {dimensions = array<i32: 0>} : vector<10x18x1xi32>
    %c1_i32 = arith.constant 1 : i32
    %18 = arith.subi %0, %c1_i32 : i32
    %19 = vector.broadcast %18 : i32 to vector<10x18x1xi32>
    %20 = arith.addi %17, %19 : vector<10x18x1xi32>
    %21 = tpu.iota {dimensions = array<i32: 1>} : vector<10x18x1xi32>
    %c1_i32_13 = arith.constant 1 : i32
    %22 = vector.broadcast %c1_i32_13 : i32 to vector<10x18x1xi32>
    %23 = arith.subi %21, %22 : vector<10x18x1xi32>
    %c0_i32 = arith.constant 0 : i32
    %24 = vector.broadcast %c0_i32 : i32 to vector<10x18x1xi32>
    %25 = arith.cmpi sge, %20, %24 : vector<10x18x1xi32>
    %c16_i32 = arith.constant 16 : i32
    %26 = vector.broadcast %c16_i32 : i32 to vector<10x18x1xi32>
    %27 = arith.cmpi slt, %20, %26 : vector<10x18x1xi32>
    %28 = arith.andi %25, %27 : vector<10x18x1xi1>
    %c0_i32_14 = arith.constant 0 : i32
    %29 = vector.broadcast %c0_i32_14 : i32 to vector<10x18x1xi32>
    %30 = arith.cmpi sge, %23, %29 : vector<10x18x1xi32>
    %31 = arith.andi %28, %30 : vector<10x18x1xi1>
    %c16_i32_15 = arith.constant 16 : i32
    %32 = vector.broadcast %c16_i32_15 : i32 to vector<10x18x1xi32>
    %33 = arith.cmpi slt, %23, %32 : vector<10x18x1xi32>
    %34 = arith.andi %31, %33 : vector<10x18x1xi1>
    %cst_16 = arith.constant 0.000000e+00 : f32
    %35 = vector.shape_cast %34 : vector<10x18x1xi1> to vector<10x18x1xi1>
    %36 = vector.broadcast %35 : vector<10x18x1xi1> to vector<10x18x64xi1>
    %37 = vector.broadcast %cst_16 : f32 to vector<10x18x64xf32>
    %38 = arith.select %36, %16, %37 : vector<10x18x64xi1>, vector<10x18x64xf32>
    %39 = arith.truncf %38 : vector<10x18x64xf32> to vector<10x18x64xbf16>
    %c0_17 = arith.constant 0 : index
    %c0_18 = arith.constant 0 : index
    %c0_19 = arith.constant 0 : index
    %40 = vector.load %arg14[%c0_17, %c0_18, %c0_19] : memref<10x18x64xbf16, #tpu.memory_space<vmem>>, vector<10x18x64xbf16>
    tpu.vector_store %arg14[%c0_17, %c0_18, %c0_19], %39 {strides = array<i32>} : memref<10x18x64xbf16, #tpu.memory_space<vmem>>, vector<10x18x64xbf16>,
    %c0_20 = arith.constant 0 : index
    %c0_21 = arith.constant 0 : index
    %c0_22 = arith.constant 0 : index
    %41 = vector.load %arg14[%c0_20, %c0_21, %c0_22] : memref<10x18x64xbf16, #tpu.memory_space<vmem>>, vector<8x16x64xbf16>
    %42 = vector.shape_cast %41 : vector<8x16x64xbf16> to vector<128x64xbf16>
    %c0_23 = arith.constant 0 : index
    %c1 = arith.constant 1 : index
    %c0_24 = arith.constant 0 : index
    %43 = vector.load %arg14[%c0_23, %c1, %c0_24] : memref<10x18x64xbf16, #tpu.memory_space<vmem>>, vector<8x16x64xbf16>
    %44 = vector.shape_cast %43 : vector<8x16x64xbf16> to vector<128x64xbf16>
    %c0_25 = arith.constant 0 : index
    %c2 = arith.constant 2 : index
    %c0_26 = arith.constant 0 : index
    %45 = vector.load %arg14[%c0_25, %c2, %c0_26] : memref<10x18x64xbf16, #tpu.memory_space<vmem>>, vector<8x16x64xbf16>
    %46 = vector.shape_cast %45 : vector<8x16x64xbf16> to vector<128x64xbf16>
    %c1_27 = arith.constant 1 : index
    %c0_28 = arith.constant 0 : index
    %c0_29 = arith.constant 0 : index
    %47 = vector.load %arg14[%c1_27, %c0_28, %c0_29] : memref<10x18x64xbf16, #tpu.memory_space<vmem>>, vector<8x16x64xbf16>
    %48 = vector.shape_cast %47 : vector<8x16x64xbf16> to vector<128x64xbf16>
    %c1_30 = arith.constant 1 : index
    %c1_31 = arith.constant 1 : index
    %c0_32 = arith.constant 0 : index
    %49 = vector.load %arg14[%c1_30, %c1_31, %c0_32] : memref<10x18x64xbf16, #tpu.memory_space<vmem>>, vector<8x16x64xbf16>
    %50 = vector.shape_cast %49 : vector<8x16x64xbf16> to vector<128x64xbf16>
    %c1_33 = arith.constant 1 : index
    %c2_34 = arith.constant 2 : index
    %c0_35 = arith.constant 0 : index
    %51 = vector.load %arg14[%c1_33, %c2_34, %c0_35] : memref<10x18x64xbf16, #tpu.memory_space<vmem>>, vector<8x16x64xbf16>
    %52 = vector.shape_cast %51 : vector<8x16x64xbf16> to vector<128x64xbf16>
    %c2_36 = arith.constant 2 : index
    %c0_37 = arith.constant 0 : index
    %c0_38 = arith.constant 0 : index
    %53 = vector.load %arg14[%c2_36, %c0_37, %c0_38] : memref<10x18x64xbf16, #tpu.memory_space<vmem>>, vector<8x16x64xbf16>
    %54 = vector.shape_cast %53 : vector<8x16x64xbf16> to vector<128x64xbf16>
    %c2_39 = arith.constant 2 : index
    %c1_40 = arith.constant 1 : index
    %c0_41 = arith.constant 0 : index
    %55 = vector.load %arg14[%c2_39, %c1_40, %c0_41] : memref<10x18x64xbf16, #tpu.memory_space<vmem>>, vector<8x16x64xbf16>
    %56 = vector.shape_cast %55 : vector<8x16x64xbf16> to vector<128x64xbf16>
    %c2_42 = arith.constant 2 : index
    %c2_43 = arith.constant 2 : index
    %c0_44 = arith.constant 0 : index
    %57 = vector.load %arg14[%c2_42, %c2_43, %c0_44] : memref<10x18x64xbf16, #tpu.memory_space<vmem>>, vector<8x16x64xbf16>
    %58 = vector.shape_cast %57 : vector<8x16x64xbf16> to vector<128x64xbf16>
    %59 = tpu.concatenate %42, %44, %46, %48, %50, %52, %54, %56, %58 in 1 : vector<128x64xbf16>, vector<128x64xbf16>, vector<128x64xbf16>, vector<128x64xbf16>, vector<128x64xbf16>, vector<128x64xbf16>, vector<128x64xbf16>, vector<128x64xbf16>, vector<128x64xbf16> -> vector<128x576xbf16>
    %c0_45 = arith.constant 0 : index
    %c0_46 = arith.constant 0 : index
    %60 = vector.load %arg7[%c0_45, %c0_46] : memref<576x4xbf16, #tpu.memory_space<vmem>>, vector<576x4xbf16>
    %cst_47 = arith.constant dense<0.000000e+00> : vector<128x4xf32>
    %61 = tpu.matmul %59, %60, %cst_47 {dimension_numbers = #tpu.dot_dimension_numbers<[1], [0], [0], [1], [0, 0, 1, 1], [], []>} : vector<128x576xbf16>, vector<576x4xbf16>, vector<128x4xf32> -> vector<128x4xf32>
    %c0_48 = arith.constant 0 : index
    %c0_49 = arith.constant 0 : index
    %62 = vector.load %arg9[%c0_48, %c0_49] : memref<1x4xf32, #tpu.memory_space<vmem>>, vector<1x4xf32>
    %63 = vector.broadcast %62 : vector<1x4xf32> to vector<128x4xf32>
    %64 = arith.addf %61, %63 : vector<128x4xf32>
    %c0_50 = arith.constant 0 : index
    %c0_51 = arith.constant 0 : index
    %65 = vector.load %arg8[%c0_50, %c0_51] : memref<576x4xbf16, #tpu.memory_space<vmem>>, vector<576x4xbf16>
    %cst_52 = arith.constant dense<0.000000e+00> : vector<128x4xf32>
    %66 = tpu.matmul %59, %65, %cst_52 {dimension_numbers = #tpu.dot_dimension_numbers<[1], [0], [0], [1], [0, 0, 1, 1], [], []>} : vector<128x576xbf16>, vector<576x4xbf16>, vector<128x4xf32> -> vector<128x4xf32>
    %c0_53 = arith.constant 0 : index
    %c0_54 = arith.constant 0 : index
    %67 = vector.load %arg10[%c0_53, %c0_54] : memref<1x4xf32, #tpu.memory_space<vmem>>, vector<1x4xf32>
    %68 = vector.broadcast %67 : vector<1x4xf32> to vector<128x4xf32>
    %69 = arith.addf %66, %68 : vector<128x4xf32>
    %c0_55 = arith.constant 0 : index
    %c0_56 = arith.constant 0 : index
    %c0_57 = arith.constant 0 : index
    %70 = vector.load %arg2[%c0_55, %c0_56, %c0_57] : memref<1x4x128xf32, #tpu.memory_space<vmem>>, vector<1x4x128xf32>
    %71 = vector.shape_cast %70 : vector<1x4x128xf32> to vector<4x128xf32>
    %c0_58 = arith.constant 0 : index
    %c0_59 = arith.constant 0 : index
    %72 = vector.load %arg11[%c0_58, %c0_59] : memref<4x1xf32, #tpu.memory_space<vmem>>, vector<4x1xf32>
    %73 = vector.broadcast %72 : vector<4x1xf32> to vector<4x128xf32>
    %74 = arith.subf %71, %73 : vector<4x128xf32>
    %c0_60 = arith.constant 0 : index
    %c0_61 = arith.constant 0 : index
    %75 = vector.load %arg12[%c0_60, %c0_61] : memref<4x1xf32, #tpu.memory_space<vmem>>, vector<4x1xf32>
    %76 = vector.broadcast %75 : vector<4x1xf32> to vector<4x128xf32>
    %77 = arith.mulf %74, %76 : vector<4x128xf32>
    %78 = tpu.transpose %64, [1, 0] : vector<128x4xf32> -> vector<4x128xf32>
    %cst_62 = arith.constant 1.000000e+00 : f32
    %79 = vector.broadcast %cst_62 : f32 to vector<4x128xf32>
    %80 = arith.addf %79, %78 : vector<4x128xf32>
    %81 = arith.mulf %77, %80 : vector<4x128xf32>
    %82 = tpu.transpose %69, [1, 0] : vector<128x4xf32> -> vector<4x128xf32>
    %83 = arith.addf %81, %82 : vector<4x128xf32>
    %c0_63 = arith.constant 0 : index
    %c0_64 = arith.constant 0 : index
    %c0_65 = arith.constant 0 : index
    %84 = vector.load %arg13[%c0_63, %c0_64, %c0_65] : memref<1x4x128xf32, #tpu.memory_space<vmem>>, vector<1x4x128xf32>
    %85 = vector.shape_cast %84 : vector<1x4x128xf32> to vector<4x128xf32>
    %86 = vector.shape_cast %83 : vector<4x128xf32> to vector<1x4x128xf32>
    tpu.vector_store %arg13[%c0_63, %c0_64, %c0_65], %86 {strides = array<i32>} : memref<1x4x128xf32, #tpu.memory_space<vmem>>, vector<1x4x128xf32>,
    return
  }
  func.func @transform_0(%arg0: i32, %arg1: i32) -> (i32, i32, i32) {
    %c0_i32 = arith.constant 0 : i32
    %c0_i32_0 = arith.constant 0 : i32
    return %arg0, %c0_i32, %arg1 : i32, i32, i32
  }
  func.func @transform_1(%arg0: i32, %arg1: i32) -> (i32, i32, i32, i32) {
    %c0_i32 = arith.constant 0 : i32
    %c0_i32_0 = arith.constant 0 : i32
    %c0_i32_1 = arith.constant 0 : i32
    return %arg0, %arg1, %c0_i32, %c0_i32_0 : i32, i32, i32, i32
  }
  func.func @transform_2(%arg0: i32, %arg1: i32) -> (i32, i32, i32, i32, i32) {
    %c0_i32 = arith.constant 0 : i32
    %c0_i32_0 = arith.constant 0 : i32
    %c0_i32_1 = arith.constant 0 : i32
    %c0_i32_2 = arith.constant 0 : i32
    return %arg0, %arg1, %c0_i32, %c0_i32_0, %c0_i32_1 : i32, i32, i32, i32, i32
  }
  func.func @transform_3(%arg0: i32, %arg1: i32) -> (i32, i32) {
    %c0_i32 = arith.constant 0 : i32
    %c0_i32_0 = arith.constant 0 : i32
    %c0_i32_1 = arith.constant 0 : i32
    return %c0_i32, %c0_i32_0 : i32, i32
  }
  func.func @transform_4(%arg0: i32, %arg1: i32) -> (i32, i32) {
    %c0_i32 = arith.constant 0 : i32
    %c0_i32_0 = arith.constant 0 : i32
    %c0_i32_1 = arith.constant 0 : i32
    return %c0_i32, %c0_i32_0 : i32, i32
  }
  func.func @transform_5(%arg0: i32, %arg1: i32) -> (i32, i32) {
    %c0_i32 = arith.constant 0 : i32
    %c0_i32_0 = arith.constant 0 : i32
    %c0_i32_1 = arith.constant 0 : i32
    return %c0_i32, %c0_i32_0 : i32, i32
  }
  func.func @transform_6(%arg0: i32, %arg1: i32) -> (i32, i32) {
    %c0_i32 = arith.constant 0 : i32
    %c0_i32_0 = arith.constant 0 : i32
    %c0_i32_1 = arith.constant 0 : i32
    return %c0_i32, %c0_i32_0 : i32, i32
  }
  func.func @transform_7(%arg0: i32, %arg1: i32) -> (i32, i32) {
    %c0_i32 = arith.constant 0 : i32
    %c0_i32_0 = arith.constant 0 : i32
    %c0_i32_1 = arith.constant 0 : i32
    return %c0_i32, %c0_i32_0 : i32, i32
  }
  func.func @transform_8(%arg0: i32, %arg1: i32) -> (i32, i32) {
    %c0_i32 = arith.constant 0 : i32
    %c0_i32_0 = arith.constant 0 : i32
    %c0_i32_1 = arith.constant 0 : i32
    return %c0_i32, %c0_i32_0 : i32, i32
  }
  func.func @transform_9(%arg0: i32, %arg1: i32) -> (i32, i32) {
    %c0_i32 = arith.constant 0 : i32
    %c0_i32_0 = arith.constant 0 : i32
    %c0_i32_1 = arith.constant 0 : i32
    return %c0_i32, %c0_i32_0 : i32, i32
  }
  func.func @transform_10(%arg0: i32, %arg1: i32) -> (i32, i32) {
    %c0_i32 = arith.constant 0 : i32
    %c0_i32_0 = arith.constant 0 : i32
    %c0_i32_1 = arith.constant 0 : i32
    return %c0_i32, %c0_i32_0 : i32, i32
  }
  func.func @transform_11(%arg0: i32, %arg1: i32) -> (i32, i32, i32) {
    %c0_i32 = arith.constant 0 : i32
    %c0_i32_0 = arith.constant 0 : i32
    return %arg0, %c0_i32, %arg1 : i32, i32, i32
  }
}

</mosaic_0001>

<bundles_post_ra>
// kernel: spatially_adaptive_norm.3
= control target key start
LH: loop header
LB: loop body
LE: loop exit
PB: predicated region body
PF: predicated region fallthrough
CT: control target
= control target key end

     0   :  { %s293_s6 = smov 0   ;;  %s295_s7 = smov 0   ;;  %s350_s0 = inlined_call_operand.vmem [shape: f32[2,4,256], index: 0, kind: input, shape index: {}]   ;;  %s351_s1 = inlined_call_operand.vmem [shape: f32[4,2], index: 1, kind: output, shape index: {}]  }
   0x1   :  { %s297_s8 = smov 0   ;;  %s299_s9 = smov 0  }
   0x2   :  { %s301_s10 = smov 0  }
   0x3 LB: > { %s20_s11 = sadd.s32 1, %s272_s8  ;;  %s23_s12 = sadd.s32 1, %s276_s9  ;;  %s280_s10 = sphi %s301_s10, %s11_s10   ;;  %s276_s9 = sphi %s299_s9, %s355_s9   ;;  %s272_s8 = sphi %s297_s8, %s354_s8   ;;  %s268_s7 = sphi %s295_s7, %s353_s7   ;;  %s264_s6 = sphi %s293_s6, %s352_s6  }
   0x4   : > { %p21_p0 = scmp.ge.s32.totalorder %s20_s11, 2  ;;  %p196_p1 = scmp.ge.s32.totalorder %s280_s10, 1 }
   0x5   : > { %p99_p2 = scmp.lt.s32.totalorder %s280_s10, 5 }
   0x6   : > { %s357_s11 = smov (%p21_p0, %s20_s11), 0  ;;  %s359_s12 = smov (!%p21_p0, %s23_s12), %s276_s9 }
   0x7   : > { %p100_p3 = pnand %p196_p1, %p99_p2  ;;  %p25_p4 = scmp.ge.s32.totalorder %s359_s12, 2 }
   0x8   : > { %p117_p5 = scmp.lt.s32.totalorder (!%p100_p3), %s268_s7, 1  ;;  %p119_p6 = scmp.lt.s32.totalorder (!%p100_p3), %s264_s6, 1 }
   0x9   : > { %s361_s12 = smov (%p25_p4, %s359_s12), 0  ;;  %103 = sbr.rel (%p100_p3) target bundleno = 170 (0xaa), region = 24 }
   0xa   : > { %p125_p7 = scmp.eq.s32.totalorder (!%p100_p3), %s268_s7, 0  ;;  %p126_p8 = scmp.eq.s32.totalorder (!%p100_p3), %s264_s6, 0 }
   0xc   : > { %p127_p9 = pnand (!%p100_p3), %p126_p8, %p125_p7 }
   0xe   : > { %s363_s7 = smov (!%p117_p5, %s268_s7), 1  ;;  %s365_s6 = smov (!%p119_p6, %s264_s6), 1 }
   0xf   : > { %s197_s13 = sshll.u32 %s363_s7, 1  ;;  %130 = sbr.rel (%p127_p9) target bundleno = 22 (0x16), region = 28 }
  0x10   : > { %s122_s14 = sadd.s32 %s197_s13, %s365_s6 }
  0x11   : > { %s198_s15 = sshll.u32 %s122_s14, 2 }
  0x12   : > { %s124_s18 = scalar_lea.vmem %s350_s0, %s198_s15 }
  0x14   : > { %vm131_vm0 = vcmask 11264   ;;  %v282_v0 = vmov 0.0  }
  0x15   : > { %132 = vst.msk [vmem:[%s351_s1] sm:$0xf] %vm131_vm0, %v282_v0 }
  0x16 PF: > { %v133_v1 = vld [vmem:[%s124_s18] sm:$0xf]  ;;  %vm134_vm1 = vcmask 1043456   ;;  %vm143_vm2 = vcmask 7168   ;;  %vm146_vm3 = vcmask 11264  }
  0x17   : > { %v135_v2 = vsel %vm134_vm1, %v133_v1, 0.0  ;;  %v138_v3 = vmul.f32 %v133_v1, %v133_v1 }
  0x18   : > { %136 = vadd.xlane.f32.xlu0 %v135_v2 }
  0x19   : > { %v139_v4 = vsel %vm134_vm1, %v138_v3, 0.0 }
  0x1c   : > { %140 = vadd.xlane.f32.xlu0 %v139_v4  ;;  %v142_v6 = vld [vmem:[%s351_s1] sm:$0xf] }
  0xa1   : > { %v137_v5 = vpop.xlane.xlu0 %136 }
  0xa5   : > { %v141_v7 = vpop.xlane.xlu0 %140 }
  0xa6   : > { %v144_v8 = vsel %vm143_vm2, %v137_v5, %v141_v7 }
  0xa7   : > { %v145_v9 = vadd.f32 %v144_v8, %v142_v6 }
  0xa9   : > { %147 = vst.msk [vmem:[%s351_s1] sm:$0xf] %vm146_vm3, %v145_v9 }
  0xaa PF: > { %s11_s10 = sadd.s32 1, %s280_s10   ;;  %s352_s6 = smov %s272_s8 }
  0xab   : > { %p8_p10 = scmp.ge.s32.totalorder %s11_s10, 6   ;;  %s353_s7 = smov %s276_s9 }
  0xac   : > { %s354_s8 = smov %s357_s11  ;;  %s355_s9 = smov %s361_s12 }
  0xad   :  { %10 = sbr.rel (!%p8_p10) target bundleno = 3 (0x3), region = 54 }

// kernel: spatially_adaptive_norm.4
= control target key start
LH: loop header
LB: loop body
LE: loop exit
PB: predicated region body
PF: predicated region fallthrough
CT: control target
= control target key end

     0   :  { %s8109_s17 = smov 0   ;;  %s8111_s18 = smov 0   ;;  %s10514_s0 = inlined_call_operand.vmem [shape: f32[2,4,256], index: 0, kind: input, shape index: {}]   ;;  %s10515_s1 = inlined_call_operand.vmem [shape: bf16[2,16,18,32], index: 1, kind: input, shape index: {}]   ;;  %s10516_s2 = inlined_call_operand.vmem [shape: bf16[2,2,2,18,32], index: 2, kind: input, shape index: {}]   ;;  %s10517_s3 = inlined_call_operand.vmem [shape: bf16[32,128], index: 3, kind: input, shape index: {}]   ;;  %s10518_s4 = inlined_call_operand.vmem [shape: f32[1,128], index: 4, kind: input, shape index: {}]   ;;  %s10519_s5 = inlined_call_operand.vmem [shape: bf16[1152,4], index: 5, kind: input, shape index: {}]   ;;  %s10520_s6 = inlined_call_operand.vmem [shape: bf16[1152,4], index: 6, kind: input, shape index: {}]   ;;  %s10521_s7 = inlined_call_operand.vmem [shape: f32[1,4], index: 7, kind: input, shape index: {}]   ;;  %s10522_s8 = inlined_call_operand.vmem [shape: f32[1,4], index: 8, kind: input, shape index: {}]   ;;  %s10523_s9 = inlined_call_operand.vmem [shape: f32[4,1], index: 9, kind: input, shape index: {}]   ;;  %s10524_s10 = inlined_call_operand.vmem [shape: f32[4,1], index: 10, kind: input, shape index: {}]   ;;  %s10525_s11 = inlined_call_operand.vmem [shape: f32[2,4,256], index: 11, kind: output, shape index: {}]  }
   0x1   :  { %10567 = sst [smem:[#allocation44_spill]] %s10517_s3  ;;  %s8113_s19 = smov 0  }
   0x2   :  { %s8115_s20 = smov 0   ;;  %s8117_s21 = smov 0  }
   0x3 LB: > { %s30_s22 = sadd.s32 1, %s8036_s19  ;;  %s33_s23 = sadd.s32 1, %s8040_s20  ;;  %s8044_s21 = sphi %s8117_s21, %s21_s21   ;;  %s8040_s20 = sphi %s8115_s20, %s10786_s20   ;;  %s8036_s19 = sphi %s8113_s19, %s10785_s19   ;;  %s8032_s18 = sphi %s8111_s18, %s10784_s18   ;;  %s8028_s17 = sphi %s8109_s17, %s10783_s17  }
   0x4   : > { %p31_p0 = scmp.ge.s32.totalorder %s30_s22, 2  ;;  %p6730_p1 = scmp.ge.s32.totalorder %s8044_s21, 1 }
   0x5   : > { %p390_p2 = scmp.lt.s32.totalorder %s8044_s21, 5 }
   0x6   : > { %s10788_s22 = smov (%p31_p0, %s30_s22), 0  ;;  %s10790_s23 = smov (!%p31_p0, %s33_s23), %s8040_s20 }
   0x7   : > { %p391_p3 = pnand %p6730_p1, %p390_p2  ;;  %p35_p4 = scmp.ge.s32.totalorder %s10790_s23, 2 }
   0x9   : > { %s10792_s23 = smov (%p35_p4, %s10790_s23), 0  ;;  %394 = sbr.rel (%p391_p3) target bundleno = 924 (0x39c), region = 64 }
   0xe   : > { %s10568_s3 = sld [smem:[#allocation44_spill]]  ;;  %p455_p5 = scmp.lt.s32.totalorder %s8032_s18, 1  ;;  %v564_v1 = vlaneseq  ;;  %v8046_v3 = vmov 1966171168   ;;  %vm1750_vm0 = vcmask 261120  }
   0xf   : > { %p457_p6 = scmp.lt.s32.totalorder %s8028_s17, 1  ;;  %v562_v4 = vunpack.c.l.s4 %v8046_v3  ;;  %s8156_s29 = sshll.u32 %s8028_s17, 3 }
  0x10   : > { %s10794_s18 = smov (!%p455_p5, %s8032_s18), 1  ;;  %v8153_v5 = vshrl.u32 %v564_v1, 7  ;;  %p466_p7 = scmp.lt.s32.totalorder %s8156_s29, 15 }
  0x11   : > { %s8151_s28 = scalar_select %p457_p6, %s8028_s17, 1  ;;  %v563_v6 = vunpack.c.0.s8 %v562_v4 }
  0x12   : > { %s7786_s30 = smul.u32 48, %s10794_s18 }
  0x13   : > { %s7787_s12 = smul.u32 6, %s8151_s28  ;;  %v8164_v7 = vsub.s32 %v563_v6, %v8153_v5 }
  0x14   : > { %v7833_v0 = vld [vmem:[%s10568_s3 + $0x8] sm:$0xff]   ;;  %v7834_v2 = vld [vmem:[%s10568_s3] sm:$0xff]   ;;  %s7788_s13 = smul.u32 12, %s10794_s18 }
  0x15   : > { %7689 = vmatprep.subr.bf16.mxu0 %v7833_v0  ;;  %7781 = vmatprep.subr.bf16.mxu1 %v7833_v0  ;;  %s467_s14 = scalar_select %p466_p7, %s8156_s29, 15 }
  0x16   : > { %7690 = vmatpush3.bf16.msra.mxu0 %v7833_v0  ;;  %7783 = vmatpush3.bf16.msra.mxu1 %v7833_v0  ;;  %s480_s15 = sadd.s32 %s7788_s13, %s7787_s12 }
  0x17   : > { %7691 = vmatprep.subr.bf16.mxu0 %v7834_v2  ;;  %7782 = vmatprep.subr.bf16.mxu1 %v7834_v2  ;;  %s7785_s16 = smul.u32 3, %s467_s14  ;;  %s6735_s24 = sshll.u32 %s480_s15, 2 }
  0x18   : > { %s8169_s26 = scalar_lea.vmem %s10516_s2, %s6735_s24 }
  0x19   : > { %s470_s27 = sadd.s32 %s7786_s30, %s7785_s16  ;;  %v6739_v8 = vld.sshfl [vmem:[%s8169_s26] sm:$0x33 pattern:$0x75316420] }
  0x1a   : > { %7692 = vmatpush3.bf16.msra.mxu0 %v7834_v2  ;;  %7784 = vmatpush3.bf16.msra.mxu1 %v7834_v2  ;;  %s6734_s3 = sshll.u32 %s470_s27, 2  ;;  %v6740_v9 = vld.sshfl [vmem:[%s8169_s26 + $0x4] sm:$0x33 pattern:$0x75316420]  ;;  %v560_v10 = vcombine.high %v6739_v8, %v6739_v8  ;;  %v567_v11 = vrot.slane %v6739_v8, %v8164_v7  ;;  %s6794_s27 = sadd.s32 4294967295, %s8156_s29 }
  0x1b   : > { %s8177_s14 = scalar_lea.vmem %s10515_s1, %s6734_s3  ;;  %v584_v12 = vcombine.high %v6740_v9, %v6740_v9  ;;  %v591_v13 = vrot.slane %v6740_v9, %v8164_v7  ;;  %v6741_v14 = vld.sshfl [vmem:[%s8169_s26 + $0x8] sm:$0x1 pattern:$0x75316420] }
  0x1c   : > { %v574_v15 = vrot.slane %v560_v10, %v8164_v7  ;;  %v6742_v16 = vld.sshfl [vmem:[%s8177_s14] sm:$0x33 pattern:$0x75316420]  ;;  %v614_v19 = vrot.slane %v6741_v14, %v8164_v7 }
  0x1d   : > { %v598_v17 = vrot.slane %v584_v12, %v8164_v7  ;;  %v6743_v18 = vld.sshfl [vmem:[%s8177_s14 + $0x4] sm:$0x33 pattern:$0x75316420]  ;;  %v622_v20 = vcombine.high %v6742_v16, %v6742_v16  ;;  %v629_v21 = vrot.slane %v6742_v16, %v8164_v7 }
  0x1e   : > { %v1184_v22 = vcombine.low %v567_v11, %v574_v15  ;;  %v6770_v23 = vcombine.high %v567_v11, %v574_v15  ;;  %v646_v24 = vcombine.high %v6743_v18, %v6743_v18  ;;  %v653_v25 = vrot.slane %v6743_v18, %v8164_v7  ;;  %v6744_v34 = vld.sshfl [vmem:[%s8177_s14 + $0x8] sm:$0x1 pattern:$0x75316420] }
  0x1f   : > { %v1186_v26 = vcombine.low %v591_v13, %v598_v17  ;;  %v6771_v27 = vcombine.high %v591_v13, %v598_v17  ;;  %v636_v28 = vrot.slane %v622_v20, %v8164_v7  ;;  %v637_v29 = vcombine.high %v629_v21, %v629_v21  ;;  %v6745_v39 = vld.sshfl [vmem:[%s8177_s14 + $0xc] sm:$0x33 pattern:$0x75316420] }
  0x20   : > { %v1194_v30 = vrot.slane %v1184_v22, %v8164_v7  ;;  %v1201_v31 = vrot.slane %v6770_v23, %v8164_v7  ;;  %v660_v32 = vrot.slane %v646_v24, %v8164_v7  ;;  %v661_v33 = vcombine.high %v653_v25, %v653_v25  ;;  %v6746_v43 = vld.sshfl [vmem:[%s8177_s14 + $0x10] sm:$0x33 pattern:$0x75316420] }
  0x21   : > { %v1208_v35 = vrot.slane %v1186_v26, %v8164_v7  ;;  %v1215_v36 = vrot.slane %v6771_v27, %v8164_v7  ;;  %v638_v37 = vcombine.high %v636_v28, %v636_v28  ;;  %v1233_v38 = vcombine.low %v614_v19, %v629_v21  ;;  %v6747_v53 = vld.sshfl [vmem:[%s8177_s14 + $0x14] sm:$0x1 pattern:$0x75316420] }
  0x22   : > { %v1216_v40 = vcombine.low %v1194_v30, %v1201_v31  ;;  %v1234_v41 = vcombine.low %v636_v28, %v637_v29  ;;  %v1236_v42 = vcombine.low %v660_v32, %v661_v33  ;;  %v662_v44 = vcombine.high %v660_v32, %v660_v32  ;;  %v6748_v62 = vld.sshfl [vmem:[%s8177_s14 + $0x18] sm:$0x33 pattern:$0x75316420] }
  0x23   : > { %v1217_v45 = vcombine.low %v1208_v35, %v1215_v36  ;;  %v1235_v46 = vcombine.low %v638_v37, %v653_v25  ;;  %v1243_v47 = vrot.slane %v1233_v38, %v8164_v7  ;;  %v676_v48 = vrot.slane %v6744_v34, %v8164_v7  ;;  %v6749_v2 = vld.sshfl [vmem:[%s8177_s14 + $0x1c] sm:$0x33 pattern:$0x75316420] }
  0x24   : > { %v1224_v49 = vrot.slane %v1216_v40, %v8164_v7  ;;  %v1250_v50 = vrot.slane %v1234_v41, %v8164_v7  ;;  %v1264_v51 = vrot.slane %v1236_v42, %v8164_v7  ;;  %v684_v52 = vcombine.high %v6745_v39, %v6745_v39  ;;  %v6750_v22 = vld.sshfl [vmem:[%s8177_s14 + $0x20] sm:$0x1 pattern:$0x75316420] }
  0x25   : > { %v1231_v54 = vrot.slane %v1217_v45, %v8164_v7  ;;  %v1257_v55 = vrot.slane %v1235_v46, %v8164_v7  ;;  %v691_v56 = vrot.slane %v6745_v39, %v8164_v7  ;;  %v708_v57 = vcombine.high %v6746_v43, %v6746_v43  ;;  %v6751_v26 = vld.sshfl [vmem:[%s8177_s14 + $0x24] sm:$0x33 pattern:$0x75316420] }
  0x26   : > { %v1265_v58 = vcombine.low %v1243_v47, %v1250_v50  ;;  %v698_v59 = vrot.slane %v684_v52, %v8164_v7  ;;  %v715_v60 = vrot.slane %v6746_v43, %v8164_v7  ;;  %v1282_v61 = vcombine.low %v662_v44, %v676_v48  ;;  %v6752_v36 = vld.sshfl [vmem:[%s8177_s14 + $0x28] sm:$0x33 pattern:$0x75316420] }
  0x27   : > { %v1232_v63 = vcombine.low %v1224_v49, %v1231_v54  ;;  %v1266_v0 = vcombine.low %v1257_v55, %v1264_v51  ;;  %v722_v1 = vrot.slane %v708_v57, %v8164_v7  ;;  %v738_v3 = vrot.slane %v6747_v53, %v8164_v7  ;;  %v6753_v45 = vld.sshfl [vmem:[%s8177_s14 + $0x2c] sm:$0x1 pattern:$0x75316420] }
  0x28   : > { %v1273_v4 = vrot.slane %v1265_v58, %v8164_v7  ;;  %v1283_v6 = vcombine.low %v691_v56, %v698_v59  ;;  %v6772_v8 = vcombine.high %v691_v56, %v698_v59  ;;  %v1292_v9 = vrot.slane %v1282_v61, %v8164_v7  ;;  %v6754_v49 = vld.sshfl [vmem:[%s8177_s14 + $0x30] sm:$0x33 pattern:$0x75316420] }
  0x29   : > { %7693 = vmatprep.mubr.msk.bf16.mxu0 %vm1750_vm0, %v1232_v63  ;;  %v1280_v10 = vrot.slane %v1266_v0, %v8164_v7  ;;  %v1285_v11 = vcombine.low %v715_v60, %v722_v1  ;;  %v746_v12 = vcombine.high %v6748_v62, %v6748_v62  ;;  %v753_v13 = vrot.slane %v6748_v62, %v8164_v7  ;;  %v6755_v63 = vld.sshfl [vmem:[%s8177_s14 + $0x34] sm:$0x33 pattern:$0x75316420] }
  0x2a   : > { %v1299_v14 = vrot.slane %v1283_v6, %v8164_v7  ;;  %v1306_v15 = vrot.slane %v6772_v8, %v8164_v7  ;;  %v777_v16 = vrot.slane %v6749_v2, %v8164_v7  ;;  %v6773_v17 = vcombine.high %v715_v60, %v722_v1 }
  0x2b   : > { %v1281_v18 = vcombine.low %v1273_v4, %v1280_v10  ;;  %v1313_v19 = vrot.slane %v1285_v11, %v8164_v7  ;;  %v760_v20 = vrot.slane %v746_v12, %v8164_v7  ;;  %v761_v21 = vcombine.high %v753_v13, %v753_v13  ;;  %v6756_v4 = vld.sshfl [vmem:[%s8177_s14 + $0x38] sm:$0x1 pattern:$0x75316420] }
  0x2c   : > { %v1314_v23 = vcombine.low %v1292_v9, %v1299_v14  ;;  %v1332_v24 = vcombine.low %v738_v3, %v753_v13  ;;  %v1341_v25 = vrot.slane %v6773_v17, %v8164_v7  ;;  %v770_v27 = vcombine.high %v6749_v2, %v6749_v2  ;;  %v6757_v11 = vld.sshfl [vmem:[%s8177_s14 + $0x3c] sm:$0x33 pattern:$0x75316420] }
  0x2d   : > { %7694 = vmatmul.mubr.msk.bf16.vlgmr.msra.gmra.mxu0 %vm1750_vm0, %v1281_v18  ;;  %v1315_v28 = vcombine.low %v1306_v15, %v1313_v19  ;;  %v762_v29 = vcombine.high %v760_v20, %v760_v20  ;;  %v1333_v30 = vcombine.low %v760_v20, %v761_v21  ;;  %v785_v31 = vcombine.high %v777_v16, %v777_v16  ;;  %v6758_v20 = vld.sshfl [vmem:[%s8177_s14 + $0x40] sm:$0x33 pattern:$0x75316420] }
  0x2e   : > { %v1322_v32 = vrot.slane %v1314_v23, %v8164_v7  ;;  %v1348_v33 = vrot.slane %v1332_v24, %v8164_v7  ;;  %v784_v34 = vrot.slane %v770_v27, %v8164_v7  ;;  %v800_v35 = vrot.slane %v6750_v22, %v8164_v7 }
  0x2f   : > { %v1329_v37 = vrot.slane %v1315_v28, %v8164_v7  ;;  %v1334_v38 = vcombine.low %v762_v29, %v777_v16  ;;  %v1355_v39 = vrot.slane %v1333_v30, %v8164_v7  ;;  %v808_v40 = vcombine.high %v6751_v26, %v6751_v26  ;;  %v6760_v30 = vld.sshfl [vmem:[%s8177_s14 + $0x48] sm:$0x33 pattern:$0x75316420] }
  0x30   : > { %v1363_v41 = vcombine.low %v1341_v25, %v1348_v33  ;;  %v786_v42 = vcombine.high %v784_v34, %v784_v34  ;;  %v815_v43 = vrot.slane %v6751_v26, %v8164_v7  ;;  %v1380_v44 = vcombine.low %v784_v34, %v785_v31  ;;  %v6759_v25 = vld.sshfl [vmem:[%s8177_s14 + $0x44] sm:$0x1 pattern:$0x75316420] }
  0x31   : > { %v1330_v46 = vcombine.low %v1322_v32, %v1329_v37  ;;  %v1362_v47 = vrot.slane %v1334_v38, %v8164_v7  ;;  %v822_v48 = vrot.slane %v808_v40, %v8164_v7  ;;  %v832_v50 = vcombine.high %v6752_v36, %v6752_v36 }
  0x32   : > { %v1371_v51 = vrot.slane %v1363_v41, %v8164_v7  ;;  %v1381_v52 = vcombine.low %v786_v42, %v800_v35  ;;  %v1390_v53 = vrot.slane %v1380_v44, %v8164_v7  ;;  %v839_v54 = vrot.slane %v6752_v36, %v8164_v7 }
  0x33   : > { %7697 = vmatprep.mubr.msk.bf16.mxu0 %vm1750_vm0, %v1330_v46  ;;  %v1364_v55 = vcombine.low %v1355_v39, %v1362_v47  ;;  %v1382_v56 = vcombine.low %v815_v43, %v822_v48  ;;  %v6774_v57 = vcombine.high %v815_v43, %v822_v48  ;;  %v846_v58 = vrot.slane %v832_v50, %v8164_v7 }
  0x34   : > { %v1397_v59 = vrot.slane %v1381_v52, %v8164_v7  ;;  %v862_v60 = vrot.slane %v6753_v45, %v8164_v7  ;;  %v870_v61 = vcombine.high %v6754_v49, %v6754_v49  ;;  %v877_v62 = vrot.slane %v6754_v49, %v8164_v7 }
  0x35   : > { %v1378_v0 = vrot.slane %v1364_v55, %v8164_v7  ;;  %v1404_v1 = vrot.slane %v1382_v56, %v8164_v7  ;;  %v1411_v2 = vrot.slane %v6774_v57, %v8164_v7  ;;  %v1429_v3 = vcombine.low %v839_v54, %v846_v58  ;;  %v6762_v55 = vld.sshfl [vmem:[%s8177_s14 + $0x50] sm:$0x1 pattern:$0x75316420] }
  0x36   : > { %v1412_v6 = vcombine.low %v1390_v53, %v1397_v59  ;;  %v884_v8 = vrot.slane %v870_v61, %v8164_v7  ;;  %v885_v9 = vcombine.high %v877_v62, %v877_v62  ;;  %v6775_v10 = vcombine.high %v839_v54, %v846_v58 }
  0x37   : > { %v1379_v12 = vcombine.low %v1371_v51, %v1378_v0  ;;  %v1413_v13 = vcombine.low %v1404_v1, %v1411_v2  ;;  %v1431_v14 = vcombine.low %v862_v60, %v877_v62  ;;  %v1439_v15 = vrot.slane %v1429_v3, %v8164_v7  ;;  %v6761_v51 = vld.sshfl [vmem:[%s8177_s14 + $0x4c] sm:$0x33 pattern:$0x75316420] }
  0x38   : > { %v1420_v16 = vrot.slane %v1412_v6, %v8164_v7  ;;  %v1432_v17 = vcombine.low %v884_v8, %v885_v9  ;;  %v1446_v18 = vrot.slane %v6775_v10, %v8164_v7  ;;  %v886_v19 = vcombine.high %v884_v8, %v884_v8  ;;  %v6763_v1 = vld.sshfl [vmem:[%s8177_s14 + $0x54] sm:$0x33 pattern:$0x75316420] }
  0x39   : > { %7698 = vmatmul.mubr.msk.bf16.gmra.mxu0 %vm1750_vm0, %v1379_v12  ;;  %v1427_v21 = vrot.slane %v1413_v13, %v8164_v7  ;;  %v1453_v22 = vrot.slane %v1431_v14, %v8164_v7  ;;  %v894_v23 = vcombine.high %v6755_v63, %v6755_v63  ;;  %v901_v24 = vrot.slane %v6755_v63, %v8164_v7  ;;  %v6764_v12 = vld.sshfl [vmem:[%s8177_s14 + $0x58] sm:$0x33 pattern:$0x75316420] }
  0x3a   : > { %v1460_v26 = vrot.slane %v1432_v17, %v8164_v7  ;;  %v1461_v27 = vcombine.low %v1439_v15, %v1446_v18  ;;  %v924_v28 = vrot.slane %v6756_v4, %v8164_v7  ;;  %v932_v29 = vcombine.high %v6757_v11, %v6757_v11 }
  0x3b   : > { %v1428_v31 = vcombine.low %v1420_v16, %v1427_v21  ;;  %v908_v32 = vrot.slane %v894_v23, %v8164_v7  ;;  %v909_v33 = vcombine.high %v901_v24, %v901_v24  ;;  %v939_v34 = vrot.slane %v6757_v11, %v8164_v7  ;;  %v6765_v21 = vld.sshfl [vmem:[%s8177_s14 + $0x5c] sm:$0x1 pattern:$0x75316420] }
  0x3c   : > { %v1462_v35 = vcombine.low %v1453_v22, %v1460_v26  ;;  %v1469_v36 = vrot.slane %v1461_v27, %v8164_v7  ;;  %v946_v37 = vrot.slane %v932_v29, %v8164_v7  ;;  %v1478_v38 = vcombine.low %v886_v19, %v901_v24  ;;  %v6766_v26 = vld.sshfl [vmem:[%s8169_s26 + $0xc] sm:$0x33 pattern:$0x75316420] }
  0x3d   : > { %7701 = vmatprep.mubr.msk.bf16.mxu0 %vm1750_vm0, %v1428_v31  ;;  %v910_v39 = vcombine.high %v908_v32, %v908_v32  ;;  %v1479_v40 = vcombine.low %v908_v32, %v909_v33  ;;  %v956_v41 = vcombine.high %v6758_v20, %v6758_v20  ;;  %v963_v42 = vrot.slane %v6758_v20, %v8164_v7 }
  0x3e   : > { %v1476_v43 = vrot.slane %v1462_v35, %v8164_v7  ;;  %v1481_v44 = vcombine.low %v939_v34, %v946_v37  ;;  %v1488_v45 = vrot.slane %v1478_v38, %v8164_v7  ;;  %v986_v46 = vrot.slane %v6759_v25, %v8164_v7  ;;  %v6767_v35 = vld.sshfl [vmem:[%s8169_s26 + $0x10] sm:$0x33 pattern:$0x75316420] }
  0x3f   : > { %v1480_v47 = vcombine.low %v910_v39, %v924_v28  ;;  %v1495_v48 = vrot.slane %v1479_v40, %v8164_v7  ;;  %v970_v49 = vrot.slane %v956_v41, %v8164_v7  ;;  %v1001_v50 = vrot.slane %v6760_v30, %v8164_v7 }
  0x40   : > { %v1477_v52 = vcombine.low %v1469_v36, %v1476_v43  ;;  %v1509_v53 = vrot.slane %v1481_v44, %v8164_v7  ;;  %v6776_v54 = vcombine.high %v939_v34, %v946_v37  ;;  %v994_v56 = vcombine.high %v6760_v30, %v6760_v30 }
  0x41   : > { %v1502_v57 = vrot.slane %v1480_v47, %v8164_v7  ;;  %v1510_v58 = vcombine.low %v1488_v45, %v1495_v48  ;;  %v1528_v59 = vcombine.low %v963_v42, %v970_v49  ;;  %v6777_v60 = vcombine.high %v963_v42, %v970_v49 }
  0x42   : > { %7702 = vmatmul.mubr.msk.bf16.gmra.mxu0 %vm1750_vm0, %v1477_v52  ;;  %v1530_v61 = vcombine.low %v986_v46, %v1001_v50  ;;  %v1537_v62 = vrot.slane %v6776_v54, %v8164_v7  ;;  %v1008_v63 = vrot.slane %v994_v56, %v8164_v7  ;;  %v1009_v0 = vcombine.high %v1001_v50, %v1001_v50  ;;  %v6768_v56 = vld.sshfl [vmem:[%s8169_s26 + $0x14] sm:$0x1 pattern:$0x75316420]  ;;  %s6731_s26 = sshll.u32 %s10794_s18, 1 }
  0x43   : > { %v1511_v2 = vcombine.low %v1502_v57, %v1509_v53  ;;  %v1518_v3 = vrot.slane %v1510_v58, %v8164_v7  ;;  %v1544_v4 = vrot.slane %v1528_v59, %v8164_v7  ;;  %v1551_v6 = vrot.slane %v6777_v60, %v8164_v7 }
  0x44   : > { %v1558_v8 = vrot.slane %v1530_v61, %v8164_v7  ;;  %v1010_v9 = vcombine.high %v1008_v63, %v1008_v63  ;;  %v1018_v10 = vcombine.high %v6761_v51, %v6761_v51  ;;  %v1025_v11 = vrot.slane %v6761_v51, %v8164_v7 }
  0x45   : > { %v1525_v13 = vrot.slane %v1511_v2, %v8164_v7  ;;  %v1559_v14 = vcombine.low %v1537_v62, %v1544_v4  ;;  %v1048_v15 = vrot.slane %v6762_v55, %v8164_v7  ;;  %v1576_v16 = vcombine.low %v1008_v63, %v1009_v0 }
  0x46   : > { %v1560_v17 = vcombine.low %v1551_v6, %v1558_v8  ;;  %v1032_v18 = vrot.slane %v1018_v10, %v8164_v7  ;;  %v1033_v19 = vcombine.high %v1025_v11, %v1025_v11  ;;  %v1577_v20 = vcombine.low %v1010_v9, %v1025_v11 }
  0x47   : > { %v1526_v22 = vcombine.low %v1518_v3, %v1525_v13  ;;  %v1567_v23 = vrot.slane %v1559_v14, %v8164_v7  ;;  %v1586_v24 = vrot.slane %v1576_v16, %v8164_v7  ;;  %v1056_v25 = vcombine.high %v6763_v1, %v6763_v1 }
  0x48   : > { %v1574_v27 = vrot.slane %v1560_v17, %v8164_v7  ;;  %v1034_v28 = vcombine.high %v1032_v18, %v1032_v18  ;;  %v1578_v29 = vcombine.low %v1032_v18, %v1033_v19  ;;  %v1593_v30 = vrot.slane %v1577_v20, %v8164_v7 }
  0x49   : > { %7705 = vmatprep.mubr.msk.bf16.mxu0 %vm1750_vm0, %v1526_v22  ;;  %v1063_v31 = vrot.slane %v6763_v1, %v8164_v7  ;;  %v1070_v32 = vrot.slane %v1056_v25, %v8164_v7  ;;  %v1080_v33 = vcombine.high %v6764_v12, %v6764_v12  ;;  %v1087_v34 = vrot.slane %v6764_v12, %v8164_v7 }
  0x4a   : > { %v1575_v36 = vcombine.low %v1567_v23, %v1574_v27  ;;  %v1579_v37 = vcombine.low %v1034_v28, %v1048_v15  ;;  %v1600_v38 = vrot.slane %v1578_v29, %v8164_v7  ;;  %v1608_v39 = vcombine.low %v1586_v24, %v1593_v30  ;;  %v7836_v27 = vld [vmem:[%s10519_s5 + $0xb8] sm:$0xff]   ;;  %v7837_v28 = vld [vmem:[%s10519_s5 + $0xf0] sm:$0xff]  }
  0x4b   : > { %v1094_v40 = vrot.slane %v1080_v33, %v8164_v7  ;;  %v1625_v41 = vcombine.low %v1063_v31, %v1070_v32  ;;  %v6778_v42 = vcombine.high %v1063_v31, %v1070_v32  ;;  %v1110_v43 = vrot.slane %v6765_v21, %v8164_v7  ;;  %v7839_v29 = vld [vmem:[%s10519_s5 + $0x78] sm:$0xff]   ;;  %v7841_v31 = vld [vmem:[%s10519_s5 + $0xe8] sm:$0xff]   ;;  %v7843_v33 = vld [vmem:[%s10519_s5 + $0x70] sm:$0xff]  }
  0x4c   : > { %7706 = vmatmul.mubr.msk.bf16.gmra.mxu0 %vm1750_vm0, %v1575_v36  ;;  %v1607_v44 = vrot.slane %v1579_v37, %v8164_v7  ;;  %v1616_v45 = vrot.slane %v1608_v39, %v8164_v7  ;;  %v1118_v46 = vcombine.high %v6766_v26, %v6766_v26  ;;  %v1125_v47 = vrot.slane %v6766_v26, %v8164_v7  ;;  %v7835_v26 = vld [vmem:[%s10519_s5 + $0xf8] sm:$0xff]   ;;  %v7842_v32 = vld [vmem:[%s10519_s5 + $0xa8] sm:$0xff]   ;;  %v7846_v36 = vld [vmem:[%s10519_s5 + $0xa0] sm:$0xff]  }
  0x4d   : > { %v1627_v48 = vcombine.low %v1087_v34, %v1094_v40  ;;  %v6779_v49 = vcombine.high %v1087_v34, %v1094_v40  ;;  %v1635_v50 = vrot.slane %v1625_v41, %v8164_v7  ;;  %v1642_v51 = vrot.slane %v6778_v42, %v8164_v7  ;;  %7209 = vmatprep.subr.bf16.mxu0 %v7835_v26  ;;  %v7840_v30 = vld [vmem:[%s10519_s5 + $0x38] sm:$0xff]   ;;  %v7844_v34 = vld [vmem:[%s10519_s5 + $0x30] sm:$0xff]   ;;  %v7847_v37 = vld [vmem:[%s10519_s5 + $0x68] sm:$0xff]  }
  0x4e   : > { %v1609_v52 = vcombine.low %v1600_v38, %v1607_v44  ;;  %v1132_v53 = vrot.slane %v1118_v46, %v8164_v7  ;;  %v1133_v54 = vcombine.high %v1125_v47, %v1125_v47  ;;  %v1142_v55 = vcombine.high %v6767_v35, %v6767_v35  ;;  %7210 = vmatpush3.bf16.msra.mxu0 %v7836_v27  ;;  %v7848_v38 = vld [vmem:[%s10519_s5 + $0x28] sm:$0xff]   ;;  %v7849_v39 = vld [vmem:[%s10519_s5 + $0xd8] sm:$0xff]   ;;  %v7851_v41 = vld [vmem:[%s10519_s5 + $0x60] sm:$0xff]  }
  0x4f   : > { %v1649_v57 = vrot.slane %v1627_v48, %v8164_v7  ;;  %v1656_v58 = vrot.slane %v6779_v49, %v8164_v7  ;;  %v1657_v59 = vcombine.low %v1635_v50, %v1642_v51  ;;  %v1149_v60 = vrot.slane %v6767_v35, %v8164_v7  ;;  %7211 = vmatprep.subr.bf16.mxu0 %v7837_v28  ;;  %v7845_v35 = vld [vmem:[%s10519_s5 + $0xe0] sm:$0xff]   ;;  %v7850_v40 = vld [vmem:[%s10519_s5 + $0x98] sm:$0xff]   ;;  %v7854_v44 = vld [vmem:[%s10519_s5 + $0x90] sm:$0xff]  }
  0x50   : > { %v1623_v61 = vrot.slane %v1609_v52, %v8164_v7  ;;  %v1134_v62 = vcombine.high %v1132_v53, %v1132_v53  ;;  %v1156_v63 = vrot.slane %v1142_v55, %v8164_v7  ;;  %v1674_v0 = vcombine.low %v1110_v43, %v1125_v47  ;;  %7145 = vmatprep.subr.bf16.mxu1 %v7839_v29  ;;  %v7852_v42 = vld [vmem:[%s10519_s5 + $0x20] sm:$0xff]   ;;  %v7853_v43 = vld [vmem:[%s10519_s5 + $0xd0] sm:$0xff]   ;;  %v7856_v46 = vld [vmem:[%s10519_s5 + $0x18] sm:$0xff]  }
  0x51   : > { %v1658_v1 = vcombine.low %v1649_v57, %v1656_v58  ;;  %v1665_v2 = vrot.slane %v1657_v59, %v8164_v7  ;;  %v1157_v3 = vcombine.high %v1149_v60, %v1149_v60  ;;  %v1675_v4 = vcombine.low %v1132_v53, %v1133_v54  ;;  %v7857_v47 = vld [vmem:[%s10519_s5 + $0xc8] sm:$0xff]   ;;  %v7859_v49 = vld [vmem:[%s10519_s5 + $0x50] sm:$0xff]   ;;  %v7861_v51 = vld [vmem:[%s10519_s5 + $0xc0] sm:$0xff]  }
  0x52   : > { %v1624_v6 = vcombine.low %v1616_v45, %v1623_v61  ;;  %v1676_v8 = vcombine.low %v1134_v62, %v1149_v60  ;;  %v1684_v9 = vrot.slane %v1674_v0, %v8164_v7  ;;  %v1158_v10 = vcombine.high %v1156_v63, %v1156_v63  ;;  %v7855_v45 = vld [vmem:[%s10519_s5 + $0x58] sm:$0xff]   ;;  %v7858_v48 = vld [vmem:[%s10519_s5 + $0x88] sm:$0xff]   ;;  %v7860_v50 = vld [vmem:[%s10519_s5 + $0x10] sm:$0xff]  }
  0x53   : > { %v1672_v11 = vrot.slane %v1658_v1, %v8164_v7  ;;  %v1677_v12 = vcombine.low %v1156_v63, %v1157_v3  ;;  %v1691_v13 = vrot.slane %v1675_v4, %v8164_v7  ;;  %v1172_v14 = vrot.slane %v6768_v56, %v8164_v7  ;;  %v7863_v52 = vld [vmem:[%s10519_s5 + $0x80] sm:$0xff]   ;;  %v7864_v53 = vld [vmem:[%s10519_s5 + $0x48] sm:$0xff]   ;;  %v7866_v57 = vld [vmem:[%s10519_s5 + $0x1f8] sm:$0xff]  }
  0x54   : > { %7709 = vmatprep.mubr.msk.bf16.mxu1 %vm1750_vm0, %v1624_v6  ;;  %v1698_v15 = vrot.slane %v1676_v8, %v8164_v7  ;;  %v7865_v54 = vld [vmem:[%s10519_s5 + $0x8] sm:$0xff]   ;;  %v7868_v55 = vld [vmem:[%s10519_s5 + $0x40] sm:$0xff]   ;;  %v7883_v58 = vld [vmem:[%s10519_s5 + $0x178] sm:$0xff]   ;;  %v8047_v59 = vmov 1983009808   ;;  %v2357_v61 = vadd.s32 16, %v8153_v5  ;;  %v8440_v63 = vstv %s6794_s27  ;;  %s460_s27 = sadd.s32 %s6731_s26, %s8151_s28 }
  0x55   : > { %v1673_v16 = vcombine.low %v1665_v2, %v1672_v11  ;;  %v1705_v17 = vrot.slane %v1677_v12, %v8164_v7  ;;  %v1706_v18 = vcombine.low %v1684_v9, %v1691_v13  ;;  %v1723_v19 = vcombine.low %v1158_v10, %v1172_v14  ;;  %v7869_v56 = vld [vmem:[%s10519_s5] sm:$0xff]   ;;  %s6732_s12 = sshll.u32 %s460_s27, 2 }
  0x56   : > { %v1963_v60 = vunpack.c.l.s4 %v8047_v59  ;;  %v8445_v0 = vld [vmem:[%s10518_s4] ss:$0 sm:$0xff]  ;;  %v8447_v1 = vadd.s32 4294967295, %v2357_v61  ;;  %vm2361_vm1 = vcmp.ge.s32.totalorder %v8440_v63, 0  ;;  %vm2371_vm2 = vcmp.lt.s32.totalorder %v8440_v63, 16  ;;  %s462_s14 = scalar_lea.vmem %s10514_s0, %s6732_s12  ;;  %s490_s15 = scalar_lea.vmem %s10525_s11, %s6732_s12 }
  0x57   : > { %7710 = vmatmul.mubr.msk.bf16.vlgmr.msra.gmra.mxu1 %vm1750_vm0, %v1673_v16  ;;  %v1707_v20 = vcombine.low %v1698_v15, %v1705_v17  ;;  %v1714_v21 = vrot.slane %v1706_v18, %v8164_v7  ;;  %v1730_v22 = vrot.slane %v1723_v19, %v8164_v7  ;;  %v8452_v3 = vadd.s32 4294967295, %v8153_v5  ;;  %vm8459_vm3 = vmand %vm2361_vm1, %vm2371_vm2 }
  0x58   : > { %7146 = vmatpush3.bf16.msra.mxu1 %v7840_v30  ;;  %v1964_v62 = vunpack.c.0.s8 %v1963_v60  ;;  %v2345_v9 = vadd.s32 1, %v8440_v63  ;;  %vm2426_vm4 = vcmp.lt.s32.totalorder %v8447_v1, 16  ;;  %v8466_v13 = vadd.s32 2, %v8440_v63 }
  0x59   : > { %v1721_v23 = vrot.slane %v1707_v20, %v8164_v7  ;;  %v1737_v25 = vrot.slane %v1730_v22, %v8164_v7  ;;  %v7838_v7 = vld [vmem:[%s10519_s5 + $0xb0] sm:$0xff]   ;;  %7147 = vmatprep.subr.bf16.mxu1 %v7843_v33  ;;  %vm2391_vm5 = vcmp.ge.s32.totalorder %v8452_v3, 0  ;;  %vm8475_vm6 = vmand %vm8459_vm3, %vm2426_vm4  ;;  %v8480_v20 = vadd.s32 3, %v8440_v63 }
  0x5a   : > { %7212 = vmatpush3.bf16.msra.mxu0 %v7838_v7  ;;  %v8456_v6 = vsub.s32 %v1964_v62, %v8153_v5  ;;  %vm2362_vm7 = vcmp.ge.s32.totalorder %v2345_v9, 0  ;;  %vm2372_vm8 = vcmp.lt.s32.totalorder %v2345_v9, 16  ;;  %vm2363_vm9 = vcmp.ge.s32.totalorder %v8466_v13, 0  ;;  %vm8528_vm13 = vmand %vm8459_vm3, %vm2391_vm5  ;;  %v7931_v3 = vld [vmem:[%s10519_s5 + $0x230] sm:$0xff]  }
  0x5b   : > { %v1722_v24 = vcombine.low %v1714_v21, %v1721_v23  ;;  %7213 = vmatprep.subr.bf16.mxu0 %v7841_v31  ;;  %v8483_v21 = vadd.s32 4, %v8440_v63  ;;  %vm2373_vm10 = vcmp.lt.s32.totalorder %v8466_v13, 16  ;;  %v8492_v7 = vadd.s32 5, %v8440_v63  ;;  %vm8507_vm11 = vmand %vm2362_vm7, %vm2372_vm8 }
  0x5c   : > { %7148 = vmatpush3.bf16.msra.mxu1 %v7844_v34  ;;  %vm2397_vm12 = vmand %vm8507_vm11, %vm2391_vm5  ;;  %vm2364_vm15 = vcmp.ge.s32.totalorder %v8480_v20, 0 }
  0x5d   : > { %7713 = vmatprep.mubr.msk.bf16.mxu1 %vm1750_vm0, %v1722_v24  ;;  %7149 = vmatprep.subr.bf16.mxu1 %v7847_v37  ;;  %vm8541_vm14 = vmand %vm2363_vm9, %vm2373_vm10  ;;  %vm2375_vm7 = vcmp.lt.s32.totalorder %v8483_v21, 16 }
  0x5e   : > { %7214 = vmatpush3.bf16.msra.mxu0 %v7842_v32  ;;  %vm2435_vm1 = vmand %vm8541_vm14, %vm2426_vm4 }
  0x5f   : > { %7714 = vmatmul.mubr.msk.bf16.gmra.mxu1 %vm1750_vm0, %v1737_v25  ;;  %7215 = vmatprep.subr.bf16.mxu0 %v7845_v35  ;;  %vm2374_vm0 = vcmp.lt.s32.totalorder %v8480_v20, 16  ;;  %vm8569_vm2 = vmand %vm8507_vm11, %vm2426_vm4 }
  0x60   : > { %7150 = vmatpush3.bf16.msra.mxu1 %v7848_v38  ;;  %vm8618_vm9 = vmand %vm8541_vm14, %vm2391_vm5 }
  0x61   : > { %7151 = vmatprep.subr.bf16.mxu1 %v7851_v41 }
  0x62   : > { %7216 = vmatpush3.bf16.msra.mxu0 %v7846_v36 }
  0x63   : > { %7217 = vmatprep.subr.bf16.mxu0 %v7849_v39  ;;  %v8499_v39 = vadd.s32 6, %v8440_v63 }
  0x64   : > { %7152 = vmatpush3.bf16.msra.mxu1 %v7852_v42 }
  0x65   : > { %7153 = vmatprep.subr.bf16.mxu1 %v7855_v45 }
  0x66   : > { %7218 = vmatpush3.bf16.msra.mxu0 %v7850_v40  ;;  %v8502_v40 = vadd.s32 7, %v8440_v63 }
  0x67   : > { %7219 = vmatprep.subr.bf16.mxu0 %v7853_v43 }
  0x68   : > { %7154 = vmatpush3.bf16.msra.mxu1 %v7856_v46 }
  0x69   : > { %7155 = vmatprep.subr.bf16.mxu1 %v7859_v49 }
  0x6a   : > { %7220 = vmatpush3.bf16.msra.mxu0 %v7854_v44 }
  0x6b   : > { %7221 = vmatprep.subr.bf16.mxu0 %v7857_v47 }
  0x6c   : > { %7156 = vmatpush3.bf16.msra.mxu1 %v7860_v50 }
  0x6d   : > { %7157 = vmatprep.subr.bf16.mxu1 %v7864_v53 }
  0x6e   : > { %7222 = vmatpush3.bf16.msra.mxu0 %v7858_v48 }
  0x6f   : > { %7223 = vmatprep.subr.bf16.mxu0 %v7861_v51 }
  0x70   : > { %7158 = vmatpush3.bf16.msra.mxu1 %v7865_v54 }
  0x71   : > { %7159 = vmatprep.subr.bf16.mxu1 %v7868_v55 }
  0x72   : > { %7224 = vmatpush3.bf16.msra.mxu0 %v7863_v52 }
  0x73   : > { %7337 = vmatprep.subr.bf16.mxu0 %v7866_v57 }
  0x74   : > { %7160 = vmatpush3.bf16.msra.mxu1 %v7869_v56 }
  0x75   : > { %7273 = vmatprep.subr.bf16.mxu1 %v7883_v58 }
  0xed   : > { %v7695_v2 = vpop.f32.mrf.mxu0 }
  0xee   : > { %v1830_v4 = vadd.f32 %v7695_v2, %v8445_v0 }
  0xef   : > { %v1821_v8 = vpop.f32.mrf.mxu0 }
  0xf0   : > { %v1917_v10 = vmax.f32 %v1830_v4, 0.0  ;;  %v1822_v12 = vadd.f32 %v8445_v0, %v1821_v8  ;;  %v8534_v8 = vadd.s32 9, %v8440_v63 }
  0xf1   : > { %v7696_v14 = vpop.f32.mrf.mxu0 }
  0xf2   : > { %v1995_v5 = vcombine.high %v1917_v10, %v1917_v10  ;;  %v2002_v15 = vrot.slane %v1917_v10, %v8456_v6  ;;  %v1915_v16 = vmax.f32 %v1822_v12, 0.0  ;;  %v1833_v17 = vadd.f32 %v7696_v14, %v8445_v0 }
  0xf3   : > { %v1824_v19 = vpop.f32.mrf.mxu0 }
  0xf4   : > { %v2009_v22 = vrot.slane %v1995_v5, %v8456_v6  ;;  %v2010_v23 = vcombine.high %v2002_v15, %v2002_v15  ;;  %v2557_v24 = vrot.slane %v2002_v15, %v8456_v6  ;;  %v1961_v25 = vcombine.high %v1915_v16, %v1915_v16 }
  0xf5   : > { %v1968_v26 = vrot.slane %v1915_v16, %v8456_v6  ;;  %v1918_v27 = vmax.f32 %v1833_v17, 0.0  ;;  %v1825_v28 = vadd.f32 %v8445_v0, %v1824_v19 }
  0xf6   : > { %v2558_v29 = vcombine.low %v2010_v23, %v2009_v22  ;;  %v2959_v30 = vsel %vm8475_vm6, %v2557_v24, 0.0  ;;  %v1975_v31 = vrot.slane %v1961_v25, %v8456_v6  ;;  %v2011_v32 = vcombine.high %v2009_v22, %v2009_v22 }
  0xf7   : > { %v7074_v33 = vpack.c.bf16 %v2959_v30, %v2959_v30  ;;  %v1976_v34 = vcombine.high %v1968_v26, %v1968_v26  ;;  %v2012_v35 = vcombine.high %v1918_v27, %v1918_v27  ;;  %v2019_v36 = vrot.slane %v1918_v27, %v8456_v6 }
  0xf8   : > { %v1977_v37 = vcombine.high %v1975_v31, %v1975_v31  ;;  %v1916_v38 = vmax.f32 %v1825_v28, 0.0  ;;  %v2566_v51 = vrot.slane %v2558_v29, %v8456_v6  ;;  %vm2365_vm6 = vcmp.ge.s32.totalorder %v8483_v21, 0 }
  0xf9   : > { %3119 = vst [vmem:[#allocation2 + $0x8] sm:$0x1] %v7074_v33  ;;  %v2517_v41 = vcombine.low %v1968_v26, %v1976_v34  ;;  %v2026_v42 = vrot.slane %v2012_v35, %v8456_v6  ;;  %v2027_v43 = vcombine.high %v2019_v36, %v2019_v36  ;;  %v2559_v45 = vcombine.low %v2011_v32, %v2019_v36  ;;  %v7699_v46 = vpop.f32.mrf.mxu0  ;;  %vm8628_vm10 = vmand %vm2365_vm6, %vm2375_vm7 }
  0xfa   : > { %v2518_v47 = vcombine.low %v1975_v31, %v1977_v37  ;;  %v1978_v48 = vcombine.high %v1916_v38, %v1916_v38  ;;  %v1985_v49 = vrot.slane %v1916_v38, %v8456_v6  ;;  %v1846_v50 = vadd.f32 %v7699_v46, %v8445_v0 }
  0xfb   : > { %v2525_v52 = vrot.slane %v2517_v41, %v8456_v6  ;;  %v2573_v53 = vrot.slane %v2559_v45, %v8456_v6  ;;  %v8516_v54 = vcombine.low %v2027_v43, %v2026_v42  ;;  %v1837_v55 = vpop.f32.mrf.mxu0  ;;  %v2028_v2 = vcombine.high %v2026_v42, %v2026_v42 }
  0xfc   : > { %v2532_v56 = vrot.slane %v2518_v47, %v8456_v6  ;;  %v1992_v57 = vrot.slane %v1978_v48, %v8456_v6  ;;  %v1993_v58 = vcombine.high %v1985_v49, %v1985_v49  ;;  %v1921_v59 = vmax.f32 %v1846_v50, 0.0 }
  0xfd   : > { %v2574_v61 = vcombine.low %v2566_v51, %v2573_v53  ;;  %v1838_v62 = vadd.f32 %v8445_v0, %v1837_v55  ;;  %v7700_v4 = vpop.f32.mrf.mxu0  ;;  %v2583_v23 = vrot.slane %v8516_v54, %v8456_v6 }
  0xfe   : > { %v2533_v9 = vcombine.low %v2525_v52, %v2532_v56  ;;  %v1994_v10 = vcombine.high %v1992_v57, %v1992_v57  ;;  %v2534_v12 = vcombine.low %v1985_v49, %v1993_v58  ;;  %v2063_v14 = vcombine.high %v1921_v59, %v1921_v59 }
  0xff   : > { %v2960_v5 = vsel %vm2397_vm12, %v2574_v61, 0.0  ;;  %v2070_v15 = vrot.slane %v1921_v59, %v8456_v6  ;;  %v1919_v17 = vmax.f32 %v1838_v62, 0.0  ;;  %v1849_v18 = vadd.f32 %v7700_v4, %v8445_v0  ;;  %v1840_v19 = vpop.f32.mrf.mxu0  ;;  %vm8654_vm12 = vmand %vm8628_vm10, %vm2426_vm4 }
 0x100   : > { %v2957_v22 = vsel %vm8528_vm13, %v2533_v9, 0.0  ;;  %v7075_v24 = vpack.c.bf16 %v2960_v5, %v2960_v5  ;;  %v2535_v13 = vcombine.low %v1992_v57, %v1994_v10  ;;  %v2077_v25 = vrot.slane %v2063_v14, %v8456_v6 }
 0x101   : > { %v2078_v26 = vcombine.high %v2070_v15, %v2070_v15  ;;  %v2029_v27 = vcombine.high %v1919_v17, %v1919_v17  ;;  %v2036_v28 = vrot.slane %v1919_v17, %v8456_v6  ;;  %v2542_v29 = vrot.slane %v2534_v12, %v8456_v6 }
 0x102   : > { %3120 = vst [vmem:[#allocation2 + $0xc] sm:$0xf] %v7075_v24  ;;  %v2549_v30 = vrot.slane %v2535_v13, %v8456_v6  ;;  %v1922_v31 = vmax.f32 %v1849_v18, 0.0  ;;  %v1841_v32 = vadd.f32 %v8445_v0, %v1840_v19  ;;  %v7703_v33 = vpop.f32.mrf.mxu0  ;;  %v2639_v35 = vrot.slane %v2077_v25, %v8456_v6 }
 0x103   : > { %v8561_v34 = vcombine.low %v2070_v15, %v2078_v26  ;;  %v2043_v36 = vrot.slane %v2029_v27, %v8456_v6  ;;  %v2044_v37 = vcombine.high %v2036_v28, %v2036_v28  ;;  %v2576_v42 = vcombine.low %v2028_v2, %v2036_v28 }
 0x104   : > { %v2550_v38 = vcombine.low %v2542_v29, %v2549_v30  ;;  %v2079_v43 = vcombine.high %v2077_v25, %v2077_v25  ;;  %v2080_v45 = vcombine.high %v1922_v31, %v1922_v31  ;;  %v1853_v46 = vpop.f32.mrf.mxu0  ;;  %v2965_v48 = vsel %vm2435_vm1, %v2639_v35, 0.0 }
 0x105   : > { %v2631_v47 = vrot.slane %v8561_v34, %v8456_v6  ;;  %v2045_v49 = vcombine.high %v2043_v36, %v2043_v36  ;;  %v2598_v50 = vrot.slane %v2044_v37, %v8456_v6  ;;  %v7080_v52 = vpack.c.bf16 %v2965_v48, %v2965_v48 }
 0x106   : > { %v2958_v51 = vsel %vm8459_vm3, %v2550_v38, 0.0  ;;  %v2590_v53 = vrot.slane %v2576_v42, %v8456_v6  ;;  %v2087_v54 = vrot.slane %v1922_v31, %v8456_v6  ;;  %v7704_v55 = vpop.f32.mrf.mxu0  ;;  %v2094_v59 = vrot.slane %v2080_v45, %v8456_v6  ;;  %vm8594_vm3 = vmand %vm2364_vm15, %vm2374_vm0 }
 0x107   : > { %v7105_v56 = vpack.c.bf16 %v2958_v51, %v2957_v22  ;;  %v2599_v57 = vcombine.low %v2043_v36, %v2045_v49  ;;  %v2962_v58 = vsel %vm8569_vm2, %v2598_v50, 0.0  ;;  %3125 = vst [vmem:[#allocation2 + $0x20] sm:$0x1] %v7080_v52  ;;  %v1920_v9 = vmax.f32 %v1841_v32, 0.0  ;;  %vm2403_vm8 = vmand %vm8594_vm3, %vm2391_vm5 }
 0x108   : > { %v2591_v11 = vcombine.low %v2583_v23, %v2590_v53  ;;  %v7077_v60 = vpack.c.bf16 %v2962_v58, %v2962_v58  ;;  %v2095_v61 = vcombine.high %v2087_v54, %v2087_v54  ;;  %v2640_v62 = vcombine.low %v2079_v43, %v2087_v54  ;;  %v1856_v2 = vpop.f32.mrf.mxu0 }
 0x109   : > { %7106 = vst [vmem:[#allocation2] sm:$0xff] %v7105_v56   ;;  %v2607_v4 = vrot.slane %v2599_v57, %v8456_v6  ;;  %v1862_v10 = vadd.f32 %v7703_v33, %v8445_v0  ;;  %v1854_v12 = vadd.f32 %v8445_v0, %v1853_v46  ;;  %v2096_v18 = vcombine.high %v2094_v59, %v2094_v59 }
 0x10a   : > { %v2961_v14 = vsel %vm8507_vm11, %v2591_v11, 0.0  ;;  %3122 = vst [vmem:[#allocation2 + $0x14] sm:$0x1] %v7077_v60  ;;  %v2641_v15 = vcombine.low %v2095_v61, %v2094_v59  ;;  %v2648_v17 = vrot.slane %v2640_v62, %v8456_v6  ;;  %v2046_v22 = vcombine.high %v1920_v9, %v1920_v9  ;;  %vm2438_vm11 = vmand %vm8594_vm3, %vm2426_vm4 }
 0x10b   : > { %v7076_v19 = vpack.c.bf16 %v2961_v14, %v2961_v14  ;;  %v2053_v23 = vrot.slane %v1920_v9, %v8456_v6  ;;  %v1925_v24 = vmax.f32 %v1862_v10, 0.0  ;;  %v1923_v13 = vmax.f32 %v1854_v12, 0.0 }
 0x10c   : > { %v2655_v44 = vrot.slane %v2641_v15, %v8456_v6  ;;  %v1865_v25 = vadd.f32 %v7704_v55, %v8445_v0  ;;  %v1857_v20 = vadd.f32 %v8445_v0, %v1856_v2  ;;  %v8603_v26 = vpop.f32.mrf.mxu0  ;;  %v2060_v27 = vrot.slane %v2046_v22, %v8456_v6 }
 0x10d   : > { %3121 = vst [vmem:[#allocation2 + $0x10] sm:$0xf] %v7076_v19  ;;  %v2061_v28 = vcombine.high %v2053_v23, %v2053_v23  ;;  %v2131_v29 = vcombine.high %v1925_v24, %v1925_v24  ;;  %v2138_v30 = vrot.slane %v1925_v24, %v8456_v6  ;;  %v2097_v32 = vcombine.high %v1923_v13, %v1923_v13 }
 0x10e   : > { %v2656_v31 = vcombine.low %v2648_v17, %v2655_v44  ;;  %v2104_v33 = vrot.slane %v1923_v13, %v8456_v6  ;;  %v1926_v35 = vmax.f32 %v1865_v25, 0.0  ;;  %v2062_v36 = vcombine.high %v2060_v27, %v2060_v27  ;;  %v1869_v48 = vpop.f32.mrf.mxu0 }
 0x10f   : > { %v2600_v37 = vcombine.low %v2053_v23, %v2061_v28  ;;  %v2145_v38 = vrot.slane %v2131_v29, %v8456_v6  ;;  %v2146_v41 = vcombine.high %v2138_v30, %v2138_v30  ;;  %v2111_v43 = vrot.slane %v2097_v32, %v8456_v6 }
 0x110   : > { %v2966_v42 = vsel %vm2403_vm8, %v2656_v31, 0.0  ;;  %v2112_v45 = vcombine.high %v2104_v33, %v2104_v33  ;;  %v2657_v46 = vcombine.low %v2096_v18, %v2104_v33  ;;  %v2616_v52 = vcombine.low %v2060_v27, %v2062_v36  ;;  %v7708_v10 = vpop.f32.mrf.mxu0 }
 0x111   : > { %v7081_v49 = vpack.c.bf16 %v2966_v42, %v2966_v42  ;;  %v2614_v51 = vrot.slane %v2600_v37, %v8456_v6  ;;  %v2147_v53 = vcombine.high %v2145_v38, %v2145_v38  ;;  %v2698_v54 = vcombine.low %v2138_v30, %v2146_v41 }
 0x112   : > { %v2113_v55 = vcombine.high %v2111_v43, %v2111_v43  ;;  %v2658_v56 = vcombine.low %v2112_v45, %v2111_v43  ;;  %v2665_v57 = vrot.slane %v2657_v46, %v8456_v6  ;;  %v2624_v11 = vrot.slane %v2616_v52, %v8456_v6  ;;  %v1872_v30 = vpop.f32.mrf.mxu0 }
 0x113   : > { %3126 = vst [vmem:[#allocation2 + $0x24] sm:$0xf] %v7081_v49  ;;  %v2615_v59 = vcombine.low %v2607_v4, %v2614_v51  ;;  %v2699_v60 = vcombine.low %v2145_v38, %v2147_v53  ;;  %v2148_v61 = vcombine.high %v1926_v35, %v1926_v35  ;;  %v2706_v62 = vrot.slane %v2698_v54, %v8456_v6 }
 0x114   : > { %v2672_v2 = vrot.slane %v2658_v56, %v8456_v6  ;;  %v2680_v21 = vrot.slane %v2113_v55, %v8456_v6  ;;  %v2155_v9 = vrot.slane %v1926_v35, %v8456_v6  ;;  %v2632_v4 = vcombine.low %v2624_v11, %v2631_v47 }
 0x115   : > { %v2963_v12 = vsel %vm8618_vm9, %v2615_v59, 0.0  ;;  %v2713_v14 = vrot.slane %v2699_v60, %v8456_v6  ;;  %v8648_v15 = vrot.slane %v2148_v61, %v8456_v6  ;;  %vm2366_vm13 = vcmp.ge.s32.totalorder %v8492_v7, 0 }
 0x116   : > { %vm2376_vm15 = vcmp.lt.s32.totalorder %v8492_v7, 16  ;;  %v2673_v34 = vcombine.low %v2665_v57, %v2672_v2  ;;  %v2968_v47 = vsel %vm2438_vm11, %v2680_v21, 0.0  ;;  %v2163_v18 = vcombine.high %v2155_v9, %v2155_v9 }
 0x117   : > { %v2721_v19 = vrot.slane %v2155_v9, %v8456_v6  ;;  %vm2367_vm0 = vcmp.ge.s32.totalorder %v8499_v39, 0  ;;  %vm2377_vm1 = vcmp.lt.s32.totalorder %v8499_v39, 16  ;;  %v2964_v22 = vsel %vm8541_vm14, %v2632_v4, 0.0  ;;  %v7711_v13 = vpop.f32.mrf.mxu1  ;;  %vm8701_vm14 = vmand %vm8628_vm10, %vm2391_vm5 }
 0x118   : > { %v8665_v23 = vcombine.low %v2706_v62, %v2713_v14  ;;  %v7083_v24 = vpack.c.bf16 %v2968_v47, %v2968_v47  ;;  %v1924_v44 = vmax.f32 %v1857_v20, 0.0  ;;  %v7110_v25 = vpack.c.bf16 %v2964_v22, %v2963_v12  ;;  %vm8716_vm2 = vmand %vm2366_vm13, %vm2376_vm15 }
 0x119   : > { %v2967_v27 = vsel %vm8594_vm3, %v2673_v34, 0.0  ;;  %v8670_v28 = vcombine.low %v2163_v18, %v8648_v15  ;;  %v2971_v29 = vsel %vm8654_vm12, %v2721_v19, 0.0  ;;  %v1885_v33 = vpop.f32.mrf.mxu1  ;;  %v8675_v35 = vadd.s32 8, %v8440_v63  ;;  %vm8726_vm6 = vmand %vm2367_vm0, %vm2377_vm1 }
 0x11a   : > { %v7082_v31 = vpack.c.bf16 %v2967_v27, %v2967_v27  ;;  %3128 = vst [vmem:[#allocation2 + $0x2c] sm:$0x1] %v7083_v24  ;;  %v7086_v16 = vpack.c.bf16 %v2971_v29, %v2971_v29  ;;  %v2114_v32 = vcombine.high %v1924_v44, %v1924_v44  ;;  %7127 = vst [vmem:[#allocation2 + $0x18] sm:$0xff] %v7110_v25   ;;  %v2970_v5 = vsel %vm8628_vm10, %v8665_v23, 0.0 }
 0x11b   : > { %v2121_v20 = vrot.slane %v1924_v44, %v8456_v6  ;;  %v1878_v36 = vadd.f32 %v8603_v26, %v8445_v0  ;;  %v1870_v37 = vadd.f32 %v8445_v0, %v1869_v48  ;;  %v2730_v38 = vrot.slane %v8670_v28, %v8456_v6  ;;  %v8689_v43 = vpop.f32.mrf.mxu1  ;;  %vm8738_vm7 = vmand %vm8726_vm6, %vm2426_vm4 }
 0x11c   : > { %3127 = vst [vmem:[#allocation2 + $0x28] sm:$0xf] %v7082_v31  ;;  %3131 = vst [vmem:[#allocation2 + $0x38] sm:$0x1] %v7086_v16  ;;  %v2128_v63 = vrot.slane %v2114_v32, %v8456_v6  ;;  %v1881_v41 = vadd.f32 %v7708_v10, %v8445_v0  ;;  %v1873_v42 = vadd.f32 %v8445_v0, %v1872_v30  ;;  %vm2368_vm3 = vcmp.ge.s32.totalorder %v8502_v40, 0 }
 0x11d   : > { %v2129_v45 = vcombine.high %v2121_v20, %v2121_v20  ;;  %v1929_v46 = vmax.f32 %v1878_v36, 0.0  ;;  %v1927_v49 = vmax.f32 %v1870_v37, 0.0  ;;  %v2164_v26 = vcombine.high %v8648_v15, %v8648_v15  ;;  %v8694_v53 = vpop.f32.mrf.mxu1  ;;  %vm2409_vm9 = vmand %vm8716_vm2, %vm2391_vm5 }
 0x11e   : > { %v2130_v48 = vcombine.high %v2128_v63, %v2128_v63  ;;  %v1930_v50 = vmax.f32 %v1881_v41, 0.0  ;;  %v1928_v51 = vmax.f32 %v1873_v42, 0.0  ;;  %v1894_v52 = vadd.f32 %v7711_v13, %v8445_v0  ;;  %vm8766_vm10 = vmand %vm8716_vm2, %vm2426_vm4 }
 0x11f   : > { %v2681_v54 = vcombine.low %v2121_v20, %v2129_v45  ;;  %v2199_v55 = vcombine.high %v1929_v46, %v1929_v46  ;;  %v2206_v56 = vrot.slane %v1929_v46, %v8456_v6  ;;  %v2165_v57 = vcombine.high %v1927_v49, %v1927_v49  ;;  %v8707_v2 = vpop.f32.mrf.mxu1  ;;  %vm8782_vm13 = vmand %vm8726_vm6, %vm2391_vm5 }
 0x120   : > { %v2682_v11 = vcombine.low %v2128_v63, %v2130_v48  ;;  %v2172_v60 = vrot.slane %v1927_v49, %v8456_v6  ;;  %v2216_v61 = vcombine.high %v1930_v50, %v1930_v50  ;;  %v2223_v62 = vrot.slane %v1930_v50, %v8456_v6 }
 0x121   : > { %v2689_v21 = vrot.slane %v2681_v54, %v8456_v6  ;;  %v2213_v9 = vrot.slane %v2199_v55, %v8456_v6  ;;  %v2214_v10 = vcombine.high %v2206_v56, %v2206_v56  ;;  %v2179_v4 = vrot.slane %v2165_v57, %v8456_v6  ;;  %v8730_v47 = vpop.f32.mrf.mxu1 }
 0x122   : > { %v2696_v12 = vrot.slane %v2682_v11, %v8456_v6  ;;  %v2180_v14 = vcombine.high %v2172_v60, %v2172_v60  ;;  %v2723_v15 = vcombine.low %v2164_v26, %v2172_v60  ;;  %v2230_v17 = vrot.slane %v2216_v61, %v8456_v6 }
 0x123   : > { %v2215_v7 = vcombine.high %v2213_v9, %v2213_v9  ;;  %v8732_v18 = vcombine.low %v2206_v56, %v2214_v10  ;;  %v2231_v19 = vcombine.high %v2223_v62, %v2223_v62  ;;  %v1886_v39 = vadd.f32 %v8445_v0, %v1885_v33  ;;  %v7716_v25 = vpop.f32.mrf.mxu1 }
 0x124   : > { %v2697_v23 = vcombine.low %v2689_v21, %v2696_v12  ;;  %v2181_v24 = vcombine.high %v2179_v4, %v2179_v4  ;;  %v2737_v44 = vrot.slane %v2723_v15, %v8456_v6  ;;  %v2803_v13 = vrot.slane %v2230_v17, %v8456_v6 }
 0x125   : > { %vm2378_vm8 = vcmp.lt.s32.totalorder %v8502_v40, 16  ;;  %v2780_v27 = vcombine.low %v2213_v9, %v2215_v7  ;;  %v2739_v28 = vcombine.low %v2180_v14, %v2179_v4  ;;  %v2781_v29 = vcombine.low %v2223_v62, %v2231_v19  ;;  %v8789_v19 = vld [vmem:[#allocation2 + $0x8] sm:$0x1] }
 0x126   : > { %v2182_v30 = vcombine.high %v1928_v51, %v1928_v51  ;;  %v2969_v31 = vsel %vm8701_vm14, %v2697_v23, 0.0  ;;  %v2778_v16 = vrot.slane %v8732_v18, %v8456_v6  ;;  %v2738_v32 = vcombine.low %v2730_v38, %v2737_v44  ;;  %v3458_v18 = vld [vmem:[#allocation2 + $0xc] sm:$0xf]  ;;  %vm8797_vm15 = vmand %vm2368_vm3, %vm2378_vm8 }
 0x127   : > { %v2977_v33 = vsel %vm8738_vm7, %v2803_v13, 0.0  ;;  %v7115_v20 = vpack.c.bf16 %v2970_v5, %v2969_v31  ;;  %v2788_v36 = vrot.slane %v2780_v27, %v8456_v6  ;;  %v2795_v37 = vrot.slane %v2781_v29, %v8456_v6  ;;  %v8802_v13 = vld [vmem:[#allocation2 + $0x10] sm:$0xf]  ;;  %vm2415_vm0 = vmand %vm8797_vm15, %vm2391_vm5 }
 0x128   : > { %v7092_v63 = vpack.c.bf16 %v2977_v33, %v2977_v33  ;;  %v2972_v41 = vsel %vm2409_vm9, %v2738_v32, 0.0  ;;  %v2189_v42 = vrot.slane %v1928_v51, %v8456_v6  ;;  %v2196_v45 = vrot.slane %v2182_v30, %v8456_v6  ;;  %v7971_v51 = vld [vmem:[%s10520_s6 + $0xc0] sm:$0xff]  }
 0x129   : > { %v1933_v46 = vmax.f32 %v1894_v52, 0.0  ;;  %7128 = vst [vmem:[#allocation2 + $0x30] sm:$0xff] %v7115_v20   ;;  %v2747_v49 = vrot.slane %v2739_v28, %v8456_v6  ;;  %v7087_v26 = vpack.c.bf16 %v2972_v41, %v2972_v41  ;;  %v1931_v38 = vmax.f32 %v1886_v39, 0.0  ;;  %v8818_v41 = vld [vmem:[#allocation2 + $0x4] sm:$0xf] }
 0x12a   : > { %3137 = vst [vmem:[#allocation2 + $0x50] sm:$0x1] %v7092_v63  ;;  %v2232_v48 = vcombine.high %v2230_v17, %v2230_v17  ;;  %v2197_v50 = vcombine.high %v2189_v42, %v2189_v42  ;;  %v2198_v5 = vcombine.high %v2196_v45, %v2196_v45  ;;  %v2740_v54 = vcombine.low %v2181_v24, %v2189_v42  ;;  %v3366_v42 = vld [vmem:[#allocation2] sm:$0xe] }
 0x12b   : > { %v2267_v55 = vcombine.high %v1933_v46, %v1933_v46  ;;  %3132 = vst [vmem:[#allocation2 + $0x3c] sm:$0xf] %v7087_v26  ;;  %v2796_v56 = vcombine.low %v2788_v36, %v2795_v37  ;;  %v2274_v52 = vrot.slane %v1933_v46, %v8456_v6  ;;  %v2233_v57 = vcombine.high %v1931_v38, %v1931_v38 }
 0x12c   : > { %v2240_v59 = vrot.slane %v1931_v38, %v8456_v6  ;;  %vm3398_vm11 = vcmask 1042432   ;;  %vm3399_vm12 = vcmask 1046532   ;;  %v2754_v11 = vrot.slane %v2740_v54, %v8456_v6  ;;  %v3460_v54 = vld [vmem:[#allocation2 + $0x18] sm:$0xf] }
 0x12d   : > { %v2762_v60 = vrot.slane %v2197_v50, %v8456_v6  ;;  %v2763_v61 = vcombine.low %v2196_v45, %v2198_v5  ;;  %v2281_v62 = vrot.slane %v2267_v55, %v8456_v6  ;;  %v2282_v21 = vcombine.high %v2274_v52, %v2274_v52  ;;  %vm8833_vm1 = vmor %vm3398_vm11, %vm3399_vm12 }
 0x12e   : > { %v8776_v9 = vrot.slane %v2233_v57, %v8456_v6  ;;  %v2248_v10 = vcombine.high %v2240_v59, %v2240_v59  ;;  %v2804_v4 = vcombine.low %v2232_v48, %v2240_v59  ;;  %v2755_v14 = vcombine.low %v2747_v49, %v2754_v11 }
 0x12f   : > { %v2771_v15 = vrot.slane %v2763_v61, %v8456_v6  ;;  %v2974_v17 = vsel %vm8766_vm10, %v2762_v60, 0.0  ;;  %v2283_v7 = vcombine.high %v2281_v62, %v2281_v62  ;;  %v2976_v22 = vsel %vm8726_vm6, %v2796_v56, 0.0  ;;  %vm8880_vm6 = vmand %vm8797_vm15, %vm2426_vm4 }
 0x130   : > { %v7089_v39 = vpack.c.bf16 %v2974_v17, %v2974_v17  ;;  %v2845_v23 = vcombine.low %v2274_v52, %v2282_v21  ;;  %v2805_v44 = vcombine.low %v2248_v10, %v8776_v9  ;;  %v2973_v27 = vsel %vm8716_vm2, %v2755_v14, 0.0  ;;  %v8848_v14 = vld [vmem:[#allocation2 + $0x1c] sm:$0xf] }
 0x131   : > { %v2779_v25 = vcombine.low %v2771_v15, %v2778_v16  ;;  %v2846_v34 = vcombine.low %v2281_v62, %v2283_v7  ;;  %v2812_v28 = vrot.slane %v2804_v4, %v8456_v6  ;;  %v7088_v29 = vpack.c.bf16 %v2973_v27, %v2973_v27  ;;  %v7867_v7 = vld [vmem:[%s10519_s5 + $0x1b8] sm:$0xff]   ;;  %v7872_v27 = vld [vmem:[%s10519_s5 + $0x1f0] sm:$0xff]  }
 0x132   : > { %3134 = vst [vmem:[#allocation2 + $0x44] sm:$0x1] %v7089_v39  ;;  %v2819_v30 = vrot.slane %v2805_v44, %v8456_v6  ;;  %v3483_v40 = vshrl.u32 %v3458_v18, 16  ;;  %v3406_v31 = vrot.slane %v8789_v19, 5  ;;  %v2853_v33 = vrot.slane %v2845_v23, %v8456_v6 }
 0x133   : > { %v2975_v32 = vsel %vm8782_vm13, %v2779_v25, 0.0  ;;  %v3486_v58 = vshll.u32 %v3458_v18, 16  ;;  %v3492_v16 = vshll.u32 %v8802_v13, 16  ;;  %3133 = vst [vmem:[#allocation2 + $0x40] sm:$0xf] %v7088_v29  ;;  %v3496_v63 = vshrl.u32 %v8802_v13, 16 }
 0x134   : > { %v7120_v20 = vpack.c.bf16 %v2976_v22, %v2975_v32  ;;  %v2820_v36 = vcombine.low %v2812_v28, %v2819_v30  ;;  %v3485_v37 = vrot.slane %v3483_v40, 4  ;;  %v2860_v45 = vrot.slane %v2846_v34, %v8456_v6  ;;  %v8858_v22 = vld [vmem:[#allocation2] sm:$0xf] }
 0x135   : > { %v3488_v46 = vrot.slane %v3486_v58, 5  ;;  %v8821_v49 = vrot.slane %v3492_v16, 5  ;;  %v8824_v26 = vcombine.low %v3458_v18, %v8802_v13  ;;  %v3498_v48 = vrot.slane %v3496_v63, 4  ;;  %v7873_v63 = vld [vmem:[%s10519_s5 + $0x1b0] sm:$0xff]  }
 0x136   : > { %7129 = vst [vmem:[#allocation2 + $0x48] sm:$0xff] %v7120_v20   ;;  %v2978_v38 = vsel %vm2415_vm0, %v2820_v36, 0.0  ;;  %v1897_v50 = vadd.f32 %v8689_v43, %v8445_v0  ;;  %v1889_v5 = vadd.f32 %v8445_v0, %v8694_v53  ;;  %v6828_v52 = vrot.slane %v3366_v42, 9 }
 0x137   : > { %10603 = vst [vmem:[#allocation3_spill] sm:$0xff] %v8824_v26  ;;  %v7093_v55 = vpack.c.bf16 %v2978_v38, %v2978_v38  ;;  %v3489_v56 = vor.u32 %v3488_v46, %v3485_v37  ;;  %5091 = vmatprep.mubr.bf16.mxu0 %v8824_v26  ;;  %v3403_v57 = vrot.slane %v8818_v41, 5  ;;  %v2249_v43 = vcombine.high %v8776_v9, %v8776_v9 }
 0x138   : > { %v3499_v59 = vor.u32 %v3498_v48, %v8821_v49  ;;  %v1934_v0 = vmax.f32 %v1897_v50, 0.0  ;;  %v1932_v53 = vmax.f32 %v1889_v5, 0.0  ;;  %v8841_v11 = vcombine.low %v2853_v33, %v2860_v45  ;;  %v7876_v48 = vld [vmem:[%s10519_s5 + $0x1e8] sm:$0xff]  }
 0x139   : > { %3138 = vst [vmem:[#allocation2 + $0x54] sm:$0xf] %v7093_v55  ;;  %v8843_v60 = vrot.slane %v3489_v56, 4  ;;  %v3405_v61 = vrot.slane %v3403_v57, 4  ;;  %v3507_v62 = vshrl.u32 %v3460_v54, 16  ;;  %v3404_v12 = vsel %vm8833_vm1, %v6828_v52, %v3403_v57 }
 0x13a   : > { %v2284_v21 = vcombine.high %v1934_v0, %v1934_v0  ;;  %v2291_v10 = vrot.slane %v1934_v0, %v8456_v6  ;;  %v2250_v4 = vcombine.high %v1932_v53, %v1932_v53  ;;  %v8850_v9 = vrot.slane %v3499_v59, 4  ;;  %v8899_v56 = vld [vmem:[#allocation2 + $0xc] sm:$0xf]  ;;  %v8909_v0 = vld [vmem:[#allocation2 + $0x10] sm:$0xf] }
 0x13b   : > { %v2257_v15 = vrot.slane %v1932_v53, %v8456_v6  ;;  %v3407_v17 = vsel %vm8833_vm1, %v3405_v61, %v3406_v31  ;;  %v3510_v18 = vshll.u32 %v3460_v54, 16  ;;  %vm3171_vm14 = vsmask.f32 3328 }
 0x13c   : > { %vm3172_vm2 = vsmask.f32 7440  ;;  %v2298_v39 = vrot.slane %v2284_v21, %v8456_v6  ;;  %v2299_v23 = vcombine.high %v2291_v10, %v2291_v10  ;;  %v2264_v44 = vrot.slane %v2250_v4, %v8456_v6 }
 0x13d   : > { %v8862_v25 = vcombine.low %v3404_v12, %v3407_v17  ;;  %v2265_v34 = vcombine.high %v2257_v15, %v2257_v15  ;;  %v2821_v28 = vcombine.low %v2249_v43, %v2257_v15  ;;  %v8867_v29 = vrot.slane %v3507_v62, 4  ;;  %v8915_v15 = vld [vmem:[#allocation2 + $0x14] sm:$0x1]  ;;  %vm8927_vm8 = vmor %vm3171_vm14, %vm3172_vm2 }
 0x13e   : > { %v8870_v30 = vcombine.low %v3460_v54, %v8848_v14  ;;  %v2300_v40 = vcombine.high %v2298_v39, %v2298_v39  ;;  %v8872_v31 = vcombine.low %v2291_v10, %v2299_v23  ;;  %v2266_v32 = vcombine.high %v2264_v44, %v2264_v44  ;;  %v7877_v10 = vld [vmem:[%s10519_s5 + $0x1a8] sm:$0xff]  }
 0x13f   : > { %10606 = vst [vmem:[#allocation4_spill] sm:$0xff] %v8862_v25  ;;  %5092 = vmatmul.mubr.bf16.vlgmr.msra.gmra.mxu0 %v8862_v25  ;;  %v3175_v33 = vshrl.u32 %v8858_v22, 16  ;;  %v2822_v16 = vcombine.low %v2265_v34, %v2264_v44  ;;  %v2829_v20 = vrot.slane %v2821_v28, %v8456_v6  ;;  %v3178_v36 = vshll.u32 %v8858_v22, 16 }
 0x140   : > { %10607 = vst [vmem:[#allocation5_spill] sm:$0xff] %v8870_v30  ;;  %7338 = vmatpush3.bf16.msra.mxu0 %v7867_v7  ;;  %5099 = vmatprep.mubr.bf16.mxu0 %v8870_v30  ;;  %v3184_v37 = vshll.u32 %v8818_v41, 16  ;;  %v2863_v42 = vcombine.low %v2298_v39, %v2300_v40  ;;  %v2844_v45 = vrot.slane %v2266_v32, %v8456_v6  ;;  %v8892_v46 = vrot.slane %v3510_v18, 5  ;;  %v7880_v7 = vld [vmem:[%s10519_s5 + $0x1e0] sm:$0xff]  }
 0x141   : > { %v3177_v38 = vrot.slane %v3175_v33, 4  ;;  %7339 = vmatprep.subr.bf16.mxu0 %v7872_v27  ;;  %v2836_v50 = vrot.slane %v2822_v16, %v8456_v6  ;;  %v3180_v5 = vrot.slane %v3178_v36, 5  ;;  %v3188_v55 = vshrl.u32 %v8818_v41, 16  ;;  %v3367_v27 = vld [vmem:[#allocation2 + $0xc] sm:$0xe]  ;;  %v7881_v36 = vld [vmem:[%s10519_s5 + $0x1a0] sm:$0xff]  }
 0x142   : > { %v3186_v54 = vrot.slane %v3184_v37, 5  ;;  %vm2369_vm7 = vcmp.ge.s32.totalorder %v8675_v35, 0  ;;  %vm2379_vm3 = vcmp.lt.s32.totalorder %v8675_v35, 16  ;;  %v2870_v52 = vrot.slane %v8872_v31, %v8456_v6  ;;  %v8932_v33 = vld [vmem:[#allocation2 + $0x24] sm:$0xf] }
 0x143   : > { %v2980_v57 = vsel %vm8880_vm6, %v2844_v45, 0.0  ;;  %v3194_v59 = vshll.u32 %v8789_v19, 16  ;;  %v2837_v53 = vcombine.low %v2829_v20, %v2836_v50  ;;  %v3181_v62 = vor.u32 %v3180_v5, %v3177_v38  ;;  %v7886_v38 = vld [vmem:[%s10519_s5 + $0x1d8] sm:$0xff]   ;;  %vm8991_vm11 = vmand %vm2369_vm7, %vm2379_vm3 }
 0x144   : > { %v7095_v61 = vpack.c.bf16 %v2980_v57, %v2980_v57  ;;  %v3190_v21 = vrot.slane %v3188_v55, 4  ;;  %7340 = vmatpush3.bf16.msra.mxu0 %v7873_v63  ;;  %v2877_v4 = vrot.slane %v2863_v42, %v8456_v6  ;;  %v3199_v17 = vshrl.u32 %v8899_v56, 16  ;;  %vm9023_vm12 = vmand %vm8991_vm11, %vm2391_vm5 }
 0x145   : > { %v3196_v12 = vrot.slane %v3194_v59, 5  ;;  %v3202_v19 = vshll.u32 %v8899_v56, 16  ;;  %7341 = vmatprep.subr.bf16.mxu0 %v7876_v48  ;;  %v2979_v18 = vsel %vm8797_vm15, %v2837_v53, 0.0  ;;  %v3182_v39 = vrot.slane %v3181_v62, 4  ;;  %v8957_v53 = vld [vmem:[#allocation2 + $0x18] sm:$0xf]  ;;  %vm9129_vm0 = vmand %vm8991_vm11, %vm2426_vm4 }
 0x146   : > { %3140 = vst [vmem:[#allocation2 + $0x5c] sm:$0x1] %v7095_v61  ;;  %v3191_v23 = vor.u32 %v3190_v21, %v3186_v54  ;;  %v3208_v44 = vshll.u32 %v8909_v0, 16  ;;  %v7094_v34 = vpack.c.bf16 %v2979_v18, %v2979_v18  ;;  %v3201_v40 = vrot.slane %v3199_v17, 4  ;;  %v7887_v61 = vld [vmem:[%s10519_s5 + $0x198] sm:$0xff]   ;;  %v7889_v17 = vld [vmem:[%s10519_s5 + $0x170] sm:$0xff]  }
 0x147   : > { %v3204_v31 = vrot.slane %v3202_v19, 5  ;;  %v3212_v32 = vshrl.u32 %v8909_v0, 16  ;;  %v3187_v24 = vsel %vm8927_vm8, %v3182_v39, %v3186_v54  ;;  %v3218_v20 = vshll.u32 %v8915_v15, 16  ;;  %v8952_v54 = vld [vmem:[#allocation2 + $0x28] sm:$0xf] }
 0x148   : > { %v3192_v58 = vrot.slane %v3191_v23, 4  ;;  %v3210_v16 = vrot.slane %v3208_v44, 5  ;;  %7342 = vmatpush3.bf16.msra.mxu0 %v7877_v10  ;;  %3139 = vst [vmem:[#allocation2 + $0x58] sm:$0xf] %v7094_v34  ;;  %v8942_v37 = vcombine.low %v8858_v22, %v8818_v41  ;;  %v3410_v45 = vrot.slane %v8909_v0, 5  ;;  %v7892_v44 = vld [vmem:[%s10519_s5 + $0x1d0] sm:$0xff]  }
 0x149   : > { %v3205_v63 = vor.u32 %v3204_v31, %v3201_v40  ;;  %v3214_v42 = vrot.slane %v3212_v32, 4  ;;  %7343 = vmatprep.subr.bf16.mxu0 %v7880_v7  ;;  %v8948_v48 = vcombine.low %v2870_v52, %v2877_v4  ;;  %v6829_v5 = vrot.slane %v3367_v27, 9  ;;  %v7884_v52 = vld [vmem:[%s10519_s5 + $0x138] sm:$0xff]   ;;  %v8985_v39 = vld [vmem:[#allocation2 + $0x20] sm:$0x1] }
 0x14a   : > { %10612 = vst [vmem:[#allocation6_spill] sm:$0xff] %v8942_v37  ;;  %v3197_v50 = vsel %vm8927_vm8, %v3192_v58, %v3196_v12  ;;  %v3531_v41 = vshrl.u32 %v8932_v33, 16  ;;  %v3220_v59 = vrot.slane %v3218_v20, 5  ;;  %vm2370_vm9 = vcmp.ge.s32.totalorder %v8534_v8, 0  ;;  %v8972_v12 = vld [vmem:[#allocation2 + $0x1c] sm:$0xf] }
 0x14b   : > { %v8955_v22 = vcombine.low %v3187_v24, %v3197_v50  ;;  %v3206_v55 = vrot.slane %v3205_v63, 4  ;;  %v3215_v57 = vor.u32 %v3214_v42, %v3210_v16  ;;  %vm2380_vm10 = vcmp.lt.s32.totalorder %v8534_v8, 16  ;;  %v3368_v31 = vld [vmem:[#allocation2 + $0x18] sm:$0xe] }
 0x14c   : > { %v3411_v62 = vsel %vm8833_vm1, %v6829_v5, %v3410_v45  ;;  %v3412_v21 = vrot.slane %v3410_v45, 4  ;;  %v3413_v10 = vrot.slane %v8915_v15, 5  ;;  %v8970_v4 = vrot.slane %v3531_v41, 4  ;;  %7344 = vmatpush3.bf16.msra.mxu0 %v7881_v36  ;;  %v7893_v45 = vld [vmem:[%s10519_s5 + $0x190] sm:$0xff]   ;;  %v9037_v41 = vld [vmem:[%s10518_s4] ss:$0 sm:$0xff]  ;;  %vm9080_vm13 = vmand %vm2370_vm9, %vm2380_vm10 }
 0x14d   : > { %10613 = vst [vmem:[#allocation7_spill] sm:$0xff] %v8955_v22  ;;  %4994 = vmatprep.mubr.bf16.mxu1 %v8955_v22  ;;  %v3211_v19 = vsel %vm8927_vm8, %v3206_v55, %v3210_v16  ;;  %v3216_v7 = vrot.slane %v3215_v57, 4  ;;  %v3534_v18 = vshll.u32 %v8932_v33, 16  ;;  %v8983_v15 = vcombine.low %v8932_v33, %v8952_v54  ;;  %7345 = vmatprep.subr.bf16.mxu0 %v7886_v38  ;;  %v7895_v38 = vld [vmem:[%s10519_s5 + $0x168] sm:$0xff]   ;;  %vm9096_vm15 = vmand %vm9080_vm13, %vm2426_vm4  ;;  %v7907_v33 = vld [vmem:[%s10519_s5 + $0x180] sm:$0xff]  }
 0x14e   : > { %4995 = vmatmul.mubr.bf16.vlgmr.msra.gmra.mxu1 %v8942_v37  ;;  %v3414_v27 = vsel %vm8833_vm1, %v3412_v21, %v3413_v10  ;;  %v9003_v34 = vcombine.low %v8899_v56, %v8909_v0  ;;  %v3223_v35 = vshrl.u32 %v8957_v53, 16  ;;  %v3226_v40 = vshll.u32 %v8957_v53, 16  ;;  %v7890_v56 = vld [vmem:[%s10519_s5 + $0x130] sm:$0xff]   ;;  %vm9424_vm4 = vmand %vm9080_vm13, %vm2391_vm5 }
 0x14f   : > { %10614 = vst [vmem:[#allocation8_spill] sm:$0xff] %v8983_v15  ;;  %v3221_v32 = vsel %vm8927_vm8, %v3216_v7, %v3220_v59  ;;  %v9009_v24 = vcombine.low %v3411_v62, %v3414_v27  ;;  %v3232_v58 = vshll.u32 %v8972_v12, 16  ;;  %v3236_v16 = vshrl.u32 %v8972_v12, 16  ;;  %7274 = vmatpush3.bf16.msra.mxu1 %v7884_v52  ;;  %v7898_v59 = vld [vmem:[%s10519_s5 + $0x1c8] sm:$0xff]   ;;  %v3464_v7 = vld [vmem:[#allocation2 + $0x30] sm:$0xf] }
 0x150   : > { %10617 = vst [vmem:[#allocation9_spill] sm:$0xff] %v9003_v34  ;;  %v9016_v0 = vcombine.low %v3211_v19, %v3221_v32  ;;  %v3225_v20 = vrot.slane %v3223_v35, 4  ;;  %v3228_v36 = vrot.slane %v3226_v40, 5  ;;  %v3242_v63 = vshll.u32 %v8985_v39, 16  ;;  %7346 = vmatpush3.bf16.msra.mxu0 %v7887_v61  ;;  %7275 = vmatprep.subr.bf16.mxu1 %v7889_v17 }
 0x151   : > { %10618 = vst [vmem:[#allocation10_spill] sm:$0xff] %v9009_v24  ;;  %5100 = vmatmul.mubr.bf16.gmra.mxu0 %v9009_v24  ;;  %v3234_v50 = vrot.slane %v3232_v58, 5  ;;  %v3238_v5 = vrot.slane %v3236_v16, 4  ;;  %v1910_v55 = vadd.f32 %v9037_v41, %v8707_v2  ;;  %v6830_v57 = vrot.slane %v3368_v31, 9  ;;  %7347 = vmatprep.subr.bf16.mxu0 %v7892_v44  ;;  %v7896_v44 = vld [vmem:[%s10519_s5 + $0x128] sm:$0xff]  }
 0x152   : > { %10619 = vst [vmem:[#allocation11_spill] sm:$0xff] %v9016_v0  ;;  %5002 = vmatprep.mubr.bf16.mxu1 %v9016_v0  ;;  %5107 = vmatprep.mubr.bf16.mxu0 %v8983_v15  ;;  %v3229_v52 = vor.u32 %v3228_v36, %v3225_v20  ;;  %v3244_v61 = vrot.slane %v3242_v63, 5  ;;  %v3417_v62 = vrot.slane %v8972_v12, 5  ;;  %v3420_v21 = vrot.slane %v8985_v39, 5  ;;  %v9086_v63 = vld [vmem:[#allocation2 + $0x34] sm:$0xf] }
 0x153   : > { %v3239_v10 = vor.u32 %v3238_v5, %v3234_v50  ;;  %v1937_v17 = vmax.f32 %v1910_v55, 0.0  ;;  %v1902_v2 = vadd.f32 %v9037_v41, %v8730_v47  ;;  %v2981_v19 = vsel %vm9023_vm12, %v8841_v11, 0.0  ;;  %7276 = vmatpush3.bf16.msra.mxu1 %v7890_v56  ;;  %v7899_v47 = vld [vmem:[%s10519_s5 + $0x188] sm:$0xff]   ;;  %v7901_v11 = vld [vmem:[%s10519_s5 + $0x160] sm:$0xff]  }
 0x154   : > { %v3230_v27 = vrot.slane %v3229_v52, 4  ;;  %v3418_v35 = vsel %vm8833_vm1, %v6830_v57, %v3417_v62  ;;  %v3419_v39 = vrot.slane %v3417_v62, 4  ;;  %v2982_v40 = vsel %vm8991_vm11, %v8948_v48, 0.0  ;;  %7348 = vmatpush3.bf16.msra.mxu0 %v7893_v45  ;;  %7277 = vmatprep.subr.bf16.mxu1 %v7895_v38  ;;  %v7906_v48 = vld [vmem:[%s10519_s5 + $0x1c0] sm:$0xff]  }
 0x155   : > { %v3240_v31 = vrot.slane %v3239_v10, 4  ;;  %v9068_v32 = vrot.slane %v1937_v17, %v8456_v6  ;;  %v1935_v58 = vmax.f32 %v1902_v2, 0.0  ;;  %v7125_v16 = vpack.c.bf16 %v2982_v40, %v2981_v19  ;;  %7349 = vmatprep.subr.bf16.mxu0 %v7898_v59  ;;  %v9102_v57 = vld [vmem:[#allocation2 + $0x24] sm:$0xf]  ;;  %v9115_v10 = vld [vmem:[#allocation2 + $0x28] sm:$0xf] }
 0x156   : > { %5003 = vmatmul.mubr.bf16.gmra.mxu1 %v9003_v34  ;;  %v3235_v56 = vsel %vm8927_vm8, %v3230_v27, %v3234_v50  ;;  %v3421_v36 = vsel %vm8833_vm1, %v3419_v39, %v3420_v21  ;;  %v3555_v42 = vshrl.u32 %v3464_v7, 16  ;;  %v3558_v45 = vshll.u32 %v3464_v7, 16  ;;  %v7902_v59 = vld [vmem:[%s10519_s5 + $0x120] sm:$0xff]   ;;  %v7904_v17 = vld [vmem:[%s10519_s5 + $0x158] sm:$0xff]  }
 0x157   : > { %v3245_v38 = vsel %vm8927_vm8, %v3240_v31, %v3244_v61  ;;  %v2342_v50 = vcombine.high %v9068_v32, %v9068_v32  ;;  %v9100_v5 = vcombine.low %v3418_v35, %v3421_v36  ;;  %v2301_v55 = vcombine.high %v1935_v58, %v1935_v58  ;;  %7130 = vst [vmem:[#allocation2 + $0x60] sm:$0xff] %v7125_v16   ;;  %v7913_v35 = vld [vmem:[%s10520_s6 + $0x78] sm:$0xff]   ;;  %v3369_v16 = vld [vmem:[#allocation2 + $0x24] sm:$0xe] }
 0x158   : > { %7278 = vmatpush3.bf16.msra.mxu1 %v7896_v44  ;;  %v9109_v52 = vrot.slane %v3534_v18, 5  ;;  %v9112_v62 = vcombine.low %v3235_v56, %v3245_v38  ;;  %v2308_v21 = vrot.slane %v1935_v58, %v8456_v6  ;;  %7350 = vmatpush3.bf16.msra.mxu0 %v7899_v47  ;;  %v9133_v19 = vrot.slane %v3555_v42, 4 }
 0x159   : > { %10626 = vst [vmem:[#allocation12_spill] sm:$0xff] %v9100_v5  ;;  %7279 = vmatprep.subr.bf16.mxu1 %v7901_v11  ;;  %v2926_v18 = vrot.slane %v2342_v50, %v8456_v6  ;;  %5108 = vmatmul.mubr.bf16.gmra.mxu0 %v9100_v5  ;;  %v9135_v44 = vrot.slane %v3558_v45, 5  ;;  %v9138_v27 = vcombine.low %v3464_v7, %v9086_v63  ;;  %v3247_v40 = vshrl.u32 %v9102_v57, 16  ;;  %v7905_v7 = vld [vmem:[%s10519_s5 + $0x118] sm:$0xff]   ;;  %v3166_v45 = vld [vmem:[#allocation2 + $0x2c] sm:$0x1] }
 0x15a   : > { %10627 = vst [vmem:[#allocation13_spill] sm:$0xff] %v9112_v62  ;;  %7351 = vmatprep.subr.bf16.mxu0 %v7906_v48  ;;  %5010 = vmatprep.mubr.bf16.mxu1 %v9112_v62  ;;  %v9145_v1 = vrot.slane %v2301_v55, %v8456_v6  ;;  %v2316_v23 = vcombine.high %v2308_v21, %v2308_v21  ;;  %v3250_v31 = vshll.u32 %v9102_v57, 16  ;;  %v3256_v58 = vshll.u32 %v9115_v10, 16  ;;  %v7908_v48 = vld [vmem:[%s10519_s5 + $0x150] sm:$0xff]   ;;  %v9216_v5 = vld [vmem:[#allocation2 + $0x4c] sm:$0xf] }
 0x15b   : > { %10630 = vst [vmem:[#allocation14_spill] sm:$0xff] %v9138_v27  ;;  %v2885_v39 = vrot.slane %v2308_v21, %v8456_v6  ;;  %v2986_v47 = vsel %vm9096_vm15, %v2926_v18, 0.0  ;;  %5115 = vmatprep.mubr.bf16.mxu0 %v9138_v27  ;;  %v9157_v11 = vcombine.low %v8957_v53, %v8972_v12  ;;  %v3249_v53 = vrot.slane %v3247_v40, 4  ;;  %v9169_v12 = vld [vmem:[#allocation2 + $0x3c] sm:$0xf] }
 0x15c   : > { %7280 = vmatpush3.bf16.msra.mxu1 %v7902_v59  ;;  %v7101_v56 = vpack.c.bf16 %v2986_v47, %v2986_v47  ;;  %v9165_v36 = vcombine.low %v2316_v23, %v9145_v1  ;;  %7352 = vmatpush3.bf16.msra.mxu0 %v7907_v33  ;;  %v3252_v50 = vrot.slane %v3250_v31, 5  ;;  %v3258_v8 = vrot.slane %v3256_v58, 5  ;;  %v9175_v33 = vld [vmem:[#allocation2 + $0x40] sm:$0xf] }
 0x15d   : > { %10631 = vst [vmem:[#allocation15_spill] sm:$0xff] %v9157_v11  ;;  %v2983_v42 = vsel %vm9129_vm0, %v2885_v39, 0.0  ;;  %7281 = vmatprep.subr.bf16.mxu1 %v7904_v17  ;;  %v3260_v55 = vshrl.u32 %v9115_v10, 16  ;;  %7417 = vmatprep.subr.bf16.mxu0 %v7913_v35  ;;  %v3266_v21 = vshll.u32 %v3166_v45, 16  ;;  %v6831_v18 = vrot.slane %v3369_v16, 9  ;;  %v7909_v35 = vld [vmem:[%s10519_s5 + $0x110] sm:$0xff]  }
 0x15e   : > { %v7098_v38 = vpack.c.bf16 %v2983_v42, %v2983_v42  ;;  %3146 = vst [vmem:[#allocation2 + $0x74] sm:$0x1] %v7101_v56  ;;  %5011 = vmatmul.mubr.bf16.gmra.mxu1 %v9157_v11  ;;  %v3424_v2 = vrot.slane %v9115_v10, 5  ;;  %v3253_v23 = vor.u32 %v3252_v50, %v3249_v53  ;;  %v3427_v17 = vrot.slane %v3166_v45, 5  ;;  %v3155_v56 = vld [vmem:[#allocation2 + $0x30] sm:$0xf] }
 0x15f   : > { %v3262_v39 = vrot.slane %v3260_v55, 4  ;;  %v3579_v40 = vshrl.u32 %v9169_v12, 16  ;;  %v3268_v58 = vrot.slane %v3266_v21, 5  ;;  %v7911_v42 = vld [vmem:[%s10519_s5 + $0x148] sm:$0xff]   ;;  %v3156_v50 = vld [vmem:[#allocation2 + $0x34] sm:$0xf]  ;;  %v9198_v61 = vcombine.low %v9169_v12, %v9175_v33 }
 0x160   : > { %3143 = vst [vmem:[#allocation2 + $0x68] sm:$0x1] %v7098_v38  ;;  %7282 = vmatpush3.bf16.msra.mxu1 %v7905_v7  ;;  %v3426_v16 = vrot.slane %v3424_v2, 4  ;;  %v3254_v45 = vrot.slane %v3253_v23, 4  ;;  %v3425_v53 = vsel %vm8833_vm1, %v6831_v18, %v3424_v2  ;;  %v3582_v38 = vshll.u32 %v9169_v12, 16  ;;  %v7916_v12 = vld [vmem:[%s10519_s5 + $0x140] sm:$0xff]  }
 0x161   : > { %7283 = vmatprep.subr.bf16.mxu1 %v7908_v48  ;;  %v3263_v7 = vor.u32 %v3262_v39, %v3258_v8  ;;  %v3167_v55 = vld [vmem:[#allocation2 + $0x38] sm:$0x1]  ;;  %v9193_v21 = vrot.slane %v3579_v40, 4  ;;  %10632 = vst [vmem:[#allocation16_spill] sm:$0xff] %v9198_v61  ;;  %v3370_v23 = vld [vmem:[#allocation2 + $0x30] sm:$0xe] }
 0x162   : > { %v3428_v59 = vsel %vm8833_vm1, %v3426_v16, %v3427_v17  ;;  %v3259_v39 = vsel %vm8927_vm8, %v3254_v45, %v3258_v8  ;;  %v3271_v43 = vshrl.u32 %v3155_v56, 16  ;;  %v7912_v17 = vld [vmem:[%s10519_s5 + $0x108] sm:$0xff]   ;;  %v3274_v40 = vshll.u32 %v3155_v56, 16 }
 0x163   : > { %v3264_v18 = vrot.slane %v3263_v7, 4  ;;  %v9202_v2 = vcombine.low %v3425_v53, %v3428_v59  ;;  %v3280_v16 = vshll.u32 %v3156_v50, 16  ;;  %v3284_v48 = vshrl.u32 %v3156_v50, 16  ;;  %v3468_v7 = vld [vmem:[#allocation2 + $0x48] sm:$0xf] }
 0x164   : > { %7284 = vmatpush3.bf16.msra.mxu1 %v7909_v35  ;;  %v3290_v31 = vshll.u32 %v3167_v55, 16  ;;  %v3273_v59 = vrot.slane %v3271_v43, 4  ;;  %v6832_v35 = vrot.slane %v3370_v23, 9  ;;  %v3431_v45 = vrot.slane %v3156_v50, 5  ;;  %v7917_v23 = vld [vmem:[%s10519_s5 + $0x100] sm:$0xff]  }
 0x165   : > { %10633 = vst [vmem:[#allocation17_spill] sm:$0xff] %v9202_v2  ;;  %7285 = vmatprep.subr.bf16.mxu1 %v7911_v42  ;;  %v3269_v8 = vsel %vm8927_vm8, %v3264_v18, %v3268_v58  ;;  %5116 = vmatmul.mubr.bf16.gmra.mxu0 %v9202_v2  ;;  %v3276_v47 = vrot.slane %v3274_v40, 5  ;;  %v3282_v27 = vrot.slane %v3280_v16, 5  ;;  %v3286_v42 = vrot.slane %v3284_v48, 4  ;;  %v9230_v16 = vld [vmem:[#allocation2 + $0x3c] sm:$0xf] }
 0x166   : > { %v9213_v53 = vcombine.low %v3259_v39, %v3269_v8  ;;  %5123 = vmatprep.mubr.bf16.mxu0 %v9198_v61  ;;  %v9218_v15 = vrot.slane %v3582_v38, 5  ;;  %v9222_v58 = vcombine.low %v9102_v57, %v9115_v10  ;;  %v3433_v18 = vrot.slane %v3431_v45, 4  ;;  %v9232_v8 = vld [vmem:[#allocation2 + $0x40] sm:$0xf]  ;;  %v9237_v57 = vld [vmem:[%s10519_s5 + $0x238] sm:$0xff]  }
 0x167   : > { %v3434_v43 = vrot.slane %v3167_v55, 5  ;;  %v3277_v39 = vor.u32 %v3276_v47, %v3273_v59  ;;  %v3287_v40 = vor.u32 %v3286_v42, %v3282_v27  ;;  %v3292_v48 = vrot.slane %v3290_v31, 5  ;;  %v3168_v42 = vld [vmem:[#allocation2 + $0x44] sm:$0x1] }
 0x168   : > { %10634 = vst [vmem:[#allocation18_spill] sm:$0xff] %v9213_v53  ;;  %10635 = vst [vmem:[#allocation19_spill] sm:$0xff] %v9222_v58  ;;  %7286 = vmatpush3.bf16.msra.mxu1 %v7912_v17  ;;  %5018 = vmatprep.mubr.bf16.mxu1 %v9213_v53  ;;  %v3432_v38 = vsel %vm8833_vm1, %v6832_v35, %v3431_v45  ;;  %v3603_v47 = vshrl.u32 %v3468_v7, 16  ;;  %v3606_v31 = vshll.u32 %v3468_v7, 16  ;;  %v3295_v61 = vshrl.u32 %v9230_v16, 16 }
 0x169   : > { %7287 = vmatprep.subr.bf16.mxu1 %v7916_v12  ;;  %5019 = vmatmul.mubr.bf16.gmra.mxu1 %v9222_v58  ;;  %v3435_v10 = vsel %vm8833_vm1, %v3433_v18, %v3434_v43  ;;  %v3278_v17 = vrot.slane %v3277_v39, 4  ;;  %v3288_v59 = vrot.slane %v3287_v40, 4  ;;  %v9244_v35 = vcombine.low %v3468_v7, %v9216_v5  ;;  %v3470_v40 = vld [vmem:[#allocation2 + $0x54] sm:$0xf]  ;;  %v9288_v53 = vld [vmem:[#allocation2 + $0x60] sm:$0xf] }
 0x16a   : > { %v9246_v12 = vcombine.low %v3155_v56, %v3156_v50  ;;  %v9248_v45 = vcombine.low %v3432_v38, %v3435_v10  ;;  %v3298_v2 = vshll.u32 %v9230_v16, 16  ;;  %v3304_v18 = vshll.u32 %v9232_v8, 16  ;;  %v3371_v50 = vld [vmem:[#allocation2 + $0x3c] sm:$0xe] }
 0x16b   : > { %10636 = vst [vmem:[#allocation20_spill] sm:$0xff] %v9244_v35  ;;  %v3283_v43 = vsel %vm8927_vm8, %v3278_v17, %v3282_v27  ;;  %v3293_v39 = vsel %vm8927_vm8, %v3288_v59, %v3292_v48  ;;  %v3308_v7 = vshrl.u32 %v9232_v8, 16  ;;  %v3314_v56 = vshll.u32 %v3168_v42, 16  ;;  %v3159_v59 = vld [vmem:[#allocation2 + $0x48] sm:$0xf] }
 0x16c   : > { %10637 = vst [vmem:[#allocation21_spill] sm:$0xff] %v9246_v12  ;;  %10638 = vst [vmem:[#allocation22_spill] sm:$0xff] %v9248_v45  ;;  %7288 = vmatpush3.bf16.msra.mxu1 %v7917_v23  ;;  %v9259_v38 = vcombine.low %v3283_v43, %v3293_v39  ;;  %v3297_v10 = vrot.slane %v3295_v61, 4  ;;  %v3300_v55 = vrot.slane %v3298_v2, 5  ;;  %v3306_v23 = vrot.slane %v3304_v18, 5 }
 0x16d   : > { %7717 = vmatprep.subr.bf16.mxu1 %v9237_v57  ;;  %5124 = vmatmul.mubr.bf16.gmra.mxu0 %v9248_v45  ;;  %v9262_v24 = vrot.slane %v3603_v47, 4  ;;  %v9264_v27 = vrot.slane %v3606_v31, 5  ;;  %v3310_v48 = vrot.slane %v3308_v7, 4  ;;  %v3438_v17 = vrot.slane %v9232_v8, 5  ;;  %v3160_v45 = vld [vmem:[#allocation2 + $0x4c] sm:$0xf] }
 0x16e   : > { %10639 = vst [vmem:[#allocation23_spill] sm:$0xff] %v9259_v38  ;;  %5131 = vmatprep.mubr.bf16.mxu0 %v9244_v35  ;;  %5026 = vmatprep.mubr.bf16.mxu1 %v9259_v38  ;;  %v3301_v30 = vor.u32 %v3300_v55, %v3297_v10  ;;  %v6833_v43 = vrot.slane %v3371_v50, 9  ;;  %v3441_v39 = vrot.slane %v3168_v42, 5  ;;  %v3627_v25 = vshrl.u32 %v3470_v40, 16  ;;  %v9269_v47 = vld [vmem:[#allocation2 + $0x58] sm:$0xf] }
 0x16f   : > { %v3311_v61 = vor.u32 %v3310_v48, %v3306_v23  ;;  %v3316_v2 = vrot.slane %v3314_v56, 5  ;;  %v3440_v18 = vrot.slane %v3438_v17, 4  ;;  %v3630_v31 = vshll.u32 %v3470_v40, 16  ;;  %v3169_v50 = vld [vmem:[#allocation2 + $0x50] sm:$0x1] }
 0x170   : > { %v3302_v35 = vrot.slane %v3301_v30, 4  ;;  %v3439_v7 = vsel %vm8833_vm1, %v6833_v43, %v3438_v17  ;;  %v9274_v26 = vrot.slane %v3627_v25, 4  ;;  %v9280_v56 = vcombine.low %v3470_v40, %v9269_v47  ;;  %v3372_v38 = vld [vmem:[#allocation2 + $0x48] sm:$0xe] }
 0x171   : > { %5027 = vmatmul.mubr.bf16.gmra.mxu1 %v9246_v12  ;;  %v3312_v42 = vrot.slane %v3311_v61, 4  ;;  %v3442_v10 = vsel %vm8833_vm1, %v3440_v18, %v3441_v39  ;;  %v3319_v48 = vshrl.u32 %v3159_v59, 16  ;;  %v3322_v17 = vshll.u32 %v3159_v59, 16 }
 0x172   : > { %10640 = vst [vmem:[#allocation24_spill] sm:$0xff] %v9280_v56  ;;  %v3307_v30 = vsel %vm8927_vm8, %v3302_v35, %v3306_v23  ;;  %v9284_v12 = vcombine.low %v3439_v7, %v3442_v10  ;;  %v3328_v25 = vshll.u32 %v3160_v45, 16  ;;  %v3332_v61 = vshrl.u32 %v3160_v45, 16 }
 0x173   : > { %v3317_v43 = vsel %vm8927_vm8, %v3312_v42, %v3316_v2  ;;  %v3321_v55 = vrot.slane %v3319_v48, 4  ;;  %v3338_v58 = vshll.u32 %v3169_v50, 16  ;;  %v3324_v40 = vrot.slane %v3322_v17, 5  ;;  %v9296_v2 = vld [vmem:[#allocation2 + $0x64] sm:$0xf] }
 0x174   : > { %10641 = vst [vmem:[#allocation25_spill] sm:$0xff] %v9284_v12  ;;  %v9290_v39 = vcombine.low %v3307_v30, %v3317_v43  ;;  %v3330_v18 = vrot.slane %v3328_v25, 5  ;;  %v6834_v11 = vrot.slane %v3372_v38, 9  ;;  %v9293_v35 = vrot.slane %v3630_v31, 5  ;;  %v9304_v38 = vld [vmem:[#allocation2 + $0x54] sm:$0xf] }
 0x175   : > { %5132 = vmatmul.mubr.bf16.gmra.mxu0 %v9284_v12  ;;  %v3334_v23 = vrot.slane %v3332_v61, 4  ;;  %v3445_v7 = vrot.slane %v3160_v45, 5  ;;  %v3448_v10 = vrot.slane %v3169_v50, 5  ;;  %v9301_v42 = vcombine.low %v9230_v16, %v9232_v8  ;;  %v3373_v8 = vld [vmem:[#allocation2 + $0x54] sm:$0xe] }
 0x176   : > { %10642 = vst [vmem:[#allocation26_spill] sm:$0xff] %v9290_v39  ;;  %5139 = vmatprep.mubr.bf16.mxu0 %v9280_v56  ;;  %5034 = vmatprep.mubr.bf16.mxu1 %v9290_v39  ;;  %v3325_v48 = vor.u32 %v3324_v40, %v3321_v55  ;;  %v3340_v30 = vrot.slane %v3338_v58, 5  ;;  %v3651_v17 = vshrl.u32 %v9288_v53, 16  ;;  %v9313_v16 = vcombine.low %v9288_v53, %v9296_v2  ;;  %v3170_v50 = vld [vmem:[#allocation2 + $0x5c] sm:$0x1] }
 0x177   : > { %10643 = vst [vmem:[#allocation27_spill] sm:$0xff] %v9301_v42  ;;  %v3335_v31 = vor.u32 %v3334_v23, %v3330_v18  ;;  %v3446_v25 = vsel %vm8833_vm1, %v6834_v11, %v3445_v7  ;;  %v3447_v43 = vrot.slane %v3445_v7, 4  ;;  %v9315_v58 = vcombine.low %v3159_v59, %v3160_v45  ;;  %v3162_v11 = vld [vmem:[#allocation2 + $0x58] sm:$0xf]  ;;  %v9329_v39 = vld [vmem:[#allocation2 + $0x1c] sm:$0xf] }
 0x178   : > { %v3326_v61 = vrot.slane %v3325_v48, 4  ;;  %10644 = vst [vmem:[#allocation28_spill] sm:$0xff] %v9313_v16  ;;  %v3343_v23 = vshrl.u32 %v9304_v38, 16  ;;  %v3346_v7 = vshll.u32 %v9304_v38, 16  ;;  %v3352_v12 = vshll.u32 %v3162_v11, 16 }
 0x179   : > { %5035 = vmatmul.mubr.bf16.gmra.mxu1 %v9301_v42  ;;  %10645 = vst [vmem:[#allocation29_spill] sm:$0xff] %v9315_v58  ;;  %v3336_v55 = vrot.slane %v3335_v31, 4  ;;  %v3449_v40 = vsel %vm8833_vm1, %v3447_v43, %v3448_v10  ;;  %v3356_v42 = vshrl.u32 %v3162_v11, 16  ;;  %v9325_v45 = vld [vmem:[#allocation2 + $0x18] sm:$0xf]  ;;  %v3362_v43 = vshll.u32 %v3170_v50, 16 }
 0x17a   : > { %v3331_v48 = vsel %vm8927_vm8, %v3326_v61, %v3330_v18  ;;  %v9323_v56 = vcombine.low %v3446_v25, %v3449_v40  ;;  %v3345_v31 = vrot.slane %v3343_v23, 4  ;;  %v3348_v10 = vrot.slane %v3346_v7, 5 }
 0x17b   : > { %v3341_v59 = vsel %vm8927_vm8, %v3336_v55, %v3340_v30  ;;  %v3354_v18 = vrot.slane %v3352_v12, 5  ;;  %v3358_v25 = vrot.slane %v3356_v42, 4  ;;  %v6835_v61 = vrot.slane %v3373_v8, 9  ;;  %v9336_v55 = vld [vmem:[#allocation2 + $0x20] sm:$0x1] }
 0x17c   : > { %10646 = vst [vmem:[#allocation30_spill] sm:$0xff] %v9323_v56  ;;  %v9331_v62 = vcombine.low %v3331_v48, %v3341_v59  ;;  %v3349_v40 = vor.u32 %v3348_v10, %v3345_v31  ;;  %v3364_v34 = vrot.slane %v3362_v43, 5  ;;  %v3452_v0 = vrot.slane %v3162_v11, 5 }
 0x17d   : > { %5140 = vmatmul.mubr.bf16.gmra.mxu0 %v9323_v56  ;;  %v3455_v37 = vrot.slane %v3170_v50, 5  ;;  %v3359_v30 = vor.u32 %v3358_v25, %v3354_v18  ;;  %v3788_v23 = vshrl.u32 %v9325_v45, 16  ;;  %v3791_v7 = vshll.u32 %v9325_v45, 16  ;;  %v3474_v25 = vld [vmem:[#allocation2 + $0x14] sm:$0x1] }
 0x17e   : > { %10647 = vst [vmem:[#allocation31_spill] sm:$0xff] %v9331_v62  ;;  %5147 = vmatprep.mubr.bf16.mxu0 %v9313_v16  ;;  %5042 = vmatprep.mubr.bf16.mxu1 %v9331_v62  ;;  %v3797_v48 = vshll.u32 %v9329_v39, 16  ;;  %v3350_v12 = vrot.slane %v3349_v40, 4  ;;  %v3453_v42 = vsel %vm8833_vm1, %v6835_v61, %v3452_v0  ;;  %v3454_v8 = vrot.slane %v3452_v0, 4  ;;  %v3674_v61 = vld [vmem:[#allocation2 + $0xc] sm:$0xe] }
 0x17f   : > { %v3801_v59 = vshrl.u32 %v9329_v39, 16  ;;  %v3360_v50 = vrot.slane %v3359_v30, 4  ;;  %v3790_v31 = vrot.slane %v3788_v23, 4  ;;  %v3793_v10 = vrot.slane %v3791_v7, 5  ;;  %v1904_v7 = vpop.f32.mrf.mxu1 }
 0x180   : > { %v3799_v43 = vrot.slane %v3797_v48, 5  ;;  %v3355_v16 = vsel %vm8927_vm8, %v3350_v12, %v3354_v18  ;;  %v3456_v56 = vsel %vm8833_vm1, %v3454_v8, %v3455_v37  ;;  %v3807_v62 = vshll.u32 %v9336_v55, 16  ;;  %v9361_v12 = vld [vmem:[#allocation2 + $0x24] sm:$0xf] }
 0x181   : > { %5043 = vmatmul.mubr.bf16.gmra.mxu1 %v9315_v58  ;;  %v3803_v40 = vrot.slane %v3801_v59, 4  ;;  %v9350_v0 = vrot.slane %v3651_v17, 4  ;;  %v3365_v58 = vsel %vm8927_vm8, %v3360_v50, %v3364_v34  ;;  %v9354_v30 = vcombine.low %v3453_v42, %v3456_v56  ;;  %v9365_v56 = vld [vmem:[#allocation2 + $0x28] sm:$0xf] }
 0x182   : > { %v3794_v23 = vor.u32 %v3793_v10, %v3790_v31  ;;  %v9356_v48 = vcombine.low %v3355_v16, %v3365_v58  ;;  %v9359_v18 = vcombine.low %v9304_v38, %v3162_v11  ;;  %v3502_v37 = vshll.u32 %v3474_v25, 16 }
 0x183   : > { %v3804_v22 = vor.u32 %v3803_v40, %v3799_v43  ;;  %v3809_v8 = vrot.slane %v3807_v62, 5  ;;  %v6836_v59 = vrot.slane %v3674_v61, 9  ;;  %v3708_v34 = vrot.slane %v8802_v13, 5 }
 0x184   : > { %v3795_v17 = vrot.slane %v3794_v23, 4  ;;  %5050 = vmatprep.mubr.bf16.mxu1 %v9356_v48  ;;  %v3504_v58 = vrot.slane %v3502_v37, 5  ;;  %v3711_v42 = vrot.slane %v3474_v25, 5  ;;  %v1905_v38 = vadd.f32 %v9037_v41, %v1904_v7 }
 0x185   : > { %5148 = vmatmul.mubr.bf16.gmra.mxu0 %v9354_v30  ;;  %v3805_v16 = vrot.slane %v3804_v22, 4  ;;  %v3709_v50 = vsel %vm8833_vm1, %v6836_v59, %v3708_v34  ;;  %v3710_v31 = vrot.slane %v3708_v34, 4  ;;  %v3812_v62 = vshrl.u32 %v9361_v12, 16 }
 0x186   : > { %v3800_v11 = vsel %vm8927_vm8, %v3795_v17, %v3799_v43  ;;  %v1936_v10 = vmax.f32 %v1905_v38, 0.0  ;;  %v3815_v40 = vshll.u32 %v9361_v12, 16  ;;  %v3821_v22 = vshll.u32 %v9365_v56, 16  ;;  %v7915_v17 = vld [vmem:[%s10520_s6 + $0x38] sm:$0xff]  }
 0x187   : > { %v3810_v13 = vsel %vm8927_vm8, %v3805_v16, %v3809_v8  ;;  %v3712_v41 = vsel %vm8833_vm1, %v3710_v31, %v3711_v42  ;;  %v3814_v43 = vrot.slane %v3812_v62, 4  ;;  %v3825_v61 = vshrl.u32 %v9365_v56, 16  ;;  %v9390_v8 = vld [vmem:[#allocation2 + $0x2c] sm:$0x1] }
 0x188   : > { %v9378_v25 = vcombine.low %v3800_v11, %v3810_v13  ;;  %v9384_v23 = vcombine.low %v3709_v50, %v3712_v41  ;;  %v2318_v7 = vcombine.high %v1936_v10, %v1936_v10  ;;  %v2325_v37 = vrot.slane %v1936_v10, %v8456_v6  ;;  %v7918_v11 = vld [vmem:[%s10520_s6 + $0x70] sm:$0xff]  }
 0x189   : > { %5051 = vmatmul.mubr.bf16.gmra.mxu1 %v9359_v18  ;;  %v3817_v59 = vrot.slane %v3815_v40, 5  ;;  %v9395_v34 = vcombine.low %v9325_v45, %v9329_v39  ;;  %v3823_v16 = vrot.slane %v3821_v22, 5  ;;  %v3827_v42 = vrot.slane %v3825_v61, 4  ;;  %v3675_v45 = vld [vmem:[#allocation2 + $0x18] sm:$0xe] }
 0x18a   : > { %10648 = vst [vmem:[#allocation32_spill] sm:$0xff] %v9378_v25  ;;  %5285 = vmatprep.mubr.bf16.mxu0 %v9378_v25  ;;  %v3831_v38 = vshll.u32 %v9390_v8, 16  ;;  %5188 = vmatprep.mubr.bf16.mxu1 %v9384_v23  ;;  %v2332_v50 = vrot.slane %v2318_v7, %v8456_v6  ;;  %v2333_v31 = vcombine.high %v2325_v37, %v2325_v37 }
 0x18b   : > { %v10649_v62 = vcombine.high %v9145_v1, %v9145_v1  ;;  %v3818_v10 = vor.u32 %v3817_v59, %v3814_v43  ;;  %v3828_v40 = vor.u32 %v3827_v42, %v3823_v16  ;;  %v3495_v41 = vsel %vm8927_vm8, %v8843_v60, %v8821_v49  ;;  %v7920_v59 = vld [vmem:[%s10520_s6 + $0x30] sm:$0xff]   ;;  %v7921_v42 = vld [vmem:[%s10520_s6 + $0x68] sm:$0xff]  }
 0x18c   : > { %v3833_v22 = vrot.slane %v3831_v38, 5  ;;  %v3505_v61 = vsel %vm8927_vm8, %v8850_v9, %v3504_v58  ;;  %v2334_v7 = vcombine.high %v2332_v50, %v2332_v50  ;;  %v2903_v1 = vcombine.low %v2333_v31, %v2332_v50 }
 0x18d   : > { %v2887_v13 = vcombine.low %v10649_v62, %v2325_v37  ;;  %5286 = vmatmul.mubr.bf16.vlgmr.msra.gmra.mxu0 %v9395_v34  ;;  %v3819_v43 = vrot.slane %v3818_v10, 4  ;;  %v9415_v37 = vld [vmem:[#allocation2 + $0x20] sm:$0x1]  ;;  %v3829_v60 = vrot.slane %v3828_v40, 4  ;;  %v9428_v9 = vcombine.low %v3495_v41, %v3505_v61  ;;  %v9463_v61 = vld [vmem:[#allocation2 + $0x38] sm:$0x1] }
 0x18e   : > { %7418 = vmatpush3.bf16.msra.mxu0 %v7915_v17  ;;  %v6837_v58 = vrot.slane %v3675_v45, 9  ;;  %v3715_v17 = vrot.slane %v8848_v14, 5  ;;  %v10652_v38 = vrot.slane %v9165_v36, %v8456_v6  ;;  %v2904_v31 = vcombine.low %v2334_v7, %v9068_v32  ;;  %v7923_v7 = vld [vmem:[%s10520_s6 + $0x28] sm:$0xff]  }
 0x18f   : > { %v2901_v25 = vrot.slane %v2887_v13, %v8456_v6  ;;  %7419 = vmatprep.subr.bf16.mxu0 %v7918_v11  ;;  %v2911_v62 = vrot.slane %v2903_v1, %v8456_v6  ;;  %v3824_v13 = vsel %vm8927_vm8, %v3819_v43, %v3823_v16  ;;  %v9444_v11 = vld [vmem:[#allocation2 + $0x30] sm:$0xf]  ;;  %v3834_v10 = vsel %vm8927_vm8, %v3829_v60, %v3833_v22 }
 0x190   : > { %v3716_v45 = vsel %vm8833_vm1, %v6837_v58, %v3715_v17  ;;  %v3717_v40 = vrot.slane %v3715_v17, 4  ;;  %v3718_v36 = vrot.slane %v9415_v37, 5  ;;  %v2918_v32 = vrot.slane %v2904_v31, %v8456_v6  ;;  %v3676_v17 = vld [vmem:[#allocation2 + $0x24] sm:$0xe] }
 0x191   : > { %v2902_v50 = vcombine.low %v10652_v38, %v2901_v25  ;;  %5189 = vmatmul.mubr.bf16.vlgmr.msra.gmra.mxu1 %v9428_v9  ;;  %v9452_v25 = vld [vmem:[#allocation2 + $0x34] sm:$0xf]  ;;  %v9457_v41 = vcombine.low %v3824_v13, %v3834_v10  ;;  %v9461_v22 = vcombine.low %v9361_v12, %v9365_v56  ;;  %v3836_v43 = vshrl.u32 %v9444_v11, 16  ;;  %v7924_v12 = vld [vmem:[%s10520_s6 + $0x60] sm:$0xff]   ;;  %v7935_v38 = vld [vmem:[%s10519_s5 + $0x228] sm:$0xff]  }
 0x192   : > { %7420 = vmatpush3.bf16.msra.mxu0 %v7920_v59  ;;  %7718 = vmatpush3.bf16.msra.mxu1 %v9237_v57  ;;  %v3719_v6 = vsel %vm8833_vm1, %v3717_v40, %v3718_v36  ;;  %v3839_v49 = vshll.u32 %v9444_v11, 16  ;;  %v2919_v59 = vcombine.low %v2911_v62, %v2918_v32  ;;  %v3845_v57 = vshll.u32 %v9452_v25, 16  ;;  %v9488_v13 = vld [vmem:[#allocation2 + $0x2c] sm:$0x1]  ;;  %v8004_v36 = vld [vmem:[#allocation2 + $0x1c] sm:$0xf] }
 0x193   : > { %v2984_v16 = vsel %vm9424_vm4, %v2902_v50, 0.0  ;;  %10653 = vst [vmem:[#allocation33_spill] sm:$0xff] %v9457_v41  ;;  %10654 = vst [vmem:[#allocation34_spill] sm:$0xff] %v9461_v22  ;;  %7421 = vmatprep.subr.bf16.mxu0 %v7921_v42  ;;  %7719 = vmatprep.subr.bf16.mxu1 %v7931_v3  ;;  %v9477_v60 = vcombine.low %v3716_v45, %v3719_v6  ;;  %v3849_v58 = vshrl.u32 %v9452_v25, 16  ;;  %v3838_v42 = vrot.slane %v3836_v43, 4 }
 0x194   : > { %v7099_v1 = vpack.c.bf16 %v2984_v16, %v2984_v16  ;;  %5293 = vmatprep.mubr.bf16.mxu0 %v9457_v41  ;;  %v3841_v50 = vrot.slane %v3839_v49, 5  ;;  %v3855_v31 = vshll.u32 %v9463_v61, 16  ;;  %v3513_v62 = vor.u32 %v8892_v46, %v8867_v29  ;;  %v7926_v16 = vld [vmem:[%s10520_s6 + $0x20] sm:$0xff]   ;;  %v7928_v46 = vld [vmem:[%s10520_s6 + $0x58] sm:$0xff]  }
 0x195   : > { %5294 = vmatmul.mubr.bf16.gmra.mxu0 %v9461_v22  ;;  %v2985_v10 = vsel %vm9080_vm13, %v2919_v59, 0.0  ;;  %5196 = vmatprep.mubr.bf16.mxu1 %v9477_v60  ;;  %v3847_v45 = vrot.slane %v3845_v57, 5  ;;  %v3851_v40 = vrot.slane %v3849_v58, 4  ;;  %v3516_v32 = vshll.u32 %v8004_v36, 16  ;;  %v7939_v58 = vld [vmem:[%s10519_s5 + $0x220] sm:$0xff]   ;;  %v7930_v36 = vld [vmem:[%s10520_s6 + $0x18] sm:$0xff]  }
 0x196   : > { %3144 = vst [vmem:[#allocation2 + $0x6c] sm:$0xf] %v7099_v1  ;;  %7422 = vmatpush3.bf16.msra.mxu0 %v7923_v7  ;;  %v7100_v1 = vpack.c.bf16 %v2985_v10, %v2985_v10  ;;  %v3842_v6 = vor.u32 %v3841_v50, %v3838_v42  ;;  %v3857_v43 = vrot.slane %v3855_v31, 5  ;;  %v3514_v29 = vrot.slane %v3513_v62, 4  ;;  %7720 = vmatpush3.bf16.msra.mxu1 %v7931_v3  ;;  %v9507_v3 = vld [vmem:[#allocation2 + $0x3c] sm:$0xf] }
 0x197   : > { %7423 = vmatprep.subr.bf16.mxu0 %v7924_v12  ;;  %v3852_v20 = vor.u32 %v3851_v40, %v3847_v45  ;;  %v3518_v49 = vrot.slane %v3516_v32, 5  ;;  %v10655_v59 = vshrl.u32 %v8848_v14, 16  ;;  %v3526_v7 = vshll.u32 %v9415_v37, 16  ;;  %7721 = vmatprep.subr.bf16.mxu1 %v7935_v38  ;;  %v9511_v40 = vld [vmem:[#allocation2 + $0x40] sm:$0xf] }
 0x198   : > { %3145 = vst [vmem:[#allocation2 + $0x70] sm:$0xf] %v7100_v1  ;;  %v3843_v42 = vrot.slane %v3842_v6, 4  ;;  %v6838_v12 = vrot.slane %v3676_v17, 9  ;;  %v3722_v50 = vrot.slane %v8952_v54, 5  ;;  %v3725_v31 = vrot.slane %v9488_v13, 5 }
 0x199   : > { %v3522_v57 = vrot.slane %v10655_v59, 4  ;;  %v3853_v62 = vrot.slane %v3852_v20, 4  ;;  %v3519_v14 = vsel %vm8927_vm8, %v3514_v29, %v3518_v49  ;;  %v3528_v37 = vrot.slane %v3526_v7, 5  ;;  %v3677_v7 = vld [vmem:[#allocation2 + $0x30] sm:$0xe] }
 0x19a   : > { %7424 = vmatpush3.bf16.msra.mxu0 %v7926_v16  ;;  %v3848_v17 = vsel %vm8927_vm8, %v3843_v42, %v3847_v45  ;;  %v3723_v32 = vsel %vm8833_vm1, %v6838_v12, %v3722_v50  ;;  %v3724_v1 = vrot.slane %v3722_v50, 4  ;;  %v9522_v6 = vcombine.low %v9444_v11, %v9452_v25  ;;  %v7932_v16 = vld [vmem:[%s10520_s6 + $0x50] sm:$0xff]   ;;  %7722 = vmatpush3.bf16.msra.mxu1 %v7935_v38  ;;  %v7940_v38 = vld [vmem:[%s10519_s5 + $0x218] sm:$0xff]   ;;  %v9544_v12 = vld [vmem:[#allocation2 + $0x44] sm:$0x1] }
 0x19b   : > { %v3523_v10 = vor.u32 %v3522_v57, %v3518_v49  ;;  %7425 = vmatprep.subr.bf16.mxu0 %v7928_v46  ;;  %v3858_v29 = vsel %vm8927_vm8, %v3853_v62, %v3857_v43  ;;  %v3860_v45 = vshrl.u32 %v9507_v3, 16  ;;  %v3863_v49 = vshll.u32 %v9507_v3, 16  ;;  %7723 = vmatprep.subr.bf16.mxu1 %v7939_v58  ;;  %v3678_v41 = vld [vmem:[#allocation2 + $0x3c] sm:$0xe] }
 0x19c   : > { %10656 = vst [vmem:[#allocation35_spill] sm:$0xff] %v9522_v6  ;;  %v9531_v59 = vcombine.low %v3848_v17, %v3858_v29  ;;  %v3726_v11 = vsel %vm8833_vm1, %v3724_v1, %v3725_v31  ;;  %v3869_v46 = vshll.u32 %v9511_v40, 16  ;;  %v3873_v57 = vshrl.u32 %v9511_v40, 16  ;;  %v7934_v31 = vld [vmem:[%s10520_s6 + $0x10] sm:$0xff]  }
 0x19d   : > { %v3524_v20 = vrot.slane %v3523_v10, 4  ;;  %v9542_v42 = vcombine.low %v3723_v32, %v3726_v11  ;;  %v3862_v50 = vrot.slane %v3860_v45, 4  ;;  %v3865_v62 = vrot.slane %v3863_v49, 5  ;;  %v9561_v11 = vld [vmem:[#allocation2 + $0x38] sm:$0x1] }
 0x19e   : > { %10657 = vst [vmem:[#allocation36_spill] sm:$0xff] %v9531_v59  ;;  %7426 = vmatpush3.bf16.msra.mxu0 %v7930_v36  ;;  %5301 = vmatprep.mubr.bf16.mxu0 %v9531_v59  ;;  %v3871_v17 = vrot.slane %v3869_v46, 5  ;;  %v3875_v1 = vrot.slane %v3873_v57, 4  ;;  %v3879_v29 = vshll.u32 %v9544_v12, 16  ;;  %v3537_v32 = vor.u32 %v9109_v52, %v8970_v4  ;;  %v7944_v4 = vld [vmem:[%s10519_s5 + $0x210] sm:$0xff]  }
 0x19f   : > { %v3529_v43 = vsel %vm8927_vm8, %v3524_v20, %v3528_v37  ;;  %7427 = vmatprep.subr.bf16.mxu0 %v7932_v16  ;;  %v7936_v37 = vld [vmem:[%s10520_s6 + $0x48] sm:$0xff]   ;;  %5302 = vmatmul.mubr.bf16.gmra.mxu0 %v9522_v6  ;;  %v3866_v36 = vor.u32 %v3865_v62, %v3862_v50  ;;  %v3550_v57 = vshll.u32 %v9488_v13, 16 }
 0x1a0   : > { %v9550_v10 = vcombine.low %v3519_v14, %v3529_v43  ;;  %v8005_v20 = vld [vmem:[#allocation2 + $0x28] sm:$0xf]  ;;  %v10658_v14 = vshrl.u32 %v8952_v54, 16  ;;  %7724 = vmatpush3.bf16.msra.mxu1 %v7939_v58  ;;  %v3876_v16 = vor.u32 %v3875_v1, %v3871_v17  ;;  %v3881_v46 = vrot.slane %v3879_v29, 5 }
 0x1a1   : > { %v3540_v45 = vshll.u32 %v8005_v20, 16  ;;  %v6839_v43 = vrot.slane %v3677_v7, 9  ;;  %v9565_v6 = vld [vmem:[#allocation2 + $0x48] sm:$0xf]  ;;  %7725 = vmatprep.subr.bf16.mxu1 %v7940_v38  ;;  %v3867_v54 = vrot.slane %v3866_v36, 4  ;;  %v3538_v52 = vrot.slane %v3537_v32, 4 }
 0x1a2   : > { %v3546_v49 = vrot.slane %v10658_v14, 4  ;;  %5197 = vmatmul.mubr.bf16.gmra.mxu1 %v9550_v10  ;;  %v3729_v58 = vrot.slane %v9086_v63, 5  ;;  %7428 = vmatpush3.bf16.msra.mxu0 %v7934_v31  ;;  %v7938_v13 = vld [vmem:[%s10520_s6 + $0x8] sm:$0xff]   ;;  %v3877_v7 = vrot.slane %v3876_v16, 4  ;;  %v3552_v62 = vrot.slane %v3550_v57, 5  ;;  %v7941_v36 = vld [vmem:[%s10520_s6 + $0x40] sm:$0xff]  }
 0x1a3   : > { %5204 = vmatprep.mubr.bf16.mxu1 %v9542_v42  ;;  %v3542_v50 = vrot.slane %v3540_v45, 5  ;;  %v3732_v1 = vrot.slane %v9561_v11, 5  ;;  %v9578_v29 = vcombine.low %v9507_v3, %v9511_v40  ;;  %v9580_v20 = vld [vmem:[#allocation2 + $0x4c] sm:$0xf]  ;;  %7429 = vmatprep.subr.bf16.mxu0 %v7936_v37  ;;  %v3872_v31 = vsel %vm8927_vm8, %v3867_v54, %v3871_v17  ;;  %v9591_v16 = vld [vmem:[#allocation2 + $0x50] sm:$0x1] }
 0x1a4   : > { %v3730_v14 = vsel %vm8833_vm1, %v6839_v43, %v3729_v58  ;;  %7726 = vmatpush3.bf16.msra.mxu1 %v7940_v38  ;;  %v3882_v3 = vsel %vm8927_vm8, %v3877_v7, %v3881_v46  ;;  %v3731_v37 = vrot.slane %v3729_v58, 4  ;;  %v3884_v57 = vshrl.u32 %v9565_v6, 16  ;;  %v7945_v17 = vld [vmem:[%s10519_s5 + $0x208] sm:$0xff]   ;;  %v7943_v46 = vld [vmem:[%s10520_s6] sm:$0xff]  }
 0x1a5   : > { %10659 = vst [vmem:[#allocation37_spill] sm:$0xff] %v9578_v29  ;;  %v3543_v32 = vsel %vm8927_vm8, %v3538_v52, %v3542_v50  ;;  %v3547_v45 = vor.u32 %v3546_v49, %v3542_v50  ;;  %v3887_v59 = vshll.u32 %v9565_v6, 16  ;;  %7727 = vmatprep.subr.bf16.mxu1 %v7944_v4  ;;  %v9600_v49 = vcombine.low %v3872_v31, %v3882_v3  ;;  %v7946_v31 = vld [vmem:[%s10520_s6 + $0x178] sm:$0xff]  }
 0x1a6   : > { %v3893_v43 = vshll.u32 %v9580_v20, 16  ;;  %v3897_v38 = vshrl.u32 %v9580_v20, 16  ;;  %7430 = vmatpush3.bf16.msra.mxu0 %v7938_v13  ;;  %v3733_v52 = vsel %vm8833_vm1, %v3731_v37, %v3732_v1  ;;  %v3886_v50 = vrot.slane %v3884_v57, 4  ;;  %v9623_v57 = vld [vmem:[#allocation2 + $0x44] sm:$0x1] }
 0x1a7   : > { %10660 = vst [vmem:[#allocation38_spill] sm:$0xff] %v9600_v49  ;;  %v3548_v54 = vrot.slane %v3547_v45, 4  ;;  %v3889_v58 = vrot.slane %v3887_v59, 5  ;;  %v3903_v7 = vshll.u32 %v9591_v16, 16  ;;  %7431 = vmatprep.subr.bf16.mxu0 %v7941_v36  ;;  %5309 = vmatprep.mubr.bf16.mxu0 %v9600_v49  ;;  %v9616_v45 = vcombine.low %v3730_v14, %v3733_v52 }
 0x1a8   : > { %v3895_v3 = vrot.slane %v3893_v43, 5  ;;  %v3899_v22 = vrot.slane %v3897_v38, 4  ;;  %7728 = vmatpush3.bf16.msra.mxu1 %v7944_v4  ;;  %5310 = vmatmul.mubr.bf16.gmra.mxu0 %v9578_v29  ;;  %v3561_v37 = vor.u32 %v9135_v44, %v9133_v19  ;;  %v10661_v4 = vshrl.u32 %v9086_v63, 16 }
 0x1a9   : > { %v3553_v13 = vsel %vm8927_vm8, %v3548_v54, %v3552_v62  ;;  %v3890_v59 = vor.u32 %v3889_v58, %v3886_v50  ;;  %v3905_v36 = vrot.slane %v3903_v7, 5  ;;  %7729 = vmatprep.subr.bf16.mxu1 %v7945_v17  ;;  %v7948_v62 = vld [vmem:[%s10519_s5 + $0x200] sm:$0xff]   ;;  %v3564_v54 = vshll.u32 %v9086_v63, 16  ;;  %v3773_v50 = vld [vmem:[#allocation2 + $0x54] sm:$0xf] }
 0x1aa   : > { %v9618_v1 = vcombine.low %v3543_v32, %v3553_v13  ;;  %v3900_v14 = vor.u32 %v3899_v22, %v3895_v3  ;;  %v3570_v32 = vrot.slane %v10661_v4, 4  ;;  %v3574_v43 = vshll.u32 %v9561_v11, 16  ;;  %7432 = vmatpush3.bf16.msra.mxu0 %v7943_v46 }
 0x1ab   : > { %v3891_v38 = vrot.slane %v3890_v59, 4  ;;  %v3562_v19 = vrot.slane %v3561_v37, 4  ;;  %v6840_v44 = vrot.slane %v3678_v41, 9  ;;  %v3736_v52 = vrot.slane %v9175_v33, 5  ;;  %7545 = vmatprep.subr.bf16.mxu0 %v7946_v31  ;;  %v7949_v31 = vld [vmem:[%s10520_s6 + $0xf8] sm:$0xff]  }
 0x1ac   : > { %5205 = vmatmul.mubr.bf16.gmra.mxu1 %v9618_v1  ;;  %v3901_v22 = vrot.slane %v3900_v14, 4  ;;  %v3566_v58 = vrot.slane %v3564_v54, 5  ;;  %v3576_v7 = vrot.slane %v3574_v43, 5  ;;  %v3739_v63 = vrot.slane %v9623_v57, 5  ;;  %v9651_v37 = vld [vmem:[#allocation2 + $0x58] sm:$0xf] }
 0x1ad   : > { %5212 = vmatprep.mubr.bf16.mxu1 %v9616_v45  ;;  %7730 = vmatpush3.bf16.msra.mxu1 %v7945_v17  ;;  %v3896_v11 = vsel %vm8927_vm8, %v3891_v38, %v3895_v3  ;;  %v3737_v46 = vsel %vm8833_vm1, %v6840_v44, %v3736_v52  ;;  %v3738_v13 = vrot.slane %v3736_v52, 4  ;;  %v9642_v41 = vcombine.low %v9565_v6, %v9580_v20  ;;  %v9660_v52 = vld [vmem:[#allocation2 + $0x5c] sm:$0x1] }
 0x1ae   : > { %7731 = vmatprep.subr.bf16.mxu1 %v7948_v62  ;;  %v3906_v59 = vsel %vm8927_vm8, %v3901_v22, %v3905_v36  ;;  %v3567_v17 = vsel %vm8927_vm8, %v3562_v19, %v3566_v58  ;;  %v3571_v3 = vor.u32 %v3570_v32, %v3566_v58  ;;  %v3908_v14 = vshrl.u32 %v3773_v50, 16 }
 0x1af   : > { %10662 = vst [vmem:[#allocation39_spill] sm:$0xff] %v9642_v41  ;;  %v9653_v54 = vcombine.low %v3896_v11, %v3906_v59  ;;  %v3740_v6 = vsel %vm8833_vm1, %v3738_v13, %v3739_v63  ;;  %v3911_v4 = vshll.u32 %v3773_v50, 16  ;;  %v3917_v43 = vshll.u32 %v9651_v37, 16  ;;  %v3679_v11 = vld [vmem:[#allocation2 + $0x48] sm:$0xe] }
 0x1b0   : > { %v3572_v38 = vrot.slane %v3571_v3, 4  ;;  %v9658_v44 = vcombine.low %v3737_v46, %v3740_v6  ;;  %v3910_v36 = vrot.slane %v3908_v14, 4  ;;  %v3921_v19 = vshrl.u32 %v9651_v37, 16  ;;  %v3479_v14 = vld [vmem:[#allocation2 + $0x50] sm:$0x1] }
 0x1b1   : > { %10663 = vst [vmem:[#allocation40_spill] sm:$0xff] %v9653_v54  ;;  %7732 = vmatpush3.bf16.msra.mxu1 %v7948_v62  ;;  %5317 = vmatprep.mubr.bf16.mxu0 %v9653_v54  ;;  %v3913_v32 = vrot.slane %v3911_v4, 5  ;;  %v3919_v22 = vrot.slane %v3917_v43, 5  ;;  %v3927_v58 = vshll.u32 %v9660_v52, 16  ;;  %v3585_v63 = vor.u32 %v9218_v15, %v9193_v21 }
 0x1b2   : > { %7481 = vmatprep.subr.bf16.mxu1 %v7949_v31  ;;  %v3577_v46 = vsel %vm8927_vm8, %v3572_v38, %v3576_v7  ;;  %5318 = vmatmul.mubr.bf16.gmra.mxu0 %v9642_v41  ;;  %v3923_v13 = vrot.slane %v3921_v19, 4  ;;  %v3588_v59 = vshll.u32 %v9175_v33, 16  ;;  %v10664_v62 = vshrl.u32 %v9175_v33, 16  ;;  %v3775_v7 = vld [vmem:[#allocation2 + $0x60] sm:$0xf] }
 0x1b3   : > { %v9673_v6 = vcombine.low %v3567_v17, %v3577_v46  ;;  %v3914_v4 = vor.u32 %v3913_v32, %v3910_v36  ;;  %v3929_v43 = vrot.slane %v3927_v58, 5  ;;  %v3586_v54 = vrot.slane %v3585_v63, 4  ;;  %v9681_v17 = vld [vmem:[#allocation2 + $0x64] sm:$0xf] }
 0x1b4   : > { %v3594_v3 = vrot.slane %v10664_v62, 4  ;;  %v3924_v15 = vor.u32 %v3923_v13, %v3919_v22  ;;  %v3590_v21 = vrot.slane %v3588_v59, 5  ;;  %v3598_v31 = vshll.u32 %v9623_v57, 16  ;;  %v9692_v62 = vld [vmem:[#allocation2 + $0x68] sm:$0x1] }
 0x1b5   : > { %v6841_v29 = vrot.slane %v3679_v11, 9  ;;  %5213 = vmatmul.mubr.bf16.gmra.mxu1 %v9673_v6  ;;  %v3915_v38 = vrot.slane %v3914_v4, 4  ;;  %v3743_v19 = vrot.slane %v9216_v5, 5  ;;  %v3746_v41 = vrot.slane %v3479_v14, 5 }
 0x1b6   : > { %v9679_v33 = vcombine.low %v3773_v50, %v9651_v37  ;;  %5220 = vmatprep.mubr.bf16.mxu1 %v9658_v44  ;;  %v3925_v36 = vrot.slane %v3924_v15, 4  ;;  %v3591_v32 = vsel %vm8927_vm8, %v3586_v54, %v3590_v21  ;;  %v3595_v57 = vor.u32 %v3594_v3, %v3590_v21 }
 0x1b7   : > { %v3600_v58 = vrot.slane %v3598_v31, 5  ;;  %v3920_v63 = vsel %vm8927_vm8, %v3915_v38, %v3919_v22  ;;  %v3744_v11 = vsel %vm8833_vm1, %v6841_v29, %v3743_v19  ;;  %v3745_v46 = vrot.slane %v3743_v19, 4  ;;  %v3680_v19 = vld [vmem:[#allocation2 + $0x54] sm:$0xe] }
 0x1b8   : > { %10665 = vst [vmem:[#allocation41_spill] sm:$0xff] %v9679_v33  ;;  %v3932_v13 = vshrl.u32 %v3775_v7, 16  ;;  %v3930_v50 = vsel %vm8927_vm8, %v3925_v36, %v3929_v43  ;;  %v3596_v59 = vrot.slane %v3595_v57, 4  ;;  %v3935_v4 = vshll.u32 %v3775_v7, 16 }
 0x1b9   : > { %v3941_v15 = vshll.u32 %v9681_v17, 16  ;;  %v9695_v54 = vcombine.low %v3920_v63, %v3930_v50  ;;  %v3747_v3 = vsel %vm8833_vm1, %v3745_v46, %v3746_v41  ;;  %v3945_v21 = vshrl.u32 %v9681_v17, 16  ;;  %v9710_v46 = vld [vmem:[#allocation2 + $0x5c] sm:$0x1] }
 0x1ba   : > { %v3934_v22 = vrot.slane %v3932_v13, 4  ;;  %v3601_v29 = vsel %vm8927_vm8, %v3596_v59, %v3600_v58  ;;  %v9702_v31 = vcombine.low %v3744_v11, %v3747_v3  ;;  %v3937_v43 = vrot.slane %v3935_v4, 5  ;;  %v3777_v4 = vld [vmem:[#allocation2 + $0x6c] sm:$0xf] }
 0x1bb   : > { %10666 = vst [vmem:[#allocation42_spill] sm:$0xff] %v9695_v54  ;;  %v3943_v38 = vrot.slane %v3941_v15, 5  ;;  %5325 = vmatprep.mubr.bf16.mxu0 %v9695_v54  ;;  %v9705_v36 = vcombine.low %v3591_v32, %v3601_v29  ;;  %v3947_v57 = vrot.slane %v3945_v21, 4  ;;  %v3951_v63 = vshll.u32 %v9692_v62, 16 }
 0x1bc   : > { %v3609_v41 = vor.u32 %v9264_v27, %v9262_v24  ;;  %5326 = vmatmul.mubr.bf16.gmra.mxu0 %v9679_v33  ;;  %v3938_v58 = vor.u32 %v3937_v43, %v3934_v22  ;;  %v3612_v11 = vshll.u32 %v9216_v5, 16  ;;  %v10667_v13 = vshrl.u32 %v9216_v5, 16 }
 0x1bd   : > { %v3622_v59 = vshll.u32 %v3479_v14, 16  ;;  %5221 = vmatmul.mubr.bf16.gmra.mxu1 %v9705_v36  ;;  %v3948_v32 = vor.u32 %v3947_v57, %v3943_v38  ;;  %v3953_v15 = vrot.slane %v3951_v63, 5  ;;  %v6842_v21 = vrot.slane %v3680_v19, 9  ;;  %v9723_v14 = vld [vmem:[#allocation2 + $0x70] sm:$0xf] }
 0x1be   : > { %v3618_v50 = vrot.slane %v10667_v13, 4  ;;  %v3610_v3 = vrot.slane %v3609_v41, 4  ;;  %5228 = vmatprep.mubr.bf16.mxu1 %v9702_v31  ;;  %v3939_v24 = vrot.slane %v3938_v58, 4  ;;  %v3614_v27 = vrot.slane %v3612_v11, 5  ;;  %v9731_v58 = vld [vmem:[#allocation2 + $0x74] sm:$0x1] }
 0x1bf   : > { %v3624_v29 = vrot.slane %v3622_v59, 5  ;;  %v3750_v22 = vrot.slane %v9269_v47, 5  ;;  %v3949_v43 = vrot.slane %v3948_v32, 4  ;;  %v3753_v33 = vrot.slane %v9710_v46, 5 }
 0x1c0   : > { %v9721_v5 = vcombine.low %v3775_v7, %v9681_v17  ;;  %v3956_v13 = vshrl.u32 %v3777_v4, 16  ;;  %v3944_v57 = vsel %vm8927_vm8, %v3939_v24, %v3943_v38  ;;  %v3615_v19 = vsel %vm8927_vm8, %v3610_v3, %v3614_v27 }
 0x1c1   : > { %v3619_v63 = vor.u32 %v3618_v50, %v3614_v27  ;;  %v3751_v41 = vsel %vm8833_vm1, %v6842_v21, %v3750_v22  ;;  %v3954_v11 = vsel %vm8927_vm8, %v3949_v43, %v3953_v15  ;;  %v3752_v7 = vrot.slane %v3750_v22, 4 }
 0x1c2   : > { %v3958_v59 = vrot.slane %v3956_v13, 4  ;;  %v3959_v32 = vshll.u32 %v3777_v4, 16  ;;  %v9735_v54 = vcombine.low %v3944_v57, %v3954_v11  ;;  %v3965_v38 = vshll.u32 %v9723_v14, 16 }
 0x1c3   : > { %v3620_v49 = vrot.slane %v3619_v63, 4  ;;  %v3969_v24 = vshrl.u32 %v9723_v14, 16  ;;  %v3754_v50 = vsel %vm8833_vm1, %v3752_v7, %v3753_v33  ;;  %v3975_v21 = vshll.u32 %v9731_v58, 16  ;;  %v3681_v63 = vld [vmem:[#allocation2 + $0x60] sm:$0xe] }
 0x1c4   : > { %10668 = vst [vmem:[#allocation43_spill] sm:$0xff] %v9735_v54  ;;  %v3961_v3 = vrot.slane %v3959_v32, 5  ;;  %v3633_v27 = vor.u32 %v9293_v35, %v9274_v26  ;;  %v10669_v15 = vshll.u32 %v9288_v53, 16  ;;  %5333 = vmatprep.mubr.bf16.mxu0 %v9735_v54  ;;  %v3967_v13 = vrot.slane %v3965_v38, 5  ;;  %v3481_v26 = vld [vmem:[#allocation2 + $0x68] sm:$0x1] }
 0x1c5   : > { %v3625_v43 = vsel %vm8927_vm8, %v3620_v49, %v3624_v29  ;;  %v3971_v57 = vrot.slane %v3969_v24, 4  ;;  %v9751_v33 = vcombine.low %v3751_v41, %v3754_v50  ;;  %5334 = vmatmul.mubr.bf16.gmra.mxu0 %v9721_v5  ;;  %v3977_v32 = vrot.slane %v3975_v21, 5 }
 0x1c6   : > { %v3656_v22 = vrot.slane %v10669_v15, 5  ;;  %v9749_v11 = vcombine.low %v3615_v19, %v3625_v43  ;;  %v3962_v7 = vor.u32 %v3961_v3, %v3958_v59  ;;  %v3636_v53 = vshll.u32 %v9269_v47, 16 }
 0x1c7   : > { %v3972_v35 = vor.u32 %v3971_v57, %v3967_v13  ;;  %v10670_v15 = vshrl.u32 %v9269_v47, 16  ;;  %v3646_v49 = vshll.u32 %v9710_v46, 16  ;;  %v3634_v19 = vrot.slane %v3633_v27, 4 }
 0x1c8   : > { %5229 = vmatmul.mubr.bf16.gmra.mxu1 %v9749_v11  ;;  %v3963_v29 = vrot.slane %v3962_v7, 4  ;;  %v6843_v38 = vrot.slane %v3681_v63, 9  ;;  %v3757_v41 = vrot.slane %v9296_v2, 5  ;;  %v3638_v24 = vrot.slane %v3636_v53, 5 }
 0x1c9   : > { %v3642_v54 = vrot.slane %v10670_v15, 4  ;;  %5236 = vmatprep.mubr.bf16.mxu1 %v9751_v33  ;;  %v3973_v59 = vrot.slane %v3972_v35, 4  ;;  %v3760_v50 = vrot.slane %v3481_v26, 5  ;;  %v3648_v21 = vrot.slane %v3646_v49, 5 }
 0x1ca   : > { %v3968_v3 = vsel %vm8927_vm8, %v3963_v29, %v3967_v13  ;;  %v3759_v47 = vrot.slane %v3757_v41, 4  ;;  %v9764_v43 = vcombine.low %v3777_v4, %v9723_v14  ;;  %v3758_v57 = vsel %vm8833_vm1, %v6843_v38, %v3757_v41  ;;  %v3981_v38 = vld [vmem:[#allocation2 + $0x30] sm:$0xe] }
 0x1cb   : > { %v3978_v46 = vsel %vm8927_vm8, %v3973_v59, %v3977_v32  ;;  %v3643_v27 = vor.u32 %v3642_v54, %v3638_v24  ;;  %v3660_v63 = vshll.u32 %v9296_v2, 16  ;;  %v3639_v35 = vsel %vm8927_vm8, %v3634_v19, %v3638_v24  ;;  %v10672_v19 = vld [vmem:[#allocation7_spill] sm:$0xff] }
 0x1cc   : > { %v9771_v7 = vcombine.low %v3968_v3, %v3978_v46  ;;  %v3657_v13 = vor.u32 %v3656_v22, %v9350_v0  ;;  %v10671_v53 = vshrl.u32 %v9296_v2, 16  ;;  %v3761_v32 = vsel %vm8833_vm1, %v3759_v47, %v3760_v50  ;;  %v3979_v24 = vld [vmem:[#allocation2 + $0x18] sm:$0xe] }
 0x1cd   : > { %v3644_v15 = vrot.slane %v3643_v27, 4  ;;  %v3662_v54 = vrot.slane %v3660_v63, 5  ;;  %v3670_v49 = vshll.u32 %v3481_v26, 16  ;;  %v4013_v29 = vrot.slane %v9329_v39, 5 }
 0x1ce   : > { %v3666_v4 = vrot.slane %v10671_v53, 4  ;;  %5341 = vmatprep.mubr.bf16.mxu0 %v9771_v7  ;;  %v9787_v2 = vcombine.low %v3758_v57, %v3761_v32  ;;  %v3658_v59 = vrot.slane %v3657_v13, 4  ;;  %v6846_v3 = vrot.slane %v3981_v38, 9  ;;  %v3982_v57 = vld [vmem:[#allocation2 + $0x3c] sm:$0xe] }
 0x1cf   : > { %v3649_v41 = vsel %vm8927_vm8, %v3644_v15, %v3648_v21  ;;  %5342 = vmatmul.mubr.bf16.gmra.mxu0 %v9764_v43  ;;  %v3672_v50 = vrot.slane %v3670_v49, 5  ;;  %v4027_v39 = vrot.slane %v9452_v25, 5  ;;  %v4015_v47 = vrot.slane %v4013_v29, 4  ;;  %v7947_v13 = vld [vmem:[%s10520_s6 + $0x138] sm:$0xff]   ;;  %v10673_v49 = vld [vmem:[#allocation6_spill] sm:$0xff] }
 0x1d0   : > { %v3667_v0 = vor.u32 %v3666_v4, %v3662_v54  ;;  %v9785_v22 = vcombine.low %v3639_v35, %v3649_v41  ;;  %6062 = vmatprep.mubr.bf16.mxu0 %v10672_v19  ;;  %v6844_v21 = vrot.slane %v3979_v24, 9  ;;  %v4030_v27 = vrot.slane %v9463_v61, 5  ;;  %v10674_v41 = vld [vmem:[#allocation11_spill] sm:$0xff] }
 0x1d1   : > { %v4029_v46 = vrot.slane %v4027_v39, 4  ;;  %v3663_v63 = vsel %vm8927_vm8, %v3658_v59, %v3662_v54  ;;  %v4016_v35 = vrot.slane %v9336_v55, 5  ;;  %v4034_v25 = vrot.slane %v9511_v40, 5  ;;  %v7951_v55 = vld [vmem:[%s10520_s6 + $0x170] sm:$0xff]  }
 0x1d2   : > { %v3668_v26 = vrot.slane %v3667_v0, 4  ;;  %5237 = vmatmul.mubr.bf16.gmra.mxu1 %v9785_v22  ;;  %v4037_v53 = vrot.slane %v9544_v12, 5  ;;  %v4020_v15 = vrot.slane %v9365_v56, 5  ;;  %v4028_v61 = vsel %vm8833_vm1, %v6846_v3, %v4027_v39  ;;  %v7952_v0 = vld [vmem:[%s10520_s6 + $0x130] sm:$0xff]   ;;  %v7957_v3 = vld [vmem:[%s10520_s6 + $0x168] sm:$0xff]  }
 0x1d3   : > { %5244 = vmatprep.mubr.bf16.mxu1 %v9787_v2  ;;  %v4031_v32 = vsel %vm8833_vm1, %v4029_v46, %v4030_v27  ;;  %v4017_v40 = vsel %vm8833_vm1, %v4015_v47, %v4016_v35  ;;  %v6847_v12 = vrot.slane %v3982_v57, 9  ;;  %v4036_v28 = vrot.slane %v4034_v25, 4  ;;  %v3980_v39 = vld [vmem:[#allocation2 + $0x24] sm:$0xe]  ;;  %v10675_v35 = vld [vmem:[#allocation9_spill] sm:$0xff] }
 0x1d4   : > { %v3673_v4 = vsel %vm8927_vm8, %v3668_v26, %v3672_v50  ;;  %v9814_v54 = vcombine.low %v4028_v61, %v4031_v32  ;;  %v4014_v56 = vsel %vm8833_vm1, %v6844_v21, %v4013_v29  ;;  %v4023_v24 = vrot.slane %v9390_v8, 5  ;;  %v7958_v8 = vld [vmem:[%s10520_s6 + $0x128] sm:$0xff]   ;;  %v7963_v46 = vld [vmem:[%s10520_s6 + $0x160] sm:$0xff]  }
 0x1d5   : > { %v9819_v38 = vcombine.low %v3663_v63, %v3673_v4  ;;  %v4035_v19 = vsel %vm8833_vm1, %v6847_v12, %v4034_v25  ;;  %v4038_v59 = vsel %vm8833_vm1, %v4036_v28, %v4037_v53  ;;  %v9830_v29 = vcombine.low %v4014_v56, %v4017_v40  ;;  %v7950_v63 = vld [vmem:[%s10520_s6 + $0xb8] sm:$0xff]   ;;  %v10676_v53 = vld [vmem:[#allocation13_spill] sm:$0xff]  ;;  %v7953_v4 = vld [vmem:[%s10520_s6 + $0xf0] sm:$0xff]  }
 0x1d6   : > { %v4022_v26 = vrot.slane %v4020_v15, 4  ;;  %v9832_v50 = vcombine.low %v4035_v19, %v4038_v59  ;;  %v6845_v47 = vrot.slane %v3980_v39, 9  ;;  %v4041_v27 = vrot.slane %v9580_v20, 5  ;;  %v7964_v20 = vld [vmem:[%s10520_s6 + $0x120] sm:$0xff]   ;;  %v7954_v40 = vld [vmem:[%s10520_s6 + $0xb0] sm:$0xff]   ;;  %v7955_v12 = vld [vmem:[%s10520_s6 + $0xe8] sm:$0xff]  }
 0x1d7   : > { %6063 = vmatmul.mubr.bf16.vlgmr.msra.gmra.mxu0 %v10673_v49  ;;  %v4048_v28 = vrot.slane %v9651_v37, 5  ;;  %v7973_v19 = vld [vmem:[%s10520_s6 + $0x150] sm:$0xff]   ;;  %v7956_v37 = vld [vmem:[%s10520_s6 + $0xa8] sm:$0xff]   ;;  %v10677_v59 = vld [vmem:[#allocation15_spill] sm:$0xff] }
 0x1d8   : > { %7546 = vmatpush3.bf16.msra.mxu0 %v7947_v13  ;;  %6070 = vmatprep.mubr.bf16.mxu0 %v10674_v41  ;;  %v4024_v21 = vsel %vm8833_vm1, %v4022_v26, %v4023_v24  ;;  %v4021_v57 = vsel %vm8833_vm1, %v6845_v47, %v4020_v15  ;;  %v3983_v13 = vld [vmem:[#allocation2 + $0x48] sm:$0xe]  ;;  %v7969_v15 = vld [vmem:[%s10520_s6 + $0x158] sm:$0xff]   ;;  %v4043_v32 = vrot.slane %v4041_v27, 4  ;;  %v3984_v41 = vld [vmem:[#allocation2 + $0x54] sm:$0xe] }
 0x1d9   : > { %7547 = vmatprep.subr.bf16.mxu0 %v7951_v55  ;;  %v9854_v25 = vcombine.low %v4021_v57, %v4024_v21  ;;  %v6848_v61 = vrot.slane %v3983_v13, 9  ;;  %v4044_v55 = vrot.slane %v9591_v16, 5  ;;  %v7970_v16 = vld [vmem:[%s10520_s6 + $0x118] sm:$0xff]   ;;  %v3985_v24 = vld [vmem:[#allocation2 + $0x60] sm:$0xe]  ;;  %v10678_v26 = vld [vmem:[#allocation18_spill] sm:$0xff] }
 0x1da   : > { %5245 = vmatmul.mubr.bf16.gmra.mxu1 %v9819_v38  ;;  %v6849_v39 = vrot.slane %v3984_v41, 9  ;;  %v4051_v47 = vrot.slane %v9660_v52, 5  ;;  %v7974_v21 = vld [vmem:[%s10520_s6 + $0x110] sm:$0xff]   ;;  %v4058_v57 = vrot.slane %v9692_v62, 5  ;;  %v7960_v52 = vld [vmem:[%s10520_s6 + $0xa0] sm:$0xff]   ;;  %v4065_v41 = vrot.slane %v9731_v58, 5 }
 0x1db   : > { %7733 = vmatprep.mubr.bf16.mxu1 %v9830_v29  ;;  %v4042_v56 = vsel %vm8833_vm1, %v6848_v61, %v4041_v27  ;;  %v4045_v49 = vsel %vm8833_vm1, %v4043_v32, %v4044_v55  ;;  %v3986_v61 = vld [vmem:[#allocation2 + $0x6c] sm:$0xe]  ;;  %v7977_v32 = vld [vmem:[%s10520_s6 + $0x140] sm:$0xff]   ;;  %v10679_v55 = vld [vmem:[#allocation19_spill] sm:$0xff] }
 0x1dc   : > { %7548 = vmatpush3.bf16.msra.mxu0 %v7952_v0  ;;  %v4055_v0 = vrot.slane %v9681_v17, 5  ;;  %v9895_v17 = vcombine.low %v4042_v56, %v4045_v49  ;;  %v4049_v62 = vsel %vm8833_vm1, %v6849_v39, %v4048_v28  ;;  %v6851_v56 = vrot.slane %v3986_v61, 9  ;;  %v7966_v58 = vld [vmem:[%s10520_s6 + $0x90] sm:$0xff]   ;;  %v7985_v61 = vld [vmem:[%s10520_s6 + $0x1e8] sm:$0xff]  }
 0x1dd   : > { %7549 = vmatprep.subr.bf16.mxu0 %v7957_v3  ;;  %v7959_v3 = vld [vmem:[%s10520_s6 + $0xe0] sm:$0xff]  }
 0x1de   : > { %v4057_v27 = vrot.slane %v4055_v0, 4 }
 0x1df   : > { %6071 = vmatmul.mubr.bf16.gmra.mxu0 %v10675_v35  ;;  %v7961_v35 = vld [vmem:[%s10520_s6 + $0xd8] sm:$0xff]  }
 0x1e0   : > { %6078 = vmatprep.mubr.bf16.mxu0 %v10676_v53  ;;  %7550 = vmatpush3.bf16.msra.mxu0 %v7958_v8  ;;  %v4050_v8 = vrot.slane %v4048_v28, 4  ;;  %v4062_v53 = vrot.slane %v9723_v14, 5  ;;  %v7962_v14 = vld [vmem:[%s10520_s6 + $0x98] sm:$0xff]   ;;  %v7965_v28 = vld [vmem:[%s10520_s6 + $0xd0] sm:$0xff]  }
 0x1e1   : > { %7551 = vmatprep.subr.bf16.mxu0 %v7963_v46  ;;  %v6850_v46 = vrot.slane %v3985_v24, 9 }
 0x1e2   : > { %7734 = vmatmul.mubr.bf16.vlgmr.msra.gmra.mxu1 %v9854_v25  ;;  %v4052_v13 = vsel %vm8833_vm1, %v4050_v8, %v4051_v47  ;;  %v4064_v49 = vrot.slane %v4062_v53, 4  ;;  %v10682_v8 = vld [vmem:[#allocation26_spill] sm:$0xff]  ;;  %v10683_v47 = vld [vmem:[#allocation3_spill] sm:$0xff] }
 0x1e3   : > { %7737 = vmatprep.mubr.bf16.mxu1 %v9814_v54  ;;  %7482 = vmatpush3.bf16.msra.mxu1 %v7950_v63  ;;  %v7975_v63 = vld [vmem:[%s10520_s6 + $0x148] sm:$0xff]  }
 0x1e4   : > { %7483 = vmatprep.subr.bf16.mxu1 %v7953_v4  ;;  %7552 = vmatpush3.bf16.msra.mxu0 %v7964_v20  ;;  %v7976_v4 = vld [vmem:[%s10520_s6 + $0x108] sm:$0xff]   ;;  %v4056_v20 = vsel %vm8833_vm1, %v6850_v46, %v4055_v0  ;;  %v7978_v0 = vld [vmem:[%s10520_s6 + $0x100] sm:$0xff]   ;;  %v4066_v24 = vsel %vm8833_vm1, %v4064_v49, %v4065_v41  ;;  %v7979_v46 = vld [vmem:[%s10520_s6 + $0x1f8] sm:$0xff]  }
 0x1e5   : > { %7553 = vmatprep.subr.bf16.mxu0 %v7969_v15  ;;  %v4059_v15 = vsel %vm8833_vm1, %v4057_v27, %v4058_v57  ;;  %v10684_v27 = vld [vmem:[#allocation27_spill] sm:$0xff]  ;;  %v10690_v49 = vld [vmem:[#allocation8_spill] sm:$0xff] }
 0x1e6   : > { %v7980_v57 = vld [vmem:[%s10520_s6 + $0x1b8] sm:$0xff]   ;;  %v7989_v41 = vld [vmem:[%s10520_s6 + $0x1a0] sm:$0xff]  }
 0x1e7   : > { %7484 = vmatpush3.bf16.msra.mxu1 %v7954_v40  ;;  %6079 = vmatmul.mubr.bf16.gmra.mxu0 %v10677_v59  ;;  %v9932_v40 = vcombine.low %v4049_v62, %v4052_v13  ;;  %v4063_v59 = vsel %vm8833_vm1, %v6851_v56, %v4062_v53  ;;  %v10686_v62 = vld [vmem:[#allocation4_spill] sm:$0xff]  ;;  %v10687_v53 = vld [vmem:[#allocation5_spill] sm:$0xff]  ;;  %v10689_v56 = vld [vmem:[#allocation10_spill] sm:$0xff] }
 0x1e8   : > { %7485 = vmatprep.subr.bf16.mxu1 %v7955_v12  ;;  %6086 = vmatprep.mubr.bf16.mxu0 %v10678_v26  ;;  %v10680_v12 = vld [vmem:[#allocation23_spill] sm:$0xff]  ;;  %v7968_v26 = vld [vmem:[%s10520_s6 + $0x88] sm:$0xff]   ;;  %v9966_v39 = vcombine.low %v4063_v59, %v4066_v24  ;;  %v10023_v59 = vld [vmem:[%s10521_s7] ss:$0 sm:$0xff] }
 0x1e9   : > { %7554 = vmatpush3.bf16.msra.mxu0 %v7970_v16  ;;  %v9938_v16 = vcombine.low %v4056_v20, %v4059_v15  ;;  %v7983_v20 = vld [vmem:[%s10520_s6 + $0x1b0] sm:$0xff]  }
 0x1ea   : > { %7738 = vmatmul.mubr.bf16.gmra.mxu1 %v9832_v50  ;;  %7555 = vmatprep.subr.bf16.mxu0 %v7973_v19  ;;  %v9948_v19 = vld [vmem:[%s10520_s6 + $0x238] sm:$0xff]  }
 0x1eb   : > { %7741 = vmatprep.mubr.bf16.mxu1 %v9895_v17  ;;  %7486 = vmatpush3.bf16.msra.mxu1 %v7956_v37  ;;  %v7967_v37 = vld [vmem:[%s10520_s6 + $0xc8] sm:$0xff]  }
 0x1ec   : > { %7487 = vmatprep.subr.bf16.mxu1 %v7959_v3  ;;  %v10681_v3 = vld [vmem:[#allocation21_spill] sm:$0xff] }
 0x1ed   : > { %7556 = vmatpush3.bf16.msra.mxu0 %v7974_v21  ;;  %v7972_v21 = vld [vmem:[%s10520_s6 + $0x80] sm:$0xff]  }
 0x1ee   : > { %7557 = vmatprep.subr.bf16.mxu0 %v7975_v63  ;;  %v10685_v63 = vld [vmem:[#allocation31_spill] sm:$0xff] }
 0x1ef   : > { %7488 = vmatpush3.bf16.msra.mxu1 %v7960_v52  ;;  %6087 = vmatmul.mubr.bf16.gmra.mxu0 %v10679_v55 }
 0x1f0   : > { %7489 = vmatprep.subr.bf16.mxu1 %v7961_v35  ;;  %6094 = vmatprep.mubr.bf16.mxu0 %v10680_v12  ;;  %v7982_v35 = vld [vmem:[%s10520_s6 + $0x1f0] sm:$0xff]   ;;  %v7986_v12 = vld [vmem:[%s10520_s6 + $0x1a8] sm:$0xff]  }
 0x1f1   : > { %7558 = vmatpush3.bf16.msra.mxu0 %v7976_v4 }
 0x1f2   : > { %7742 = vmatmul.mubr.bf16.gmra.mxu1 %v9932_v40  ;;  %7559 = vmatprep.subr.bf16.mxu0 %v7977_v32 }
 0x1f3   : > { %7745 = vmatprep.mubr.bf16.mxu1 %v9938_v16  ;;  %7490 = vmatpush3.bf16.msra.mxu1 %v7962_v14  ;;  %v10688_v14 = vld [vmem:[#allocation29_spill] sm:$0xff] }
 0x1f4   : > { %7491 = vmatprep.subr.bf16.mxu1 %v7965_v28  ;;  %v7988_v28 = vld [vmem:[%s10520_s6 + $0x1e0] sm:$0xff]  }
 0x1f5   : > { %7560 = vmatpush3.bf16.msra.mxu0 %v7978_v0  ;;  %v7990_v0 = vld [vmem:[%s10520_s6 + $0x1d8] sm:$0xff]  }
 0x1f6   : > { %7749 = vmatprep.subr.bf16.mxu0 %v9948_v19 }
 0x1f7   : > { %7492 = vmatpush3.bf16.msra.mxu1 %v7966_v58  ;;  %6095 = vmatmul.mubr.bf16.gmra.mxu0 %v10681_v3  ;;  %v7991_v58 = vld [vmem:[%s10520_s6 + $0x198] sm:$0xff]  }
 0x1f8   : > { %7493 = vmatprep.subr.bf16.mxu1 %v7967_v37  ;;  %6102 = vmatprep.mubr.bf16.mxu0 %v10682_v8  ;;  %v7993_v37 = vld [vmem:[%s10520_s6 + $0x1d0] sm:$0xff]  }
 0x1f9   : > { %v10692_v8 = vld [vmem:[#allocation14_spill] sm:$0xff] }
 0x1fa   : > { %7746 = vmatmul.mubr.bf16.gmra.mxu1 %v9966_v39 }
 0x1fb   : > { %7494 = vmatpush3.bf16.msra.mxu1 %v7968_v26  ;;  %6159 = vmatprep.mubr.bf16.mxu1 %v10683_v47 }
 0x1fc   : > { %7495 = vmatprep.subr.bf16.mxu1 %v7971_v51 }
 0x1ff   : > { %7496 = vmatpush3.bf16.msra.mxu1 %v7972_v21  ;;  %6103 = vmatmul.mubr.bf16.gmra.mxu0 %v10684_v27  ;;  %v7225_v52 = vpop.f32.mrf.mxu0 }
 0x200   : > { %6110 = vmatprep.mubr.bf16.mxu0 %v10685_v63  ;;  %7609 = vmatprep.subr.bf16.mxu1 %v7979_v46  ;;  %v7984_v46 = vld [vmem:[%s10520_s6 + $0x230] sm:$0xff]   ;;  %v7995_v63 = vld [vmem:[%s10520_s6 + $0x1c8] sm:$0xff]  }
 0x201   : > { %v7226_v13 = vpop.f32.mrf.mxu0 }
 0x202   : > { %6160 = vmatmul.mubr.bf16.vlgmr.msra.gmra.mxu1 %v10686_v62  ;;  %v7227_v4 = vadd.f32 %v7226_v13, %v7225_v52 }
 0x203   : > { %6167 = vmatprep.mubr.bf16.mxu1 %v10687_v53  ;;  %7610 = vmatpush3.bf16.msra.mxu1 %v7980_v57  ;;  %v7228_v15 = vpop.f32.mrf.mxu0  ;;  %v7996_v53 = vld [vmem:[%s10520_s6 + $0x188] sm:$0xff]  }
 0x204   : > { %7611 = vmatprep.subr.bf16.mxu1 %v7982_v35 }
 0x205   : > { %v7229_v32 = vpop.f32.mrf.mxu0 }
 0x206   : > { %v7230_v55 = vadd.f32 %v7229_v32, %v7228_v15  ;;  %v7987_v32 = vld [vmem:[%s10520_s6 + $0x228] sm:$0xff]  }
 0x207   : > { %6111 = vmatmul.mubr.bf16.gmra.mxu0 %v10688_v14  ;;  %7612 = vmatpush3.bf16.msra.mxu1 %v7983_v20  ;;  %v10693_v14 = vld [vmem:[#allocation17_spill] sm:$0xff] }
 0x208   : > { %6118 = vmatprep.mubr.bf16.mxu0 %v9356_v48  ;;  %7613 = vmatprep.subr.bf16.mxu1 %v7985_v61 }
 0x20a   : > { %6168 = vmatmul.mubr.bf16.gmra.mxu1 %v10689_v56 }
 0x20b   : > { %6175 = vmatprep.mubr.bf16.mxu1 %v10690_v49  ;;  %7614 = vmatpush3.bf16.msra.mxu1 %v7986_v12  ;;  %v7999_v49 = vld [vmem:[%s10520_s6 + $0x180] sm:$0xff]  }
 0x20c   : > { %7615 = vmatprep.subr.bf16.mxu1 %v7988_v28  ;;  %v10694_v28 = vld [vmem:[#allocation16_spill] sm:$0xff] }
 0x20e   : > { %v7161_v48 = vpop.f32.mrf.mxu1 }
 0x20f   : > { %6119 = vmatmul.mubr.bf16.gmra.mxu0 %v9359_v18  ;;  %7616 = vmatpush3.bf16.msra.mxu1 %v7989_v41  ;;  %v10691_v18 = vld [vmem:[#allocation12_spill] sm:$0xff] }
 0x210   : > { %6256 = vmatprep.mubr.bf16.mxu0 %v9384_v23  ;;  %7617 = vmatprep.subr.bf16.mxu1 %v7990_v0  ;;  %v7162_v24 = vpop.f32.mrf.mxu1  ;;  %v7994_v23 = vld [vmem:[%s10520_s6 + $0x190] sm:$0xff]  }
 0x211   : > { %v7163_v26 = vadd.f32 %v7162_v24, %v7161_v48  ;;  %v7231_v3 = vpop.f32.mrf.mxu0 }
 0x212   : > { %6176 = vmatmul.mubr.bf16.gmra.mxu1 %v10691_v18  ;;  %v7164_v51 = vpop.f32.mrf.mxu1 }
 0x213   : > { %6183 = vmatprep.mubr.bf16.mxu1 %v10692_v8  ;;  %7618 = vmatpush3.bf16.msra.mxu1 %v7991_v58  ;;  %v4997_v47 = vadd.f32 %v7163_v26, %v10023_v59  ;;  %v7232_v21 = vpop.f32.mrf.mxu0 }
 0x214   : > { %7619 = vmatprep.subr.bf16.mxu1 %v7993_v37  ;;  %v7233_v27 = vadd.f32 %v7232_v21, %v7231_v3  ;;  %v7165_v57 = vpop.f32.mrf.mxu1  ;;  %v10695_v21 = vld [vmem:[#allocation22_spill] sm:$0xff] }
 0x215   : > { %v7166_v52 = vadd.f32 %v7165_v57, %v7164_v51  ;;  %v7234_v35 = vpop.f32.mrf.mxu0  ;;  %v10037_v62 = vadd.f32 %v7227_v4, %v4997_v47  ;;  %v7998_v4 = vld [vmem:[%s10520_s6 + $0x1c0] sm:$0xff]   ;;  %v7997_v47 = vld [vmem:[%s10520_s6 + $0x218] sm:$0xff]  }
 0x216   : > { %v7167_v13 = vpop.f32.mrf.mxu1 }
 0x217   : > { %6257 = vmatmul.mubr.bf16.vlgmr.msra.gmra.mxu0 %v9428_v9  ;;  %7620 = vmatpush3.bf16.msra.mxu1 %v7994_v23  ;;  %v5000_v20 = vadd.f32 %v7166_v52, %v10023_v59  ;;  %v7235_v15 = vpop.f32.mrf.mxu0  ;;  %v8000_v52 = vld [vmem:[%s10520_s6 + $0x210] sm:$0xff]  }
 0x218   : > { %7750 = vmatpush3.bf16.msra.mxu0 %v9948_v19  ;;  %6264 = vmatprep.mubr.bf16.mxu0 %v9477_v60  ;;  %v7236_v61 = vadd.f32 %v7235_v15, %v7234_v35  ;;  %v7168_v9 = vpop.f32.mrf.mxu1 }
 0x219   : > { %7751 = vmatprep.subr.bf16.mxu0 %v7984_v46  ;;  %7621 = vmatprep.subr.bf16.mxu1 %v7995_v63  ;;  %v7169_v19 = vadd.f32 %v7168_v9, %v7167_v13  ;;  %v7237_v12 = vpop.f32.mrf.mxu0  ;;  %v10053_v60 = vadd.f32 %v7230_v55, %v5000_v20  ;;  %v7992_v55 = vld [vmem:[%s10520_s6 + $0x220] sm:$0xff]   ;;  %v10697_v9 = vld [vmem:[#allocation25_spill] sm:$0xff] }
 0x21a   : > { %6184 = vmatmul.mubr.bf16.gmra.mxu1 %v10693_v14  ;;  %v7170_v56 = vpop.f32.mrf.mxu1 }
 0x21b   : > { %6191 = vmatprep.mubr.bf16.mxu1 %v10694_v28  ;;  %7622 = vmatpush3.bf16.msra.mxu1 %v7996_v53  ;;  %v5005_v41 = vadd.f32 %v7169_v19, %v10023_v59  ;;  %v7238_v0 = vpop.f32.mrf.mxu0 }
 0x21c   : > { %7752 = vmatpush3.bf16.msra.mxu0 %v7984_v46  ;;  %7623 = vmatprep.subr.bf16.mxu1 %v7998_v4  ;;  %v7239_v48 = vadd.f32 %v7238_v0, %v7237_v12  ;;  %v7171_v58 = vpop.f32.mrf.mxu1  ;;  %v10698_v12 = vld [vmem:[#allocation24_spill] sm:$0xff] }
 0x21d   : > { %7753 = vmatprep.subr.bf16.mxu0 %v7987_v32  ;;  %v7172_v37 = vadd.f32 %v7171_v58, %v7170_v56  ;;  %v7240_v24 = vpop.f32.mrf.mxu0  ;;  %v10063_v18 = vadd.f32 %v7233_v27, %v5005_v41 }
 0x21e   : > { %v7173_v26 = vpop.f32.mrf.mxu1 }
 0x21f   : > { %6265 = vmatmul.mubr.bf16.gmra.mxu0 %v9550_v10  ;;  %7624 = vmatpush3.bf16.msra.mxu1 %v7999_v49  ;;  %v5008_v3 = vadd.f32 %v7172_v37, %v10023_v59  ;;  %v7241_v8 = vpop.f32.mrf.mxu0  ;;  %v10696_v10 = vld [vmem:[#allocation20_spill] sm:$0xff] }
 0x220   : > { %6272 = vmatprep.mubr.bf16.mxu0 %v9542_v42  ;;  %7754 = vmatpush3.bf16.msra.mxu0 %v7987_v32  ;;  %v7242_v51 = vadd.f32 %v7241_v8, %v7240_v24  ;;  %v7174_v23 = vpop.f32.mrf.mxu1  ;;  %v8002_v49 = vld [vmem:[%s10520_s6 + $0x200] sm:$0xff]  }
 0x221   : > { %7755 = vmatprep.subr.bf16.mxu0 %v7992_v55  ;;  %v7175_v46 = vadd.f32 %v7174_v23, %v7173_v26  ;;  %v10072_v27 = vadd.f32 %v7236_v61, %v5008_v3  ;;  %v8001_v61 = vld [vmem:[%s10520_s6 + $0x208] sm:$0xff]   ;;  %v10699_v3 = vld [vmem:[#allocation30_spill] sm:$0xff]  ;;  %v10700_v23 = vld [vmem:[#allocation28_spill] sm:$0xff] }
 0x222   : > { %6192 = vmatmul.mubr.bf16.gmra.mxu1 %v10695_v21  ;;  %v7176_v57 = vpop.f32.mrf.mxu1 }
 0x223   : > { %6199 = vmatprep.mubr.bf16.mxu1 %v10696_v10  ;;  %v5013_v42 = vadd.f32 %v7175_v46, %v10023_v59 }
 0x224   : > { %7756 = vmatpush3.bf16.msra.mxu0 %v7992_v55  ;;  %v7177_v63 = vpop.f32.mrf.mxu1 }
 0x225   : > { %7757 = vmatprep.subr.bf16.mxu0 %v7997_v47  ;;  %v7243_v35 = vpop.f32.mrf.mxu0  ;;  %v7178_v13 = vadd.f32 %v7177_v63, %v7176_v57  ;;  %v10079_v53 = vadd.f32 %v7239_v48, %v5013_v42 }
 0x227   : > { %6273 = vmatmul.mubr.bf16.gmra.mxu0 %v9618_v1  ;;  %v7244_v20 = vpop.f32.mrf.mxu0  ;;  %v5016_v15 = vadd.f32 %v7178_v13, %v10023_v59 }
 0x228   : > { %6280 = vmatprep.mubr.bf16.mxu0 %v9616_v45  ;;  %7758 = vmatpush3.bf16.msra.mxu0 %v7997_v47  ;;  %v7245_v4 = vadd.f32 %v7244_v20, %v7243_v35 }
 0x229   : > { %7759 = vmatprep.subr.bf16.mxu0 %v8000_v52  ;;  %v7246_v32 = vpop.f32.mrf.mxu0  ;;  %v7179_v14 = vpop.f32.mrf.mxu1  ;;  %v10088_v19 = vadd.f32 %v7242_v51, %v5016_v15 }
 0x22a   : > { %6200 = vmatmul.mubr.bf16.gmra.mxu1 %v10697_v9  ;;  %v10701_v9 = vld [vmem:[#allocation32_spill] sm:$0xff] }
 0x22b   : > { %6207 = vmatprep.mubr.bf16.mxu1 %v10698_v12  ;;  %v7247_v1 = vpop.f32.mrf.mxu0  ;;  %v7180_v45 = vpop.f32.mrf.mxu1 }
 0x22c   : > { %7760 = vmatpush3.bf16.msra.mxu0 %v8000_v52  ;;  %v7248_v28 = vadd.f32 %v7247_v1, %v7246_v32  ;;  %v7181_v56 = vadd.f32 %v7180_v45, %v7179_v14 }
 0x22d   : > { %7761 = vmatprep.subr.bf16.mxu0 %v8001_v61  ;;  %v7249_v41 = vpop.f32.mrf.mxu0  ;;  %v7182_v0 = vpop.f32.mrf.mxu1 }
 0x22e   : > { %v5021_v48 = vadd.f32 %v7181_v56, %v10023_v59 }
 0x22f   : > { %6281 = vmatmul.mubr.bf16.gmra.mxu0 %v9673_v6  ;;  %v7250_v58 = vpop.f32.mrf.mxu0  ;;  %v7183_v55 = vpop.f32.mrf.mxu1 }
 0x230   : > { %6288 = vmatprep.mubr.bf16.mxu0 %v9658_v44  ;;  %7762 = vmatpush3.bf16.msra.mxu0 %v8001_v61  ;;  %v7251_v37 = vadd.f32 %v7250_v58, %v7249_v41  ;;  %v7184_v24 = vadd.f32 %v7183_v55, %v7182_v0  ;;  %v10097_v26 = vadd.f32 %v7245_v4, %v5021_v48 }
 0x231   : > { %7763 = vmatprep.subr.bf16.mxu0 %v8002_v49  ;;  %v7252_v8 = vpop.f32.mrf.mxu0  ;;  %v7185_v51 = vpop.f32.mrf.mxu1 }
 0x232   : > { %6208 = vmatmul.mubr.bf16.gmra.mxu1 %v10699_v3  ;;  %v5024_v6 = vadd.f32 %v7184_v24, %v10023_v59 }
 0x233   : > { %6215 = vmatprep.mubr.bf16.mxu1 %v10700_v23  ;;  %v7253_v47 = vpop.f32.mrf.mxu0  ;;  %v7186_v21 = vpop.f32.mrf.mxu1 }
 0x234   : > { %7764 = vmatpush3.bf16.msra.mxu0 %v8002_v49  ;;  %v7254_v44 = vadd.f32 %v7253_v47, %v7252_v8  ;;  %v7187_v46 = vadd.f32 %v7186_v21, %v7185_v51  ;;  %v10102_v10 = vadd.f32 %v7248_v28, %v5024_v6 }
 0x235   : > { %v7255_v57 = vpop.f32.mrf.mxu0  ;;  %v7188_v42 = vpop.f32.mrf.mxu1 }
 0x236   : > { %v5029_v63 = vadd.f32 %v7187_v46, %v10023_v59 }
 0x237   : > { %6289 = vmatmul.mubr.bf16.gmra.mxu0 %v9705_v36  ;;  %v7256_v52 = vpop.f32.mrf.mxu0  ;;  %v7189_v35 = vpop.f32.mrf.mxu1 }
 0x238   : > { %6296 = vmatprep.mubr.bf16.mxu0 %v9702_v31  ;;  %v7257_v13 = vadd.f32 %v7256_v52, %v7255_v57  ;;  %v7190_v20 = vadd.f32 %v7189_v35, %v7188_v42  ;;  %v10107_v15 = vadd.f32 %v7251_v37, %v5029_v63  ;;  %v10702_v37 = vld [vmem:[#allocation33_spill] sm:$0xff]  ;;  %v10703_v42 = vld [vmem:[#allocation34_spill] sm:$0xff]  ;;  %v10704_v35 = vld [vmem:[#allocation36_spill] sm:$0xff] }
 0x239   : > { %v7258_v4 = vpop.f32.mrf.mxu0  ;;  %v7191_v61 = vpop.f32.mrf.mxu1 }
 0x23a   : > { %6216 = vmatmul.mubr.bf16.gmra.mxu1 %v9354_v30  ;;  %v5032_v32 = vadd.f32 %v7190_v20, %v10023_v59 }
 0x23b   : > { %6353 = vmatprep.mubr.bf16.mxu1 %v10701_v9  ;;  %v7259_v14 = vpop.f32.mrf.mxu0  ;;  %v7192_v36 = vpop.f32.mrf.mxu1 }
 0x23c   : > { %v7260_v12 = vadd.f32 %v7259_v14, %v7258_v4  ;;  %v7193_v1 = vadd.f32 %v7192_v36, %v7191_v61  ;;  %v10112_v45 = vadd.f32 %v7254_v44, %v5032_v32 }
 0x23d   : > { %v7261_v31 = vpop.f32.mrf.mxu0  ;;  %v7194_v28 = vpop.f32.mrf.mxu1 }
 0x23e   : > { %v5037_v56 = vadd.f32 %v7193_v1, %v10023_v59 }
 0x23f   : > { %6297 = vmatmul.mubr.bf16.gmra.mxu0 %v9749_v11  ;;  %v7262_v30 = vpop.f32.mrf.mxu0  ;;  %v7195_v49 = vpop.f32.mrf.mxu1 }
 0x240   : > { %6304 = vmatprep.mubr.bf16.mxu0 %v9751_v33  ;;  %v7263_v41 = vadd.f32 %v7262_v30, %v7261_v31  ;;  %v7196_v0 = vadd.f32 %v7195_v49, %v7194_v28  ;;  %v10117_v48 = vadd.f32 %v7257_v13, %v5037_v56  ;;  %v10705_v56 = vld [vmem:[#allocation35_spill] sm:$0xff] }
 0x241   : > { %v7264_v58 = vpop.f32.mrf.mxu0  ;;  %v7197_v55 = vpop.f32.mrf.mxu1 }
 0x242   : > { %6354 = vmatmul.mubr.bf16.vlgmr.msra.gmra.mxu1 %v9395_v34  ;;  %v5040_v24 = vadd.f32 %v7196_v0, %v10023_v59 }
 0x243   : > { %6361 = vmatprep.mubr.bf16.mxu1 %v10702_v37  ;;  %v7265_v3 = vpop.f32.mrf.mxu0  ;;  %v7198_v11 = vpop.f32.mrf.mxu1 }
 0x244   : > { %v7266_v8 = vadd.f32 %v7265_v3, %v7264_v58  ;;  %v7199_v51 = vadd.f32 %v7198_v11, %v7197_v55  ;;  %v10122_v23 = vadd.f32 %v7260_v12, %v5040_v24 }
 0x245   : > { %v7267_v33 = vpop.f32.mrf.mxu0  ;;  %v7200_v6 = vpop.f32.mrf.mxu1 }
 0x246   : > { %v5045_v47 = vadd.f32 %v7199_v51, %v10023_v59 }
 0x247   : > { %6305 = vmatmul.mubr.bf16.gmra.mxu0 %v9785_v22  ;;  %v7268_v34 = vpop.f32.mrf.mxu0  ;;  %v7201_v21 = vpop.f32.mrf.mxu1 }
 0x248   : > { %6312 = vmatprep.mubr.bf16.mxu0 %v9787_v2  ;;  %v7269_v44 = vadd.f32 %v7268_v34, %v7267_v33  ;;  %v7202_v46 = vadd.f32 %v7201_v21, %v7200_v6  ;;  %v10127_v57 = vadd.f32 %v7263_v41, %v5045_v47  ;;  %v10706_v41 = vld [vmem:[#allocation38_spill] sm:$0xff]  ;;  %v10708_v21 = vld [vmem:[#allocation40_spill] sm:$0xff] }
 0x249   : > { %v7270_v63 = vpop.f32.mrf.mxu0  ;;  %v7203_v52 = vpop.f32.mrf.mxu1 }
 0x24a   : > { %6362 = vmatmul.mubr.bf16.gmra.mxu1 %v10703_v42  ;;  %v5048_v13 = vadd.f32 %v7202_v46, %v10023_v59 }
 0x24b   : > { %6369 = vmatprep.mubr.bf16.mxu1 %v10704_v35  ;;  %v7271_v20 = vpop.f32.mrf.mxu0  ;;  %v7204_v22 = vpop.f32.mrf.mxu1 }
 0x24c   : > { %v7272_v4 = vadd.f32 %v7271_v20, %v7270_v63  ;;  %v7205_v61 = vadd.f32 %v7204_v22, %v7203_v52  ;;  %v10132_v9 = vadd.f32 %v7266_v8, %v5048_v13  ;;  %v10710_v52 = vld [vmem:[#allocation42_spill] sm:$0xff] }
 0x24d   : > { %v7353_v2 = vpop.f32.mrf.mxu0  ;;  %v7206_v32 = vpop.f32.mrf.mxu1 }
 0x24e   : > { %v5053_v14 = vadd.f32 %v7205_v61, %v10023_v59 }
 0x24f   : > { %6313 = vmatmul.mubr.bf16.gmra.mxu0 %v9819_v38  ;;  %v7354_v36 = vpop.f32.mrf.mxu0  ;;  %v7207_v12 = vpop.f32.mrf.mxu1 }
 0x250   : > { %7765 = vmatprep.mubr.bf16.mxu0 %v9830_v29  ;;  %v7355_v1 = vadd.f32 %v7354_v36, %v7353_v2  ;;  %v7208_v31 = vadd.f32 %v7207_v12, %v7206_v32  ;;  %v10137_v28 = vadd.f32 %v7269_v44, %v5053_v14  ;;  %v10711_v36 = vld [vmem:[#allocation41_spill] sm:$0xff] }
 0x251   : > { %v7356_v30 = vpop.f32.mrf.mxu0  ;;  %v7289_v49 = vpop.f32.mrf.mxu1 }
 0x252   : > { %6370 = vmatmul.mubr.bf16.gmra.mxu1 %v10705_v56  ;;  %v5056_v0 = vadd.f32 %v7208_v31, %v10023_v59  ;;  %v10707_v59 = vld [vmem:[#allocation37_spill] sm:$0xff] }
 0x253   : > { %6377 = vmatprep.mubr.bf16.mxu1 %v10706_v41  ;;  %v7357_v58 = vpop.f32.mrf.mxu0  ;;  %v7290_v38 = vpop.f32.mrf.mxu1 }
 0x254   : > { %v7358_v55 = vadd.f32 %v7357_v58, %v7356_v30  ;;  %v7291_v37 = vadd.f32 %v7290_v38, %v7289_v49  ;;  %v10142_v24 = vadd.f32 %v7272_v4, %v5056_v0 }
 0x255   : > { %v7359_v29 = vpop.f32.mrf.mxu0  ;;  %v7292_v3 = vpop.f32.mrf.mxu1 }
 0x256   : > { %v5191_v11 = vadd.f32 %v7291_v37, %v10037_v62  ;;  %v10709_v62 = vld [vmem:[#allocation39_spill] sm:$0xff] }
 0x257   : > { %7766 = vmatmul.mubr.bf16.vlgmr.msra.gmra.mxu0 %v9854_v25  ;;  %v7360_v8 = vpop.f32.mrf.mxu0  ;;  %v7293_v51 = vpop.f32.mrf.mxu1 }
 0x258   : > { %7769 = vmatprep.mubr.bf16.mxu0 %v9814_v54  ;;  %v7361_v33 = vadd.f32 %v7360_v8, %v7359_v29  ;;  %v7294_v6 = vadd.f32 %v7293_v51, %v7292_v3  ;;  %v10147_v47 = vadd.f32 %v7355_v1, %v5191_v11  ;;  %v10712_v1 = vld [vmem:[#allocation43_spill] sm:$0xff] }
 0x259   : > { %v7362_v34 = vpop.f32.mrf.mxu0 }
 0x25a   : > { %6378 = vmatmul.mubr.bf16.gmra.mxu1 %v10707_v59  ;;  %v5194_v44 = vadd.f32 %v7294_v6, %v10053_v60 }
 0x25b   : > { %6385 = vmatprep.mubr.bf16.mxu1 %v10708_v21  ;;  %v7363_v46 = vpop.f32.mrf.mxu0 }
 0x25c   : > { %v7364_v42 = vadd.f32 %v7363_v46, %v7362_v34  ;;  %v10152_v25 = vadd.f32 %v7358_v55, %v5194_v44  ;;  %v6516_v44 = vld [vmem:[%s10523_s9] sm:$0xf]  ;;  %v8048_v46 = vmov 0  }
 0x25d   : > { %7832 = vset.pattern.permute.xlu0 %v8048_v46 }
 0x25e   : > { %6519 = vperm.xlu0 %7832, %v6516_v44  }
 0x25f   : > { %7770 = vmatmul.mubr.bf16.gmra.mxu0 %v9832_v50  ;;  %v7365_v54 = vpop.f32.mrf.mxu0 }
 0x260   : > { %7773 = vmatprep.mubr.bf16.mxu0 %v9895_v17 }
 0x261   : > { %v7366_v35 = vpop.f32.mrf.mxu0 }
 0x262   : > { %6386 = vmatmul.mubr.bf16.gmra.mxu1 %v10709_v62  ;;  %v7295_v63 = vpop.f32.mrf.mxu1  ;;  %v7367_v20 = vadd.f32 %v7366_v35, %v7365_v54 }
 0x263   : > { %6393 = vmatprep.mubr.bf16.mxu1 %v10710_v52  ;;  %v7368_v4 = vpop.f32.mrf.mxu0 }
 0x264   : > { %v7296_v13 = vpop.f32.mrf.mxu1 }
 0x265   : > { %v7297_v22 = vadd.f32 %v7296_v13, %v7295_v63  ;;  %v7369_v2 = vpop.f32.mrf.mxu0 }
 0x266   : > { %v7298_v60 = vpop.f32.mrf.mxu1  ;;  %v7370_v17 = vadd.f32 %v7369_v2, %v7368_v4 }
 0x267   : > { %v5199_v61 = vadd.f32 %v7297_v22, %v10063_v18  ;;  %7774 = vmatmul.mubr.bf16.gmra.mxu0 %v9932_v40 }
 0x268   : > { %7777 = vmatprep.mubr.bf16.mxu0 %v9938_v16  ;;  %v7299_v50 = vpop.f32.mrf.mxu1  ;;  %v7371_v12 = vpop.f32.mrf.mxu0 }
 0x269   : > { %v7300_v32 = vadd.f32 %v7299_v50, %v7298_v60  ;;  %v10161_v14 = vadd.f32 %v7361_v33, %v5199_v61 }
 0x26a   : > { %6394 = vmatmul.mubr.bf16.gmra.mxu1 %v10711_v36  ;;  %v7372_v30 = vpop.f32.mrf.mxu0 }
 0x26b   : > { %6401 = vmatprep.mubr.bf16.mxu1 %v10712_v1  ;;  %v5202_v31 = vadd.f32 %v7300_v32, %v10072_v27  ;;  %v7373_v18 = vadd.f32 %v7372_v30, %v7371_v12 }
 0x26c   : > { %v7301_v56 = vpop.f32.mrf.mxu1  ;;  %v7374_v41 = vpop.f32.mrf.mxu0 }
 0x26d   : > { %v10166_v49 = vadd.f32 %v7364_v42, %v5202_v31 }
 0x26e   : > { %v7302_v40 = vpop.f32.mrf.mxu1  ;;  %v7375_v58 = vpop.f32.mrf.mxu0 }
 0x26f   : > { %v7303_v16 = vadd.f32 %v7302_v40, %v7301_v56  ;;  %7778 = vmatmul.mubr.bf16.gmra.mxu0 %v9966_v39  ;;  %v7376_v55 = vadd.f32 %v7375_v58, %v7374_v41 }
 0x270   : > { %v7304_v0 = vpop.f32.mrf.mxu1 }
 0x271   : > { %v5207_v38 = vadd.f32 %v7303_v16, %v10079_v53 }
 0x272   : > { %6402 = vmatmul.mubr.bf16.gmra.mxu1 %v9721_v5  ;;  %v7305_v37 = vpop.f32.mrf.mxu1  ;;  %v7377_v29 = vpop.f32.mrf.mxu0 }
 0x273   : > { %6409 = vmatprep.mubr.bf16.mxu1 %v9771_v7  ;;  %v7306_v27 = vadd.f32 %v7305_v37, %v7304_v0  ;;  %v10172_v3 = vadd.f32 %v7367_v20, %v5207_v38 }
 0x274   : > { %v7378_v8 = vpop.f32.mrf.mxu0 }
 0x275   : > { %v5210_v11 = vadd.f32 %v7306_v27, %v10088_v19  ;;  %v7307_v51 = vpop.f32.mrf.mxu1  ;;  %v7379_v33 = vadd.f32 %v7378_v8, %v7377_v29 }
 0x276   : > { %v7380_v39 = vpop.f32.mrf.mxu0 }
 0x277   : > { %v10175_v6 = vadd.f32 %v7370_v17, %v5210_v11  ;;  %v7308_v59 = vpop.f32.mrf.mxu1 }
 0x278   : > { %v7309_v53 = vadd.f32 %v7308_v59, %v7307_v51  ;;  %v7381_v34 = vpop.f32.mrf.mxu0 }
 0x279   : > { %v7310_v5 = vpop.f32.mrf.mxu1  ;;  %v7382_v21 = vadd.f32 %v7381_v34, %v7380_v39 }
 0x27a   : > { %6410 = vmatmul.mubr.bf16.gmra.mxu1 %v9764_v43  ;;  %v5215_v7 = vadd.f32 %v7309_v53, %v10097_v26  ;;  %v6523_v26 = vld [vmem:[%s10524_s10] sm:$0xf] }
 0x27b   : > { %v7311_v19 = vpop.f32.mrf.mxu1  ;;  %6526 = vperm.xlu0 %7832, %v6523_v26  }
 0x27c   : > { %v7312_v42 = vadd.f32 %v7311_v19, %v7310_v5  ;;  %v7383_v54 = vpop.f32.mrf.mxu0  ;;  %v10182_v62 = vadd.f32 %v7373_v18, %v5215_v7 }
 0x27d   : > { %v7313_v63 = vpop.f32.mrf.mxu1 }
 0x27e   : > { %v5218_v52 = vadd.f32 %v7312_v42, %v10102_v10  ;;  %v7384_v43 = vpop.f32.mrf.mxu0 }
 0x27f   : > { %v7314_v35 = vpop.f32.mrf.mxu1  ;;  %v7385_v13 = vadd.f32 %v7384_v43, %v7383_v54 }
 0x280   : > { %v7315_v20 = vadd.f32 %v7314_v35, %v7313_v63  ;;  %v7386_v22 = vpop.f32.mrf.mxu0  ;;  %v10188_v4 = vadd.f32 %v7376_v55, %v5218_v52 }
 0x281   : > { %v7316_v60 = vpop.f32.mrf.mxu1 }
 0x282   : > { %v5223_v61 = vadd.f32 %v7315_v20, %v10107_v15  ;;  %v7387_v2 = vpop.f32.mrf.mxu0 }
 0x283   : > { %v7317_v50 = vpop.f32.mrf.mxu1  ;;  %v7388_v17 = vadd.f32 %v7387_v2, %v7386_v22 }
 0x284   : > { %v7318_v32 = vadd.f32 %v7317_v50, %v7316_v60  ;;  %v10191_v10 = vadd.f32 %v7379_v33, %v5223_v61 }
 0x285   : > { %v7389_v36 = vpop.f32.mrf.mxu0 }
 0x286   : > { %v5226_v12 = vadd.f32 %v7318_v32, %v10112_v45 }
 0x287   : > { %v7390_v31 = vpop.f32.mrf.mxu0 }
 0x288   : > { %v7319_v1 = vpop.f32.mrf.mxu1  ;;  %v7391_v56 = vadd.f32 %v7390_v31, %v7389_v36  ;;  %v10194_v30 = vadd.f32 %v7382_v21, %v5226_v12 }
 0x289   : > { %v7392_v40 = vpop.f32.mrf.mxu0 }
 0x28a   : > { %v7320_v18 = vpop.f32.mrf.mxu1 }
 0x28b   : > { %v7321_v41 = vadd.f32 %v7320_v18, %v7319_v1  ;;  %v7393_v0 = vpop.f32.mrf.mxu0 }
 0x28c   : > { %v7322_v16 = vpop.f32.mrf.mxu1  ;;  %v7394_v58 = vadd.f32 %v7393_v0, %v7392_v40 }
 0x28d   : > { %v5231_v15 = vadd.f32 %v7321_v41, %v10117_v48 }
 0x28e   : > { %v7323_v38 = vpop.f32.mrf.mxu1 }
 0x28f   : > { %v7324_v55 = vadd.f32 %v7323_v38, %v7322_v16  ;;  %v7395_v37 = vpop.f32.mrf.mxu0  ;;  %v10197_v27 = vadd.f32 %v7385_v13, %v5231_v15 }
 0x291   : > { %v5234_v45 = vadd.f32 %v7324_v55, %v10122_v23  ;;  %v7396_v29 = vpop.f32.mrf.mxu0 }
 0x292   : > { %v7325_v11 = vpop.f32.mrf.mxu1  ;;  %v7397_v8 = vadd.f32 %v7396_v29, %v7395_v37 }
 0x293   : > { %v7398_v51 = vpop.f32.mrf.mxu0  ;;  %v10200_v33 = vadd.f32 %v7388_v17, %v5234_v45 }
 0x294   : > { %v7326_v39 = vpop.f32.mrf.mxu1 }
 0x295   : > { %v7327_v59 = vadd.f32 %v7326_v39, %v7325_v11  ;;  %v7399_v53 = vpop.f32.mrf.mxu0 }
 0x296   : > { %v7328_v34 = vpop.f32.mrf.mxu1  ;;  %v7400_v5 = vadd.f32 %v7399_v53, %v7398_v51 }
 0x297   : > { %v5239_v48 = vadd.f32 %v7327_v59, %v10127_v57  ;;  %v7433_v21 = vpop.f32.mrf.mxu0 }
 0x298   : > { %v7329_v7 = vpop.f32.mrf.mxu1 }
 0x299   : > { %v7330_v44 = vadd.f32 %v7329_v7, %v7328_v34  ;;  %v7434_v19 = vpop.f32.mrf.mxu0  ;;  %v10203_v46 = vadd.f32 %v7391_v56, %v5239_v48 }
 0x29a   : > { %v7331_v23 = vpop.f32.mrf.mxu1  ;;  %v10205_v42 = vadd.f32 %v7434_v19, %v7433_v21 }
 0x29b   : > { %v5242_v54 = vadd.f32 %v7330_v44, %v10132_v9  ;;  %v7436_v63 = vpop.f32.mrf.mxu0 }
 0x29c   : > { %v7332_v52 = vpop.f32.mrf.mxu1 }
 0x29d   : > { %v7333_v43 = vadd.f32 %v7332_v52, %v7331_v23  ;;  %v7437_v26 = vpop.f32.mrf.mxu0  ;;  %v10208_v35 = vadd.f32 %v7394_v58, %v5242_v54 }
 0x29e   : > { %v7334_v13 = vpop.f32.mrf.mxu1  ;;  %v10210_v20 = vadd.f32 %v7437_v26, %v7436_v63 }
 0x29f   : > { %v5247_v57 = vadd.f32 %v7333_v43, %v10137_v28  ;;  %v7439_v22 = vpop.f32.mrf.mxu0 }
 0x2a0   : > { %v7335_v60 = vpop.f32.mrf.mxu1 }
 0x2a1   : > { %v7336_v61 = vadd.f32 %v7335_v60, %v7334_v13  ;;  %v7440_v2 = vpop.f32.mrf.mxu0  ;;  %v10213_v50 = vadd.f32 %v7397_v8, %v5247_v57 }
 0x2a2   : > { %v7735_v17 = vpop.f32.mrf.mxu1  ;;  %v10215_v32 = vadd.f32 %v7440_v2, %v7439_v22 }
 0x2a3   : > { %v5250_v9 = vadd.f32 %v7336_v61, %v10142_v24  ;;  %v7442_v36 = vpop.f32.mrf.mxu0 }
 0x2a4   : > { %v5384_v12 = vpop.f32.mrf.mxu1 }
 0x2a5   : > { %v5385_v1 = vadd.f32 %v5384_v12, %v10147_v47  ;;  %v7443_v31 = vpop.f32.mrf.mxu0  ;;  %v10219_v56 = vadd.f32 %v7400_v5, %v5250_v9  ;;  %v5393_v47 = vadd.f32 %v7735_v17, %v10161_v14 }
 0x2a6   : > { %v7736_v18 = vpop.f32.mrf.mxu1  ;;  %v10221_v28 = vadd.f32 %v7443_v31, %v7442_v36 }
 0x2a7   : > { %6530 = vxpose.xlu1.b32.start [1/16] (narrow) %v5385_v1, 8  ;;  %v7445_v40 = vpop.f32.mrf.mxu0  ;;  %v5396_v8 = vadd.f32 %v7736_v18, %v10166_v49 }
 0x2a8   : > { %v5387_v41 = vpop.f32.mrf.mxu1 }
 0x2a9   : > { %v5388_v16 = vadd.f32 %v5387_v41, %v10152_v25  ;;  %v7446_v0 = vpop.f32.mrf.mxu0 }
 0x2aa   : > { %v7739_v15 = vpop.f32.mrf.mxu1  ;;  %v10224_v58 = vadd.f32 %v7446_v0, %v7445_v40 }
 0x2ab   : > { %6531 = vxpose.xlu1.b32.cont [2/16] (narrow) %v5388_v16, 8  ;;  %v7448_v24 = vpop.f32.mrf.mxu0  ;;  %v5409_v52 = vadd.f32 %v7739_v15, %v10182_v62 }
 0x2ac   : > { %v5400_v38 = vpop.f32.mrf.mxu1 }
 0x2ad   : > { %v7449_v55 = vpop.f32.mrf.mxu0  ;;  %v5401_v34 = vadd.f32 %v5400_v38, %v10172_v3 }
 0x2ae   : > { %v7740_v37 = vpop.f32.mrf.mxu1  ;;  %v10227_v45 = vadd.f32 %v7449_v55, %v7448_v24 }
 0x2af   : > { %6532 = vxpose.xlu1.b32.cont [3/16] (narrow) %v5393_v47, 8  ;;  %v7451_v29 = vpop.f32.mrf.mxu0  ;;  %v5412_v22 = vadd.f32 %v7740_v37, %v10188_v4 }
 0x2b0   : > { %v5403_v11 = vpop.f32.mrf.mxu1 }
 0x2b1   : > { %v7452_v51 = vpop.f32.mrf.mxu0  ;;  %v5404_v44 = vadd.f32 %v5403_v11, %v10175_v6 }
 0x2b2   : > { %v7743_v25 = vpop.f32.mrf.mxu1  ;;  %v10230_v39 = vadd.f32 %v7452_v51, %v7451_v29 }
 0x2b3   : > { %6533 = vxpose.xlu1.b32.cont [4/16] (narrow) %v5396_v8, 8  ;;  %v7454_v59 = vpop.f32.mrf.mxu0 }
 0x2b4   : > { %v5416_v53 = vpop.f32.mrf.mxu1 }
 0x2b5   : > { %v7455_v5 = vpop.f32.mrf.mxu0  ;;  %v5417_v62 = vadd.f32 %v5416_v53, %v10191_v10  ;;  %v5425_v10 = vadd.f32 %v7743_v25, %v10197_v27 }
 0x2b6   : > { %v7744_v14 = vpop.f32.mrf.mxu1  ;;  %v10233_v48 = vadd.f32 %v7455_v5, %v7454_v59 }
 0x2b7   : > { %6534 = vxpose.xlu1.b32.cont [5/16] (narrow) %v5401_v34, 8  ;;  %v7457_v21 = vpop.f32.mrf.mxu0 }
 0x2b8   : > { %v5419_v7 = vpop.f32.mrf.mxu1 }
 0x2b9   : > { %v7458_v19 = vpop.f32.mrf.mxu0  ;;  %v5420_v4 = vadd.f32 %v5419_v7, %v10194_v30  ;;  %v5428_v30 = vadd.f32 %v7744_v14, %v10200_v33 }
 0x2ba   : > { %v7747_v49 = vpop.f32.mrf.mxu1  ;;  %v10236_v23 = vadd.f32 %v7458_v19, %v7457_v21 }
 0x2bb   : > { %6535 = vxpose.xlu1.b32.cont [6/16] (narrow) %v5404_v44, 8  ;;  %v7460_v54 = vpop.f32.mrf.mxu0  ;;  %v5441_v44 = vadd.f32 %v7747_v49, %v10213_v50 }
 0x2bc   : > { %v5432_v63 = vpop.f32.mrf.mxu1 }
 0x2bd   : > { %v7461_v43 = vpop.f32.mrf.mxu0  ;;  %v5433_v27 = vadd.f32 %v5432_v63, %v10203_v46 }
 0x2be   : > { %v7748_v3 = vpop.f32.mrf.mxu1  ;;  %v10239_v26 = vadd.f32 %v7461_v43, %v7460_v54 }
 0x2bf   : > { %6536 = vxpose.xlu1.b32.cont [7/16] (narrow) %v5409_v52, 8  ;;  %v7463_v13 = vpop.f32.mrf.mxu0 }
 0x2c0   : > { %10713 = vst [vmem:[#allocation7_spill] sm:$0xff] %v10239_v26  ;;  %v5435_v57 = vpop.f32.mrf.mxu1 }
 0x2c1   : > { %v7464_v60 = vpop.f32.mrf.mxu0  ;;  %v5436_v5 = vadd.f32 %v5435_v57, %v10208_v35  ;;  %v5444_v35 = vadd.f32 %v7748_v3, %v10219_v56 }
 0x2c2   : > { %v10242_v6 = vpop.f32.mrf.mxu1  ;;  %v10244_v61 = vadd.f32 %v7464_v60, %v7463_v13 }
 0x2c3   : > { %6537 = vxpose.xlu1.b32.cont [8/16] (narrow) %v5412_v22, 8  ;;  %v7466_v2 = vpop.f32.mrf.mxu0 }
 0x2c4   : > { %10714 = vst [vmem:[#allocation6_spill] sm:$0xff] %v10244_v61  ;;  %v10246_v17 = vpop.f32.mrf.mxu1 }
 0x2c5   : > { %v7467_v9 = vpop.f32.mrf.mxu0 }
 0x2c6   : > { %v10249_v36 = vpop.f32.mrf.mxu1  ;;  %v10251_v12 = vadd.f32 %v7467_v9, %v7466_v2 }
 0x2c7   : > { %6538 = vxpose.xlu1.b32.cont [9/16] (narrow) %v5417_v62, 8  ;;  %v7469_v1 = vpop.f32.mrf.mxu0 }
 0x2c8   : > { %10715 = vst [vmem:[#allocation11_spill] sm:$0xff] %v10251_v12  ;;  %v10253_v31 = vpop.f32.mrf.mxu1 }
 0x2c9   : > { %v7470_v18 = vpop.f32.mrf.mxu0 }
 0x2ca   : > { %v10256_v40 = vpop.f32.mrf.mxu1  ;;  %v10258_v41 = vadd.f32 %v7470_v18, %v7469_v1 }
 0x2cb   : > { %6539 = vxpose.xlu1.b32.cont [10/16] (narrow) %v5420_v4, 8  ;;  %v7472_v16 = vpop.f32.mrf.mxu0 }
 0x2cc   : > { %10716 = vst [vmem:[#allocation9_spill] sm:$0xff] %v10258_v41  ;;  %v10260_v0 = vpop.f32.mrf.mxu1 }
 0x2cd   : > { %v7473_v15 = vpop.f32.mrf.mxu0 }
 0x2ce   : > { %v10263_v24 = vpop.f32.mrf.mxu1  ;;  %v10265_v38 = vadd.f32 %v7473_v15, %v7472_v16 }
 0x2cf   : > { %6540 = vxpose.xlu1.b32.cont [11/16] (narrow) %v5425_v10, 8  ;;  %v7475_v47 = vpop.f32.mrf.mxu0 }
 0x2d0   : > { %10717 = vst [vmem:[#allocation13_spill] sm:$0xff] %v10265_v38  ;;  %v10267_v55 = vpop.f32.mrf.mxu1 }
 0x2d1   : > { %v7476_v37 = vpop.f32.mrf.mxu0 }
 0x2d2   : > { %v10270_v29 = vpop.f32.mrf.mxu1  ;;  %v10272_v11 = vadd.f32 %v7476_v37, %v7475_v47 }
 0x2d3   : > { %6541 = vxpose.xlu1.b32.cont [12/16] (narrow) %v5428_v30, 8  ;;  %v7478_v8 = vpop.f32.mrf.mxu0 }
 0x2d4   : > { %10718 = vst [vmem:[#allocation15_spill] sm:$0xff] %v10272_v11  ;;  %v10274_v51 = vpop.f32.mrf.mxu1 }
 0x2d5   : > { %v7479_v25 = vpop.f32.mrf.mxu0 }
 0x2d6   : > { %v10277_v59 = vpop.f32.mrf.mxu1  ;;  %v10279_v53 = vadd.f32 %v7479_v25, %v7478_v8 }
 0x2d7   : > { %6542 = vxpose.xlu1.b32.cont [13/16] (narrow) %v5433_v27, 8  ;;  %v10281_v34 = vpop.f32.mrf.mxu0 }
 0x2d8   : > { %10719 = vst [vmem:[#allocation18_spill] sm:$0xff] %v10279_v53  ;;  %v10283_v33 = vpop.f32.mrf.mxu1 }
 0x2d9   : > { %v10286_v14 = vpop.f32.mrf.mxu0 }
 0x2da   : > { %v10288_v21 = vpop.f32.mrf.mxu1 }
 0x2db   : > { %6543 = vxpose.xlu1.b32.cont [14/16] (narrow) %v5436_v5, 8  ;;  %v10290_v7 = vpop.f32.mrf.mxu0 }
 0x2dc   : > { %v10292_v46 = vpop.f32.mrf.mxu1 }
 0x2dd   : > { %v10295_v19 = vpop.f32.mrf.mxu0 }
 0x2de   : > { %v10297_v54 = vpop.f32.mrf.mxu1 }
 0x2df   : > { %6544 = vxpose.xlu1.b32.cont [15/16] (narrow) %v5441_v44, 8  ;;  %v10299_v63 = vpop.f32.mrf.mxu0 }
 0x2e0   : > { %v10301_v52 = vpop.f32.mrf.mxu1 }
 0x2e1   : > { %v10304_v43 = vpop.f32.mrf.mxu0 }
 0x2e2   : > { %v10306_v13 = vpop.f32.mrf.mxu1 }
 0x2e3   : > { %6545 = vxpose.xlu1.b32.end [16/16] (narrow) %v5444_v35, 8  ;;  %v10308_v57 = vpop.f32.mrf.mxu0 }
 0x2e4   : > { %v10310_v22 = vpop.f32.mrf.mxu1 }
 0x2e5   : > { %v10312_v50 = vpop.f32.mrf.mxu0 }
 0x2e6   : > { %v10314_v49 = vpop.f32.mrf.mxu1 }
 0x2e7   : > { %10720 = vst [vmem:[#allocation19_spill] sm:$0xff] %v10314_v49  ;;  %v10316_v60 = vpop.f32.mrf.mxu0 }
 0x2e8   : > { %v10318_v2 = vpop.f32.mrf.mxu1 }
 0x2e9   : > { %10721 = vst [vmem:[#allocation23_spill] sm:$0xff] %v10318_v2  ;;  %v10320_v62 = vpop.f32.mrf.mxu0  ;;  %v7502_v2 = vadd.f32 %v10253_v31, %v10249_v36 }
 0x2ea   : > { %v10322_v56 = vpop.f32.mrf.mxu1 }
 0x2eb   : > { %10722 = vst [vmem:[#allocation21_spill] sm:$0xff] %v10322_v56  ;;  %v10324_v3 = vpop.f32.mrf.mxu0 }
 0x2ec   : > { %v10326_v9 = vpop.f32.mrf.mxu1 }
 0x2ed   : > { %10723 = vst [vmem:[#allocation26_spill] sm:$0xff] %v10326_v9  ;;  %v10328_v1 = vpop.f32.mrf.mxu0 }
 0x2ee   : > { %v10330_v4 = vpop.f32.mrf.mxu1 }
 0x2ef   : > { %10724 = vst [vmem:[#allocation3_spill] sm:$0xff] %v10330_v4  ;;  %v10332_v18 = vpop.f32.mrf.mxu0 }
 0x2f0   : > { %v10334_v16 = vpop.f32.mrf.mxu1 }
 0x2f1   : > { %10725 = vst [vmem:[#allocation27_spill] sm:$0xff] %v10334_v16  ;;  %v10336_v10 = vpop.f32.mrf.mxu0 }
 0x2f2   : > { %v10338_v15 = vpop.f32.mrf.mxu1 }
 0x2f3   : > { %10726 = vst [vmem:[#allocation31_spill] sm:$0xff] %v10338_v15  ;;  %v10340_v47 = vpop.f32.mrf.mxu0 }
 0x2f4   : > { %v10342_v30 = vpop.f32.mrf.mxu1 }
 0x2f5   : > { %10727 = vst [vmem:[#allocation4_spill] sm:$0xff] %v10342_v30  ;;  %v10344_v37 = vpop.f32.mrf.mxu0 }
 0x2f6   : > { %v10346_v8 = vpop.f32.mrf.mxu1 }
 0x2f7   : > { %10728 = vst [vmem:[#allocation5_spill] sm:$0xff] %v10346_v8  ;;  %v10348_v27 = vpop.f32.mrf.mxu0 }
 0x2f8   : > { %v10350_v25 = vpop.f32.mrf.mxu1 }
 0x2f9   : > { %10729 = vst [vmem:[#allocation29_spill] sm:$0xff] %v10350_v25  ;;  %v10352_v5 = vpop.f32.mrf.mxu0 }
 0x2fa   : > { %10730 = vst [vmem:[#allocation10_spill] sm:$0xff] %v10352_v5  ;;  %v10354_v44 = vpop.f32.mrf.mxu1 }
 0x2fb   : > { %10731 = vst [vmem:[#allocation8_spill] sm:$0xff] %v10354_v44  ;;  %v10356_v35 = vpop.f32.mrf.mxu0 }
 0x2fc   : > { %10732 = vst [vmem:[#allocation12_spill] sm:$0xff] %v10356_v35  ;;  %v10358_v53 = vpop.f32.mrf.mxu1 }
 0x2fd   : > { %10733 = vst [vmem:[#allocation14_spill] sm:$0xff] %v10358_v53  ;;  %v10360_v11 = vpop.f32.mrf.mxu0 }
 0x2fe   : > { %10734 = vst [vmem:[#allocation17_spill] sm:$0xff] %v10360_v11  ;;  %v10362_v38 = vpop.f32.mrf.mxu1 }
 0x2ff   : > { %10735 = vst [vmem:[#allocation16_spill] sm:$0xff] %v10362_v38  ;;  %v10364_v41 = vpop.f32.mrf.mxu0 }
 0x300   : > { %10736 = vst [vmem:[#allocation22_spill] sm:$0xff] %v10364_v41  ;;  %v10366_v30 = vpop.f32.mrf.mxu1 }
 0x301   : > { %10737 = vst [vmem:[#allocation20_spill] sm:$0xff] %v10366_v30  ;;  %v10368_v8 = vpop.f32.mrf.mxu0 }
 0x302   : > { %10738 = vst [vmem:[#allocation25_spill] sm:$0xff] %v10368_v8  ;;  %v7625_v15 = vpop.f32.mrf.mxu1 }
 0x303   : > { %v10370_v25 = vpop.f32.mrf.mxu0 }
 0x304   : > { %10739 = vst [vmem:[#allocation24_spill] sm:$0xff] %v10370_v25  ;;  %v7626_v12 = vpop.f32.mrf.mxu1  ;;  %v10385_v25 = vld [vmem:[%s10522_s8] ss:$0 sm:$0xff] }
 0x305   : > { %v10372_v16 = vpop.f32.mrf.mxu0  ;;  %v6073_v31 = vadd.f32 %v10215_v32, %v10385_v25 }
 0x306   : > { %10740 = vst [vmem:[#allocation30_spill] sm:$0xff] %v10372_v16  ;;  %v7628_v44 = vpop.f32.mrf.mxu1 }
 0x307   : > { %v10374_v4 = vpop.f32.mrf.mxu0 }
 0x308   : > { %10741 = vst [vmem:[#allocation28_spill] sm:$0xff] %v10374_v4  ;;  %v7629_v53 = vpop.f32.mrf.mxu1  ;;  %v7499_v4 = vadd.f32 %v10246_v17, %v10242_v6  ;;  %v6068_v6 = vadd.f32 %v10210_v20, %v10385_v25  ;;  %v7569_v20 = vadd.f32 %v10304_v43, %v10299_v63 }
 0x309   : > { %v10376_v61 = vpop.f32.mrf.mxu0 }
 0x30a   : > { %10742 = vst [vmem:[#allocation32_spill] sm:$0xff] %v10376_v61  ;;  %v7631_v11 = vpop.f32.mrf.mxu1 }
 0x30b   : > { %v10378_v38 = vpop.f32.mrf.mxu0 }
 0x30c   : > { %10743 = vst [vmem:[#allocation33_spill] sm:$0xff] %v10378_v38  ;;  %v7632_v41 = vpop.f32.mrf.mxu1  ;;  %v6065_v38 = vadd.f32 %v10205_v42, %v10385_v25  ;;  %v7566_v42 = vadd.f32 %v10295_v19, %v10290_v7 }
 0x30d   : > { %v10380_v35 = vpop.f32.mrf.mxu0 }
 0x30e   : > { %10744 = vst [vmem:[#allocation34_spill] sm:$0xff] %v10380_v35  ;;  %v7634_v30 = vpop.f32.mrf.mxu1  ;;  %v7563_v35 = vadd.f32 %v10286_v14, %v10281_v34  ;;  %v6162_v56 = vadd.f32 %v7499_v4, %v6065_v38  ;;  %v6165_v14 = vadd.f32 %v7502_v2, %v6068_v6  ;;  %v7505_v38 = vadd.f32 %v10260_v0, %v10256_v40 }
 0x30f   : > { %v10387_v8 = vpop.f32.mrf.mxu0  ;;  %v7630_v4 = vadd.f32 %v7629_v53, %v7628_v44  ;;  %v7508_v2 = vadd.f32 %v10267_v55, %v10263_v24  ;;  %v7633_v6 = vadd.f32 %v7632_v41, %v7631_v11  ;;  %v7572_v44 = vadd.f32 %v10312_v50, %v10308_v57 }
 0x310   : > { %10745 = vst [vmem:[#allocation36_spill] sm:$0xff] %v10387_v8  ;;  %v7635_v16 = vpop.f32.mrf.mxu1  ;;  %v7627_v8 = vadd.f32 %v7626_v12, %v7625_v15  ;;  %v6259_v17 = vadd.f32 %v7563_v35, %v6162_v56  ;;  %v6262_v15 = vadd.f32 %v7566_v42, %v6165_v14  ;;  %v6170_v19 = vadd.f32 %v7505_v38, %v6073_v31 }
 0x311   : > { %v10391_v26 = vpop.f32.mrf.mxu0  ;;  %v7511_v14 = vadd.f32 %v10274_v51, %v10270_v29  ;;  %v7636_v24 = vadd.f32 %v7635_v16, %v7634_v30  ;;  %v6081_v11 = vadd.f32 %v10224_v58, %v10385_v25  ;;  %v6084_v16 = vadd.f32 %v10227_v45, %v10385_v25 }
 0x312   : > { %10746 = vst [vmem:[#allocation35_spill] sm:$0xff] %v10391_v26  ;;  %v7637_v61 = vpop.f32.mrf.mxu1  ;;  %v6356_v36 = vadd.f32 %v7627_v8, %v6259_v17  ;;  %v6359_v0 = vadd.f32 %v7630_v4, %v6262_v15  ;;  %v6076_v8 = vadd.f32 %v10221_v28, %v10385_v25  ;;  %v6267_v32 = vadd.f32 %v7569_v20, %v6170_v19 }
 0x313   : > { %v10397_v9 = vpop.f32.mrf.mxu0  ;;  %v7575_v28 = vadd.f32 %v10320_v62, %v10316_v60  ;;  %v7578_v58 = vadd.f32 %v10328_v1, %v10324_v3  ;;  %v7517_v20 = vadd.f32 %v10292_v46, %v10288_v21  ;;  %v7581_v45 = vadd.f32 %v10336_v10, %v10332_v18 }
 0x314   : > { %10747 = vst [vmem:[#allocation38_spill] sm:$0xff] %v10397_v9  ;;  %v7638_v49 = vpop.f32.mrf.mxu1  ;;  %v6173_v42 = vadd.f32 %v7508_v2, %v6076_v8  ;;  %v6364_v41 = vadd.f32 %v7633_v6, %v6267_v32  ;;  %v7520_v2 = vadd.f32 %v10301_v52, %v10297_v54  ;;  %v6092_v46 = vadd.f32 %v10233_v48, %v10385_v25  ;;  %v10748_v48 = vld [vmem:[#allocation10_spill] sm:$0xff] }
 0x315   : > { %v10401_v5 = vpop.f32.mrf.mxu0  ;;  %v7639_v31 = vadd.f32 %v7638_v49, %v7637_v61  ;;  %v7523_v8 = vadd.f32 %v10310_v22, %v10306_v13 }
 0x316   : > { %v7640_v26 = vpop.f32.mrf.mxu1  ;;  %v6270_v38 = vadd.f32 %v7572_v44, %v6173_v42  ;;  %v7587_v44 = vadd.f32 %v10748_v48, %v10348_v27  ;;  %v10755_v27 = vld [vmem:[#allocation17_spill] sm:$0xff] }
 0x317   : > { %v7767_v34 = vpop.f32.mrf.mxu0 }
 0x318   : > { %v7641_v9 = vpop.f32.mrf.mxu1  ;;  %v6461_v4 = vadd.f32 %v7767_v34, %v6364_v41  ;;  %v6367_v29 = vadd.f32 %v7636_v24, %v6270_v38  ;;  %v10750_v24 = vld [vmem:[#allocation23_spill] sm:$0xff] }
 0x319   : > { %v6452_v12 = vpop.f32.mrf.mxu0 }
 0x31a   : > { %v7643_v56 = vpop.f32.mrf.mxu1  ;;  %v6453_v35 = vadd.f32 %v6452_v12, %v6356_v36  ;;  %v6178_v36 = vadd.f32 %v7511_v14, %v6081_v11  ;;  %v7514_v12 = vadd.f32 %v10283_v33, %v10277_v59  ;;  %v6089_v33 = vadd.f32 %v10230_v39, %v10385_v25  ;;  %v10749_v14 = vld [vmem:[#allocation19_spill] sm:$0xff] }
 0x31b   : > { %v7768_v7 = vpop.f32.mrf.mxu0  ;;  %v7584_v39 = vadd.f32 %v10344_v37, %v10340_v47  ;;  %v7526_v41 = vadd.f32 %v10750_v24, %v10749_v14  ;;  %v10769_v14 = vld [vmem:[#allocation5_spill] sm:$0xff] }
 0x31c   : > { %v7644_v40 = vpop.f32.mrf.mxu1  ;;  %6564 = vxpose.xlu0.b32.start [1/16] (narrow) %v6453_v35, 8  ;;  %v6275_v30 = vadd.f32 %v7575_v28, %v6178_v36  ;;  %v6464_v15 = vadd.f32 %v7768_v7, %v6367_v29  ;;  %v6181_v34 = vadd.f32 %v7514_v12, %v6084_v16  ;;  %v7642_v35 = vadd.f32 %v7641_v9, %v7640_v26  ;;  %v10756_v12 = vld [vmem:[#allocation6_spill] sm:$0xff]  ;;  %v10770_v24 = vld [vmem:[#allocation29_spill] sm:$0xff] }
 0x31d   : > { %v6455_v53 = vpop.f32.mrf.mxu0  ;;  %v6186_v7 = vadd.f32 %v7517_v20, %v6089_v33  ;;  %v7645_v6 = vadd.f32 %v7644_v40, %v7643_v56  ;;  %v6097_v56 = vadd.f32 %v10236_v23, %v10385_v25  ;;  %v10753_v23 = vld [vmem:[#allocation7_spill] sm:$0xff] }
 0x31e   : > { %v7646_v63 = vpop.f32.mrf.mxu1  ;;  %v6456_v43 = vadd.f32 %v6455_v53, %v6359_v0  ;;  %v6372_v59 = vadd.f32 %v7639_v31, %v6275_v30  ;;  %v6278_v49 = vadd.f32 %v7578_v58, %v6181_v34  ;;  %v6189_v53 = vadd.f32 %v7520_v2, %v6092_v46  ;;  %v10758_v30 = vld [vmem:[#allocation25_spill] sm:$0xff]  ;;  %v10763_v46 = vld [vmem:[#allocation30_spill] sm:$0xff] }
 0x31f   : > { %v7771_v17 = vpop.f32.mrf.mxu0  ;;  %v6283_v9 = vadd.f32 %v7581_v45, %v6186_v7  ;;  %v6194_v42 = vadd.f32 %v7523_v8, %v6097_v56  ;;  %v6100_v28 = vadd.f32 %v10753_v23, %v10385_v25  ;;  %v6105_v31 = vadd.f32 %v10756_v12, %v10385_v25  ;;  %v10761_v7 = vld [vmem:[#allocation11_spill] sm:$0xff] }
 0x320   : > { %v7647_v55 = vpop.f32.mrf.mxu1  ;;  %6565 = vxpose.xlu0.b32.cont [2/16] (narrow) %v6456_v43, 8  ;;  %v6375_v21 = vadd.f32 %v7642_v35, %v6278_v49  ;;  %v6286_v40 = vadd.f32 %v7584_v39, %v6189_v53  ;;  %v10759_v35 = vld [vmem:[#allocation3_spill] sm:$0xff]  ;;  %v6108_v2 = vadd.f32 %v10761_v7, %v10385_v25 }
 0x321   : > { %v6468_v50 = vpop.f32.mrf.mxu0  ;;  %v7648_v32 = vadd.f32 %v7647_v55, %v7646_v63  ;;  %v6380_v54 = vadd.f32 %v7645_v6, %v6283_v9  ;;  %v10751_v63 = vld [vmem:[#allocation21_spill] sm:$0xff]  ;;  %v10752_v55 = vld [vmem:[#allocation26_spill] sm:$0xff] }
 0x322   : > { %v7649_v57 = vpop.f32.mrf.mxu1  ;;  %v6469_v19 = vadd.f32 %v6468_v50, %v6372_v59  ;;  %v7529_v38 = vadd.f32 %v10752_v55, %v10751_v63  ;;  %v10754_v50 = vld [vmem:[#allocation12_spill] sm:$0xff]  ;;  %v10760_v59 = vld [vmem:[#allocation27_spill] sm:$0xff] }
 0x323   : > { %v7772_v62 = vpop.f32.mrf.mxu0  ;;  %v6477_v43 = vadd.f32 %v7771_v17, %v6380_v54  ;;  %v6383_v13 = vadd.f32 %v7648_v32, %v6286_v40  ;;  %v7590_v17 = vadd.f32 %v10755_v27, %v10754_v50  ;;  %v7532_v33 = vadd.f32 %v10760_v59, %v10759_v35  ;;  %v10774_v27 = vld [vmem:[#allocation8_spill] sm:$0xff] }
 0x324   : > { %v7650_v51 = vpop.f32.mrf.mxu1  ;;  %6566 = vxpose.xlu0.b32.cont [3/16] (narrow) %v6461_v4, 8  ;;  %v6291_v4 = vadd.f32 %v7587_v44, %v6194_v42  ;;  %v6202_v20 = vadd.f32 %v7529_v38, %v6105_v31  ;;  %v10767_v44 = vld [vmem:[#allocation28_spill] sm:$0xff] }
 0x325   : > { %v6471_v1 = vpop.f32.mrf.mxu0  ;;  %v7651_v11 = vadd.f32 %v7650_v51, %v7649_v57  ;;  %v6480_v36 = vadd.f32 %v7772_v62, %v6383_v13  ;;  %v6197_v57 = vadd.f32 %v7526_v41, %v6100_v28  ;;  %v10757_v51 = vld [vmem:[#allocation22_spill] sm:$0xff]  ;;  %v6205_v53 = vadd.f32 %v7532_v33, %v6108_v2  ;;  %v10772_v28 = vld [vmem:[#allocation33_spill] sm:$0xff]  ;;  %v10779_v59 = vld [vmem:[#allocation16_spill] sm:$0xff] }
 0x326   : > { %v7652_v60 = vpop.f32.mrf.mxu1  ;;  %v6472_v0 = vadd.f32 %v6471_v1, %v6375_v21  ;;  %v7593_v58 = vadd.f32 %v10758_v30, %v10757_v51  ;;  %v10762_v21 = vld [vmem:[#allocation24_spill] sm:$0xff]  ;;  %v7538_v41 = vadd.f32 %v10770_v24, %v10769_v14 }
 0x327   : > { %v7775_v10 = vpop.f32.mrf.mxu0  ;;  %v6388_v34 = vadd.f32 %v7651_v11, %v6291_v4  ;;  %v6294_v49 = vadd.f32 %v7590_v17, %v6197_v57  ;;  %v7596_v9 = vadd.f32 %v10763_v46, %v10762_v21  ;;  %v10773_v4 = vld [vmem:[#allocation34_spill] sm:$0xff]  ;;  %v10780_v33 = vld [vmem:[#allocation20_spill] sm:$0xff] }
 0x328   : > { %v7653_v61 = vpop.f32.mrf.mxu1  ;;  %6567 = vxpose.xlu0.b32.cont [4/16] (narrow) %v6464_v15, 8  ;;  %v6299_v6 = vadd.f32 %v7593_v58, %v6202_v20  ;;  %v7602_v50 = vadd.f32 %v10773_v4, %v10772_v28  ;;  %v10775_v17 = vld [vmem:[#allocation14_spill] sm:$0xff] }
 0x329   : > { %v6484_v37 = vpop.f32.mrf.mxu0  ;;  %v7654_v15 = vadd.f32 %v7653_v61, %v7652_v60  ;;  %v10764_v60 = vld [vmem:[#allocation31_spill] sm:$0xff]  ;;  %v10765_v61 = vld [vmem:[#allocation4_spill] sm:$0xff]  ;;  %v6302_v48 = vadd.f32 %v7596_v9, %v6205_v53 }
 0x32a   : > { %v7655_v3 = vpop.f32.mrf.mxu1 }
 0x32b   : > { %v7776_v29 = vpop.f32.mrf.mxu0  ;;  %v6391_v39 = vadd.f32 %v7654_v15, %v6294_v49  ;;  %v10777_v15 = vld [vmem:[#allocation36_spill] sm:$0xff]  ;;  %v7544_v49 = vadd.f32 %v10780_v33, %v10779_v59 }
 0x32c   : > { %v7656_v26 = vpop.f32.mrf.mxu1  ;;  %6568 = vxpose.xlu0.b32.cont [5/16] (narrow) %v6469_v19, 8  ;;  %v6485_v19 = vadd.f32 %v6484_v37, %v6388_v34  ;;  %v10778_v34 = vld [vmem:[#allocation35_spill] sm:$0xff] }
 0x32d   : > { %v7657_v45 = vadd.f32 %v7656_v26, %v7655_v3  ;;  %v6487_v62 = vpop.f32.mrf.mxu0  ;;  %v10766_v3 = vld [vmem:[#allocation9_spill] sm:$0xff]  ;;  %v7605_v20 = vadd.f32 %v10778_v34, %v10777_v15 }
 0x32e   : > { %v7658_v18 = vpop.f32.mrf.mxu1  ;;  %v6488_v54 = vadd.f32 %v6487_v62, %v6391_v39  ;;  %v6113_v26 = vadd.f32 %v10766_v3, %v10385_v25  ;;  %v6546_v3 = vpop.trf.xlu1 }
 0x32f   : > { %v6396_v8 = vadd.f32 %v7657_v45, %v6299_v6  ;;  %v7779_v56 = vpop.f32.mrf.mxu0  ;;  %v10782_v6 = vld [vmem:[#allocation38_spill] sm:$0xff] }
 0x330   : > { %v7659_v52 = vpop.f32.mrf.mxu1  ;;  %6569 = vxpose.xlu0.b32.cont [6/16] (narrow) %v6472_v0, 8  ;;  %v7535_v0 = vadd.f32 %v10765_v61, %v10764_v60  ;;  %v7608_v21 = vadd.f32 %v10401_v5, %v10782_v6  ;;  %v6515_v5 = vld [vmem:[%s462_s14] sm:$0xf] }
 0x331   : > { %v7660_v32 = vadd.f32 %v7659_v52, %v7658_v18  ;;  %v6493_v11 = vadd.f32 %v7775_v10, %v6396_v8  ;;  %v6500_v55 = vpop.f32.mrf.mxu0  ;;  %v10771_v52 = vld [vmem:[#allocation13_spill] sm:$0xff]  ;;  %v10776_v10 = vld [vmem:[#allocation15_spill] sm:$0xff] }
 0x332   : > { %v7661_v47 = vpop.f32.mrf.mxu1  ;;  %v6210_v42 = vadd.f32 %v7535_v0, %v6113_v26  ;;  %v6116_v38 = vadd.f32 %v10771_v52, %v10385_v25 }
 0x333   : > { %v6399_v13 = vadd.f32 %v7660_v32, %v6302_v48 }
 0x334   : > { %v7662_v22 = vpop.f32.mrf.mxu1  ;;  %6570 = vxpose.xlu0.b32.cont [7/16] (narrow) %v6477_v43, 8  ;;  %v10768_v43 = vld [vmem:[#allocation32_spill] sm:$0xff]  ;;  %v6213_v12 = vadd.f32 %v7538_v41, %v6116_v38 }
 0x335   : > { %v7599_v37 = vadd.f32 %v10768_v43, %v10767_v44  ;;  %v7663_v63 = vadd.f32 %v7662_v22, %v7661_v47  ;;  %v6496_v31 = vadd.f32 %v7776_v29, %v6399_v13  ;;  %v6121_v47 = vadd.f32 %v10776_v10, %v10385_v25  ;;  %v7780_v22 = vpop.f32.mrf.mxu0 }
 0x336   : > { %v7664_v16 = vpop.f32.mrf.mxu1  ;;  %v6310_v58 = vadd.f32 %v7602_v50, %v6213_v12 }
 0x337   : > { %v6307_v23 = vadd.f32 %v7599_v37, %v6210_v42  ;;  %v6503_v29 = vpop.f32.mrf.mxu0 }
 0x338   : > { %6571 = vxpose.xlu0.b32.cont [8/16] (narrow) %v6480_v36, 8  ;;  %v7665_v1 = vpop.f32.mrf.mxu1  ;;  %v7541_v36 = vadd.f32 %v10775_v17, %v10774_v27 }
 0x339   : > { %v6404_v57 = vadd.f32 %v7663_v63, %v6307_v23  ;;  %v7666_v51 = vadd.f32 %v7665_v1, %v7664_v16  ;;  %v10781_v16 = vld [vmem:[#allocation18_spill] sm:$0xff] }
 0x33a   : > { %v7667_v40 = vpop.f32.mrf.mxu1  ;;  %v6218_v35 = vadd.f32 %v7541_v36, %v6121_v47  ;;  %v6124_v1 = vadd.f32 %v10781_v16, %v10385_v25  ;;  %v6520_v25 = vpop.permute.xlu0 %6519 }
 0x33b   : > { %v6501_v45 = vadd.f32 %v6500_v55, %v6404_v57  ;;  %v6522_v32 = vsub.f32 %v6515_v5, %v6520_v25 }
 0x33c   : > { %6572 = vxpose.xlu0.b32.cont [9/16] (narrow) %v6485_v19, 8  ;;  %v7668_v18 = vpop.f32.mrf.mxu1  ;;  %v6407_v19 = vadd.f32 %v7666_v51, %v6310_v58  ;;  %v6315_v2 = vadd.f32 %v7605_v20, %v6218_v35  ;;  %v6221_v46 = vadd.f32 %v7544_v49, %v6124_v1 }
 0x33d   : > { %v7669_v62 = vadd.f32 %v7668_v18, %v7667_v40  ;;  %v6562_v40 = vadd.f32 1.0, %v6546_v3 }
 0x33e   : > { %v7670_v30 = vpop.f32.mrf.mxu1  ;;  %v6504_v9 = vadd.f32 %v6503_v29, %v6407_v19  ;;  %v6318_v61 = vadd.f32 %v7608_v21, %v6221_v46 }
 0x33f   : > { %v6412_v39 = vadd.f32 %v7669_v62, %v6315_v2 }
 0x340   : > { %6573 = vxpose.xlu0.b32.cont [10/16] (narrow) %v6488_v54, 8  ;;  %v7671_v7 = vpop.f32.mrf.mxu1  ;;  %v6527_v54 = vpop.permute.xlu0 %6526 }
 0x341   : > { %v7672_v60 = vadd.f32 %v7671_v7, %v7670_v30  ;;  %v6509_v0 = vadd.f32 %v7779_v56, %v6412_v39  ;;  %v6529_v26 = vmul.f32 %v6527_v54, %v6522_v32 }
 0x343   : > { %v6415_v53 = vadd.f32 %v7672_v60, %v6318_v61  ;;  %v6563_v48 = vmul.f32 %v6562_v40, %v6529_v26 }
 0x344   : > { %6574 = vxpose.xlu0.b32.cont [11/16] (narrow) %v6493_v11, 8 }
 0x345   : > { %v6512_v8 = vadd.f32 %v7780_v22, %v6415_v53 }
 0x348   : > { %6575 = vxpose.xlu0.b32.cont [12/16] (narrow) %v6496_v31, 8 }
 0x34c   : > { %6576 = vxpose.xlu0.b32.cont [13/16] (narrow) %v6501_v45, 8 }
 0x350   : > { %6577 = vxpose.xlu0.b32.cont [14/16] (narrow) %v6504_v9, 8 }
 0x354   : > { %6578 = vxpose.xlu0.b32.cont [15/16] (narrow) %v6509_v0, 8 }
 0x358   : > { %6579 = vxpose.xlu0.b32.end [16/16] (narrow) %v6512_v8, 8 }
 0x398   : > { %v6580_v56 = vpop.trf.xlu0 }
 0x399   : > { %v6596_v44 = vadd.f32 %v6580_v56, %v6563_v48 }
 0x39b   : > { %6597 = vst [vmem:[%s490_s15] sm:$0xf] %v6596_v44 }
 0x39c PF: > { %s21_s21 = sadd.s32 1, %s8044_s21   ;;  %s10783_s17 = smov %s8036_s19 }
 0x39d   : > { %p18_p8 = scmp.ge.s32.totalorder %s21_s21, 6   ;;  %s10784_s18 = smov %s8040_s20 }
 0x39e   : > { %s10785_s19 = smov %s10788_s22  ;;  %s10786_s20 = smov %s10792_s23 }
 0x39f   :  { %20 = sbr.rel (!%p18_p8) target bundleno = 3 (0x3), region = 102 }

// kernel: spatially_adaptive_norm.5
= control target key start
LH: loop header
LB: loop body
LE: loop exit
PB: predicated region body
PF: predicated region fallthrough
CT: control target
= control target key end

     0   :  { %s6898_s17 = smov 0   ;;  %s6900_s18 = smov 0   ;;  %s9089_s0 = inlined_call_operand.vmem [shape: f32[2,4,256], index: 0, kind: input, shape index: {}, may-alias: {0,11}]   ;;  %s9090_s1 = inlined_call_operand.vmem [shape: bf16[2,16,18,48], index: 1, kind: input, shape index: {}]   ;;  %s9091_s2 = inlined_call_operand.vmem [shape: bf16[2,2,2,18,48], index: 2, kind: input, shape index: {}]   ;;  %s9092_s3 = inlined_call_operand.vmem [shape: bf16[48,64], index: 3, kind: input, shape index: {}]   ;;  %s9093_s4 = inlined_call_operand.vmem [shape: f32[1,64], index: 4, kind: input, shape index: {}]   ;;  %s9094_s5 = inlined_call_operand.vmem [shape: bf16[576,4], index: 5, kind: input, shape index: {}]   ;;  %s9095_s6 = inlined_call_operand.vmem [shape: bf16[576,4], index: 6, kind: input, shape index: {}]   ;;  %s9096_s7 = inlined_call_operand.vmem [shape: f32[1,4], index: 7, kind: input, shape index: {}]   ;;  %s9097_s8 = inlined_call_operand.vmem [shape: f32[1,4], index: 8, kind: input, shape index: {}]   ;;  %s9098_s9 = inlined_call_operand.vmem [shape: f32[4,1], index: 9, kind: input, shape index: {}]   ;;  %s9099_s10 = inlined_call_operand.vmem [shape: f32[4,1], index: 10, kind: input, shape index: {}]   ;;  %s9100_s11 = inlined_call_operand.vmem [shape: f32[2,4,256], index: 11, kind: output, shape index: {}, may-alias: {0,11}]  }
   0x1   :  { %9121 = sst [smem:[#allocation17_spill]] %s9092_s3  ;;  %s6902_s19 = smov 0  }
   0x2   :  { %s6904_s20 = smov 0   ;;  %s6906_s21 = smov 0  }
   0x3 LB: > { %s30_s22 = sadd.s32 1, %s6824_s19  ;;  %s33_s23 = sadd.s32 1, %s6828_s20  ;;  %s6832_s21 = sphi %s6906_s21, %s21_s21   ;;  %s6828_s20 = sphi %s6904_s20, %s9220_s20   ;;  %s6824_s19 = sphi %s6902_s19, %s9219_s19   ;;  %s6820_s18 = sphi %s6900_s18, %s9218_s18   ;;  %s6816_s17 = sphi %s6898_s17, %s9217_s17  }
   0x4   : > { %p31_p0 = scmp.ge.s32.totalorder %s30_s22, 2  ;;  %p5921_p1 = scmp.ge.s32.totalorder %s6832_s21, 1 }
   0x5   : > { %p390_p2 = scmp.lt.s32.totalorder %s6832_s21, 5 }
   0x6   : > { %s9222_s22 = smov (%p31_p0, %s30_s22), 0  ;;  %s9224_s23 = smov (!%p31_p0, %s33_s23), %s6828_s20 }
   0x7   : > { %p391_p3 = pnand %p5921_p1, %p390_p2  ;;  %p35_p4 = scmp.ge.s32.totalorder %s9224_s23, 2 }
   0x9   : > { %s9226_s23 = smov (%p35_p4, %s9224_s23), 0  ;;  %394 = sbr.rel (%p391_p3) target bundleno = 940 (0x3ac), region = 64 }
   0xe   : > { %s9122_s3 = sld [smem:[#allocation17_spill]]  ;;  %p455_p5 = scmp.lt.s32.totalorder %s6820_s18, 1  ;;  %v564_v1 = vlaneseq  ;;  %v6834_v5 = vmov 1966171168   ;;  %vm1758_vm0 = vcmask 392192   ;;  %vm3128_vm5 = vcmask 516096  }
   0xf   : > { %p457_p6 = scmp.lt.s32.totalorder %s6816_s17, 1  ;;  %s6943_s12 = sshll.u32 %s6816_s17, 3  ;;  %v562_v6 = vunpack.c.l.s4 %v6834_v5  ;;  %vm3125_vm12 = vcmask 519168  }
  0x10   : > { %s9228_s18 = smov (!%p455_p5, %s6820_s18), 1  ;;  %v6941_v4 = vshrl.u32 %v564_v1, 7  ;;  %p466_p7 = scmp.lt.s32.totalorder %s6943_s12, 15 }
  0x11   : > { %s6939_s30 = scalar_select %p457_p6, %s6816_s17, 1  ;;  %v563_v7 = vunpack.c.0.s8 %v562_v6 }
  0x12   : > { %s6618_s13 = smul.u32 48, %s9228_s18 }
  0x13   : > { %s6619_s14 = smul.u32 6, %s6939_s30  ;;  %v6951_v8 = vsub.s32 %v563_v7, %v6941_v4 }
  0x14   : > { %v6667_v0 = vld [vmem:[%s9122_s3 + $0x10] sm:$0xff]   ;;  %v6668_v2 = vld [vmem:[%s9122_s3 + $0x8] sm:$0xff]   ;;  %v6669_v3 = vld [vmem:[%s9122_s3] sm:$0xff]   ;;  %s6620_s15 = smul.u32 12, %s9228_s18 }
  0x15   : > { %6533 = vmatprep.subr.bf16.mxu0 %v6667_v0  ;;  %6611 = vmatprep.subr.bf16.mxu1 %v6667_v0  ;;  %s467_s16 = scalar_select %p466_p7, %s6943_s12, 15 }
  0x16   : > { %6534 = vmatpush3.bf16.msra.mxu0 %v6667_v0  ;;  %6614 = vmatpush3.bf16.msra.mxu1 %v6667_v0  ;;  %s480_s24 = sadd.s32 %s6620_s15, %s6619_s14 }
  0x17   : > { %6535 = vmatprep.subr.bf16.mxu0 %v6668_v2  ;;  %6612 = vmatprep.subr.bf16.mxu1 %v6668_v2  ;;  %s6617_s17 = smul.u32 3, %s467_s16  ;;  %s5926_s25 = sshll.u32 %s480_s24, 2 }
  0x18   : > { %s6956_s28 = scalar_lea.vmem %s9091_s2, %s5926_s25 }
  0x19   : > { %s470_s29 = sadd.s32 %s6618_s13, %s6617_s17  ;;  %v5930_v9 = vld.sshfl [vmem:[%s6956_s28] sm:$0x33 pattern:$0x75316420]  ;;  %s5922_s17 = sshll.u32 %s9228_s18, 1 }
  0x1a   : > { %6536 = vmatpush3.bf16.msra.mxu0 %v6668_v2  ;;  %6615 = vmatpush3.bf16.msra.mxu1 %v6668_v2  ;;  %s5925_s3 = sshll.u32 %s470_s29, 2  ;;  %v5931_v10 = vld.sshfl [vmem:[%s6956_s28 + $0x4] sm:$0x33 pattern:$0x75316420]  ;;  %v560_v11 = vcombine.high %v5930_v9, %v5930_v9  ;;  %v567_v12 = vrot.slane %v5930_v9, %v6951_v8  ;;  %s6836_s29 = smov 64  }
  0x1b   : > { %6537 = vmatprep.subr.bf16.mxu0 %v6669_v3  ;;  %6613 = vmatprep.subr.bf16.mxu1 %v6669_v3  ;;  %s6964_s16 = scalar_lea.vmem %s9090_s1, %s5925_s3  ;;  %v584_v13 = vcombine.high %v5931_v10, %v5931_v10  ;;  %v591_v14 = vrot.slane %v5931_v10, %v6951_v8  ;;  %v5932_v15 = vld.sshfl [vmem:[%s6956_s28 + $0x8] sm:$0x1 pattern:$0x75316420]  ;;  %s5986_s3 = sadd.s32 4294967295, %s6943_s12 }
  0x1c   : > { %v574_v16 = vrot.slane %v560_v11, %v6951_v8  ;;  %v5933_v17 = vld.sshfl [vmem:[%s6964_s16] sm:$0x33 pattern:$0x75316420]  ;;  %v614_v20 = vrot.slane %v5932_v15, %v6951_v8  ;;  %s460_s25 = sadd.s32 %s5922_s17, %s6939_s30 }
  0x1d   : > { %v598_v18 = vrot.slane %v584_v13, %v6951_v8  ;;  %v5934_v19 = vld.sshfl [vmem:[%s6964_s16 + $0x4] sm:$0x33 pattern:$0x75316420]  ;;  %v622_v21 = vcombine.high %v5933_v17, %v5933_v17  ;;  %v629_v22 = vrot.slane %v5933_v17, %v6951_v8  ;;  %s5923_s26 = sshll.u32 %s460_s25, 2 }
  0x1e   : > { %6538 = vmatpush3.bf16.msra.mxu0 %v6669_v3  ;;  %6616 = vmatpush3.bf16.msra.mxu1 %v6669_v3  ;;  %v1186_v23 = vcombine.low %v567_v12, %v574_v16  ;;  %v5961_v24 = vcombine.high %v567_v12, %v574_v16  ;;  %v646_v25 = vcombine.high %v5934_v19, %v5934_v19  ;;  %v5935_v35 = vld.sshfl [vmem:[%s6964_s16 + $0x8] sm:$0x1 pattern:$0x75316420]  ;;  %s462_s14 = scalar_lea.vmem %s9089_s0, %s5923_s26 }
  0x1f   : > { %v653_v26 = vrot.slane %v5934_v19, %v6951_v8  ;;  %v1188_v27 = vcombine.low %v591_v14, %v598_v18  ;;  %v5962_v28 = vcombine.high %v591_v14, %v598_v18  ;;  %v636_v29 = vrot.slane %v622_v21, %v6951_v8  ;;  %v5936_v40 = vld.sshfl [vmem:[%s6964_s16 + $0xc] sm:$0x33 pattern:$0x75316420] }
  0x20   : > { %v637_v30 = vcombine.high %v629_v22, %v629_v22  ;;  %v1196_v31 = vrot.slane %v1186_v23, %v6951_v8  ;;  %v1203_v32 = vrot.slane %v5961_v24, %v6951_v8  ;;  %v660_v33 = vrot.slane %v646_v25, %v6951_v8  ;;  %v5937_v44 = vld.sshfl [vmem:[%s6964_s16 + $0x10] sm:$0x33 pattern:$0x75316420] }
  0x21   : > { %v661_v34 = vcombine.high %v653_v26, %v653_v26  ;;  %v1210_v36 = vrot.slane %v1188_v27, %v6951_v8  ;;  %v1217_v37 = vrot.slane %v5962_v28, %v6951_v8  ;;  %v638_v38 = vcombine.high %v636_v29, %v636_v29  ;;  %v5938_v54 = vld.sshfl [vmem:[%s6964_s16 + $0x14] sm:$0x1 pattern:$0x75316420] }
  0x22   : > { %v1235_v39 = vcombine.low %v614_v20, %v629_v22  ;;  %v1218_v41 = vcombine.low %v1196_v31, %v1203_v32  ;;  %v1236_v42 = vcombine.low %v636_v29, %v637_v30  ;;  %v662_v45 = vcombine.high %v660_v33, %v660_v33  ;;  %v5939_v63 = vld.sshfl [vmem:[%s6964_s16 + $0x18] sm:$0x33 pattern:$0x75316420] }
  0x23   : > { %v1238_v43 = vcombine.low %v660_v33, %v661_v34  ;;  %v1219_v46 = vcombine.low %v1210_v36, %v1217_v37  ;;  %v1237_v47 = vcombine.low %v638_v38, %v653_v26  ;;  %v676_v49 = vrot.slane %v5935_v35, %v6951_v8  ;;  %v5940_v3 = vld.sshfl [vmem:[%s6964_s16 + $0x1c] sm:$0x33 pattern:$0x75316420] }
  0x24   : > { %v1245_v48 = vrot.slane %v1235_v39, %v6951_v8  ;;  %v1226_v50 = vrot.slane %v1218_v41, %v6951_v8  ;;  %v1252_v51 = vrot.slane %v1236_v42, %v6951_v8  ;;  %v684_v53 = vcombine.high %v5936_v40, %v5936_v40  ;;  %v5941_v23 = vld.sshfl [vmem:[%s6964_s16 + $0x20] sm:$0x1 pattern:$0x75316420] }
  0x25   : > { %v1266_v52 = vrot.slane %v1238_v43, %v6951_v8  ;;  %v1233_v55 = vrot.slane %v1219_v46, %v6951_v8  ;;  %v1259_v56 = vrot.slane %v1237_v47, %v6951_v8  ;;  %v691_v57 = vrot.slane %v5936_v40, %v6951_v8  ;;  %v5942_v27 = vld.sshfl [vmem:[%s6964_s16 + $0x24] sm:$0x33 pattern:$0x75316420] }
  0x26   : > { %v708_v58 = vcombine.high %v5937_v44, %v5937_v44  ;;  %v1267_v59 = vcombine.low %v1245_v48, %v1252_v51  ;;  %v698_v60 = vrot.slane %v684_v53, %v6951_v8  ;;  %v715_v61 = vrot.slane %v5937_v44, %v6951_v8  ;;  %v5943_v37 = vld.sshfl [vmem:[%s6964_s16 + $0x28] sm:$0x33 pattern:$0x75316420] }
  0x27   : > { %v1284_v62 = vcombine.low %v662_v45, %v676_v49  ;;  %v1234_v0 = vcombine.low %v1226_v50, %v1233_v55  ;;  %v1268_v1 = vcombine.low %v1259_v56, %v1266_v52  ;;  %v738_v5 = vrot.slane %v5938_v54, %v6951_v8  ;;  %v5944_v46 = vld.sshfl [vmem:[%s6964_s16 + $0x2c] sm:$0x1 pattern:$0x75316420] }
  0x28   : > { %v722_v2 = vrot.slane %v708_v58, %v6951_v8  ;;  %v1275_v6 = vrot.slane %v1267_v59, %v6951_v8  ;;  %v1285_v7 = vcombine.low %v691_v57, %v698_v60  ;;  %v5963_v9 = vcombine.high %v691_v57, %v698_v60  ;;  %v5945_v50 = vld.sshfl [vmem:[%s6964_s16 + $0x30] sm:$0x33 pattern:$0x75316420] }
  0x29   : > { %v1294_v10 = vrot.slane %v1284_v62, %v6951_v8  ;;  %6539 = vmatprep.mubr.msk.bf16.mxu0 %vm1758_vm0, %v1234_v0  ;;  %v1282_v11 = vrot.slane %v1268_v1, %v6951_v8  ;;  %v746_v13 = vcombine.high %v5939_v63, %v5939_v63  ;;  %v753_v14 = vrot.slane %v5939_v63, %v6951_v8  ;;  %v5946_v0 = vld.sshfl [vmem:[%s6964_s16 + $0x34] sm:$0x33 pattern:$0x75316420] }
  0x2a   : > { %v1287_v12 = vcombine.low %v715_v61, %v722_v2  ;;  %v1301_v15 = vrot.slane %v1285_v7, %v6951_v8  ;;  %v1308_v16 = vrot.slane %v5963_v9, %v6951_v8  ;;  %v777_v17 = vrot.slane %v5940_v3, %v6951_v8 }
  0x2b   : > { %v5964_v18 = vcombine.high %v715_v61, %v722_v2  ;;  %v1283_v19 = vcombine.low %v1275_v6, %v1282_v11  ;;  %v760_v21 = vrot.slane %v746_v13, %v6951_v8  ;;  %v761_v22 = vcombine.high %v753_v14, %v753_v14  ;;  %v5947_v6 = vld.sshfl [vmem:[%s6964_s16 + $0x38] sm:$0x1 pattern:$0x75316420] }
  0x2c   : > { %v1315_v20 = vrot.slane %v1287_v12, %v6951_v8  ;;  %v1316_v24 = vcombine.low %v1294_v10, %v1301_v15  ;;  %v1334_v25 = vcombine.low %v738_v5, %v753_v14  ;;  %v770_v28 = vcombine.high %v5940_v3, %v5940_v3  ;;  %v5948_v12 = vld.sshfl [vmem:[%s6964_s16 + $0x3c] sm:$0x33 pattern:$0x75316420] }
  0x2d   : > { %v1343_v26 = vrot.slane %v5964_v18, %v6951_v8  ;;  %6540 = vmatmul.mubr.msk.bf16.vlgmr.msra.gmra.mxu0 %vm1758_vm0, %v1283_v19  ;;  %v762_v30 = vcombine.high %v760_v21, %v760_v21  ;;  %v1335_v31 = vcombine.low %v760_v21, %v761_v22  ;;  %v785_v32 = vcombine.high %v777_v17, %v777_v17  ;;  %v5949_v21 = vld.sshfl [vmem:[%s6964_s16 + $0x40] sm:$0x33 pattern:$0x75316420] }
  0x2e   : > { %v1317_v29 = vcombine.low %v1308_v16, %v1315_v20  ;;  %v1324_v33 = vrot.slane %v1316_v24, %v6951_v8  ;;  %v1350_v34 = vrot.slane %v1334_v25, %v6951_v8  ;;  %v784_v35 = vrot.slane %v770_v28, %v6951_v8 }
  0x2f   : > { %v800_v36 = vrot.slane %v5941_v23, %v6951_v8  ;;  %v1336_v39 = vcombine.low %v762_v30, %v777_v17  ;;  %v1357_v40 = vrot.slane %v1335_v31, %v6951_v8  ;;  %v808_v41 = vcombine.high %v5942_v27, %v5942_v27 }
  0x30   : > { %v1331_v38 = vrot.slane %v1317_v29, %v6951_v8  ;;  %v1365_v42 = vcombine.low %v1343_v26, %v1350_v34  ;;  %v786_v43 = vcombine.high %v784_v35, %v784_v35  ;;  %v815_v44 = vrot.slane %v5942_v27, %v6951_v8  ;;  %v5950_v26 = vld.sshfl [vmem:[%s6964_s16 + $0x44] sm:$0x1 pattern:$0x75316420] }
  0x31   : > { %v1382_v45 = vcombine.low %v784_v35, %v785_v32  ;;  %v1364_v48 = vrot.slane %v1336_v39, %v6951_v8  ;;  %v822_v49 = vrot.slane %v808_v41, %v6951_v8  ;;  %v832_v51 = vcombine.high %v5943_v37, %v5943_v37  ;;  %v5951_v35 = vld.sshfl [vmem:[%s6964_s16 + $0x48] sm:$0x33 pattern:$0x75316420] }
  0x32   : > { %v1332_v47 = vcombine.low %v1324_v33, %v1331_v38  ;;  %v1373_v52 = vrot.slane %v1365_v42, %v6951_v8  ;;  %v1383_v53 = vcombine.low %v786_v43, %v800_v36  ;;  %v839_v55 = vrot.slane %v5943_v37, %v6951_v8 }
  0x33   : > { %v1392_v54 = vrot.slane %v1382_v45, %v6951_v8  ;;  %v1366_v56 = vcombine.low %v1357_v40, %v1364_v48  ;;  %v1384_v57 = vcombine.low %v815_v44, %v822_v49  ;;  %v5965_v58 = vcombine.high %v815_v44, %v822_v49 }
  0x34   : > { %6543 = vmatprep.mubr.msk.bf16.mxu0 %vm1758_vm0, %v1332_v47  ;;  %v846_v59 = vrot.slane %v832_v51, %v6951_v8  ;;  %v1399_v60 = vrot.slane %v1383_v53, %v6951_v8  ;;  %v862_v61 = vrot.slane %v5944_v46, %v6951_v8  ;;  %v870_v62 = vcombine.high %v5945_v50, %v5945_v50 }
  0x35   : > { %v877_v63 = vrot.slane %v5945_v50, %v6951_v8  ;;  %v1380_v1 = vrot.slane %v1366_v56, %v6951_v8  ;;  %v1406_v2 = vrot.slane %v1384_v57, %v6951_v8  ;;  %v1413_v3 = vrot.slane %v5965_v58, %v6951_v8  ;;  %v5953_v56 = vld.sshfl [vmem:[%s6964_s16 + $0x50] sm:$0x1 pattern:$0x75316420] }
  0x36   : > { %v1431_v5 = vcombine.low %v839_v55, %v846_v59  ;;  %v1414_v7 = vcombine.low %v1392_v54, %v1399_v60  ;;  %v884_v9 = vrot.slane %v870_v62, %v6951_v8  ;;  %v5966_v11 = vcombine.high %v839_v55, %v846_v59 }
  0x37   : > { %v885_v10 = vcombine.high %v877_v63, %v877_v63  ;;  %v1381_v13 = vcombine.low %v1373_v52, %v1380_v1  ;;  %v1415_v14 = vcombine.low %v1406_v2, %v1413_v3  ;;  %v1433_v15 = vcombine.low %v862_v61, %v877_v63  ;;  %v5952_v52 = vld.sshfl [vmem:[%s6964_s16 + $0x4c] sm:$0x33 pattern:$0x75316420] }
  0x38   : > { %v1441_v16 = vrot.slane %v1431_v5, %v6951_v8  ;;  %v1422_v17 = vrot.slane %v1414_v7, %v6951_v8  ;;  %v1448_v19 = vrot.slane %v5966_v11, %v6951_v8  ;;  %v886_v20 = vcombine.high %v884_v9, %v884_v9  ;;  %v5954_v2 = vld.sshfl [vmem:[%s6964_s16 + $0x54] sm:$0x33 pattern:$0x75316420] }
  0x39   : > { %v1434_v18 = vcombine.low %v884_v9, %v885_v10  ;;  %6544 = vmatmul.mubr.msk.bf16.gmra.mxu0 %vm1758_vm0, %v1381_v13  ;;  %v1429_v22 = vrot.slane %v1415_v14, %v6951_v8  ;;  %v1455_v23 = vrot.slane %v1433_v15, %v6951_v8  ;;  %v894_v24 = vcombine.high %v5946_v0, %v5946_v0  ;;  %v5955_v13 = vld.sshfl [vmem:[%s6964_s16 + $0x58] sm:$0x33 pattern:$0x75316420] }
  0x3a   : > { %v901_v25 = vrot.slane %v5946_v0, %v6951_v8  ;;  %v1463_v28 = vcombine.low %v1441_v16, %v1448_v19  ;;  %v924_v29 = vrot.slane %v5947_v6, %v6951_v8  ;;  %v932_v30 = vcombine.high %v5948_v12, %v5948_v12 }
  0x3b   : > { %v1462_v27 = vrot.slane %v1434_v18, %v6951_v8  ;;  %v1430_v31 = vcombine.low %v1422_v17, %v1429_v22  ;;  %v908_v32 = vrot.slane %v894_v24, %v6951_v8  ;;  %v939_v34 = vrot.slane %v5948_v12, %v6951_v8  ;;  %v5956_v22 = vld.sshfl [vmem:[%s6964_s16 + $0x5c] sm:$0x1 pattern:$0x75316420]  ;;  %s490_s16 = scalar_lea.vmem %s9100_s11, %s5923_s26 }
  0x3c   : > { %v909_v33 = vcombine.high %v901_v25, %v901_v25  ;;  %v1471_v37 = vrot.slane %v1463_v28, %v6951_v8  ;;  %v946_v38 = vrot.slane %v932_v30, %v6951_v8  ;;  %v1480_v39 = vcombine.low %v886_v20, %v901_v25 }
  0x3d   : > { %v1464_v36 = vcombine.low %v1455_v23, %v1462_v27  ;;  %6547 = vmatprep.mubr.msk.bf16.mxu0 %vm1758_vm0, %v1430_v31  ;;  %v910_v40 = vcombine.high %v908_v32, %v908_v32  ;;  %v956_v42 = vcombine.high %v5949_v21, %v5949_v21  ;;  %v963_v43 = vrot.slane %v5949_v21, %v6951_v8  ;;  %v5957_v27 = vld.sshfl [vmem:[%s6956_s28 + $0xc] sm:$0x33 pattern:$0x75316420] }
  0x3e   : > { %v1481_v41 = vcombine.low %v908_v32, %v909_v33  ;;  %v1483_v45 = vcombine.low %v939_v34, %v946_v38  ;;  %v1490_v46 = vrot.slane %v1480_v39, %v6951_v8  ;;  %v986_v47 = vrot.slane %v5950_v26, %v6951_v8 }
  0x3f   : > { %v1478_v44 = vrot.slane %v1464_v36, %v6951_v8  ;;  %v1482_v48 = vcombine.low %v910_v40, %v924_v29  ;;  %v970_v50 = vrot.slane %v956_v42, %v6951_v8  ;;  %v1001_v51 = vrot.slane %v5951_v35, %v6951_v8  ;;  %v5958_v36 = vld.sshfl [vmem:[%s6956_s28 + $0x10] sm:$0x33 pattern:$0x75316420] }
  0x40   : > { %v1497_v49 = vrot.slane %v1481_v41, %v6951_v8  ;;  %v1511_v54 = vrot.slane %v1483_v45, %v6951_v8  ;;  %v5967_v55 = vcombine.high %v939_v34, %v946_v38  ;;  %v994_v57 = vcombine.high %v5951_v35, %v5951_v35 }
  0x41   : > { %v1479_v53 = vcombine.low %v1471_v37, %v1478_v44  ;;  %v1504_v58 = vrot.slane %v1482_v48, %v6951_v8  ;;  %v1530_v60 = vcombine.low %v963_v43, %v970_v50  ;;  %v5968_v61 = vcombine.high %v963_v43, %v970_v50 }
  0x42   : > { %v1512_v59 = vcombine.low %v1490_v46, %v1497_v49  ;;  %v1532_v62 = vcombine.low %v986_v47, %v1001_v51  ;;  %v1539_v63 = vrot.slane %v5967_v55, %v6951_v8  ;;  %v1008_v0 = vrot.slane %v994_v57, %v6951_v8  ;;  %v5959_v57 = vld.sshfl [vmem:[%s6956_s28 + $0x14] sm:$0x1 pattern:$0x75316420] }
  0x43   : > { %6548 = vmatmul.mubr.msk.bf16.gmra.mxu0 %vm1758_vm0, %v1479_v53  ;;  %v1009_v1 = vcombine.high %v1001_v51, %v1001_v51  ;;  %v1513_v3 = vcombine.low %v1504_v58, %v1511_v54  ;;  %v1546_v6 = vrot.slane %v1530_v60, %v6951_v8  ;;  %v1553_v7 = vrot.slane %v5968_v61, %v6951_v8 }
  0x44   : > { %v1520_v5 = vrot.slane %v1512_v59, %v6951_v8  ;;  %v1560_v9 = vrot.slane %v1532_v62, %v6951_v8  ;;  %v1010_v10 = vcombine.high %v1008_v0, %v1008_v0  ;;  %v1018_v11 = vcombine.high %v5952_v52, %v5952_v52 }
  0x45   : > { %v1025_v12 = vrot.slane %v5952_v52, %v6951_v8  ;;  %v1527_v14 = vrot.slane %v1513_v3, %v6951_v8  ;;  %v1561_v15 = vcombine.low %v1539_v63, %v1546_v6  ;;  %v1048_v16 = vrot.slane %v5953_v56, %v6951_v8 }
  0x46   : > { %v1578_v17 = vcombine.low %v1008_v0, %v1009_v1  ;;  %v1562_v18 = vcombine.low %v1553_v7, %v1560_v9  ;;  %v1032_v19 = vrot.slane %v1018_v11, %v6951_v8  ;;  %v1056_v26 = vcombine.high %v5954_v2, %v5954_v2 }
  0x47   : > { %v1033_v20 = vcombine.high %v1025_v12, %v1025_v12  ;;  %v1579_v21 = vcombine.low %v1010_v10, %v1025_v12  ;;  %v1528_v23 = vcombine.low %v1520_v5, %v1527_v14  ;;  %v1569_v24 = vrot.slane %v1561_v15, %v6951_v8 }
  0x48   : > { %v1588_v25 = vrot.slane %v1578_v17, %v6951_v8  ;;  %v1576_v28 = vrot.slane %v1562_v18, %v6951_v8  ;;  %v1034_v29 = vcombine.high %v1032_v19, %v1032_v19  ;;  %v1063_v32 = vrot.slane %v5954_v2, %v6951_v8 }
  0x49   : > { %v1580_v30 = vcombine.low %v1032_v19, %v1033_v20  ;;  %v1595_v31 = vrot.slane %v1579_v21, %v6951_v8  ;;  %6551 = vmatprep.mubr.msk.bf16.mxu0 %vm1758_vm0, %v1528_v23  ;;  %v1070_v33 = vrot.slane %v1056_v26, %v6951_v8  ;;  %v1080_v34 = vcombine.high %v5955_v13, %v5955_v13 }
  0x4a   : > { %v1087_v35 = vrot.slane %v5955_v13, %v6951_v8  ;;  %v1577_v37 = vcombine.low %v1569_v24, %v1576_v28  ;;  %v1581_v38 = vcombine.low %v1034_v29, %v1048_v16  ;;  %v1110_v44 = vrot.slane %v5956_v22, %v6951_v8 }
  0x4b   : > { %v1602_v39 = vrot.slane %v1580_v30, %v6951_v8  ;;  %v1610_v40 = vcombine.low %v1588_v25, %v1595_v31  ;;  %v1094_v41 = vrot.slane %v1080_v34, %v6951_v8  ;;  %v1627_v42 = vcombine.low %v1063_v32, %v1070_v33 }
  0x4c   : > { %v5969_v43 = vcombine.high %v1063_v32, %v1070_v33  ;;  %6552 = vmatmul.mubr.msk.bf16.gmra.mxu0 %vm1758_vm0, %v1577_v37  ;;  %v1609_v45 = vrot.slane %v1581_v38, %v6951_v8  ;;  %v1118_v47 = vcombine.high %v5957_v27, %v5957_v27  ;;  %v1125_v48 = vrot.slane %v5957_v27, %v6951_v8  ;;  %v7130_v32 = vld [vmem:[%s9093_s4] ss:$0 sm:$0xff] }
  0x4d   : > { %v1618_v46 = vrot.slane %v1610_v40, %v6951_v8  ;;  %v1629_v49 = vcombine.low %v1087_v35, %v1094_v41  ;;  %v5970_v50 = vcombine.high %v1087_v35, %v1094_v41  ;;  %v1637_v51 = vrot.slane %v1627_v42, %v6951_v8 }
  0x4e   : > { %v1644_v52 = vrot.slane %v5969_v43, %v6951_v8  ;;  %v1611_v53 = vcombine.low %v1602_v39, %v1609_v45  ;;  %v1132_v54 = vrot.slane %v1118_v47, %v6951_v8  ;;  %v1133_v55 = vcombine.high %v1125_v48, %v1125_v48 }
  0x4f   : > { %v1142_v56 = vcombine.high %v5958_v36, %v5958_v36  ;;  %v1651_v58 = vrot.slane %v1629_v49, %v6951_v8  ;;  %v1658_v59 = vrot.slane %v5970_v50, %v6951_v8  ;;  %v1149_v61 = vrot.slane %v5958_v36, %v6951_v8 }
  0x50   : > { %v1659_v60 = vcombine.low %v1637_v51, %v1644_v52  ;;  %v1625_v62 = vrot.slane %v1611_v53, %v6951_v8  ;;  %v1134_v63 = vcombine.high %v1132_v54, %v1132_v54  ;;  %v1676_v1 = vcombine.low %v1110_v44, %v1125_v48 }
  0x51   : > { %v1156_v0 = vrot.slane %v1142_v56, %v6951_v8  ;;  %v1660_v2 = vcombine.low %v1651_v58, %v1658_v59  ;;  %v1157_v5 = vcombine.high %v1149_v61, %v1149_v61  ;;  %v1677_v6 = vcombine.low %v1132_v54, %v1133_v55 }
  0x52   : > { %v1667_v3 = vrot.slane %v1659_v60, %v6951_v8  ;;  %v1626_v7 = vcombine.low %v1618_v46, %v1625_v62  ;;  %v1678_v9 = vcombine.low %v1134_v63, %v1149_v61  ;;  %v1686_v10 = vrot.slane %v1676_v1, %v6951_v8 }
  0x53   : > { %v1158_v11 = vcombine.high %v1156_v0, %v1156_v0  ;;  %v1674_v12 = vrot.slane %v1660_v2, %v6951_v8  ;;  %v1679_v13 = vcombine.low %v1156_v0, %v1157_v5  ;;  %v1693_v14 = vrot.slane %v1677_v6, %v6951_v8 }
  0x54   : > { %v1172_v15 = vrot.slane %v5959_v57, %v6951_v8  ;;  %6555 = vmatprep.mubr.msk.bf16.mxu1 %vm1758_vm0, %v1626_v7  ;;  %v1700_v16 = vrot.slane %v1678_v9, %v6951_v8  ;;  %v6835_v27 = vmov 1983009808   ;;  %v2365_v29 = vadd.s32 16, %v6941_v4 }
  0x55   : > { %v1675_v17 = vcombine.low %v1667_v3, %v1674_v12  ;;  %v1707_v18 = vrot.slane %v1679_v13, %v6951_v8  ;;  %v1708_v19 = vcombine.low %v1686_v10, %v1693_v14  ;;  %v1971_v28 = vunpack.c.l.s4 %v6835_v27 }
  0x56   : > { %v1725_v20 = vcombine.low %v1158_v11, %v1172_v15  ;;  %v7125_v31 = vstv %s5986_s3  ;;  %v7132_v33 = vadd.s32 4294967295, %v2365_v29  ;;  %v7137_v34 = vadd.s32 4294967295, %v6941_v4 }
  0x57   : > { %6556 = vmatmul.mubr.msk.bf16.vlgmr.msra.gmra.mxu1 %vm1758_vm0, %v1675_v17  ;;  %v1709_v21 = vcombine.low %v1700_v16, %v1707_v18  ;;  %v1716_v22 = vrot.slane %v1708_v19, %v6951_v8  ;;  %v1972_v30 = vunpack.c.0.s8 %v1971_v28  ;;  %vm2369_vm1 = vcmp.ge.s32.totalorder %v7125_v31, 0 }
  0x58   : > { %v1732_v23 = vrot.slane %v1725_v20, %v6951_v8  ;;  %vm2379_vm2 = vcmp.lt.s32.totalorder %v7125_v31, 16  ;;  %v2353_v38 = vadd.s32 1, %v7125_v31  ;;  %vm2434_vm4 = vcmp.lt.s32.totalorder %v7132_v33, 16 }
  0x59   : > { %v1723_v24 = vrot.slane %v1709_v21, %v6951_v8  ;;  %v7141_v36 = vsub.s32 %v1972_v30, %v6941_v4  ;;  %vm7144_vm3 = vmand %vm2369_vm1, %vm2379_vm2  ;;  %v7151_v42 = vadd.s32 2, %v7125_v31  ;;  %vm2399_vm6 = vcmp.ge.s32.totalorder %v7137_v34, 0  ;;  %v6705_v34 = vld [vmem:[%s9094_s5 + $0x90] sm:$0xff]  }
  0x5a   : > { %v1739_v26 = vrot.slane %v1732_v23, %v6951_v8  ;;  %vm7160_vm7 = vmand %vm7144_vm3, %vm2434_vm4  ;;  %vm2370_vm8 = vcmp.ge.s32.totalorder %v2353_v38, 0  ;;  %vm2380_vm9 = vcmp.lt.s32.totalorder %v2353_v38, 16  ;;  %v7165_v49 = vadd.s32 3, %v7125_v31 }
  0x5b   : > { %v1724_v25 = vcombine.low %v1716_v22, %v1723_v24  ;;  %v7168_v50 = vadd.s32 4, %v7125_v31  ;;  %vm2371_vm10 = vcmp.ge.s32.totalorder %v7151_v42, 0  ;;  %vm2381_vm11 = vcmp.lt.s32.totalorder %v7151_v42, 16  ;;  %vm7193_vm13 = vmand %vm2370_vm8, %vm2380_vm9 }
  0x5c   : > { %v7177_v58 = vadd.s32 5, %v7125_v31  ;;  %v7184_v6 = vadd.s32 6, %v7125_v31  ;;  %v7187_v7 = vadd.s32 7, %v7125_v31  ;;  %vm7209_vm14 = vmand %vm7193_vm13, %vm2399_vm6  ;;  %vm2382_vm1 = vcmp.lt.s32.totalorder %v7165_v49, 16 }
  0x5d   : > { %6559 = vmatprep.mubr.msk.bf16.mxu1 %vm1758_vm0, %v1724_v25  ;;  %vm7218_vm15 = vmand %vm7144_vm3, %vm2399_vm6  ;;  %vm2373_vm9 = vcmp.ge.s32.totalorder %v7168_v50, 0 }
  0x5e   : > { %vm7234_vm2 = vmand %vm2371_vm10, %vm2381_vm11  ;;  %vm2383_vm10 = vcmp.lt.s32.totalorder %v7168_v50, 16 }
  0x5f   : > { %6560 = vmatmul.mubr.msk.bf16.gmra.mxu1 %vm1758_vm0, %v1739_v26  ;;  %vm2372_vm0 = vcmp.ge.s32.totalorder %v7165_v49, 0  ;;  %vm2440_vm8 = vmand %vm7193_vm13, %vm2434_vm4 }
  0xed   : > { %v6541_v8 = vpop.f32.mrf.mxu0 }
  0xee   : > { %v1838_v35 = vadd.f32 %v6541_v8, %v7130_v32 }
  0xef   : > { %v1829_v37 = vpop.f32.mrf.mxu0 }
  0xf0   : > { %v1925_v39 = vmax.f32 %v1838_v35, 0.0  ;;  %v1830_v41 = vadd.f32 %v7130_v32, %v1829_v37 }
  0xf1   : > { %v6542_v4 = vpop.f32.mrf.mxu0 }
  0xf2   : > { %v2003_v43 = vcombine.high %v1925_v39, %v1925_v39  ;;  %v2010_v44 = vrot.slane %v1925_v39, %v7141_v36  ;;  %v1923_v45 = vmax.f32 %v1830_v41, 0.0  ;;  %v1841_v46 = vadd.f32 %v6542_v4, %v7130_v32 }
  0xf3   : > { %v1832_v48 = vpop.f32.mrf.mxu0 }
  0xf4   : > { %v2017_v51 = vrot.slane %v2003_v43, %v7141_v36  ;;  %v2018_v52 = vcombine.high %v2010_v44, %v2010_v44  ;;  %v2565_v53 = vrot.slane %v2010_v44, %v7141_v36  ;;  %v1969_v54 = vcombine.high %v1923_v45, %v1923_v45 }
  0xf5   : > { %v1976_v55 = vrot.slane %v1923_v45, %v7141_v36  ;;  %v1926_v56 = vmax.f32 %v1841_v46, 0.0  ;;  %v1833_v57 = vadd.f32 %v7130_v32, %v1832_v48 }
  0xf6   : > { %v2566_v59 = vcombine.low %v2018_v52, %v2017_v51  ;;  %v2967_v60 = vsel %vm7160_vm7, %v2565_v53, 0.0  ;;  %v1983_v61 = vrot.slane %v1969_v54, %v7141_v36  ;;  %v2019_v62 = vcombine.high %v2017_v51, %v2017_v51  ;;  %vm7249_vm7 = vmand %vm7234_vm2, %vm2434_vm4 }
  0xf7   : > { %v6210_v63 = vpack.c.bf16 %v2967_v60, %v2967_v60  ;;  %v1984_v0 = vcombine.high %v1976_v55, %v1976_v55  ;;  %v2020_v1 = vcombine.high %v1926_v56, %v1926_v56  ;;  %v2027_v2 = vrot.slane %v1926_v56, %v7141_v36 }
  0xf8   : > { %v1985_v3 = vcombine.high %v1983_v61, %v1983_v61  ;;  %v1924_v5 = vmax.f32 %v1833_v57, 0.0  ;;  %v2574_v19 = vrot.slane %v2566_v59, %v7141_v36 }
  0xf9   : > { %3129 = vst.msk [vmem:[#allocation2 + $0x8] sm:$0x1] %vm3128_vm5, %v6210_v63  ;;  %v2525_v9 = vcombine.low %v1976_v55, %v1984_v0  ;;  %v2034_v10 = vrot.slane %v2020_v1, %v7141_v36  ;;  %v2035_v11 = vcombine.high %v2027_v2, %v2027_v2  ;;  %v2567_v13 = vcombine.low %v2019_v62, %v2027_v2  ;;  %v6545_v14 = vpop.f32.mrf.mxu0 }
  0xfa   : > { %v2526_v15 = vcombine.low %v1983_v61, %v1985_v3  ;;  %v1986_v16 = vcombine.high %v1924_v5, %v1924_v5  ;;  %v1993_v17 = vrot.slane %v1924_v5, %v7141_v36  ;;  %v1854_v18 = vadd.f32 %v6545_v14, %v7130_v32 }
  0xfb   : > { %v2533_v20 = vrot.slane %v2525_v9, %v7141_v36  ;;  %v2581_v21 = vrot.slane %v2567_v13, %v7141_v36  ;;  %v7202_v22 = vcombine.low %v2035_v11, %v2034_v10  ;;  %v1845_v23 = vpop.f32.mrf.mxu0  ;;  %v2036_v37 = vcombine.high %v2034_v10, %v2034_v10 }
  0xfc   : > { %v2540_v24 = vrot.slane %v2526_v15, %v7141_v36  ;;  %v2000_v26 = vrot.slane %v1986_v16, %v7141_v36  ;;  %v2001_v27 = vcombine.high %v1993_v17, %v1993_v17  ;;  %v1929_v28 = vmax.f32 %v1854_v18, 0.0 }
  0xfd   : > { %v2582_v30 = vcombine.low %v2574_v19, %v2581_v21  ;;  %v2591_v8 = vrot.slane %v7202_v22, %v7141_v36  ;;  %v1846_v35 = vadd.f32 %v7130_v32, %v1845_v23  ;;  %v6546_v38 = vpop.f32.mrf.mxu0 }
  0xfe   : > { %v2541_v39 = vcombine.low %v2533_v20, %v2540_v24  ;;  %v2002_v41 = vcombine.high %v2000_v26, %v2000_v26  ;;  %v2542_v4 = vcombine.low %v1993_v17, %v2001_v27  ;;  %v2071_v43 = vcombine.high %v1929_v28, %v1929_v28 }
  0xff   : > { %v2968_v44 = vsel %vm7209_vm14, %v2582_v30, 0.0  ;;  %v2078_v45 = vrot.slane %v1929_v28, %v7141_v36  ;;  %v1927_v47 = vmax.f32 %v1846_v35, 0.0  ;;  %v1857_v48 = vadd.f32 %v6546_v38, %v7130_v32  ;;  %v1848_v51 = vpop.f32.mrf.mxu0  ;;  %vm7322_vm14 = vmand %vm2373_vm9, %vm2383_vm10 }
 0x100   : > { %v2965_v52 = vsel %vm7218_vm15, %v2541_v39, 0.0  ;;  %v6211_v53 = vpack.c.bf16 %v2968_v44, %v2968_v44  ;;  %v2543_v54 = vcombine.low %v2000_v26, %v2002_v41  ;;  %v2550_v55 = vrot.slane %v2542_v4, %v7141_v36  ;;  %vm7420_vm10 = vmand %vm7322_vm14, %vm2399_vm6 }
 0x101   : > { %v6208_v56 = vpack.c.bf16 %v2965_v52, %v2965_v52  ;;  %v2085_v57 = vrot.slane %v2071_v43, %v7141_v36  ;;  %v2086_v59 = vcombine.high %v2078_v45, %v2078_v45  ;;  %v2037_v42 = vcombine.high %v1927_v47, %v1927_v47 }
 0x102   : > { %3130 = vst.msk [vmem:[#allocation2 + $0xc] sm:$0xf] %vm3125_vm12, %v6211_v53  ;;  %v2557_v60 = vrot.slane %v2543_v54, %v7141_v36  ;;  %v2044_v62 = vrot.slane %v1927_v47, %v7141_v36  ;;  %v1930_v63 = vmax.f32 %v1857_v48, 0.0  ;;  %v1849_v0 = vadd.f32 %v7130_v32, %v1848_v51 }
 0x103   : > { %v6549_v1 = vpop.f32.mrf.mxu0  ;;  %3126 = vst.msk [vmem:[#allocation2] sm:$0xf] %vm3125_vm12, %v6208_v56  ;;  %v7256_v2 = vcombine.low %v2078_v45, %v2086_v59  ;;  %v2647_v3 = vrot.slane %v2085_v57, %v7141_v36  ;;  %v2051_v5 = vrot.slane %v2037_v42, %v7141_v36  ;;  %v2087_v9 = vcombine.high %v2085_v57, %v2085_v57 }
 0x104   : > { %v2558_v10 = vcombine.low %v2550_v55, %v2557_v60  ;;  %v2052_v11 = vcombine.high %v2044_v62, %v2044_v62  ;;  %v2584_v13 = vcombine.low %v2036_v37, %v2044_v62  ;;  %v2088_v14 = vcombine.high %v1930_v63, %v1930_v63 }
 0x105   : > { %v1861_v15 = vpop.f32.mrf.mxu0  ;;  %v2639_v16 = vrot.slane %v7256_v2, %v7141_v36  ;;  %v2973_v17 = vsel %vm7249_vm7, %v2647_v3, 0.0  ;;  %v2053_v18 = vcombine.high %v2051_v5, %v2051_v5  ;;  %v2095_v19 = vrot.slane %v1930_v63, %v7141_v36 }
 0x106   : > { %v2966_v20 = vsel %vm7144_vm3, %v2558_v10, 0.0  ;;  %v6216_v21 = vpack.c.bf16 %v2973_v17, %v2973_v17  ;;  %v2598_v22 = vrot.slane %v2584_v13, %v7141_v36  ;;  %v2606_v23 = vrot.slane %v2052_v11, %v7141_v36  ;;  %vm7283_vm3 = vmand %vm2372_vm0, %vm2382_vm1 }
 0x107   : > { %v6209_v24 = vpack.c.bf16 %v2966_v20, %v2966_v20  ;;  %v2607_v25 = vcombine.low %v2051_v5, %v2053_v18  ;;  %v2102_v26 = vrot.slane %v2088_v14, %v7141_v36  ;;  %v2103_v27 = vcombine.high %v2095_v19, %v2095_v19  ;;  %v6550_v28 = vpop.f32.mrf.mxu0  ;;  %vm2411_vm11 = vmand %vm7283_vm3, %vm2399_vm6 }
 0x108   : > { %3135 = vst.msk [vmem:[#allocation2 + $0x20] sm:$0x1] %vm3128_vm5, %v6216_v21  ;;  %v2599_v29 = vcombine.low %v2591_v8, %v2598_v22  ;;  %v2970_v40 = vsel %vm2440_vm8, %v2606_v23, 0.0  ;;  %v2648_v30 = vcombine.low %v2087_v9, %v2095_v19  ;;  %v1928_v35 = vmax.f32 %v1849_v0, 0.0  ;;  %vm7337_vm15 = vmand %vm7283_vm3, %vm2434_vm4 }
 0x109   : > { %3127 = vst.msk [vmem:[#allocation2 + $0x4] sm:$0xf] %vm3125_vm12, %v6209_v24  ;;  %v2615_v37 = vrot.slane %v2607_v25, %v7141_v36  ;;  %v6213_v38 = vpack.c.bf16 %v2970_v40, %v2970_v40  ;;  %v2649_v41 = vcombine.low %v2103_v27, %v2102_v26  ;;  %v1870_v4 = vadd.f32 %v6549_v1, %v7130_v32  ;;  %v1864_v52 = vpop.f32.mrf.mxu0  ;;  %vm7351_vm0 = vmand %vm7322_vm14, %vm2434_vm4 }
 0x10a   : > { %v2969_v8 = vsel %vm7193_vm13, %v2599_v29, 0.0  ;;  %v2656_v43 = vrot.slane %v2648_v30, %v7141_v36  ;;  %v2054_v44 = vcombine.high %v1928_v35, %v1928_v35  ;;  %v2061_v45 = vrot.slane %v1928_v35, %v7141_v36  ;;  %vm7311_vm13 = vmand %vm7234_vm2, %vm2399_vm6 }
 0x10b   : > { %v6212_v47 = vpack.c.bf16 %v2969_v8, %v2969_v8  ;;  %3132 = vst.msk [vmem:[#allocation2 + $0x14] sm:$0x1] %vm3128_vm5, %v6213_v38  ;;  %v2663_v49 = vrot.slane %v2649_v41, %v7141_v36  ;;  %v1933_v48 = vmax.f32 %v1870_v4, 0.0  ;;  %v1862_v51 = vadd.f32 %v7130_v32, %v1861_v15 }
 0x10c   : > { %v2068_v12 = vrot.slane %v2054_v44, %v7141_v36  ;;  %v2069_v53 = vcombine.high %v2061_v45, %v2061_v45  ;;  %v2104_v54 = vcombine.high %v2102_v26, %v2102_v26  ;;  %v1873_v55 = vadd.f32 %v6550_v28, %v7130_v32  ;;  %v6553_v20 = vpop.f32.mrf.mxu0 }
 0x10d   : > { %3131 = vst.msk [vmem:[#allocation2 + $0x10] sm:$0xf] %vm3125_vm12, %v6212_v47  ;;  %v2664_v56 = vcombine.low %v2656_v43, %v2663_v49  ;;  %v2139_v57 = vcombine.high %v1933_v48, %v1933_v48  ;;  %v2146_v59 = vrot.slane %v1933_v48, %v7141_v36  ;;  %v1931_v42 = vmax.f32 %v1862_v51, 0.0 }
 0x10e   : > { %v2070_v60 = vcombine.high %v2068_v12, %v2068_v12  ;;  %v2608_v61 = vcombine.low %v2061_v45, %v2069_v53  ;;  %v1934_v62 = vmax.f32 %v1873_v55, 0.0  ;;  %v1865_v63 = vadd.f32 %v7130_v32, %v1864_v52  ;;  %v1877_v8 = vpop.f32.mrf.mxu0 }
 0x10f   : > { %v2974_v0 = vsel %vm2411_vm11, %v2664_v56, 0.0  ;;  %v2153_v1 = vrot.slane %v2139_v57, %v7141_v36  ;;  %v2154_v3 = vcombine.high %v2146_v59, %v2146_v59  ;;  %v2105_v5 = vcombine.high %v1931_v42, %v1931_v42 }
 0x110   : > { %v6217_v9 = vpack.c.bf16 %v2974_v0, %v2974_v0  ;;  %v2622_v10 = vrot.slane %v2608_v61, %v7141_v36  ;;  %v2624_v11 = vcombine.low %v2068_v12, %v2070_v60  ;;  %v2112_v13 = vrot.slane %v1931_v42, %v7141_v36  ;;  %v6554_v60 = vpop.f32.mrf.mxu0 }
 0x111   : > { %v2155_v15 = vcombine.high %v2153_v1, %v2153_v1  ;;  %v2706_v17 = vcombine.low %v2146_v59, %v2154_v3  ;;  %v2119_v18 = vrot.slane %v2105_v5, %v7141_v36  ;;  %v2156_v19 = vcombine.high %v1934_v62, %v1934_v62 }
 0x112   : > { %3136 = vst.msk [vmem:[#allocation2 + $0x24] sm:$0xf] %vm3125_vm12, %v6217_v9  ;;  %v2623_v21 = vcombine.low %v2615_v37, %v2622_v10  ;;  %v2632_v22 = vrot.slane %v2624_v11, %v7141_v36  ;;  %v2120_v23 = vcombine.high %v2112_v13, %v2112_v13  ;;  %v2665_v24 = vcombine.low %v2104_v54, %v2112_v13 }
 0x113   : > { %v2707_v26 = vcombine.low %v2153_v1, %v2155_v15  ;;  %v2714_v27 = vrot.slane %v2706_v17, %v7141_v36  ;;  %v2121_v28 = vcombine.high %v2119_v18, %v2119_v18  ;;  %v2163_v29 = vrot.slane %v1934_v62, %v7141_v36 }
 0x114   : > { %v2640_v40 = vcombine.low %v2632_v22, %v2639_v16  ;;  %v2971_v30 = vsel %vm7311_vm13, %v2623_v21, 0.0  ;;  %v2666_v35 = vcombine.low %v2120_v23, %v2119_v18  ;;  %v2673_v37 = vrot.slane %v2665_v24, %v7141_v36 }
 0x115   : > { %v6214_v38 = vpack.c.bf16 %v2971_v30, %v2971_v30  ;;  %v2721_v41 = vrot.slane %v2707_v26, %v7141_v36  ;;  %v2688_v2 = vrot.slane %v2121_v28, %v7141_v36  ;;  %v7345_v16 = vrot.slane %v2156_v19, %v7141_v36 }
 0x116   : > { %v2972_v43 = vsel %vm7234_vm2, %v2640_v40, 0.0  ;;  %v2680_v44 = vrot.slane %v2666_v35, %v7141_v36  ;;  %v2171_v45 = vcombine.high %v2163_v29, %v2163_v29  ;;  %v2729_v47 = vrot.slane %v2163_v29, %v7141_v36 }
 0x117   : > { %vm2374_vm1 = vcmp.ge.s32.totalorder %v7177_v58, 0  ;;  %vm2384_vm7 = vcmp.lt.s32.totalorder %v7177_v58, 16  ;;  %v6215_v49 = vpack.c.bf16 %v2972_v43, %v2972_v43  ;;  %3133 = vst.msk [vmem:[#allocation2 + $0x18] sm:$0xf] %vm3125_vm12, %v6214_v38  ;;  %v2722_v48 = vcombine.low %v2714_v27, %v2721_v41  ;;  %v6557_v12 = vpop.f32.mrf.mxu1 }
 0x118   : > { %v2976_v51 = vsel %vm7337_vm15, %v2688_v2, 0.0  ;;  %v1932_v52 = vmax.f32 %v1865_v63, 0.0  ;;  %v2681_v46 = vcombine.low %v2673_v37, %v2680_v44  ;;  %v7365_v54 = vcombine.low %v2171_v45, %v7345_v16  ;;  %vm7410_vm9 = vmand %vm2374_vm1, %vm2384_vm7 }
 0x119   : > { %v6219_v53 = vpack.c.bf16 %v2976_v51, %v2976_v51  ;;  %v2979_v55 = vsel %vm7351_vm0, %v2729_v47, 0.0  ;;  %3134 = vst.msk [vmem:[#allocation2 + $0x1c] sm:$0xf] %vm3125_vm12, %v6215_v49  ;;  %v2978_v56 = vsel %vm7322_vm14, %v2722_v48, 0.0  ;;  %v1893_v61 = vpop.f32.mrf.mxu1  ;;  %v1886_v1 = vadd.f32 %v6553_v20, %v7130_v32  ;;  %vm2417_vm11 = vmand %vm7410_vm9, %vm2399_vm6 }
 0x11a   : > { %v6222_v57 = vpack.c.bf16 %v2979_v55, %v2979_v55  ;;  %v2122_v59 = vcombine.high %v1932_v52, %v1932_v52  ;;  %v2129_v42 = vrot.slane %v1932_v52, %v7141_v36  ;;  %v2975_v62 = vsel %vm7283_vm3, %v2681_v46, 0.0  ;;  %vm2452_vm7 = vmand %vm7410_vm9, %vm2434_vm4 }
 0x11b   : > { %3138 = vst.msk [vmem:[#allocation2 + $0x2c] sm:$0x1] %vm3128_vm5, %v6219_v53  ;;  %v2738_v63 = vrot.slane %v7365_v54, %v7141_v36  ;;  %v6221_v0 = vpack.c.bf16 %v2978_v56, %v2978_v56  ;;  %vm2375_vm2 = vcmp.ge.s32.totalorder %v7184_v6, 0  ;;  %vm2385_vm8 = vcmp.lt.s32.totalorder %v7184_v6, 16  ;;  %v7384_v10 = vpop.f32.mrf.mxu1 }
 0x11c   : > { %v6218_v3 = vpack.c.bf16 %v2975_v62, %v2975_v62  ;;  %3141 = vst.msk [vmem:[#allocation2 + $0x38] sm:$0x1] %vm3128_vm5, %v6222_v57  ;;  %v2136_v5 = vrot.slane %v2122_v59, %v7141_v36  ;;  %v2137_v9 = vcombine.high %v2129_v42, %v2129_v42  ;;  %v1878_v39 = vadd.f32 %v7130_v32, %v1877_v8  ;;  %vm7447_vm14 = vmand %vm2375_vm2, %vm2385_vm8 }
 0x11d   : > { %3140 = vst.msk [vmem:[#allocation2 + $0x34] sm:$0xf] %vm3125_vm12, %v6221_v0  ;;  %v1937_v11 = vmax.f32 %v1886_v1, 0.0  ;;  %v2172_v13 = vcombine.high %v7345_v16, %v7345_v16  ;;  %v1902_v14 = vadd.f32 %v6557_v12, %v7130_v32  ;;  %v1889_v15 = vadd.f32 %v6554_v60, %v7130_v32  ;;  %v7393_v21 = vpop.f32.mrf.mxu1  ;;  %vm2455_vm15 = vmand %vm7447_vm14, %vm2434_vm4 }
 0x11e   : > { %3137 = vst.msk [vmem:[#allocation2 + $0x28] sm:$0xf] %vm3125_vm12, %v6218_v3  ;;  %v2138_v17 = vcombine.high %v2136_v5, %v2136_v5  ;;  %v2689_v18 = vcombine.low %v2129_v42, %v2137_v9  ;;  %v1935_v19 = vmax.f32 %v1878_v39, 0.0  ;;  %v1894_v20 = vadd.f32 %v7130_v32, %v1893_v61  ;;  %v1880_v42 = vpop.f32.mrf.mxu0  ;;  %vm7517_vm8 = vmand %vm7447_vm14, %vm2399_vm6 }
 0x11f   : > { %v2207_v22 = vcombine.high %v1937_v11, %v1937_v11  ;;  %v2214_v23 = vrot.slane %v1937_v11, %v7141_v36  ;;  %v1941_v24 = vmax.f32 %v1902_v14, 0.0  ;;  %v1938_v26 = vmax.f32 %v1889_v15, 0.0  ;;  %v7398_v30 = vpop.f32.mrf.mxu1 }
 0x120   : > { %v2690_v27 = vcombine.low %v2136_v5, %v2138_v17  ;;  %v2697_v28 = vrot.slane %v2689_v18, %v7141_v36  ;;  %v2173_v29 = vcombine.high %v1935_v19, %v1935_v19  ;;  %v2180_v40 = vrot.slane %v1935_v19, %v7141_v36 }
 0x121   : > { %v2221_v50 = vrot.slane %v2207_v22, %v7141_v36  ;;  %v2222_v35 = vcombine.high %v2214_v23, %v2214_v23  ;;  %v2275_v37 = vcombine.high %v1941_v24, %v1941_v24  ;;  %v2282_v38 = vrot.slane %v1941_v24, %v7141_v36  ;;  %v7414_v43 = vpop.f32.mrf.mxu1 }
 0x122   : > { %v2704_v41 = vrot.slane %v2690_v27, %v7141_v36  ;;  %v7404_v2 = vrot.slane %v2173_v29, %v7141_v36  ;;  %v2188_v16 = vcombine.high %v2180_v40, %v2180_v40  ;;  %v2731_v8 = vcombine.low %v2172_v13, %v2180_v40 }
 0x123   : > { %v2223_v45 = vcombine.high %v2221_v50, %v2221_v50  ;;  %v7424_v47 = vcombine.low %v2214_v23, %v2222_v35  ;;  %v2289_v58 = vrot.slane %v2275_v37, %v7141_v36  ;;  %v2290_v49 = vcombine.high %v2282_v38, %v2282_v38  ;;  %v6562_v25 = vpop.f32.mrf.mxu1 }
 0x124   : > { %v2705_v48 = vcombine.low %v2697_v28, %v2704_v41  ;;  %v2745_v51 = vrot.slane %v2731_v8, %v7141_v36  ;;  %v7429_v52 = vcombine.low %v2188_v16, %v7404_v2  ;;  %v2224_v12 = vcombine.high %v1938_v26, %v1938_v26 }
 0x125   : > { %vm2376_vm3 = vcmp.ge.s32.totalorder %v7187_v7, 0  ;;  %v2788_v46 = vcombine.low %v2221_v50, %v2223_v45  ;;  %v2291_v53 = vcombine.high %v2289_v58, %v2289_v58  ;;  %vm2386_vm13 = vcmp.lt.s32.totalorder %v7187_v7, 16 }
 0x126   : > { %v7438_v54 = vadd.s32 9, %v7125_v31  ;;  %v2977_v55 = vsel %vm7420_vm10, %v2705_v48, 0.0  ;;  %v2746_v56 = vcombine.low %v2738_v63, %v2745_v51  ;;  %v2231_v57 = vrot.slane %v1938_v26, %v7141_v36  ;;  %vm7487_vm0 = vmand %vm2376_vm3, %vm2386_vm13 }
 0x127   : > { %v7452_v60 = vadd.s32 8, %v7125_v31  ;;  %v6220_v61 = vpack.c.bf16 %v2977_v55, %v2977_v55  ;;  %v2786_v62 = vrot.slane %v7424_v47, %v7141_v36  ;;  %v2755_v63 = vrot.slane %v7429_v52, %v7141_v36  ;;  %vm2423_vm2 = vmand %vm7487_vm0, %vm2399_vm6  ;;  %v6691_v47 = vld [vmem:[%s9094_s5 + $0xe8] sm:$0xff]  }
 0x128   : > { %v7458_v0 = vcombine.low %v2282_v38, %v2290_v49  ;;  %v2980_v1 = vsel %vm2417_vm11, %v2746_v56, 0.0  ;;  %v2238_v6 = vrot.slane %v2224_v12, %v7141_v36  ;;  %v2239_v3 = vcombine.high %v2231_v57, %v2231_v57 }
 0x129   : > { %v1939_v5 = vmax.f32 %v1894_v20, 0.0  ;;  %3139 = vst.msk [vmem:[#allocation2 + $0x30] sm:$0xf] %vm3125_vm12, %v6220_v61  ;;  %v2796_v9 = vrot.slane %v2788_v46, %v7141_v36  ;;  %v6223_v31 = vpack.c.bf16 %v2980_v1, %v2980_v1  ;;  %v7463_v39 = vcombine.low %v2289_v58, %v2291_v53 }
 0x12a   : > { %v1881_v11 = vadd.f32 %v7130_v32, %v1880_v42  ;;  %v2789_v13 = vcombine.low %v2231_v57, %v2239_v3  ;;  %v2811_v14 = vrot.slane %v2238_v6, %v7141_v36  ;;  %v2240_v15 = vcombine.high %v2238_v6, %v2238_v6 }
 0x12b   : > { %v2241_v17 = vcombine.high %v1939_v5, %v1939_v5  ;;  %3142 = vst.msk [vmem:[#allocation2 + $0x3c] sm:$0xf] %vm3125_vm12, %v6223_v31  ;;  %v2248_v18 = vrot.slane %v1939_v5, %v7141_v36  ;;  %v2189_v20 = vcombine.high %v7404_v2, %v7404_v2  ;;  %v1905_v22 = vadd.f32 %v7384_v10, %v7130_v32  ;;  %v6689_v10 = vld [vmem:[%s9094_s5 + $0xb0] sm:$0xff]  }
 0x12c   : > { %v1936_v19 = vmax.f32 %v1881_v11, 0.0  ;;  %v2803_v23 = vrot.slane %v2789_v13, %v7141_v36  ;;  %v2985_v24 = vsel %vm2455_vm15, %v2811_v14, 0.0  ;;  %v1897_v27 = vadd.f32 %v7130_v32, %v7393_v21  ;;  %v6686_v14 = vld [vmem:[%s9094_s5 + $0x60] sm:$0xff]  }
 0x12d   : > { %v2255_v26 = vrot.slane %v2241_v17, %v7141_v36  ;;  %v6228_v28 = vpack.c.bf16 %v2985_v24, %v2985_v24  ;;  %v2256_v29 = vcombine.high %v2248_v18, %v2248_v18  ;;  %v2812_v40 = vcombine.low %v2240_v15, %v2248_v18  ;;  %v7523_v18 = vld [vmem:[#allocation2 + $0x10] sm:$0xf]  ;;  %v7543_v24 = vld [vmem:[#allocation2 + $0xc] sm:$0xf] }
 0x12e   : > { %v2190_v50 = vcombine.high %v1936_v19, %v1936_v19  ;;  %v2804_v35 = vcombine.low %v2796_v9, %v2803_v23  ;;  %v2197_v37 = vrot.slane %v1936_v19, %v7141_v36  ;;  %v1942_v38 = vmax.f32 %v1905_v22, 0.0 }
 0x12f   : > { %v1940_v41 = vmax.f32 %v1897_v27, 0.0  ;;  %3147 = vst.msk [vmem:[#allocation2 + $0x50] sm:$0x1] %vm3128_vm5, %v6228_v28  ;;  %v2813_v21 = vcombine.low %v2256_v29, %v2255_v26  ;;  %v2820_v2 = vrot.slane %v2812_v40, %v7141_v36  ;;  %v2257_v8 = vcombine.high %v2255_v26, %v2255_v26  ;;  %v6678_v28 = vld [vmem:[%s9094_s5 + $0x78] sm:$0xff]   ;;  %v6680_v40 = vld [vmem:[%s9094_s5 + $0x70] sm:$0xff]  }
 0x130   : > { %v2204_v16 = vrot.slane %v2190_v50, %v7141_v36  ;;  %v2984_v44 = vsel %vm7447_vm14, %v2804_v35, 0.0  ;;  %v2205_v45 = vcombine.high %v2197_v37, %v2197_v37  ;;  %v2748_v58 = vcombine.low %v2189_v20, %v2197_v37  ;;  %v6679_v29 = vld [vmem:[%s9094_s5 + $0x38] sm:$0xff]   ;;  %6253 = vmatprep.subr.bf16.mxu1 %v6678_v28 }
 0x131   : > { %v2292_v49 = vcombine.high %v1942_v38, %v1942_v38  ;;  %vm2377_vm1 = vcmp.ge.s32.totalorder %v7452_v60, 0  ;;  %v6227_v48 = vpack.c.bf16 %v2984_v44, %v2984_v44  ;;  %v2827_v7 = vrot.slane %v2813_v21, %v7141_v36  ;;  %6254 = vmatpush3.bf16.msra.mxu1 %v6679_v29 }
 0x132   : > { %v2206_v51 = vcombine.high %v2204_v16, %v2204_v16  ;;  %v2299_v52 = vrot.slane %v1942_v38, %v7141_v36  ;;  %v2762_v12 = vrot.slane %v2748_v58, %v7141_v36  ;;  %v2770_v25 = vrot.slane %v2205_v45, %v7141_v36  ;;  %v6681_v58 = vld [vmem:[%s9094_s5 + $0x30] sm:$0xff]   ;;  %6255 = vmatprep.subr.bf16.mxu1 %v6680_v40 }
 0x133   : > { %v2306_v46 = vrot.slane %v2292_v49, %v7141_v36  ;;  %v2258_v53 = vcombine.high %v1940_v41, %v1940_v41  ;;  %3146 = vst.msk [vmem:[#allocation2 + $0x4c] sm:$0xf] %vm3125_vm12, %v6227_v48  ;;  %v2828_v55 = vcombine.low %v2820_v2, %v2827_v7  ;;  %v2265_v42 = vrot.slane %v1940_v41, %v7141_v36  ;;  %v3157_v41 = vld [vmem:[#allocation2] sm:$0xf]  ;;  %v3158_v2 = vld [vmem:[#allocation2 + $0x4] sm:$0xf] }
 0x134   : > { %v2771_v56 = vcombine.low %v2204_v16, %v2206_v51  ;;  %v2307_v57 = vcombine.high %v2299_v52, %v2299_v52  ;;  %v2763_v61 = vcombine.low %v2755_v63, %v2762_v12  ;;  %v2982_v1 = vsel %vm2452_vm7, %v2770_v25, 0.0  ;;  %v6685_v49 = vld [vmem:[%s9094_s5 + $0xb8] sm:$0xff]   ;;  %v7667_v40 = vld [vmem:[#allocation2 + $0x14] sm:$0x1] }
 0x135   : > { %v2308_v6 = vcombine.high %v2306_v46, %v2306_v46  ;;  %v2272_v3 = vrot.slane %v2258_v53, %v7141_v36  ;;  %v2986_v5 = vsel %vm2423_vm2, %v2828_v55, 0.0  ;;  %v6225_v31 = vpack.c.bf16 %v2982_v1, %v2982_v1  ;;  %v7597_v53 = vld [vmem:[#allocation2 + $0x8] sm:$0x1]  ;;  %6256 = vmatpush3.bf16.msra.mxu1 %v6681_v58  ;;  %v6758_v16 = vld [vmem:[%s9095_s6 + $0x90] sm:$0xff]  }
 0x136   : > { %v2779_v9 = vrot.slane %v2771_v56, %v7141_v36  ;;  %v2870_v11 = vcombine.low %v2299_v52, %v2307_v57  ;;  %v6229_v13 = vpack.c.bf16 %v2986_v5, %v2986_v5  ;;  %v2981_v63 = vsel %vm7410_vm9, %v2763_v61, 0.0  ;;  %vm7539_vm9 = vmand %vm7487_vm0, %vm2434_vm4  ;;  %v6687_v52 = vld [vmem:[%s9094_s5 + $0xf0] sm:$0xff]   ;;  %v6684_v5 = vld [vmem:[%s9094_s5 + $0x28] sm:$0xff]  }
 0x137   : > { %v2871_v15 = vcombine.low %v2306_v46, %v2308_v6  ;;  %v2273_v17 = vcombine.high %v2265_v42, %v2265_v42  ;;  %v6224_v20 = vpack.c.bf16 %v2981_v63, %v2981_v63  ;;  %3144 = vst.msk [vmem:[#allocation2 + $0x44] sm:$0x1] %vm3128_vm5, %v6225_v31  ;;  %v2274_v22 = vcombine.high %v2272_v3, %v2272_v3 }
 0x138   : > { %v2787_v19 = vcombine.low %v2779_v9, %v2786_v62  ;;  %vm2387_vm10 = vcmp.lt.s32.totalorder %v7452_v60, 16  ;;  %v2861_v59 = vrot.slane %v7458_v0, %v7141_v36  ;;  %v2868_v4 = vrot.slane %v7463_v39, %v7141_v36  ;;  %3148 = vst.msk [vmem:[#allocation2 + $0x54] sm:$0xf] %vm3125_vm12, %v6229_v13  ;;  %v6683_v60 = vld [vmem:[%s9094_s5 + $0xf8] sm:$0xff]  }
 0x139   : > { %v2829_v62 = vcombine.low %v2257_v8, %v2265_v42  ;;  %v2830_v23 = vcombine.low %v2273_v17, %v2272_v3  ;;  %3143 = vst.msk [vmem:[#allocation2 + $0x40] sm:$0xf] %vm3125_vm12, %v6224_v20  ;;  %v2878_v39 = vrot.slane %v2870_v11, %v7141_v36  ;;  %v2852_v26 = vrot.slane %v2274_v22, %v7141_v36  ;;  %vm7571_vm11 = vmand %vm2377_vm1, %vm2387_vm10  ;;  %v3775_v20 = vld [vmem:[#allocation2 + $0x24] sm:$0xf] }
 0x13a   : > { %v2983_v0 = vsel %vm7517_vm8, %v2787_v19, 0.0  ;;  %v6068_v27 = vcombine.low %v7543_v24, %v7523_v18  ;;  %v2885_v35 = vrot.slane %v2871_v15, %v7141_v36  ;;  %vm3181_vm3 = vsmask.f32 3328  ;;  %6317 = vmatprep.subr.bf16.mxu0 %v6683_v60  ;;  %vm7604_vm1 = vmand %vm7571_vm11, %vm2399_vm6 }
 0x13b   : > { %v6226_v50 = vpack.c.bf16 %v2983_v0, %v2983_v0  ;;  %v2837_v37 = vrot.slane %v2829_v62, %v7141_v36  ;;  %v2844_v38 = vrot.slane %v2830_v23, %v7141_v36  ;;  %v2988_v21 = vsel %vm7539_vm9, %v2852_v26, 0.0  ;;  %6318 = vmatpush3.bf16.msra.mxu0 %v6685_v49  ;;  %vm7681_vm9 = vmand %vm7571_vm11, %vm2434_vm4  ;;  %v3773_v49 = vld [vmem:[#allocation2 + $0x18] sm:$0xf] }
 0x13c   : > { %4205 = vrot.lane.b32.xlu0 %v6068_v27, %s6836_s29  ;;  %v6231_v44 = vpack.c.bf16 %v2988_v21, %v2988_v21  ;;  %v1918_v45 = vadd.f32 %v7398_v30, %v7130_v32  ;;  %vm3182_vm13 = vsmask.f32 7440  ;;  %v2869_v48 = vcombine.low %v2861_v59, %v2868_v4  ;;  %v6682_v30 = vld [vmem:[%s9094_s5 + $0x68] sm:$0xff]   ;;  %6319 = vmatprep.subr.bf16.mxu0 %v6687_v52  ;;  %v6692_v52 = vld [vmem:[%s9094_s5 + $0x18] sm:$0xff]  }
 0x13d   : > { %3145 = vst.msk [vmem:[#allocation2 + $0x48] sm:$0xf] %vm3125_vm12, %v6226_v50  ;;  %v2845_v8 = vcombine.low %v2837_v37, %v2844_v38  ;;  %vm2378_vm14 = vcmp.ge.s32.totalorder %v7438_v54, 0  ;;  %v3185_v7 = vshrl.u32 %v3157_v41, 16  ;;  %v3188_v51 = vshll.u32 %v3157_v41, 16  ;;  %6257 = vmatprep.subr.bf16.mxu1 %v6682_v30  ;;  %v1912_v50 = vpop.f32.mrf.mxu1  ;;  %v6693_v37 = vld [vmem:[%s9094_s5 + $0xa8] sm:$0xff]  }
 0x13e   : > { %v2886_v12 = vcombine.low %v2878_v39, %v2885_v35  ;;  %3150 = vst.msk [vmem:[#allocation2 + $0x5c] sm:$0x1] %vm3128_vm5, %v6231_v44  ;;  %v1945_v46 = vmax.f32 %v1918_v45, 0.0  ;;  %v3194_v55 = vshll.u32 %v3158_v2, 16  ;;  %vm2388_vm15 = vcmp.lt.s32.totalorder %v7438_v54, 16  ;;  %6258 = vmatpush3.bf16.msra.mxu1 %v6684_v5  ;;  %v6688_v39 = vld [vmem:[%s9094_s5 + $0x20] sm:$0xff]  }
 0x13f   : > { %v2987_v25 = vsel %vm7487_vm0, %v2845_v8, 0.0  ;;  %v3187_v57 = vrot.slane %v3185_v7, 4  ;;  %v3190_v42 = vrot.slane %v3188_v51, 5  ;;  %v3198_v3 = vshrl.u32 %v3158_v2, 16  ;;  %vm7622_vm0 = vmor %vm3181_vm3, %vm3182_vm13  ;;  %v3684_v4 = vld [vmem:[#allocation2 + $0xc] sm:$0xe]  ;;  %6320 = vmatpush3.bf16.msra.mxu0 %v6689_v10  ;;  %6259 = vmatprep.subr.bf16.mxu1 %v6686_v14 }
 0x140   : > { %v6230_v56 = vpack.c.bf16 %v2987_v25, %v2987_v25  ;;  %v7612_v1 = vrot.slane %v1945_v46, %v7141_v36  ;;  %v7614_v6 = vrot.slane %v3194_v55, 5  ;;  %v3204_v11 = vshll.u32 %v7597_v53, 16  ;;  %vm7638_vm7 = vmand %vm2378_vm14, %vm2388_vm15  ;;  %v6690_v35 = vld [vmem:[%s9094_s5 + $0x58] sm:$0xff]   ;;  %6321 = vmatprep.subr.bf16.mxu0 %v6691_v47  ;;  %v3789_v10 = vld [vmem:[#allocation2 + $0x20] sm:$0x1] }
 0x141   : > { %v3191_v31 = vor.u32 %v3190_v42, %v3187_v57  ;;  %v1910_v13 = vadd.f32 %v7130_v32, %v7414_v43  ;;  %v3200_v17 = vrot.slane %v3198_v3, 4  ;;  %v2989_v43 = vsel %vm7604_vm1, %v2869_v48, 0.0  ;;  %vm7650_vm2 = vmand %vm7638_vm7, %vm2434_vm4  ;;  %v3774_v30 = vld [vmem:[#allocation2 + $0x1c] sm:$0xf]  ;;  %v6697_v3 = vld [vmem:[%s9094_s5 + $0xa0] sm:$0xff]  }
 0x142   : > { %3149 = vst.msk [vmem:[#allocation2 + $0x58] sm:$0xf] %vm3125_vm12, %v6230_v56  ;;  %v2350_v63 = vcombine.high %v7612_v1, %v7612_v1  ;;  %v2990_v19 = vsel %vm7571_vm11, %v2886_v12, 0.0  ;;  %v6232_v59 = vpack.c.bf16 %v2989_v43, %v2989_v43  ;;  %vm3408_vm8 = vcmask 1042432   ;;  %6260 = vmatpush3.bf16.msra.mxu1 %v6688_v39  ;;  %v6695_v56 = vld [vmem:[%s9094_s5 + $0xe0] sm:$0xff]   ;;  %v6699_v14 = vld [vmem:[%s9094_s5 + $0xd8] sm:$0xff]  }
 0x143   : > { %v3192_v54 = vrot.slane %v3191_v31, 4  ;;  %v1943_v22 = vmax.f32 %v1910_v13, 0.0  ;;  %v3201_v23 = vor.u32 %v3200_v17, %v7614_v6  ;;  %v6233_v0 = vpack.c.bf16 %v2990_v19, %v2990_v19  ;;  %6322 = vmatpush3.bf16.msra.mxu0 %v6693_v37  ;;  %6261 = vmatprep.subr.bf16.mxu1 %v6690_v35 }
 0x144   : > { %v2934_v62 = vrot.slane %v2350_v63, %v7141_v36  ;;  %vm3409_vm10 = vcmask 1046532   ;;  %v3206_v27 = vrot.slane %v3204_v11, 5  ;;  %3151 = vst.msk [vmem:[#allocation2 + $0x60] sm:$0xf] %vm3125_vm12, %v6232_v59  ;;  %v6028_v2 = vrot.slane %v3684_v4, 9  ;;  %6323 = vmatprep.subr.bf16.mxu0 %v6695_v56 }
 0x145   : > { %v3197_v26 = vsel %vm7622_vm0, %v3192_v54, %v7614_v6  ;;  %v2309_v28 = vcombine.high %v1943_v22, %v1943_v22  ;;  %v2316_v29 = vrot.slane %v1943_v22, %v7141_v36  ;;  %v3202_v41 = vrot.slane %v3201_v23, 4  ;;  %3152 = vst.msk [vmem:[#allocation2 + $0x64] sm:$0xf] %vm3125_vm12, %v6233_v0  ;;  %vm7693_vm4 = vmor %vm3408_vm8, %vm3409_vm10  ;;  %v6696_v54 = vld [vmem:[%s9094_s5 + $0x10] sm:$0xff]   ;;  %v6701_v23 = vld [vmem:[%s9094_s5 + $0x98] sm:$0xff]  }
 0x146   : > { %v2994_v38 = vsel %vm7650_vm2, %v2934_v62, 0.0  ;;  %v3718_v8 = vrot.slane %v7523_v18, 5  ;;  %v3721_v7 = vrot.slane %v7667_v40, 5  ;;  %v1913_v51 = vadd.f32 %v7130_v32, %v1912_v50  ;;  %v6694_v32 = vld [vmem:[%s9094_s5 + $0x50] sm:$0xff]   ;;  %6262 = vmatpush3.bf16.msra.mxu1 %v6692_v52  ;;  %v6698_v62 = vld [vmem:[%s9094_s5 + $0x48] sm:$0xff]  }
 0x147   : > { %v6237_v44 = vpack.c.bf16 %v2994_v38, %v2994_v38  ;;  %v2323_v45 = vrot.slane %v2309_v28, %v7141_v36  ;;  %v2324_v58 = vcombine.high %v2316_v29, %v2316_v29  ;;  %v2893_v60 = vrot.slane %v2316_v29, %v7141_v36  ;;  %6324 = vmatpush3.bf16.msra.mxu0 %v6697_v3  ;;  %v3776_v28 = vld [vmem:[#allocation2 + $0x28] sm:$0xf]  ;;  %v6703_v38 = vld [vmem:[%s9094_s5 + $0xd0] sm:$0xff]  }
 0x148   : > { %v3207_v33 = vsel %vm7622_vm0, %v3202_v41, %v3206_v27  ;;  %v3720_v48 = vrot.slane %v3718_v8, 4  ;;  %v1944_v61 = vmax.f32 %v1913_v51, 0.0  ;;  %v3798_v6 = vshrl.u32 %v3773_v49, 16  ;;  %6263 = vmatprep.subr.bf16.mxu1 %v6694_v32  ;;  %6325 = vmatprep.subr.bf16.mxu0 %v6699_v14 }
 0x149   : > { %3156 = vst.msk [vmem:[#allocation2 + $0x74] sm:$0x1] %vm3128_vm5, %v6237_v44  ;;  %v6052_v12 = vcombine.low %v3197_v26, %v3207_v33  ;;  %v7703_v25 = vcombine.low %v2324_v58, %v2323_v45  ;;  %v2991_v46 = vsel %vm7681_vm9, %v2893_v60, 0.0  ;;  %v2325_v55 = vcombine.high %v2323_v45, %v2323_v45  ;;  %v6700_v44 = vld [vmem:[%s9094_s5 + $0x8] sm:$0xff]  }
 0x14a   : > { %v6234_v57 = vpack.c.bf16 %v2991_v46, %v2991_v46  ;;  %v3722_v42 = vsel %vm7693_vm4, %v3720_v48, %v3721_v7  ;;  %v3719_v31 = vsel %vm7693_vm4, %v6028_v2, %v3718_v8  ;;  %v3801_v11 = vshll.u32 %v3773_v49, 16  ;;  %6264 = vmatpush3.bf16.msra.mxu1 %v6696_v54  ;;  %v6702_v48 = vld [vmem:[%s9094_s5 + $0x40] sm:$0xff]  }
 0x14b   : > { %4133 = vrot.lane.b32.xlu1 %v6052_v12, %s6836_s29  ;;  %v2902_v5 = vrot.slane %v7703_v25, %v7141_v36  ;;  %v3807_v13 = vshll.u32 %v3774_v30, 16  ;;  %v2326_v63 = vcombine.high %v1944_v61, %v1944_v61  ;;  %v2333_v17 = vrot.slane %v1944_v61, %v7141_v36  ;;  %6265 = vmatprep.subr.bf16.mxu1 %v6698_v62  ;;  %v3790_v12 = vld [vmem:[#allocation2 + $0x2c] sm:$0x1]  ;;  %v6704_v61 = vld [vmem:[%s9094_s5] sm:$0xff]  }
 0x14c   : > { %3153 = vst.msk [vmem:[#allocation2 + $0x68] sm:$0x1] %vm3128_vm5, %v6234_v57  ;;  %v3800_v43 = vrot.slane %v3798_v6, 4  ;;  %v3811_v19 = vshrl.u32 %v3774_v30, 16  ;;  %v6084_v22 = vcombine.low %v3719_v31, %v3722_v42  ;;  %v3803_v59 = vrot.slane %v3801_v11, 5  ;;  %vm7750_vm5 = vmand %vm7638_vm7, %vm2399_vm6  ;;  %6326 = vmatpush3.bf16.msra.mxu0 %v6701_v23  ;;  %v6706_v25 = vld [vmem:[%s9094_s5 + $0xc8] sm:$0xff]  }
 0x14d   : > { %v3809_v4 = vrot.slane %v3807_v13, 5  ;;  %v3817_v47 = vshll.u32 %v3789_v10, 16  ;;  %v2340_v0 = vrot.slane %v2326_v63, %v7141_v36  ;;  %v2341_v39 = vcombine.high %v2333_v17, %v2333_v17  ;;  %6327 = vmatprep.subr.bf16.mxu0 %v6703_v38  ;;  %v7778_v11 = vld [vmem:[#allocation2 + $0x1c] sm:$0xf]  ;;  %v6708_v13 = vld [vmem:[%s9094_s5 + $0xc0] sm:$0xff]  }
 0x14e   : > { %v2895_v26 = vcombine.low %v2325_v55, %v2333_v17  ;;  %v3813_v27 = vrot.slane %v3811_v19, 4  ;;  %v3804_v29 = vor.u32 %v3803_v59, %v3800_v43  ;;  %v3822_v35 = vshrl.u32 %v3775_v20, 16  ;;  %6266 = vmatpush3.bf16.msra.mxu1 %v6700_v44  ;;  %v7787_v43 = vld [vmem:[#allocation2 + $0x18] sm:$0xf]  ;;  %v3159_v19 = vld [vmem:[#allocation2 + $0xc] sm:$0xf] }
 0x14f   : > { %4269 = vrot.lane.b32.xlu1 %v6084_v22, %s6836_s29  ;;  %v3819_v50 = vrot.slane %v3817_v47, 5  ;;  %v3825_v37 = vshll.u32 %v3775_v20, 16  ;;  %v2342_v41 = vcombine.high %v2340_v0, %v2340_v0  ;;  %v2911_v2 = vcombine.low %v2341_v39, %v2340_v0  ;;  %6267 = vmatprep.subr.bf16.mxu1 %v6702_v48  ;;  %v6709_v47 = vld [vmem:[%s9094_s5 + $0x80] sm:$0xff]   ;;  %v3685_v23 = vld [vmem:[#allocation2 + $0x18] sm:$0xe] }
 0x150   : > { %v2909_v21 = vrot.slane %v2895_v26, %v7141_v36  ;;  %v3814_v8 = vor.u32 %v3813_v27, %v3809_v4  ;;  %v3805_v58 = vrot.slane %v3804_v29, 4  ;;  %v3824_v60 = vrot.slane %v3822_v35, 4  ;;  %6328 = vmatpush3.bf16.msra.mxu0 %v6705_v34  ;;  %v7797_v62 = vld [vmem:[#allocation2 + $0x20] sm:$0x1]  ;;  %v6711_v0 = vld [vmem:[%s9095_s6 + $0x78] sm:$0xff]  }
 0x151   : > { %v3827_v49 = vrot.slane %v3825_v37, 5  ;;  %v3831_v33 = vshll.u32 %v3776_v28, 16  ;;  %v2912_v51 = vcombine.low %v2342_v41, %v7612_v1  ;;  %v2919_v30 = vrot.slane %v2911_v2, %v7141_v36  ;;  %6329 = vmatprep.subr.bf16.mxu0 %v6706_v25  ;;  %v7810_v29 = vld [vmem:[#allocation2 + $0x14] sm:$0x1] }
 0x152   : > { %v2910_v7 = vcombine.low %v2902_v5, %v2909_v21  ;;  %v3815_v52 = vrot.slane %v3814_v8, 4  ;;  %v3810_v46 = vsel %vm7622_vm0, %v3805_v58, %v3809_v4  ;;  %v3835_v32 = vshrl.u32 %v3776_v28, 16  ;;  %6268 = vmatpush3.bf16.msra.mxu1 %v6704_v61  ;;  %v7791_v4 = vld [vmem:[#allocation2 + $0x10] sm:$0xf] }
 0x153   : > { %v3833_v55 = vrot.slane %v3831_v33, 5  ;;  %v2926_v56 = vrot.slane %v2912_v51, %v7141_v36  ;;  %v3828_v42 = vor.u32 %v3827_v49, %v3824_v60  ;;  %v3841_v5 = vshll.u32 %v3790_v12, 16  ;;  %v6707_v36 = vld [vmem:[%s9094_s5 + $0x88] sm:$0xff]   ;;  %v3778_v49 = vld [vmem:[#allocation2 + $0x34] sm:$0xf] }
 0x154   : > { %v2992_v57 = vsel %vm7750_vm5, %v2910_v7, 0.0  ;;  %v3820_v1 = vsel %vm7622_vm0, %v3815_v52, %v3819_v50  ;;  %v3837_v3 = vrot.slane %v3835_v32, 4  ;;  %v6069_v59 = vcombine.low %v7787_v43, %v7778_v11  ;;  %6330 = vmatpush3.bf16.msra.mxu0 %v6707_v36  ;;  %v3791_v12 = vld [vmem:[#allocation2 + $0x38] sm:$0x1] }
 0x155   : > { %v6235_v10 = vpack.c.bf16 %v2992_v57, %v2992_v57  ;;  %v6100_v6 = vcombine.low %v3810_v46, %v3820_v1  ;;  %v2927_v31 = vcombine.low %v2919_v30, %v2926_v56  ;;  %v3829_v17 = vrot.slane %v3828_v42, 4  ;;  %6331 = vmatprep.subr.bf16.mxu0 %v6708_v13 }
 0x156   : > { %v3838_v14 = vor.u32 %v3837_v3, %v3833_v55  ;;  %v3843_v22 = vrot.slane %v3841_v5, 5  ;;  %v3493_v15 = vshrl.u32 %v7543_v24, 16  ;;  %v3496_v39 = vshll.u32 %v7543_v24, 16  ;;  %v3777_v24 = vld [vmem:[#allocation2 + $0x30] sm:$0xf] }
 0x157   : > { %3154 = vst.msk [vmem:[#allocation2 + $0x6c] sm:$0xf] %vm3125_vm12, %v6235_v10  ;;  %4341 = vrot.lane.b32.xlu0 %v6100_v6, %s6836_s29  ;;  %v2993_v63 = vsel %vm7638_vm7, %v2927_v31, 0.0  ;;  %v3834_v26 = vsel %vm7622_vm0, %v3829_v17, %v3833_v55  ;;  %v3725_v28 = vrot.slane %v7778_v11, 5  ;;  %v3209_v35 = vshrl.u32 %v3159_v19, 16 }
 0x158   : > { %v6236_v20 = vpack.c.bf16 %v2993_v63, %v2993_v63  ;;  %v3839_v54 = vrot.slane %v3838_v14, 4  ;;  %v3212_v37 = vshll.u32 %v3159_v19, 16  ;;  %v3218_v38 = vshll.u32 %v7791_v4, 16  ;;  %6332 = vmatpush3.bf16.msra.mxu0 %v6709_v47  ;;  %v7832_v19 = vld [vmem:[#allocation2 + $0x28] sm:$0xf] }
 0x159   : > { %v6029_v41 = vrot.slane %v3685_v23, 9  ;;  %v3727_v21 = vrot.slane %v3725_v28, 4  ;;  %v3728_v2 = vrot.slane %v7797_v62, 5  ;;  %v3222_v8 = vshrl.u32 %v7791_v4, 16  ;;  %6393 = vmatprep.subr.bf16.mxu0 %v6711_v0  ;;  %v7838_v23 = vld [vmem:[#allocation2 + $0x2c] sm:$0x1] }
 0x15a   : > { %3155 = vst.msk [vmem:[#allocation2 + $0x70] sm:$0xf] %vm3125_vm12, %v6236_v20  ;;  %v3844_v27 = vsel %vm7622_vm0, %v3839_v54, %v3843_v22  ;;  %v3211_v44 = vrot.slane %v3209_v35, 4  ;;  %v3214_v45 = vrot.slane %v3212_v37, 5  ;;  %v3220_v58 = vrot.slane %v3218_v38, 5 }
 0x15b   : > { %4207 = vrot.lane.b32.xlu0 %v6069_v59, %s6836_s29  ;;  %v6101_v50 = vcombine.low %v3834_v26, %v3844_v27  ;;  %v3228_v60 = vshll.u32 %v7810_v29, 16  ;;  %v3726_v33 = vsel %vm7693_vm4, %v6029_v41, %v3725_v28  ;;  %v3729_v48 = vsel %vm7693_vm4, %v3727_v21, %v3728_v2  ;;  %v7834_v22 = vld [vmem:[#allocation2 + $0x24] sm:$0xf]  ;;  %v3161_v59 = vld [vmem:[#allocation2 + $0x18] sm:$0xf] }
 0x15c   : > { %v3224_v34 = vrot.slane %v3222_v8, 4  ;;  %v3846_v7 = vshrl.u32 %v3777_v24, 16  ;;  %v7821_v51 = vrot.slane %v3493_v15, 4  ;;  %v6085_v30 = vcombine.low %v3726_v33, %v3729_v48  ;;  %v3686_v0 = vld [vmem:[#allocation2 + $0x24] sm:$0xe] }
 0x15d   : > { %4343 = vrot.lane.b32.xlu1 %v6101_v50, %s6836_s29  ;;  %v3215_v52 = vor.u32 %v3214_v45, %v3211_v44  ;;  %v3849_v25 = vshll.u32 %v3777_v24, 16  ;;  %v3855_v32 = vshll.u32 %v3778_v49, 16  ;;  %v3859_v56 = vshrl.u32 %v3778_v49, 16  ;;  %v3162_v50 = vld [vmem:[#allocation2 + $0x1c] sm:$0xf] }
 0x15e   : > { %v3225_v46 = vor.u32 %v3224_v34, %v3220_v58  ;;  %v3848_v55 = vrot.slane %v3846_v7, 4  ;;  %v7823_v57 = vrot.slane %v3496_v39, 5  ;;  %v3230_v42 = vrot.slane %v3228_v60, 5  ;;  %v3779_v41 = vld [vmem:[#allocation2 + $0x3c] sm:$0xf] }
 0x15f   : > { %v3216_v1 = vrot.slane %v3215_v52, 4  ;;  %v3851_v61 = vrot.slane %v3849_v25, 5  ;;  %v3857_v6 = vrot.slane %v3855_v32, 5  ;;  %v3861_v3 = vrot.slane %v3859_v56, 4  ;;  %v3175_v45 = vld [vmem:[#allocation2 + $0x20] sm:$0x1] }
 0x160   : > { %v3226_v10 = vrot.slane %v3225_v46, 4  ;;  %v3865_v5 = vshll.u32 %v3791_v12, 16  ;;  %v3502_v36 = vshll.u32 %v7523_v18, 16  ;;  %v3506_v31 = vshrl.u32 %v7523_v18, 16  ;;  %v3780_v48 = vld [vmem:[#allocation2 + $0x40] sm:$0xf] }
 0x161   : > { %4271 = vrot.lane.b32.xlu1 %v6085_v30, %s6836_s29  ;;  %v3852_v13 = vor.u32 %v3851_v61, %v3848_v55  ;;  %v3221_v14 = vsel %vm7622_vm0, %v3216_v1, %v3220_v58  ;;  %v3862_v17 = vor.u32 %v3861_v3, %v3857_v6  ;;  %v3499_v47 = vor.u32 %v7823_v57, %v7821_v51  ;;  %v3792_v32 = vld [vmem:[#allocation2 + $0x44] sm:$0x1] }
 0x162   : > { %v3231_v63 = vsel %vm7622_vm0, %v3226_v10, %v3230_v42  ;;  %v3867_v18 = vrot.slane %v3865_v5, 5  ;;  %v7840_v39 = vrot.slane %v3502_v36, 5  ;;  %v7842_v26 = vrot.slane %v3506_v31, 4 }
 0x163   : > { %v6053_v20 = vcombine.low %v3221_v14, %v3231_v63  ;;  %v3853_v54 = vrot.slane %v3852_v13, 4  ;;  %v3863_v15 = vrot.slane %v3862_v17, 4  ;;  %v3732_v28 = vrot.slane %v7832_v19, 5 }
 0x164   : > { %v6070_v37 = vcombine.low %v7834_v22, %v7832_v19  ;;  %v3233_v38 = vshrl.u32 %v3161_v59, 16  ;;  %v3236_v24 = vshll.u32 %v3161_v59, 16  ;;  %v6030_v2 = vrot.slane %v3686_v0, 9  ;;  %v3687_v59 = vld [vmem:[#allocation2 + $0x30] sm:$0xe] }
 0x165   : > { %4135 = vrot.lane.b32.xlu0 %v6053_v20, %s6836_s29  ;;  %v3858_v27 = vsel %vm7622_vm0, %v3853_v54, %v3857_v6  ;;  %v3868_v35 = vsel %vm7622_vm0, %v3863_v15, %v3867_v18  ;;  %v3734_v8 = vrot.slane %v3732_v28, 4  ;;  %v3735_v44 = vrot.slane %v7838_v23, 5  ;;  %v7866_v54 = vld [vmem:[#allocation2 + $0x34] sm:$0xf] }
 0x166   : > { %v6102_v21 = vcombine.low %v3858_v27, %v3868_v35  ;;  %v3235_v58 = vrot.slane %v3233_v38, 4  ;;  %v3238_v60 = vrot.slane %v3236_v24, 5  ;;  %v3242_v49 = vshll.u32 %v3162_v50, 16  ;;  %v3164_v38 = vld [vmem:[#allocation2 + $0x28] sm:$0xf] }
 0x167   : > { %v3246_v33 = vshrl.u32 %v3162_v50, 16  ;;  %v3733_v34 = vsel %vm7693_vm4, %v6030_v2, %v3732_v28  ;;  %v3736_v7 = vsel %vm7693_vm4, %v3734_v8, %v3735_v44  ;;  %v3870_v51 = vshrl.u32 %v3779_v41, 16  ;;  %v7872_v28 = vld [vmem:[#allocation2 + $0x30] sm:$0xf] }
 0x168   : > { %4345 = vrot.lane.b32.xlu1 %v6102_v21, %s6836_s29  ;;  %v3873_v30 = vshll.u32 %v3779_v41, 16  ;;  %v3239_v52 = vor.u32 %v3238_v60, %v3235_v58  ;;  %v3244_v12 = vrot.slane %v3242_v49, 5  ;;  %v3252_v46 = vshll.u32 %v3175_v45, 16  ;;  %v7876_v21 = vld [vmem:[#allocation2 + $0x38] sm:$0x1] }
 0x169   : > { %4209 = vrot.lane.b32.xlu0 %v6070_v37, %s6836_s29  ;;  %v3248_v25 = vrot.slane %v3246_v33, 4  ;;  %v6086_v55 = vcombine.low %v3733_v34, %v3736_v7  ;;  %v3872_v56 = vrot.slane %v3870_v51, 4  ;;  %v3879_v1 = vshll.u32 %v3780_v48, 16  ;;  %v3176_v34 = vld [vmem:[#allocation2 + $0x2c] sm:$0x1] }
 0x16a   : > { %v3875_v57 = vrot.slane %v3873_v30, 5  ;;  %v3240_v42 = vrot.slane %v3239_v52, 4  ;;  %v3883_v10 = vshrl.u32 %v3780_v48, 16  ;;  %v3517_v6 = vshrl.u32 %v7787_v43, 16  ;;  %v3781_v51 = vld [vmem:[#allocation2 + $0x48] sm:$0xf] }
 0x16b   : > { %v3249_v61 = vor.u32 %v3248_v25, %v3244_v12  ;;  %v3881_v5 = vrot.slane %v3879_v1, 5  ;;  %v3254_v31 = vrot.slane %v3252_v46, 5  ;;  %v3889_v14 = vshll.u32 %v3792_v32, 16  ;;  %v3782_v46 = vld [vmem:[#allocation2 + $0x4c] sm:$0xf] }
 0x16c   : > { %4273 = vrot.lane.b32.xlu1 %v6086_v55, %s6836_s29  ;;  %v3876_v3 = vor.u32 %v3875_v57, %v3872_v56  ;;  %v3885_v13 = vrot.slane %v3883_v10, 4  ;;  %v7861_v63 = vrot.slane %v3499_v47, 4  ;;  %v3520_v20 = vshll.u32 %v7787_v43, 16  ;;  %v3163_v47 = vld [vmem:[#allocation2 + $0x24] sm:$0xf] }
 0x16d   : > { %v3250_v36 = vrot.slane %v3249_v61, 4  ;;  %v3245_v15 = vsel %vm7622_vm0, %v3240_v42, %v3244_v12  ;;  %v3519_v37 = vrot.slane %v3517_v6, 4  ;;  %v3891_v41 = vrot.slane %v3889_v14, 5  ;;  %v3793_v61 = vld [vmem:[#allocation2 + $0x50] sm:$0x1] }
 0x16e   : > { %v3877_v0 = vrot.slane %v3876_v3, 4  ;;  %v3886_v27 = vor.u32 %v3885_v13, %v3881_v5  ;;  %v6031_v2 = vrot.slane %v3687_v59, 9  ;;  %v3739_v8 = vrot.slane %v7866_v54, 5 }
 0x16f   : > { %v3255_v18 = vsel %vm7622_vm0, %v3250_v36, %v3254_v31  ;;  %v3522_v44 = vrot.slane %v3520_v20, 5  ;;  %v6071_v45 = vcombine.low %v7872_v28, %v7866_v54  ;;  %v3257_v58 = vshrl.u32 %v3163_v47, 16 }
 0x170   : > { %v6054_v43 = vcombine.low %v3245_v15, %v3255_v18  ;;  %v3887_v24 = vrot.slane %v3886_v27, 4  ;;  %v3260_v60 = vshll.u32 %v3163_v47, 16  ;;  %v3882_v49 = vsel %vm7622_vm0, %v3877_v0, %v3881_v5  ;;  %v7897_v15 = vld [vmem:[%s9094_s5 + $0x118] sm:$0xff]  }
 0x171   : > { %v3741_v48 = vrot.slane %v3739_v8, 4  ;;  %v3266_v7 = vshll.u32 %v3164_v38, 16  ;;  %v3742_v52 = vrot.slane %v7876_v21, 5  ;;  %v3259_v12 = vrot.slane %v3257_v58, 4  ;;  %6563 = vmatprep.subr.bf16.mxu1 %v7897_v15  ;;  %v7904_v58 = vld [vmem:[#allocation2 + $0x44] sm:$0x1] }
 0x172   : > { %4137 = vrot.lane.b32.xlu0 %v6054_v43, %s6836_s29  ;;  %v3892_v33 = vsel %vm7622_vm0, %v3887_v24, %v3891_v41  ;;  %v3262_v25 = vrot.slane %v3260_v60, 5  ;;  %v3530_v55 = vshrl.u32 %v7778_v11, 16  ;;  %v3740_v32 = vsel %vm7693_vm4, %v6031_v2, %v3739_v8  ;;  %v3688_v41 = vld [vmem:[#allocation2 + $0x3c] sm:$0xe]  ;;  %9175 = vst [vmem:[#allocation3_spill] sm:$0xff] %v7904_v58 }
 0x173   : > { %v6103_v30 = vcombine.low %v3882_v49, %v3892_v33  ;;  %v3268_v56 = vrot.slane %v3266_v7, 5  ;;  %v3270_v57 = vshrl.u32 %v3164_v38, 16  ;;  %v3743_v1 = vsel %vm7693_vm4, %v3741_v48, %v3742_v52  ;;  %v7917_v52 = vld [vmem:[#allocation2 + $0x30] sm:$0xf] }
 0x174   : > { %v3276_v42 = vshll.u32 %v3176_v34, 16  ;;  %v3894_v10 = vshrl.u32 %v3781_v51, 16  ;;  %v3897_v6 = vshll.u32 %v3781_v51, 16  ;;  %v3263_v3 = vor.u32 %v3262_v25, %v3259_v12  ;;  %v7919_v12 = vld [vmem:[#allocation2 + $0x34] sm:$0xf] }
 0x175   : > { %4347 = vrot.lane.b32.xlu1 %v6103_v30, %s6836_s29  ;;  %v3272_v5 = vrot.slane %v3270_v57, 4  ;;  %v3903_v36 = vshll.u32 %v3782_v46, 16  ;;  %v3907_v31 = vshrl.u32 %v3782_v46, 16  ;;  %v3523_v13 = vor.u32 %v3522_v44, %v3519_v37  ;;  %v7927_v57 = vld [vmem:[#allocation2 + $0x38] sm:$0x1] }
 0x176   : > { %4211 = vrot.lane.b32.xlu0 %v6071_v45, %s6836_s29  ;;  %v6087_v14 = vcombine.low %v3740_v32, %v3743_v1  ;;  %v3896_v20 = vrot.slane %v3894_v10, 4  ;;  %v3899_v59 = vrot.slane %v3897_v6, 5  ;;  %v3913_v47 = vshll.u32 %v3793_v61, 16  ;;  %v7931_v1 = vld [vmem:[#allocation2 + $0x3c] sm:$0xf] }
 0x177   : > { %v3273_v18 = vor.u32 %v3272_v5, %v3268_v56  ;;  %v3905_v0 = vrot.slane %v3903_v36, 5  ;;  %v3909_v27 = vrot.slane %v3907_v31, 4  ;;  %v3541_v38 = vshrl.u32 %v7834_v22, 16  ;;  %v7939_v31 = vld [vmem:[#allocation2 + $0x54] sm:$0xf] }
 0x178   : > { %v3544_v24 = vshll.u32 %v7834_v22, 16  ;;  %v3900_v37 = vor.u32 %v3899_v59, %v3896_v20  ;;  %v3264_v2 = vrot.slane %v3263_v3, 4  ;;  %v3278_v44 = vrot.slane %v3276_v42, 5  ;;  %v7911_v22 = vld [vmem:[#allocation2 + $0x40] sm:$0xf]  ;;  %9176 = vst [vmem:[#allocation4_spill] sm:$0xff] %v7939_v31 }
 0x179   : > { %4275 = vrot.lane.b32.xlu1 %v6087_v14, %s6836_s29  ;;  %v3274_v8 = vrot.slane %v3273_v18, 4  ;;  %v3910_v45 = vor.u32 %v3909_v27, %v3905_v0  ;;  %v7906_v60 = vrot.slane %v3530_v55, 4  ;;  %v7908_v49 = vrot.slane %v3523_v13, 4 }
 0x17a   : > { %v3901_v48 = vrot.slane %v3900_v37, 4  ;;  %v3269_v34 = vsel %vm7622_vm0, %v3264_v2, %v3268_v56  ;;  %v3915_v30 = vrot.slane %v3913_v47, 5  ;;  %v7921_v25 = vrot.slane %v3541_v38, 4  ;;  %v7950_v37 = vld [vmem:[#allocation2 + $0x58] sm:$0xf] }
 0x17b   : > { %v3279_v7 = vsel %vm7622_vm0, %v3274_v8, %v3278_v44  ;;  %v3911_v51 = vrot.slane %v3910_v45, 4  ;;  %v7923_v46 = vrot.slane %v3544_v24, 5  ;;  %v6032_v42 = vrot.slane %v3688_v41, 9  ;;  %9177 = vst [vmem:[#allocation5_spill] sm:$0xff] %v7950_v37 }
 0x17c   : > { %v6055_v55 = vcombine.low %v3269_v34, %v3279_v7  ;;  %v3906_v32 = vsel %vm7622_vm0, %v3901_v48, %v3905_v0  ;;  %v3746_v61 = vrot.slane %v7911_v22, 5  ;;  %v3749_v10 = vrot.slane %v7904_v58, 5  ;;  %v3794_v7 = vld [vmem:[#allocation2 + $0x5c] sm:$0x1] }
 0x17d   : > { %v3916_v56 = vsel %vm7622_vm0, %v3911_v51, %v3915_v30  ;;  %v3281_v3 = vshrl.u32 %v7917_v52, 16  ;;  %v3284_v5 = vshll.u32 %v7917_v52, 16  ;;  %v3290_v36 = vshll.u32 %v7919_v12, 16 }
 0x17e   : > { %4139 = vrot.lane.b32.xlu0 %v6055_v55, %s6836_s29  ;;  %v6104_v6 = vcombine.low %v3906_v32, %v3916_v56  ;;  %v6072_v13 = vcombine.low %v7931_v1, %v7911_v22  ;;  %v3747_v14 = vsel %vm7693_vm4, %v6032_v42, %v3746_v61  ;;  %v3748_v20 = vrot.slane %v3746_v61, 4 }
 0x17f   : > { %v3294_v59 = vshrl.u32 %v7919_v12, 16  ;;  %v3283_v18 = vrot.slane %v3281_v3, 4  ;;  %v3286_v0 = vrot.slane %v3284_v5, 5  ;;  %v3292_v27 = vrot.slane %v3290_v36, 5 }
 0x180   : > { %4349 = vrot.lane.b32.xlu1 %v6104_v6, %s6836_s29  ;;  %v3300_v47 = vshll.u32 %v7927_v57, 16  ;;  %v3750_v38 = vsel %vm7693_vm4, %v3748_v20, %v3749_v10  ;;  %v3918_v41 = vshrl.u32 %v7939_v31, 16  ;;  %v3921_v2 = vshll.u32 %v7939_v31, 16 }
 0x181   : > { %v3296_v24 = vrot.slane %v3294_v59, 4  ;;  %v3554_v8 = vshrl.u32 %v7832_v19, 16  ;;  %v6088_v44 = vcombine.low %v3747_v14, %v3750_v38  ;;  %v3287_v45 = vor.u32 %v3286_v0, %v3283_v18  ;;  %v3689_v59 = vld [vmem:[#allocation2 + $0x48] sm:$0xe] }
 0x182   : > { %4213 = vrot.lane.b32.xlu0 %v6072_v13, %s6836_s29  ;;  %v3927_v48 = vshll.u32 %v7950_v37, 16  ;;  %v3920_v51 = vrot.slane %v3918_v41, 4  ;;  %v3923_v30 = vrot.slane %v3921_v2, 5  ;;  %v3931_v55 = vshrl.u32 %v7950_v37, 16  ;;  %v7967_v41 = vld [vmem:[#allocation2 + $0x4c] sm:$0xf] }
 0x183   : > { %v3297_v34 = vor.u32 %v3296_v24, %v3292_v27  ;;  %v3565_v32 = vshrl.u32 %v7872_v28, 16  ;;  %v3288_v56 = vrot.slane %v3287_v45, 4  ;;  %v3937_v61 = vshll.u32 %v3794_v7, 16 }
 0x184   : > { %4277 = vrot.lane.b32.xlu1 %v6088_v44, %s6836_s29  ;;  %v3929_v42 = vrot.slane %v3927_v48, 5  ;;  %v3302_v6 = vrot.slane %v3300_v47, 5  ;;  %v3924_v3 = vor.u32 %v3923_v30, %v3920_v51  ;;  %v3933_v5 = vrot.slane %v3931_v55, 4  ;;  %v7969_v47 = vld [vmem:[#allocation2 + $0x50] sm:$0x1] }
 0x185   : > { %v3298_v10 = vrot.slane %v3297_v34, 4  ;;  %v3568_v14 = vshll.u32 %v7872_v28, 16  ;;  %v3293_v20 = vsel %vm7622_vm0, %v3288_v56, %v3292_v27  ;;  %v3939_v24 = vrot.slane %v3937_v61, 5  ;;  %v7977_v27 = vld [vmem:[#allocation2 + $0x3c] sm:$0xf] }
 0x186   : > { %v3925_v0 = vrot.slane %v3924_v3, 4  ;;  %v3934_v38 = vor.u32 %v3933_v5, %v3929_v42  ;;  %v3547_v2 = vor.u32 %v7923_v46, %v7921_v25  ;;  %v7973_v44 = vrot.slane %v3554_v8, 4  ;;  %v7979_v48 = vld [vmem:[#allocation2 + $0x40] sm:$0xf]  ;;  %v7984_v30 = vld [vmem:[#allocation2 + $0x48] sm:$0xf] }
 0x187   : > { %v3303_v18 = vsel %vm7622_vm0, %v3298_v10, %v3302_v6  ;;  %v7975_v28 = vrot.slane %v3565_v32, 4  ;;  %v3578_v34 = vshrl.u32 %v7866_v54, 16  ;;  %v6033_v55 = vrot.slane %v3689_v59, 9  ;;  %v7995_v6 = vld [vmem:[#allocation2 + $0x60] sm:$0xf] }
 0x188   : > { %v6056_v45 = vcombine.low %v3293_v20, %v3303_v18  ;;  %v3930_v7 = vsel %vm7622_vm0, %v3925_v0, %v3929_v42  ;;  %v3935_v51 = vrot.slane %v3934_v38, 4  ;;  %v3570_v56 = vrot.slane %v3568_v14, 5  ;;  %9178 = vst [vmem:[#allocation6_spill] sm:$0xff] %v7995_v6  ;;  %v8001_v59 = vld [vmem:[#allocation2 + $0x44] sm:$0x1] }
 0x189   : > { %v3589_v25 = vshrl.u32 %v7931_v1, 16  ;;  %v3753_v46 = vrot.slane %v7967_v41, 5  ;;  %v3756_v8 = vrot.slane %v7969_v47, 5  ;;  %v3305_v61 = vshrl.u32 %v7977_v27, 16  ;;  %v8003_v18 = vld [vmem:[#allocation2 + $0x64] sm:$0xf] }
 0x18a   : > { %4141 = vrot.lane.b32.xlu0 %v6056_v45, %s6836_s29  ;;  %v3940_v32 = vsel %vm7622_vm0, %v3935_v51, %v3939_v24  ;;  %v3308_v42 = vshll.u32 %v7977_v27, 16  ;;  %v3314_v10 = vshll.u32 %v7979_v48, 16  ;;  %v6073_v5 = vcombine.low %v7984_v30, %v7967_v41  ;;  %9179 = vst [vmem:[#allocation7_spill] sm:$0xff] %v8003_v18 }
 0x18b   : > { %v6105_v3 = vcombine.low %v3930_v7, %v3940_v32  ;;  %v3754_v14 = vsel %vm7693_vm4, %v6033_v55, %v3753_v46  ;;  %v3755_v20 = vrot.slane %v3753_v46, 4  ;;  %v3307_v0 = vrot.slane %v3305_v61, 4  ;;  %v3795_v55 = vld [vmem:[#allocation2 + $0x68] sm:$0x1] }
 0x18c   : > { %v3310_v38 = vrot.slane %v3308_v42, 5  ;;  %v3316_v24 = vrot.slane %v3314_v10, 5  ;;  %v3318_v45 = vshrl.u32 %v7979_v48, 16  ;;  %v3592_v51 = vshll.u32 %v7931_v1, 16 }
 0x18d   : > { %4351 = vrot.lane.b32.xlu1 %v6105_v3, %s6836_s29  ;;  %v3757_v7 = vsel %vm7693_vm4, %v3755_v20, %v3756_v8  ;;  %v3942_v46 = vshrl.u32 %v7995_v6, 16  ;;  %v3945_v32 = vshll.u32 %v7995_v6, 16  ;;  %v3324_v42 = vshll.u32 %v8001_v59, 16 }
 0x18e   : > { %4215 = vrot.lane.b32.xlu0 %v6073_v5, %s6836_s29  ;;  %v3311_v13 = vor.u32 %v3310_v38, %v3307_v0  ;;  %v3320_v61 = vrot.slane %v3318_v45, 4  ;;  %v3951_v10 = vshll.u32 %v8003_v18, 16  ;;  %v6089_v36 = vcombine.low %v3754_v14, %v3757_v7 }
 0x18f   : > { %v3944_v1 = vrot.slane %v3942_v46, 4  ;;  %v3947_v33 = vrot.slane %v3945_v32, 5  ;;  %v3955_v3 = vshrl.u32 %v8003_v18, 16  ;;  %v3961_v8 = vshll.u32 %v3795_v55, 16  ;;  %v3690_v46 = vld [vmem:[#allocation2 + $0x54] sm:$0xe] }
 0x190   : > { %v3312_v5 = vrot.slane %v3311_v13, 4  ;;  %v3321_v43 = vor.u32 %v3320_v61, %v3316_v24  ;;  %v3953_v50 = vrot.slane %v3951_v10, 5  ;;  %v8016_v20 = vrot.slane %v3547_v2, 4  ;;  %v8025_v2 = vld [vmem:[#allocation2 + $0x58] sm:$0xf] }
 0x191   : > { %v3571_v35 = vor.u32 %v3570_v56, %v7975_v28  ;;  %4279 = vrot.lane.b32.xlu1 %v6089_v36, %s6836_s29  ;;  %v3948_v0 = vor.u32 %v3947_v33, %v3944_v1  ;;  %v3957_v38 = vrot.slane %v3955_v3, 4  ;;  %v8020_v45 = vrot.slane %v3589_v25, 4  ;;  %v8036_v56 = vld [vmem:[#allocation2 + $0x48] sm:$0xf]  ;;  %v8042_v1 = vld [vmem:[#allocation2 + $0x54] sm:$0xf] }
 0x192   : > { %v8022_v17 = vrot.slane %v3592_v51, 5  ;;  %v3322_v14 = vrot.slane %v3321_v43, 4  ;;  %v3326_v7 = vrot.slane %v3324_v42, 5  ;;  %v3963_v55 = vrot.slane %v3961_v8, 5  ;;  %v8034_v43 = vld [vmem:[#allocation2 + $0x5c] sm:$0x1] }
 0x193   : > { %v3949_v32 = vrot.slane %v3948_v0, 4  ;;  %v3958_v61 = vor.u32 %v3957_v38, %v3953_v50  ;;  %v8027_v10 = vrot.slane %v3578_v34, 4  ;;  %v3317_v33 = vsel %vm7622_vm0, %v3312_v5, %v3316_v24  ;;  %9180 = vst [vmem:[#allocation8_spill] sm:$0xff] %v8036_v56  ;;  %v8048_v0 = vld [vmem:[#allocation2 + $0x4c] sm:$0xf] }
 0x194   : > { %v3327_v28 = vsel %vm7622_vm0, %v3322_v14, %v3326_v7  ;;  %v8038_v25 = vrot.slane %v3571_v35, 4  ;;  %v3595_v3 = vor.u32 %v8022_v17, %v8020_v45  ;;  %v3602_v24 = vshrl.u32 %v7911_v22, 16  ;;  %9181 = vst [vmem:[#allocation9_spill] sm:$0xff] %v8048_v0  ;;  %v8056_v7 = vld [vmem:[#allocation2 + $0x6c] sm:$0xf] }
 0x195   : > { %v6057_v51 = vcombine.low %v3317_v33, %v3327_v28  ;;  %v3954_v42 = vsel %vm7622_vm0, %v3949_v32, %v3953_v50  ;;  %v3959_v34 = vrot.slane %v3958_v61, 4  ;;  %v6034_v5 = vrot.slane %v3690_v46, 9  ;;  %9182 = vst [vmem:[#allocation10_spill] sm:$0xff] %v8056_v7  ;;  %v8062_v61 = vld [vmem:[#allocation2 + $0x50] sm:$0x1] }
 0x196   : > { %v3760_v8 = vrot.slane %v8025_v2, 5  ;;  %v3763_v50 = vrot.slane %v8034_v43, 5  ;;  %v3329_v38 = vshrl.u32 %v8036_v56, 16  ;;  %v3332_v14 = vshll.u32 %v8036_v56, 16  ;;  %9183 = vst [vmem:[#allocation11_spill] sm:$0xff] %v8062_v61 }
 0x197   : > { %4143 = vrot.lane.b32.xlu0 %v6057_v51, %s6836_s29  ;;  %v3964_v35 = vsel %vm7622_vm0, %v3959_v34, %v3963_v55  ;;  %v6074_v45 = vcombine.low %v8042_v1, %v8025_v2  ;;  %v3338_v28 = vshll.u32 %v8048_v0, 16  ;;  %v3342_v51 = vshrl.u32 %v8048_v0, 16  ;;  %v8066_v34 = vld [vmem:[#allocation2 + $0x70] sm:$0xf] }
 0x198   : > { %v6106_v17 = vcombine.low %v3954_v42, %v3964_v35  ;;  %v3761_v46 = vsel %vm7693_vm4, %v6034_v5, %v3760_v8  ;;  %v3762_v32 = vrot.slane %v3760_v8, 4  ;;  %v3331_v33 = vrot.slane %v3329_v38, 4  ;;  %9184 = vst [vmem:[#allocation12_spill] sm:$0xff] %v8066_v34  ;;  %v8072_v35 = vld [vmem:[#allocation2 + $0x74] sm:$0x1] }
 0x199   : > { %v3334_v55 = vrot.slane %v3332_v14, 5  ;;  %v3613_v36 = vshrl.u32 %v7984_v30, 16  ;;  %9185 = vst [vmem:[#allocation13_spill] sm:$0xff] %v8072_v35  ;;  %v3966_v5 = vshrl.u32 %v8056_v7, 16  ;;  %v3969_v8 = vshll.u32 %v8056_v7, 16 }
 0x19a   : > { %4353 = vrot.lane.b32.xlu1 %v6106_v17, %s6836_s29  ;;  %v3764_v42 = vsel %vm7693_vm4, %v3762_v32, %v3763_v50  ;;  %v3340_v14 = vrot.slane %v3338_v28, 5  ;;  %v3344_v13 = vrot.slane %v3342_v51, 4  ;;  %v3348_v6 = vshll.u32 %v8062_v61, 16  ;;  %v3691_v7 = vld [vmem:[#allocation2 + $0x60] sm:$0xe] }
 0x19b   : > { %4217 = vrot.lane.b32.xlu0 %v6074_v45, %s6836_s29  ;;  %v3335_v38 = vor.u32 %v3334_v55, %v3331_v33  ;;  %v6090_v18 = vcombine.low %v3761_v46, %v3764_v42  ;;  %v3968_v31 = vrot.slane %v3966_v5, 4  ;;  %v3971_v37 = vrot.slane %v3969_v8, 5 }
 0x19c   : > { %v3975_v17 = vshll.u32 %v8066_v34, 16  ;;  %v3345_v50 = vor.u32 %v3344_v13, %v3340_v14  ;;  %v3979_v32 = vshrl.u32 %v8066_v34, 16  ;;  %v3985_v0 = vshll.u32 %v8072_v35, 16 }
 0x19d   : > { %v3336_v56 = vrot.slane %v3335_v38, 4  ;;  %v3616_v45 = vshll.u32 %v7984_v30, 16  ;;  %v3972_v33 = vor.u32 %v3971_v37, %v3968_v31  ;;  %v3350_v51 = vrot.slane %v3348_v6, 5 }
 0x19e   : > { %4281 = vrot.lane.b32.xlu1 %v6090_v18, %s6836_s29  ;;  %v3977_v55 = vrot.slane %v3975_v17, 5  ;;  %v3346_v28 = vrot.slane %v3345_v50, 4  ;;  %v3981_v42 = vrot.slane %v3979_v32, 4  ;;  %v8086_v5 = vrot.slane %v3595_v3, 4  ;;  %v8095_v18 = vld [vmem:[#allocation2 + $0x68] sm:$0x1] }
 0x19f   : > { %v3341_v46 = vsel %vm7622_vm0, %v3336_v56, %v3340_v14  ;;  %v8088_v13 = vrot.slane %v3602_v24, 4  ;;  %v3973_v38 = vrot.slane %v3972_v33, 4  ;;  %v8091_v35 = vrot.slane %v3613_v36, 4  ;;  %v8097_v56 = vld [vmem:[#allocation2 + $0x54] sm:$0xf] }
 0x1a0   : > { %v3351_v31 = vsel %vm7622_vm0, %v3346_v28, %v3350_v51  ;;  %v3982_v37 = vor.u32 %v3981_v42, %v3977_v55  ;;  %v3987_v30 = vrot.slane %v3985_v0, 5  ;;  %9186 = vst [vmem:[#allocation14_spill] sm:$0xff] %v8097_v56  ;;  %v8099_v6 = vrot.slane %v3616_v45, 5  ;;  %v8103_v17 = vld [vmem:[#allocation2 + $0x64] sm:$0xf] }
 0x1a1   : > { %v3637_v24 = vshrl.u32 %v8042_v1, 16  ;;  %v6058_v14 = vcombine.low %v3341_v46, %v3351_v31  ;;  %v3978_v36 = vsel %vm7622_vm0, %v3973_v38, %v3977_v55  ;;  %v6035_v32 = vrot.slane %v3691_v7, 9  ;;  %v8108_v33 = vld [vmem:[#allocation2 + $0x58] sm:$0xf]  ;;  %v3482_v45 = vld [vmem:[#allocation2 + $0x60] sm:$0xf] }
 0x1a2   : > { %v3983_v50 = vrot.slane %v3982_v37, 4  ;;  %v3767_v0 = vrot.slane %v8103_v17, 5  ;;  %9187 = vst [vmem:[#allocation15_spill] sm:$0xff] %v8108_v33  ;;  %v3640_v28 = vshll.u32 %v8042_v1, 16  ;;  %v3770_v51 = vrot.slane %v8095_v18, 5 }
 0x1a3   : > { %4145 = vrot.lane.b32.xlu0 %v6058_v14, %s6836_s29  ;;  %v3353_v46 = vshrl.u32 %v8097_v56, 16  ;;  %v3356_v42 = vshll.u32 %v8097_v56, 16  ;;  %v6075_v7 = vcombine.low %v3482_v45, %v8103_v17  ;;  %v3362_v31 = vshll.u32 %v8108_v33, 16  ;;  %v8121_v14 = vld [vmem:[#allocation2 + $0x5c] sm:$0x1] }
 0x1a4   : > { %v3988_v55 = vsel %vm7622_vm0, %v3983_v50, %v3987_v30  ;;  %v3769_v38 = vrot.slane %v3767_v0, 4  ;;  %v3768_v1 = vsel %vm7693_vm4, %v6035_v32, %v3767_v0  ;;  %9188 = vst [vmem:[#allocation16_spill] sm:$0xff] %v8121_v14  ;;  %v3366_v61 = vshrl.u32 %v8108_v33, 16  ;;  %v3376_v50 = vld [vmem:[#allocation2] sm:$0xe] }
 0x1a5   : > { %v6107_v37 = vcombine.low %v3978_v36, %v3988_v55  ;;  %v3355_v8 = vrot.slane %v3353_v46, 4  ;;  %v3358_v3 = vrot.slane %v3356_v42, 5  ;;  %v3364_v56 = vrot.slane %v3362_v31, 5  ;;  %v8131_v0 = vld [vmem:[#allocation2 + $0x4] sm:$0xf] }
 0x1a6   : > { %v3771_v34 = vsel %vm7693_vm4, %v3769_v38, %v3770_v51  ;;  %v3372_v30 = vshll.u32 %v8121_v14, 16  ;;  %v3619_v58 = vor.u32 %v8099_v6, %v8091_v35  ;;  %v3639_v36 = vrot.slane %v3637_v24, 4 }
 0x1a7   : > { %4355 = vrot.lane.b32.xlu1 %v6107_v37, %s6836_s29  ;;  %4219 = vrot.lane.b32.xlu0 %v6075_v7, %s6836_s29  ;;  %v3359_v32 = vor.u32 %v3358_v3, %v3355_v8  ;;  %v3413_v46 = vrot.slane %v8131_v0, 5  ;;  %v3642_v51 = vrot.slane %v3640_v28, 5  ;;  %v3661_v42 = vshrl.u32 %v3482_v45, 16 }
 0x1a8   : > { %v6091_v55 = vcombine.low %v3768_v1, %v3771_v34  ;;  %v3368_v38 = vrot.slane %v3366_v61, 4  ;;  %v6020_v14 = vrot.slane %v3376_v50, 9  ;;  %v3505_v35 = vsel %vm7622_vm0, %v7861_v63, %v7840_v39 }
 0x1a9   : > { %v3360_v31 = vrot.slane %v3359_v32, 4  ;;  %v3415_v33 = vrot.slane %v3413_v46, 4  ;;  %v3374_v24 = vrot.slane %v3372_v30, 5  ;;  %v9189_v8 = vor.u32 %v7842_v26, %v7840_v39 }
 0x1aa   : > { %v3369_v6 = vor.u32 %v3368_v38, %v3364_v56  ;;  %v9190_v7 = vshll.u32 %v7667_v40, 16  ;;  %v3664_v37 = vshll.u32 %v3482_v45, 16  ;;  %v3414_v34 = vsel %vm7693_vm4, %v6020_v14, %v3413_v46 }
 0x1ab   : > { %v3510_v3 = vrot.slane %v9189_v8, 4  ;;  %4283 = vrot.lane.b32.xlu1 %v6091_v55, %s6836_s29  ;;  %v9191_v1 = vrot.slane %v7597_v53, 5  ;;  %vm4381_vm6 = vcmask 523264   ;;  %v3365_v39 = vsel %vm7622_vm0, %v3360_v31, %v3364_v56 }
 0x1ac   : > { %v3514_v28 = vrot.slane %v9190_v7, 5  ;;  %v3370_v26 = vrot.slane %v3369_v6, 4  ;;  %v3650_v45 = vshrl.u32 %v8025_v2, 16  ;;  %v3420_v14 = vrot.slane %v7791_v4, 5 }
 0x1ad   : > { %v3417_v63 = vsel %vm7693_vm4, %v3415_v33, %v9191_v1  ;;  %v9192_v53 = vshll.u32 %v7778_v11, 16  ;;  %v3643_v46 = vor.u32 %v3642_v51, %v3639_v36  ;;  %v3663_v33 = vrot.slane %v3661_v42, 4 }
 0x1ae   : > { %v4206_v61 = vpop.permute.xlu0 %4205  ;;  %v6060_v30 = vcombine.low %v3414_v34, %v3417_v63  ;;  %v3515_v40 = vsel %vm7622_vm0, %v3510_v3, %v3514_v28  ;;  %v3375_v55 = vsel %vm7622_vm0, %v3370_v26, %v3374_v24  ;;  %v3666_v38 = vrot.slane %v3664_v37, 5  ;;  %v3377_v37 = vld [vmem:[#allocation2 + $0xc] sm:$0xe] }
 0x1af   : > { %v8155_v50 = vcombine.low %v3505_v35, %v3515_v40  ;;  %v3528_v32 = vrot.slane %v9192_v53, 5  ;;  %v6059_v31 = vcombine.low %v3365_v39, %v3375_v55  ;;  %v8170_v11 = vrot.slane %v3619_v58, 4  ;;  %v3380_v53 = vld [vmem:[#allocation2 + $0x30] sm:$0xe] }
 0x1b0   : > { %v8163_v56 = vsel %vm4381_vm6, %v6060_v30, %v4206_v61  ;;  %v3622_v36 = vshll.u32 %v7967_v41, 16  ;;  %v9193_v51 = vshrl.u32 %v7967_v41, 16  ;;  %v3632_v6 = vshll.u32 %v7969_v47, 16  ;;  %v6712_v41 = vld [vmem:[%s9095_s6 + $0x38] sm:$0xff]  }
 0x1b1   : > { %4861 = vmatprep.mubr.bf16.mxu1 %v8163_v56  ;;  %v3529_v35 = vsel %vm7622_vm0, %v7908_v49, %v3528_v32  ;;  %v3533_v4 = vor.u32 %v7906_v60, %v3528_v32  ;;  %v3646_v24 = vshll.u32 %v8025_v2, 16  ;;  %4147 = vrot.lane.b32.xlu0 %v6059_v31, %s6836_s29  ;;  %v3422_v8 = vrot.slane %v3420_v14, 4 }
 0x1b2   : > { %v8175_v42 = vrot.slane %v9193_v51, 4  ;;  %v9194_v49 = vshll.u32 %v7797_v62, 16  ;;  %v8182_v60 = vrot.slane %v3643_v46, 4  ;;  %v8184_v58 = vrot.slane %v3650_v45, 4  ;;  %v6766_v62 = vld [vmem:[#allocation2] sm:$0xf] }
 0x1b3   : > { %v3534_v3 = vrot.slane %v3533_v4, 4  ;;  %v3656_v28 = vshll.u32 %v8034_v43, 16  ;;  %v9195_v61 = vshll.u32 %v7832_v19, 16  ;;  %v3667_v1 = vor.u32 %v3666_v38, %v3663_v33  ;;  %v6716_v43 = vld [vmem:[%s9095_s6 + $0x30] sm:$0xff]  }
 0x1b4   : > { %v3538_v7 = vrot.slane %v9194_v49, 5  ;;  %v3674_v63 = vshrl.u32 %v8103_v17, 16  ;;  %v3423_v39 = vrot.slane %v7810_v29, 5  ;;  %v6044_v30 = vcombine.low %v6766_v62, %v8131_v0  ;;  %v6735_v0 = vld [vmem:[%s9094_s5 + $0x110] sm:$0xff]   ;;  %v8221_v49 = vld [vmem:[#allocation2 + $0x1c] sm:$0xf] }
 0x1b5   : > { %v3552_v34 = vrot.slane %v9195_v61, 5  ;;  %v3670_v32 = vshll.u32 %v8103_v17, 16  ;;  %v3680_v46 = vshll.u32 %v8095_v18, 16  ;;  %v6021_v33 = vrot.slane %v3377_v37, 9  ;;  %v6728_v18 = vld [vmem:[%s9095_s6 + $0x58] sm:$0xff]  }
 0x1b6   : > { %v3539_v26 = vsel %vm7622_vm0, %v3534_v3, %v3538_v7  ;;  %v8204_v55 = vsel %vm7693_vm4, %v3422_v8, %v3423_v39  ;;  %v8216_v51 = vrot.slane %v3667_v1, 4  ;;  %v8218_v3 = vrot.slane %v3674_v63, 4  ;;  %v6767_v8 = vld [vmem:[#allocation2 + $0x18] sm:$0xf]  ;;  %v3381_v1 = vld [vmem:[#allocation2 + $0x3c] sm:$0xe] }
 0x1b7   : > { %v8194_v40 = vcombine.low %v3529_v35, %v3539_v26  ;;  %v3553_v45 = vsel %vm7622_vm0, %v8016_v20, %v3552_v34  ;;  %v3557_v19 = vor.u32 %v7973_v44, %v3552_v34  ;;  %v9196_v44 = vshll.u32 %v7838_v23, 16 }
 0x1b8   : > { %v9197_v35 = vshll.u32 %v7866_v54, 16  ;;  %v6092_v7 = vcombine.low %v6767_v8, %v8221_v49  ;;  %v6024_v37 = vrot.slane %v3380_v53, 9  ;;  %v8226_v61 = vsel %vm7693_vm4, %v6021_v33, %v3420_v14 }
 0x1b9   : > { %v3558_v20 = vrot.slane %v3557_v19, 4  ;;  %v3562_v31 = vrot.slane %v9196_v44, 5  ;;  %v6061_v39 = vcombine.low %v8226_v61, %v8204_v55  ;;  %v3441_v14 = vrot.slane %v7919_v12, 5 }
 0x1ba   : > { %v3576_v4 = vrot.slane %v9197_v35, 5  ;;  %v6048_v62 = vcombine.low %v7917_v52, %v7919_v12  ;;  %v3444_v19 = vrot.slane %v7927_v57, 5  ;;  %v9199_v53 = vshll.u32 %v7911_v22, 16  ;;  %v3382_v35 = vld [vmem:[#allocation2 + $0x48] sm:$0xe] }
 0x1bb   : > { %v3563_v23 = vsel %vm7622_vm0, %v3558_v20, %v3562_v31  ;;  %v8256_v33 = vsel %vm7693_vm4, %v6024_v37, %v3441_v14  ;;  %v3443_v20 = vrot.slane %v3441_v14, 4  ;;  %v6025_v44 = vrot.slane %v3381_v1, 9 }
 0x1bc   : > { %v3577_v54 = vsel %vm7622_vm0, %v8038_v25, %v3576_v4  ;;  %v3581_v34 = vor.u32 %v8027_v10, %v3576_v4  ;;  %v8237_v26 = vcombine.low %v3553_v45, %v3563_v23  ;;  %v6741_v25 = vld [vmem:[%s9094_s5 + $0x108] sm:$0xff]   ;;  %v3600_v45 = vrot.slane %v9199_v53, 5  ;;  %v9200_v23 = vld [vmem:[#allocation3_spill] sm:$0xff] }
 0x1bd   : > { %v4134_v29 = vpop.permute.xlu1 %4133  ;;  %v3448_v57 = vrot.slane %v7979_v48, 5  ;;  %v8269_v4 = vsel %vm7693_vm4, %v3443_v20, %v3444_v19  ;;  %v3451_v8 = vrot.slane %v8001_v59, 5  ;;  %v6049_v37 = vcombine.low %v7977_v27, %v7979_v48  ;;  %v9202_v19 = vld [vmem:[#allocation9_spill] sm:$0xff] }
 0x1be   : > { %v8210_v38 = vsel %vm4381_vm6, %v6044_v30, %v4134_v29  ;;  %v3582_v10 = vrot.slane %v3581_v34, 4  ;;  %v3605_v22 = vor.u32 %v8088_v13, %v3600_v45  ;;  %v6064_v13 = vcombine.low %v8256_v33, %v8269_v4  ;;  %v9211_v33 = vld [vmem:[#allocation5_spill] sm:$0xff]  ;;  %v9212_v4 = vld [vmem:[#allocation4_spill] sm:$0xff] }
 0x1bf   : > { %4862 = vmatmul.mubr.bf16.vlgmr.msra.gmra.mxu1 %v8210_v38  ;;  %v3450_v1 = vrot.slane %v3448_v57, 4  ;;  %v3624_v59 = vrot.slane %v3622_v36, 5  ;;  %v3634_v14 = vrot.slane %v3632_v6, 5  ;;  %v3455_v53 = vrot.slane %v9202_v19, 5 }
 0x1c0   : > { %6564 = vmatpush3.bf16.msra.mxu1 %v7897_v15  ;;  %v9198_v15 = vshll.u32 %v7876_v21, 16  ;;  %v3601_v21 = vsel %vm7622_vm0, %v8086_v5, %v3600_v45  ;;  %v6744_v5 = vld [vmem:[%s9094_s5 + $0x100] sm:$0xff]   ;;  %v9203_v45 = vld [vmem:[#allocation11_spill] sm:$0xff] }
 0x1c1   : > { %v4270_v63 = vpop.permute.xlu1 %4269  ;;  %6565 = vmatprep.subr.bf16.mxu1 %v6735_v0  ;;  %v3458_v20 = vrot.slane %v9203_v45, 5  ;;  %v3625_v6 = vsel %vm7622_vm0, %v8170_v11, %v3624_v59  ;;  %v6745_v11 = vld [vmem:[%s9095_s6 + $0xf8] sm:$0xff]   ;;  %v9208_v45 = vld [vmem:[#allocation16_spill] sm:$0xff] }
 0x1c2   : > { %v3586_v30 = vrot.slane %v9198_v15, 5  ;;  %v8252_v29 = vsel %vm4381_vm6, %v8155_v50, %v4270_v63  ;;  %v8283_v63 = vsel %vm7693_vm4, %v6025_v44, %v3448_v57  ;;  %v6715_v57 = vld [vmem:[%s9095_s6 + $0x70] sm:$0xff]  }
 0x1c4   : > { %v3587_v31 = vsel %vm7622_vm0, %v3582_v10, %v3586_v30  ;;  %6566 = vmatpush3.bf16.msra.mxu1 %v6735_v0  ;;  %v3606_v0 = vrot.slane %v3605_v22, 4  ;;  %v6026_v10 = vrot.slane %v3382_v35, 9  ;;  %v8293_v30 = vsel %vm7693_vm4, %v3450_v1, %v3451_v8  ;;  %v3383_v22 = vld [vmem:[#allocation2 + $0x54] sm:$0xe]  ;;  %v9204_v8 = vld [vmem:[#allocation8_spill] sm:$0xff] }
 0x1c5   : > { %v8265_v50 = vcombine.low %v3577_v54, %v3587_v31  ;;  %6567 = vmatprep.subr.bf16.mxu1 %v6741_v25  ;;  %v9201_v54 = vshll.u32 %v9200_v23, 16  ;;  %v6065_v36 = vcombine.low %v8283_v63, %v8293_v30  ;;  %v3629_v31 = vor.u32 %v8175_v42, %v3624_v59  ;;  %v9213_v30 = vld [vmem:[#allocation7_spill] sm:$0xff] }
 0x1c6   : > { %v3457_v35 = vrot.slane %v3455_v53, 4  ;;  %v3658_v23 = vrot.slane %v3656_v28, 5 }
 0x1c7   : > { %v3610_v34 = vrot.slane %v9201_v54, 5  ;;  %v3630_v42 = vrot.slane %v3629_v31, 4  ;;  %v9205_v54 = vld [vmem:[#allocation12_spill] sm:$0xff] }
 0x1c8   : > { %6568 = vmatpush3.bf16.msra.mxu1 %v6741_v25  ;;  %v8333_v59 = vsel %vm7693_vm4, %v3457_v35, %v3458_v20  ;;  %v8363_v35 = vld [vmem:[#allocation2 + $0x28] sm:$0xf] }
 0x1c9   : > { %v3611_v15 = vsel %vm7622_vm0, %v3606_v0, %v3610_v34  ;;  %v4342_v44 = vpop.permute.xlu0 %4341  ;;  %6569 = vmatprep.subr.bf16.mxu1 %v6744_v5  ;;  %v6050_v0 = vcombine.low %v9204_v8, %v9202_v19  ;;  %v9206_v34 = vld [vmem:[#allocation10_spill] sm:$0xff] }
 0x1ca   : > { %v8300_v47 = vcombine.low %v3601_v21, %v3611_v15  ;;  %v8309_v25 = vsel %vm4381_vm6, %v6092_v7, %v4342_v44  ;;  %v8316_v21 = vsel %vm7693_vm4, %v6026_v10, %v3455_v53  ;;  %v3648_v7 = vrot.slane %v3646_v24, 5  ;;  %v9207_v15 = vld [vmem:[#allocation15_spill] sm:$0xff] }
 0x1cb   : > { %4958 = vmatprep.mubr.bf16.mxu0 %v8309_v25  ;;  %v6099_v1 = vcombine.low %v9206_v34, %v9205_v54  ;;  %v6027_v10 = vrot.slane %v3383_v22, 9  ;;  %v3462_v53 = vrot.slane %v9207_v15, 5  ;;  %v3465_v44 = vrot.slane %v9208_v45, 5  ;;  %v8389_v45 = vld [vmem:[#allocation2 + $0x1c] sm:$0xf] }
 0x1cc   : > { %4959 = vmatmul.mubr.bf16.vlgmr.msra.gmra.mxu0 %v8252_v29  ;;  %6570 = vmatpush3.bf16.msra.mxu1 %v6744_v5  ;;  %v3635_v24 = vsel %vm7622_vm0, %v3630_v42, %v3634_v14  ;;  %v6066_v28 = vcombine.low %v8316_v21, %v8333_v59  ;;  %v3649_v20 = vsel %vm7622_vm0, %v8182_v60, %v3648_v7  ;;  %v6719_v14 = vld [vmem:[%s9095_s6 + $0x68] sm:$0xff]   ;;  %v6785_v34 = vld [vmem:[#allocation2 + $0x20] sm:$0x1] }
 0x1cd   : > { %6394 = vmatpush3.bf16.msra.mxu0 %v6712_v41  ;;  %v4208_v2 = vpop.permute.xlu0 %4207  ;;  %v3653_v31 = vor.u32 %v8184_v58, %v3648_v7  ;;  %v8357_v41 = vcombine.low %v3625_v6, %v3635_v24  ;;  %v8361_v22 = vsel %vm7693_vm4, %v6027_v10, %v3462_v53  ;;  %v3464_v60 = vrot.slane %v3462_v53, 4  ;;  %6457 = vmatprep.subr.bf16.mxu1 %v6745_v11  ;;  %v6769_v58 = vld [vmem:[#allocation2 + $0x24] sm:$0xf]  ;;  %v6720_v10 = vld [vmem:[%s9095_s6 + $0x28] sm:$0xff]  }
 0x1ce   : > { %v8352_v5 = vsel %vm4381_vm6, %v6061_v39, %v4208_v2  ;;  %6395 = vmatprep.subr.bf16.mxu0 %v6715_v57  ;;  %v6093_v55 = vcombine.low %v6769_v58, %v8363_v35  ;;  %v9209_v39 = vld [vmem:[#allocation14_spill] sm:$0xff]  ;;  %v3672_v6 = vrot.slane %v3670_v32, 5  ;;  %v6723_v2 = vld [vmem:[%s9095_s6 + $0x60] sm:$0xff]   ;;  %v3682_v24 = vrot.slane %v3680_v46, 5 }
 0x1cf   : > { %4869 = vmatprep.mubr.bf16.mxu1 %v8352_v5  ;;  %v3654_v61 = vrot.slane %v3653_v31, 4  ;;  %v4344_v42 = vpop.permute.xlu1 %4343  ;;  %v8373_v7 = vsel %vm7693_vm4, %v3464_v60, %v3465_v44  ;;  %v3427_v44 = vrot.slane %v8389_v45, 5 }
 0x1d0   : > { %v8376_v11 = vsel %vm4381_vm6, %v6093_v55, %v4344_v42  ;;  %v3673_v32 = vsel %vm7622_vm0, %v8216_v51, %v3672_v6  ;;  %v6772_v55 = vld [vmem:[#allocation2 + $0x20] sm:$0x1] }
 0x1d1   : > { %6396 = vmatpush3.bf16.msra.mxu0 %v6716_v43  ;;  %v3659_v53 = vsel %vm7622_vm0, %v3654_v61, %v3658_v23  ;;  %4966 = vmatprep.mubr.bf16.mxu0 %v8376_v11  ;;  %v3677_v23 = vor.u32 %v8218_v3, %v3672_v6  ;;  %v3378_v3 = vld [vmem:[#allocation2 + $0x18] sm:$0xe]  ;;  %v3430_v61 = vrot.slane %v6772_v55, 5  ;;  %v9210_v6 = vld [vmem:[#allocation13_spill] sm:$0xff]  ;;  %v8433_v55 = vld [vmem:[#allocation2 + $0x34] sm:$0xf] }
 0x1d2   : > { %6397 = vmatprep.subr.bf16.mxu0 %v6719_v14  ;;  %v8395_v43 = vcombine.low %v3649_v20, %v3659_v53  ;;  %v6724_v14 = vld [vmem:[%s9095_s6 + $0x20] sm:$0xff]   ;;  %v3429_v20 = vrot.slane %v3427_v44, 4  ;;  %v4075_v42 = vrot.slane %v9210_v6, 5  ;;  %v6774_v53 = vld [vmem:[#allocation2 + $0x10] sm:$0xf]  ;;  %v6022_v57 = vrot.slane %v3378_v3, 9 }
 0x1d3   : > { %v4272_v31 = vpop.permute.xlu1 %4271  ;;  %v3678_v51 = vrot.slane %v3677_v23, 4  ;;  %v6733_v6 = vld [vmem:[%s9095_s6 + $0x10] sm:$0xff]  }
 0x1d4   : > { %v8402_v60 = vsel %vm4381_vm6, %v8194_v40, %v4272_v31  ;;  %v3996_v40 = vld [vmem:[#allocation2 + $0x6c] sm:$0xe]  ;;  %v3431_v9 = vsel %vm7693_vm4, %v3429_v20, %v3430_v61 }
 0x1d5   : > { %6398 = vmatpush3.bf16.msra.mxu0 %v6720_v10  ;;  %v3683_v46 = vsel %vm7622_vm0, %v3678_v51, %v3682_v24  ;;  %v6773_v10 = vld [vmem:[#allocation2 + $0xc] sm:$0xf]  ;;  %v6043_v24 = vrot.slane %v3996_v40, 9  ;;  %v4072_v51 = vrot.slane %v9205_v54, 5  ;;  %v3989_v54 = vld [vmem:[#allocation2 + $0x18] sm:$0xe] }
 0x1d6   : > { %4967 = vmatmul.mubr.bf16.gmra.mxu0 %v8402_v60  ;;  %6399 = vmatprep.subr.bf16.mxu0 %v6723_v2  ;;  %v8413_v58 = vcombine.low %v3673_v32, %v3683_v46  ;;  %v6045_v23 = vcombine.low %v6773_v10, %v6774_v53  ;;  %v6729_v2 = vld [vmem:[%s9095_s6 + $0x18] sm:$0xff]   ;;  %v6732_v32 = vld [vmem:[%s9095_s6 + $0x50] sm:$0xff]  }
 0x1d7   : > { %v4136_v31 = vpop.permute.xlu0 %4135  ;;  %v4073_v3 = vsel %vm7693_vm4, %v6043_v24, %v4072_v51  ;;  %v4074_v20 = vrot.slane %v4072_v51, 4  ;;  %v6738_v24 = vld [vmem:[%s9095_s6 + $0x8] sm:$0xff]   ;;  %v6742_v51 = vld [vmem:[%s9095_s6 + $0x40] sm:$0xff]  }
 0x1d8   : > { %v8426_v46 = vsel %vm4381_vm6, %v6045_v23, %v4136_v31 }
 0x1d9   : > { %6400 = vmatpush3.bf16.msra.mxu0 %v6724_v14  ;;  %4870 = vmatmul.mubr.bf16.gmra.mxu1 %v8426_v46  ;;  %v3428_v14 = vsel %vm7693_vm4, %v6022_v57, %v3427_v44  ;;  %v6737_v57 = vld [vmem:[%s9095_s6 + $0x48] sm:$0xff]   ;;  %v4076_v44 = vsel %vm7693_vm4, %v4074_v20, %v4075_v42  ;;  %v3379_v20 = vld [vmem:[#allocation2 + $0x24] sm:$0xe] }
 0x1da   : > { %6401 = vmatprep.subr.bf16.mxu0 %v6728_v18  ;;  %v6775_v18 = vld [vmem:[#allocation2 + $0x30] sm:$0xf]  ;;  %v6062_v40 = vcombine.low %v3428_v14, %v3431_v9  ;;  %v4346_v10 = vpop.permute.xlu1 %4345  ;;  %v6777_v9 = vld [vmem:[#allocation2 + $0x28] sm:$0xf] }
 0x1db   : > { %v6094_v61 = vcombine.low %v6775_v18, %v8433_v55  ;;  %v4210_v53 = vpop.permute.xlu0 %4209  ;;  %v6743_v18 = vld [vmem:[%s9095_s6] sm:$0xff]  }
 0x1dc   : > { %v8448_v31 = vsel %vm4381_vm6, %v6062_v40, %v4210_v53 }
 0x1dd   : > { %6402 = vmatpush3.bf16.msra.mxu0 %v6729_v2  ;;  %v8445_v23 = vsel %vm4381_vm6, %v6094_v61, %v4346_v10  ;;  %v8450_v2 = vcombine.low %v4073_v3, %v4076_v44  ;;  %4877 = vmatprep.mubr.bf16.mxu1 %v8448_v31  ;;  %v6778_v61 = vld [vmem:[#allocation2 + $0x2c] sm:$0x1]  ;;  %v6779_v10 = vld [vmem:[#allocation2 + $0x18] sm:$0xf] }
 0x1de   : > { %6403 = vmatprep.subr.bf16.mxu0 %v6732_v32  ;;  %4974 = vmatprep.mubr.bf16.mxu0 %v8445_v23  ;;  %v3434_v32 = vrot.slane %v6777_v9, 5  ;;  %v4274_v42 = vpop.permute.xlu1 %4273  ;;  %v3437_v40 = vrot.slane %v6778_v61, 5  ;;  %v8483_v61 = vld [vmem:[#allocation2 + $0x40] sm:$0xf] }
 0x1df   : > { %v8462_v14 = vsel %vm4381_vm6, %v8237_v26, %v4274_v42  ;;  %v6046_v26 = vcombine.low %v6779_v10, %v8389_v45 }
 0x1e0   : > { %4975 = vmatmul.mubr.bf16.gmra.mxu0 %v8462_v14  ;;  %v3436_v3 = vrot.slane %v3434_v32, 4 }
 0x1e1   : > { %6404 = vmatpush3.bf16.msra.mxu0 %v6733_v6  ;;  %v8471_v6 = vld [vmem:[%s9095_s6 + $0x118] sm:$0xff]  }
 0x1e2   : > { %6405 = vmatprep.subr.bf16.mxu0 %v6737_v57  ;;  %v6023_v57 = vrot.slane %v3379_v20, 9  ;;  %v3438_v44 = vsel %vm7693_vm4, %v3436_v3, %v3437_v40 }
 0x1e4   : > { %v4138_v53 = vpop.permute.xlu0 %4137  ;;  %v3435_v42 = vsel %vm7693_vm4, %v6023_v57, %v3434_v32 }
 0x1e5   : > { %6406 = vmatpush3.bf16.msra.mxu0 %v6738_v24  ;;  %v8477_v24 = vsel %vm4381_vm6, %v6046_v26, %v4138_v53  ;;  %v6063_v20 = vcombine.low %v3435_v42, %v3438_v44  ;;  %v6782_v26 = vld [vmem:[#allocation2 + $0x24] sm:$0xf]  ;;  %v6783_v42 = vld [vmem:[#allocation2 + $0x48] sm:$0xf] }
 0x1e6   : > { %6407 = vmatprep.subr.bf16.mxu0 %v6742_v51  ;;  %4878 = vmatmul.mubr.bf16.gmra.mxu1 %v8477_v24  ;;  %v6780_v51 = vld [vmem:[#allocation2 + $0x3c] sm:$0xf]  ;;  %v6047_v53 = vcombine.low %v6782_v26, %v6777_v9 }
 0x1e7   : > { %v6095_v45 = vcombine.low %v6780_v51, %v8483_v61  ;;  %v4348_v10 = vpop.permute.xlu1 %4347 }
 0x1e8   : > { %v4212_v17 = vpop.permute.xlu0 %4211 }
 0x1e9   : > { %6408 = vmatpush3.bf16.msra.mxu0 %v6743_v18  ;;  %v8487_v3 = vsel %vm4381_vm6, %v6095_v45, %v4348_v10  ;;  %v8490_v18 = vsel %vm4381_vm6, %v6063_v20, %v4212_v17  ;;  %v8502_v17 = vld [vmem:[#allocation2 + $0x4c] sm:$0xf] }
 0x1ea   : > { %6587 = vmatprep.subr.bf16.mxu0 %v8471_v6  ;;  %4982 = vmatprep.mubr.bf16.mxu0 %v8487_v3  ;;  %v6096_v51 = vcombine.low %v6783_v42, %v8502_v17 }
 0x1eb   : > { %4885 = vmatprep.mubr.bf16.mxu1 %v8490_v18  ;;  %v4276_v32 = vpop.permute.xlu1 %4275 }
 0x1ec   : > { %v8496_v40 = vsel %vm4381_vm6, %v8265_v50, %v4276_v32 }
 0x1ed   : > { %4983 = vmatmul.mubr.bf16.gmra.mxu0 %v8496_v40 }
 0x1f0   : > { %v4140_v57 = vpop.permute.xlu0 %4139 }
 0x1f1   : > { %v8500_v44 = vsel %vm4381_vm6, %v6047_v53, %v4140_v57 }
 0x1f2   : > { %4886 = vmatmul.mubr.bf16.gmra.mxu1 %v8500_v44  ;;  %v4350_v45 = vpop.permute.xlu1 %4349 }
 0x1f3   : > { %v8507_v20 = vsel %vm4381_vm6, %v6096_v51, %v4350_v45 }
 0x1f4   : > { %v4214_v50 = vpop.permute.xlu0 %4213  ;;  %4990 = vmatprep.mubr.bf16.mxu0 %v8507_v20 }
 0x1f5   : > { %v8514_v9 = vsel %vm4381_vm6, %v6064_v13, %v4214_v50  ;;  %v6097_v13 = vcombine.low %v9212_v4, %v9211_v33  ;;  %v9215_v4 = vcombine.low %v8361_v22, %v8373_v7  ;;  %v4030_v22 = vrot.slane %v8363_v35, 5 }
 0x1f6   : > { %4893 = vmatprep.mubr.bf16.mxu1 %v8514_v9  ;;  %v4278_v10 = vpop.permute.xlu1 %4277  ;;  %v6036_v7 = vrot.slane %v3989_v54, 9  ;;  %v4051_v54 = vrot.slane %v8502_v17, 5  ;;  %v6749_v17 = vld [vmem:[%s9095_s6 + $0xb0] sm:$0xff]  }
 0x1f7   : > { %v8519_v32 = vsel %vm4381_vm6, %v8300_v47, %v4278_v10 }
 0x1f8   : > { %4991 = vmatmul.mubr.bf16.gmra.mxu0 %v8519_v32 }
 0x1fc   : > { %v4142_v26 = vpop.permute.xlu0 %4141 }
 0x1fd   : > { %v8526_v53 = vsel %vm4381_vm6, %v6048_v62, %v4142_v26 }
 0x1fe   : > { %4894 = vmatmul.mubr.bf16.gmra.mxu1 %v8526_v53 }
 0x1ff   : > { %v4352_v57 = vpop.permute.xlu1 %4351 }
 0x200   : > { %v4216_v42 = vpop.permute.xlu0 %4215  ;;  %v8532_v51 = vsel %vm4381_vm6, %v6097_v13, %v4352_v57  ;;  %v3991_v57 = vld [vmem:[#allocation2 + $0x30] sm:$0xe] }
 0x201   : > { %v8538_v47 = vsel %vm4381_vm6, %v6065_v36, %v4216_v42  ;;  %4998 = vmatprep.mubr.bf16.mxu0 %v8532_v51  ;;  %v9214_v36 = vld [vmem:[#allocation6_spill] sm:$0xff] }
 0x202   : > { %4901 = vmatprep.mubr.bf16.mxu1 %v8538_v47  ;;  %v6098_v45 = vcombine.low %v9214_v36, %v9213_v30  ;;  %v9216_v30 = vcombine.low %v9209_v39, %v9207_v15 }
 0x203   : > { %v4280_v52 = vpop.permute.xlu1 %4279 }
 0x204   : > { %v8544_v12 = vsel %vm4381_vm6, %v8357_v41, %v4280_v52 }
 0x205   : > { %4999 = vmatmul.mubr.bf16.gmra.mxu0 %v8544_v12 }
 0x209   : > { %v4144_v62 = vpop.permute.xlu0 %4143 }
 0x20a   : > { %v8551_v63 = vsel %vm4381_vm6, %v6049_v37, %v4144_v62  ;;  %v4032_v62 = vrot.slane %v4030_v22, 4 }
 0x20b   : > { %4902 = vmatmul.mubr.bf16.gmra.mxu1 %v8551_v63 }
 0x20c   : > { %v4354_v50 = vpop.permute.xlu1 %4353 }
 0x20d   : > { %v4218_v10 = vpop.permute.xlu0 %4217  ;;  %v8557_v26 = vsel %vm4381_vm6, %v6098_v45, %v4354_v50  ;;  %v6038_v45 = vrot.slane %v3991_v57, 9  ;;  %v6755_v50 = vld [vmem:[%s9095_s6 + $0x110] sm:$0xff]  }
 0x20e   : > { %5006 = vmatprep.mubr.bf16.mxu0 %v8557_v26  ;;  %v8564_v27 = vsel %vm4381_vm6, %v6066_v28, %v4218_v10  ;;  %v4023_v28 = vrot.slane %v8221_v49, 5  ;;  %v6786_v10 = vld [vmem:[#allocation2 + $0x2c] sm:$0x1] }
 0x20f   : > { %4909 = vmatprep.mubr.bf16.mxu1 %v8564_v27 }
 0x210   : > { %v4282_v48 = vpop.permute.xlu1 %4281  ;;  %v4024_v52 = vsel %vm7693_vm4, %v6036_v7, %v4023_v28 }
 0x211   : > { %v8569_v37 = vsel %vm4381_vm6, %v8395_v43, %v4282_v48  ;;  %v4033_v48 = vrot.slane %v6786_v10, 5 }
 0x212   : > { %5007 = vmatmul.mubr.bf16.gmra.mxu0 %v8569_v37 }
 0x213   : > { %v4034_v15 = vsel %vm7693_vm4, %v4032_v62, %v4033_v48  ;;  %v6750_v62 = vld [vmem:[%s9095_s6 + $0xe8] sm:$0xff]  }
 0x215   : > { %v4146_v41 = vpop.permute.xlu0 %4145 }
 0x216   : > { %v8576_v33 = vsel %vm4381_vm6, %v6050_v0, %v4146_v41  ;;  %v4025_v0 = vrot.slane %v4023_v28, 4  ;;  %v4044_v41 = vrot.slane %v8483_v61, 5 }
 0x217   : > { %4910 = vmatmul.mubr.bf16.gmra.mxu1 %v8576_v33 }
 0x219   : > { %v4356_v21 = vpop.permute.xlu1 %4355  ;;  %v4220_v59 = vpop.permute.xlu0 %4219 }
 0x21a   : > { %v8584_v43 = vsel %vm4381_vm6, %v6099_v1, %v4356_v21  ;;  %v8590_v19 = vsel %vm4381_vm6, %v9215_v4, %v4220_v59  ;;  %v4026_v1 = vrot.slane %v6785_v34, 5  ;;  %v6787_v21 = vld [vmem:[#allocation2 + $0x38] sm:$0x1]  ;;  %v6788_v34 = vld [vmem:[#allocation2 + $0x44] sm:$0x1] }
 0x21b   : > { %5014 = vmatprep.mubr.bf16.mxu0 %v8584_v43  ;;  %4917 = vmatprep.mubr.bf16.mxu1 %v8590_v19  ;;  %v4040_v59 = vrot.slane %v6787_v21, 5  ;;  %v6751_v21 = vld [vmem:[%s9095_s6 + $0xa8] sm:$0xff]  }
 0x21c   : > { %v4027_v13 = vsel %vm7693_vm4, %v4025_v0, %v4026_v1  ;;  %v6748_v0 = vld [vmem:[%s9095_s6 + $0xf0] sm:$0xff]   ;;  %v4047_v1 = vrot.slane %v6788_v34, 5 }
 0x21d   : > { %v4284_v8 = vpop.permute.xlu1 %4283  ;;  %v8612_v35 = vcombine.low %v4024_v52, %v4027_v13  ;;  %v3992_v13 = vld [vmem:[#allocation2 + $0x3c] sm:$0xe]  ;;  %v6789_v52 = vld [vmem:[#allocation2 + $0x50] sm:$0x1] }
 0x21e   : > { %v8596_v49 = vsel %vm4381_vm6, %v8413_v58, %v4284_v8  ;;  %v4037_v58 = vrot.slane %v8433_v55, 5 }
 0x21f   : > { %5015 = vmatmul.mubr.bf16.gmra.mxu0 %v8596_v49 }
 0x220   : > { %5447 = vmatprep.mubr.bf16.mxu0 %v8163_v56  ;;  %v3990_v56 = vld [vmem:[#allocation2 + $0x24] sm:$0xe]  ;;  %v4039_v55 = vrot.slane %v4037_v58, 4  ;;  %v4038_v28 = vsel %vm7693_vm4, %v6038_v45, %v4037_v58  ;;  %v4054_v58 = vrot.slane %v6789_v52, 5  ;;  %v6837_v52 = vmov 0  }
 0x221   : > { %v6037_v39 = vrot.slane %v3990_v56, 9  ;;  %v6039_v56 = vrot.slane %v3992_v13, 9  ;;  %v5714_v13 = vld [vmem:[%s9099_s10] sm:$0xf]  ;;  %6666 = vset.pattern.permute.xlu1 %v6837_v52  ;;  %6665 = vset.pattern.permute.xlu0 %v6837_v52 }
 0x222   : > { %v4041_v61 = vsel %vm7693_vm4, %v4039_v55, %v4040_v59  ;;  %v3994_v55 = vld [vmem:[#allocation2 + $0x54] sm:$0xe]  ;;  %v3995_v59 = vld [vmem:[#allocation2 + $0x60] sm:$0xe]  ;;  %5717 = vperm.xlu1 %6666, %v5714_v13  }
 0x223   : > { %v4148_v42 = vpop.permute.xlu0 %4147  ;;  %v4031_v4 = vsel %vm7693_vm4, %v6037_v39, %v4030_v22  ;;  %v8644_v7 = vcombine.low %v4038_v28, %v4041_v61  ;;  %v4046_v22 = vrot.slane %v4044_v41, 4  ;;  %v6042_v34 = vrot.slane %v3995_v59, 9 }
 0x224   : > { %v8610_v36 = vsel %vm4381_vm6, %v9216_v30, %v4148_v42  ;;  %v8636_v8 = vcombine.low %v4031_v4, %v4034_v15  ;;  %v6764_v42 = vld [vmem:[%s9095_s6 + $0x100] sm:$0xff]   ;;  %v4053_v30 = vrot.slane %v4051_v54, 4  ;;  %v6792_v4 = vld [vmem:[#allocation2 + $0x5c] sm:$0x1] }
 0x225   : > { %4918 = vmatmul.mubr.bf16.gmra.mxu1 %v8610_v36  ;;  %v4048_v45 = vsel %vm7693_vm4, %v4046_v22, %v4047_v1  ;;  %v6791_v15 = vld [vmem:[#allocation2 + $0x64] sm:$0xf] }
 0x226   : > { %6571 = vmatprep.mubr.msk.bf16.mxu1 %vm4381_vm6, %v8612_v35  ;;  %v4065_v39 = vrot.slane %v6791_v15, 5  ;;  %v4055_v28 = vsel %vm7693_vm4, %v4053_v30, %v4054_v58  ;;  %v6753_v22 = vld [vmem:[%s9095_s6 + $0xa0] sm:$0xff]  }
 0x227   : > { %5448 = vmatmul.mubr.bf16.vlgmr.msra.gmra.mxu0 %v8210_v38  ;;  %v6763_v38 = vld [vmem:[%s9095_s6 + $0x108] sm:$0xff]  }
 0x228   : > { %6588 = vmatpush3.bf16.msra.mxu0 %v8471_v6  ;;  %5455 = vmatprep.mubr.bf16.mxu0 %v8352_v5  ;;  %v6747_v6 = vld [vmem:[%s9095_s6 + $0xb8] sm:$0xff]   ;;  %v3993_v5 = vld [vmem:[#allocation2 + $0x48] sm:$0xe]  ;;  %v4067_v1 = vrot.slane %v4065_v39, 4  ;;  %v4066_v58 = vsel %vm7693_vm4, %v6042_v34, %v4065_v39 }
 0x229   : > { %6589 = vmatprep.subr.bf16.mxu0 %v6755_v50  ;;  %v6040_v57 = vrot.slane %v3993_v5, 9 }
 0x22b   : > { %v4052_v48 = vsel %vm7693_vm4, %v6040_v57, %v4051_v54  ;;  %v6754_v57 = vld [vmem:[%s9095_s6 + $0xd8] sm:$0xff]  }
 0x22c   : > { %6590 = vmatpush3.bf16.msra.mxu0 %v6755_v50  ;;  %v6790_v50 = vld [vmem:[#allocation2 + $0x58] sm:$0xf]  ;;  %v8677_v5 = vcombine.low %v4052_v48, %v4055_v28 }
 0x22d   : > { %6572 = vmatmul.mubr.msk.bf16.vlgmr.msra.gmra.mxu1 %vm4381_vm6, %v8636_v8  ;;  %6591 = vmatprep.subr.bf16.mxu0 %v6763_v38  ;;  %v4058_v10 = vrot.slane %v6790_v50, 5  ;;  %v6760_v50 = vld [vmem:[%s9095_s6 + $0x88] sm:$0xff]  }
 0x22e   : > { %6575 = vmatprep.mubr.msk.bf16.mxu1 %vm4381_vm6, %v8644_v7  ;;  %6458 = vmatpush3.bf16.msra.mxu1 %v6747_v6  ;;  %v4061_v6 = vrot.slane %v6792_v4, 5 }
 0x22f   : > { %6459 = vmatprep.subr.bf16.mxu1 %v6748_v0  ;;  %5456 = vmatmul.mubr.bf16.gmra.mxu0 %v8426_v46  ;;  %v4045_v46 = vsel %vm7693_vm4, %v6039_v56, %v4044_v41  ;;  %v6041_v41 = vrot.slane %v3994_v55, 9  ;;  %v4060_v61 = vrot.slane %v4058_v10, 4  ;;  %v6793_v0 = vld [vmem:[#allocation2 + $0x68] sm:$0x1] }
 0x230   : > { %5463 = vmatprep.mubr.bf16.mxu0 %v8448_v31  ;;  %6592 = vmatpush3.bf16.msra.mxu0 %v6763_v38  ;;  %v8670_v31 = vcombine.low %v4045_v46, %v4048_v45  ;;  %v6752_v38 = vld [vmem:[%s9095_s6 + $0xe0] sm:$0xff]   ;;  %v4068_v54 = vrot.slane %v6793_v0, 5  ;;  %v6759_v45 = vld [vmem:[%s9095_s6 + $0xc8] sm:$0xff]  }
 0x231   : > { %6593 = vmatprep.subr.bf16.mxu0 %v6764_v42 }
 0x232   : > { %6460 = vmatpush3.bf16.msra.mxu1 %v6749_v17  ;;  %v4062_v17 = vsel %vm7693_vm4, %v4060_v61, %v4061_v6 }
 0x233   : > { %6461 = vmatprep.subr.bf16.mxu1 %v6750_v62  ;;  %v4069_v62 = vsel %vm7693_vm4, %v4067_v1, %v4068_v54 }
 0x234   : > { %6594 = vmatpush3.bf16.msra.mxu0 %v6764_v42  ;;  %v4059_v42 = vsel %vm7693_vm4, %v6041_v41, %v4058_v10  ;;  %v6114_v56 = vcombine.low %v4066_v58, %v4069_v62  ;;  %v6761_v10 = vld [vmem:[%s9095_s6 + $0xc0] sm:$0xff]  }
 0x235   : > { %6576 = vmatmul.mubr.msk.bf16.gmra.mxu1 %vm4381_vm6, %v8670_v31  ;;  %v6113_v30 = vcombine.low %v4059_v42, %v4062_v17 }
 0x236   : > { %6579 = vmatprep.mubr.msk.bf16.mxu1 %vm4381_vm6, %v8677_v5  ;;  %6462 = vmatpush3.bf16.msra.mxu1 %v6751_v21 }
 0x237   : > { %6463 = vmatprep.subr.bf16.mxu1 %v6752_v38  ;;  %5464 = vmatmul.mubr.bf16.gmra.mxu0 %v8477_v24  ;;  %v6756_v24 = vld [vmem:[%s9095_s6 + $0x98] sm:$0xff]  }
 0x238   : > { %5471 = vmatprep.mubr.bf16.mxu0 %v8490_v18  ;;  %v6757_v18 = vld [vmem:[%s9095_s6 + $0xd0] sm:$0xff]  }
 0x23a   : > { %6464 = vmatpush3.bf16.msra.mxu1 %v6753_v22 }
 0x23b   : > { %6465 = vmatprep.subr.bf16.mxu1 %v6754_v57 }
 0x23d   : > { %6580 = vmatmul.mubr.msk.bf16.gmra.mxu1 %vm4381_vm6, %v6113_v30 }
 0x23e   : > { %6583 = vmatprep.mubr.msk.bf16.mxu1 %vm4381_vm6, %v6114_v56  ;;  %6466 = vmatpush3.bf16.msra.mxu1 %v6756_v24 }
 0x23f   : > { %6467 = vmatprep.subr.bf16.mxu1 %v6757_v18  ;;  %5472 = vmatmul.mubr.bf16.gmra.mxu0 %v8500_v44  ;;  %v6762_v44 = vld [vmem:[%s9095_s6 + $0x80] sm:$0xff]  }
 0x240   : > { %5479 = vmatprep.mubr.bf16.mxu0 %v8514_v9 }
 0x242   : > { %6468 = vmatpush3.bf16.msra.mxu1 %v6758_v16 }
 0x243   : > { %6469 = vmatprep.subr.bf16.mxu1 %v6759_v45 }
 0x245   : > { %6584 = vmatmul.mubr.msk.bf16.gmra.mxu1 %vm4381_vm6, %v8450_v2 }
 0x246   : > { %6470 = vmatpush3.bf16.msra.mxu1 %v6760_v50  ;;  %5544 = vmatprep.mubr.bf16.mxu1 %v8309_v25  ;;  %v5707_v25 = vld [vmem:[%s9098_s9] sm:$0xf] }
 0x247   : > { %6471 = vmatprep.subr.bf16.mxu1 %v6761_v10  ;;  %5480 = vmatmul.mubr.bf16.gmra.mxu0 %v8526_v53 }
 0x248   : > { %5487 = vmatprep.mubr.bf16.mxu0 %v8538_v47  ;;  %5710 = vperm.xlu0 %6665, %v5707_v25  }
 0x24a   : > { %6472 = vmatpush3.bf16.msra.mxu1 %v6762_v44 }
 0x24d   : > { %5545 = vmatmul.mubr.bf16.vlgmr.msra.gmra.mxu1 %v8252_v29 }
 0x24e   : > { %5552 = vmatprep.mubr.bf16.mxu1 %v8376_v11 }
 0x24f   : > { %5488 = vmatmul.mubr.bf16.gmra.mxu0 %v8551_v63 }
 0x250   : > { %5495 = vmatprep.mubr.bf16.mxu0 %v8564_v27 }
 0x255   : > { %5553 = vmatmul.mubr.bf16.gmra.mxu1 %v8402_v60 }
 0x256   : > { %5560 = vmatprep.mubr.bf16.mxu1 %v8445_v23 }
 0x257   : > { %5496 = vmatmul.mubr.bf16.gmra.mxu0 %v8576_v33 }
 0x258   : > { %5503 = vmatprep.mubr.bf16.mxu0 %v8590_v19 }
 0x25d   : > { %5561 = vmatmul.mubr.bf16.gmra.mxu1 %v8462_v14 }
 0x25e   : > { %5568 = vmatprep.mubr.bf16.mxu1 %v8487_v3 }
 0x25f   : > { %5504 = vmatmul.mubr.bf16.gmra.mxu0 %v8610_v36 }
 0x260   : > { %6595 = vmatprep.mubr.msk.bf16.mxu0 %vm4381_vm6, %v8612_v35 }
 0x265   : > { %5569 = vmatmul.mubr.bf16.gmra.mxu1 %v8496_v40 }
 0x266   : > { %5576 = vmatprep.mubr.bf16.mxu1 %v8507_v20 }
 0x267   : > { %6596 = vmatmul.mubr.msk.bf16.vlgmr.msra.gmra.mxu0 %vm4381_vm6, %v8636_v8 }
 0x268   : > { %6599 = vmatprep.mubr.msk.bf16.mxu0 %vm4381_vm6, %v8644_v7 }
 0x26d   : > { %5577 = vmatmul.mubr.bf16.gmra.mxu1 %v8519_v32 }
 0x26e   : > { %5584 = vmatprep.mubr.bf16.mxu1 %v8532_v51 }
 0x26f   : > { %6600 = vmatmul.mubr.msk.bf16.gmra.mxu0 %vm4381_vm6, %v8670_v31 }
 0x270   : > { %6603 = vmatprep.mubr.msk.bf16.mxu0 %vm4381_vm6, %v8677_v5 }
 0x275   : > { %5585 = vmatmul.mubr.bf16.gmra.mxu1 %v8544_v12 }
 0x276   : > { %5592 = vmatprep.mubr.bf16.mxu1 %v8557_v26 }
 0x277   : > { %6604 = vmatmul.mubr.msk.bf16.gmra.mxu0 %vm4381_vm6, %v6113_v30 }
 0x278   : > { %6607 = vmatprep.mubr.msk.bf16.mxu0 %vm4381_vm6, %v6114_v56 }
 0x27d   : > { %5593 = vmatmul.mubr.bf16.gmra.mxu1 %v8569_v37 }
 0x27e   : > { %5600 = vmatprep.mubr.bf16.mxu1 %v8584_v43 }
 0x27f   : > { %6608 = vmatmul.mubr.msk.bf16.gmra.mxu0 %vm4381_vm6, %v8450_v2  ;;  %v8769_v11 = vpop.f32.mrf.mxu1 }
 0x281   : > { %v8773_v3 = vpop.f32.mrf.mxu1 }
 0x283   : > { %v8777_v2 = vpop.f32.mrf.mxu1 }
 0x285   : > { %5601 = vmatmul.mubr.bf16.gmra.mxu1 %v8596_v49  ;;  %v8781_v51 = vpop.f32.mrf.mxu1 }
 0x28c   : > { %v6333_v29 = vpop.f32.mrf.mxu0 }
 0x28e   : > { %v6334_v60 = vpop.f32.mrf.mxu0 }
 0x28f   : > { %v8771_v23 = vadd.f32 %v6334_v60, %v6333_v29 }
 0x290   : > { %v6336_v14 = vpop.f32.mrf.mxu0 }
 0x292   : > { %v6337_v40 = vpop.f32.mrf.mxu0 }
 0x293   : > { %v8775_v20 = vadd.f32 %v6337_v40, %v6336_v14 }
 0x296   : > { %v6339_v9 = vpop.f32.mrf.mxu0 }
 0x298   : > { %v6340_v32 = vpop.f32.mrf.mxu0 }
 0x299   : > { %v8779_v53 = vadd.f32 %v6340_v32, %v6339_v9  ;;  %v8783_v12 = vpop.f32.mrf.mxu1 }
 0x29a   : > { %v6342_v47 = vpop.f32.mrf.mxu0 }
 0x29b   : > { %v8787_v27 = vpop.f32.mrf.mxu1 }
 0x29c   : > { %v6343_v63 = vpop.f32.mrf.mxu0 }
 0x29d   : > { %v8785_v26 = vadd.f32 %v6343_v63, %v6342_v47  ;;  %v8789_v37 = vpop.f32.mrf.mxu1 }
 0x29f   : > { %v8791_v43 = vpop.f32.mrf.mxu1 }
 0x2a0   : > { %v6345_v33 = vpop.f32.mrf.mxu0 }
 0x2a2   : > { %v6346_v19 = vpop.f32.mrf.mxu0 }
 0x2a3   : > { %v8793_v49 = vadd.f32 %v6346_v19, %v6345_v33 }
 0x2a4   : > { %v6348_v36 = vpop.f32.mrf.mxu0 }
 0x2a6   : > { %v8795_v35 = vpop.f32.mrf.mxu1  ;;  %v6349_v8 = vpop.f32.mrf.mxu0 }
 0x2a7   : > { %v8797_v7 = vadd.f32 %v6349_v8, %v6348_v36 }
 0x2a8   : > { %v8799_v48 = vpop.f32.mrf.mxu1 }
 0x2aa   : > { %v8801_v55 = vpop.f32.mrf.mxu1 }
 0x2ac   : > { %v8803_v39 = vpop.f32.mrf.mxu1 }
 0x2ad   : > { %v6351_v15 = vpop.f32.mrf.mxu0 }
 0x2af   : > { %v6352_v46 = vpop.f32.mrf.mxu0 }
 0x2b0   : > { %v8805_v21 = vadd.f32 %v6352_v46, %v6351_v15 }
 0x2b1   : > { %v6354_v59 = vpop.f32.mrf.mxu0 }
 0x2b2   : > { %v8807_v31 = vpop.f32.mrf.mxu1 }
 0x2b3   : > { %v6355_v28 = vpop.f32.mrf.mxu0 }
 0x2b4   : > { %v8809_v38 = vadd.f32 %v6355_v28, %v6354_v59  ;;  %v8811_v4 = vpop.f32.mrf.mxu1  ;;  %v6271_v28 = vadd.f32 %v8773_v3, %v8769_v11  ;;  %v6277_v3 = vadd.f32 %v8787_v27, %v8783_v12 }
 0x2b6   : > { %v8813_v6 = vpop.f32.mrf.mxu1 }
 0x2b8   : > { %v6357_v5 = vpop.f32.mrf.mxu0  ;;  %v8815_v41 = vpop.f32.mrf.mxu1 }
 0x2ba   : > { %v6358_v61 = vpop.f32.mrf.mxu0 }
 0x2bb   : > { %v8817_v0 = vadd.f32 %v6358_v61, %v6357_v5  ;;  %v8868_v5 = vld [vmem:[%s9096_s7] ss:$0 sm:$0xff] }
 0x2bc   : > { %v6360_v54 = vpop.f32.mrf.mxu0 }
 0x2be   : > { %v8819_v34 = vpop.f32.mrf.mxu1  ;;  %v6361_v1 = vpop.f32.mrf.mxu0 }
 0x2bf   : > { %v8821_v22 = vadd.f32 %v6361_v1, %v6360_v54 }
 0x2c0   : > { %v8823_v13 = vpop.f32.mrf.mxu1 }
 0x2c2   : > { %v8825_v57 = vpop.f32.mrf.mxu1 }
 0x2c4   : > { %v8827_v17 = vpop.f32.mrf.mxu1 }
 0x2c5   : > { %v6363_v42 = vpop.f32.mrf.mxu0 }
 0x2c7   : > { %v6364_v52 = vpop.f32.mrf.mxu0 }
 0x2c8   : > { %v8829_v58 = vadd.f32 %v6364_v52, %v6363_v42  ;;  %v4864_v52 = vadd.f32 %v6271_v28, %v8868_v5 }
 0x2c9   : > { %v6366_v62 = vpop.f32.mrf.mxu0 }
 0x2cb   : > { %v8831_v24 = vpop.f32.mrf.mxu1  ;;  %v6367_v30 = vpop.f32.mrf.mxu0 }
 0x2cc   : > { %v8833_v18 = vadd.f32 %v6367_v30, %v6366_v62  ;;  %v6274_v62 = vadd.f32 %v8781_v51, %v8777_v2  ;;  %v6280_v2 = vadd.f32 %v8791_v43, %v8789_v37 }
 0x2cd   : > { %v8835_v56 = vpop.f32.mrf.mxu1 }
 0x2cf   : > { %v8837_v16 = vpop.f32.mrf.mxu1 }
 0x2d1   : > { %v8839_v50 = vpop.f32.mrf.mxu1 }
 0x2d2   : > { %v6369_v45 = vpop.f32.mrf.mxu0 }
 0x2d4   : > { %v6370_v10 = vpop.f32.mrf.mxu0 }
 0x2d5   : > { %v8841_v44 = vadd.f32 %v6370_v10, %v6369_v45  ;;  %v4961_v45 = vadd.f32 %v8771_v23, %v4864_v52 }
 0x2d6   : > { %v6372_v29 = vpop.f32.mrf.mxu0 }
 0x2d7   : > { %v8843_v25 = vpop.f32.mrf.mxu1 }
 0x2d8   : > { %v6373_v60 = vpop.f32.mrf.mxu0 }
 0x2d9   : > { %v8845_v14 = vadd.f32 %v6373_v60, %v6372_v29  ;;  %v8847_v40 = vpop.f32.mrf.mxu1  ;;  %v4867_v60 = vadd.f32 %v6274_v62, %v8868_v5  ;;  %v4875_v62 = vadd.f32 %v6280_v2, %v8868_v5 }
 0x2db   : > { %v8849_v9 = vpop.f32.mrf.mxu1  ;;  %v4964_v51 = vadd.f32 %v8775_v20, %v4867_v60  ;;  %v4972_v2 = vadd.f32 %v8785_v26, %v4875_v62 }
 0x2dd   : > { %v8851_v47 = vpop.f32.mrf.mxu1 }
 0x2df   : > { %v6375_v32 = vpop.f32.mrf.mxu0 }
 0x2e1   : > { %v6376_v63 = vpop.f32.mrf.mxu0 }
 0x2e2   : > { %v8853_v33 = vadd.f32 %v6376_v63, %v6375_v32 }
 0x2e3   : > { %v6378_v19 = vpop.f32.mrf.mxu0 }
 0x2e5   : > { %v8855_v36 = vpop.f32.mrf.mxu1  ;;  %v6379_v8 = vpop.f32.mrf.mxu0 }
 0x2e6   : > { %v8857_v15 = vadd.f32 %v6379_v8, %v6378_v19  ;;  %v4872_v8 = vadd.f32 %v6277_v3, %v8868_v5 }
 0x2e7   : > { %v8859_v46 = vpop.f32.mrf.mxu1  ;;  %v8861_v59 = vpop.f32.mrf.mxu0 }
 0x2e8   : > { %v4969_v3 = vadd.f32 %v8779_v53, %v4872_v8 }
 0x2e9   : > { %v8870_v61 = vpop.f32.mrf.mxu1  ;;  %v8872_v54 = vpop.f32.mrf.mxu0 }
 0x2eb   : > { %v8874_v1 = vpop.f32.mrf.mxu1  ;;  %v8876_v42 = vpop.f32.mrf.mxu0 }
 0x2ed   : > { %v6573_v30 = vpop.f32.mrf.mxu1  ;;  %v8881_v11 = vpop.f32.mrf.mxu0 }
 0x2ee   : > { %v5066_v43 = vadd.f32 %v6573_v30, %v4969_v3 }
 0x2ef   : > { %v5057_v10 = vpop.f32.mrf.mxu1  ;;  %v8886_v29 = vpop.f32.mrf.mxu0 }
 0x2f0   : > { %v5058_v32 = vadd.f32 %v5057_v10, %v4961_v45  ;;  %v6283_v45 = vadd.f32 %v8799_v48, %v8795_v35 }
 0x2f1   : > { %v6574_v63 = vpop.f32.mrf.mxu1  ;;  %v8889_v19 = vpop.f32.mrf.mxu0 }
 0x2f2   : > { %5721 = vxpose.xlu1.b32.start [1/16] (narrow) %v5058_v32, 8  ;;  %v4880_v32 = vadd.f32 %v6283_v45, %v8868_v5  ;;  %v5069_v53 = vadd.f32 %v6574_v63, %v4972_v2 }
 0x2f3   : > { %v5060_v12 = vpop.f32.mrf.mxu1  ;;  %v8895_v27 = vpop.f32.mrf.mxu0 }
 0x2f4   : > { %v5061_v23 = vadd.f32 %v5060_v12, %v4964_v51  ;;  %v6286_v51 = vadd.f32 %v8803_v39, %v8801_v55  ;;  %v4977_v45 = vadd.f32 %v8793_v49, %v4880_v32 }
 0x2f5   : > { %v6577_v28 = vpop.f32.mrf.mxu1  ;;  %v8897_v52 = vpop.f32.mrf.mxu0 }
 0x2f6   : > { %5722 = vxpose.xlu1.b32.cont [2/16] (narrow) %v5061_v23, 8  ;;  %v4883_v30 = vadd.f32 %v6286_v51, %v8868_v5  ;;  %v6289_v23 = vadd.f32 %v8811_v4, %v8807_v31 }
 0x2f7   : > { %v5073_v10 = vpop.f32.mrf.mxu1  ;;  %v8903_v37 = vpop.f32.mrf.mxu0 }
 0x2f8   : > { %v5074_v26 = vadd.f32 %v5073_v10, %v4977_v45  ;;  %v4888_v63 = vadd.f32 %v6289_v23, %v8868_v5  ;;  %v4980_v51 = vadd.f32 %v8797_v7, %v4883_v30 }
 0x2f9   : > { %v6578_v20 = vpop.f32.mrf.mxu1  ;;  %v8905_v60 = vpop.f32.mrf.mxu0 }
 0x2fa   : > { %5723 = vxpose.xlu1.b32.cont [3/16] (narrow) %v5066_v43, 8  ;;  %v6292_v43 = vadd.f32 %v8815_v41, %v8813_v6  ;;  %v4985_v23 = vadd.f32 %v8805_v21, %v4888_v63 }
 0x2fb   : > { %v5076_v12 = vpop.f32.mrf.mxu1  ;;  %v8911_v35 = vpop.f32.mrf.mxu0 }
 0x2fc   : > { %v5077_v49 = vadd.f32 %v5076_v12, %v4980_v51  ;;  %v4891_v10 = vadd.f32 %v6292_v43, %v8868_v5  ;;  %v5082_v7 = vadd.f32 %v6577_v28, %v4985_v23 }
 0x2fd   : > { %v6581_v48 = vpop.f32.mrf.mxu1  ;;  %v8913_v8 = vpop.f32.mrf.mxu0 }
 0x2fe   : > { %5724 = vxpose.xlu1.b32.cont [4/16] (narrow) %v5069_v53, 8  ;;  %v6295_v53 = vadd.f32 %v8823_v13, %v8819_v34  ;;  %v4988_v43 = vadd.f32 %v8809_v38, %v4891_v10 }
 0x2ff   : > { %v5089_v3 = vpop.f32.mrf.mxu1  ;;  %v8919_v55 = vpop.f32.mrf.mxu0 }
 0x300   : > { %v4896_v12 = vadd.f32 %v6295_v53, %v8868_v5  ;;  %v5085_v21 = vadd.f32 %v6578_v20, %v4988_v43 }
 0x301   : > { %v6582_v39 = vpop.f32.mrf.mxu1  ;;  %v8921_v62 = vpop.f32.mrf.mxu0 }
 0x302   : > { %5725 = vxpose.xlu1.b32.cont [5/16] (narrow) %v5074_v26, 8  ;;  %v6298_v26 = vadd.f32 %v8827_v17, %v8825_v57  ;;  %v4993_v53 = vadd.f32 %v8817_v0, %v4896_v12 }
 0x303   : > { %v5092_v2 = vpop.f32.mrf.mxu1  ;;  %v8927_v31 = vpop.f32.mrf.mxu0 }
 0x304   : > { %v4899_v28 = vadd.f32 %v6298_v26, %v8868_v5  ;;  %v5090_v38 = vadd.f32 %v5089_v3, %v4993_v53 }
 0x305   : > { %v8929_v4 = vpop.f32.mrf.mxu1  ;;  %v8931_v32 = vpop.f32.mrf.mxu0 }
 0x306   : > { %5726 = vxpose.xlu1.b32.cont [6/16] (narrow) %v5077_v49, 8  ;;  %v6301_v49 = vadd.f32 %v8835_v56, %v8831_v24  ;;  %v4996_v26 = vadd.f32 %v8821_v22, %v4899_v28 }
 0x307   : > { %v5105_v6 = vpop.f32.mrf.mxu1  ;;  %v8937_v41 = vpop.f32.mrf.mxu0 }
 0x308   : > { %v4904_v20 = vadd.f32 %v6301_v49, %v8868_v5  ;;  %v5093_v0 = vadd.f32 %v5092_v2, %v4996_v26 }
 0x309   : > { %v8939_v30 = vpop.f32.mrf.mxu1  ;;  %v8941_v45 = vpop.f32.mrf.mxu0 }
 0x30a   : > { %5727 = vxpose.xlu1.b32.cont [7/16] (narrow) %v5082_v7, 8  ;;  %v6304_v7 = vadd.f32 %v8839_v50, %v8837_v16  ;;  %v5001_v49 = vadd.f32 %v8829_v58, %v4904_v20 }
 0x30b   : > { %v5108_v34 = vpop.f32.mrf.mxu1  ;;  %v8947_v13 = vpop.f32.mrf.mxu0 }
 0x30c   : > { %v4907_v3 = vadd.f32 %v6304_v7, %v8868_v5  ;;  %v5098_v22 = vadd.f32 %v6581_v48, %v5001_v49 }
 0x30d   : > { %v6473_v63 = vpop.f32.mrf.mxu1  ;;  %v8949_v51 = vpop.f32.mrf.mxu0 }
 0x30e   : > { %5728 = vxpose.xlu1.b32.cont [8/16] (narrow) %v5085_v21, 8  ;;  %v6307_v21 = vadd.f32 %v8847_v40, %v8843_v25  ;;  %v5004_v7 = vadd.f32 %v8833_v18, %v4907_v3 }
 0x30f   : > { %v6474_v23 = vpop.f32.mrf.mxu1  ;;  %v8955_v57 = vpop.f32.mrf.mxu0 }
 0x310   : > { %v4912_v2 = vadd.f32 %v6307_v21, %v8868_v5  ;;  %v5101_v58 = vadd.f32 %v6582_v39, %v5004_v7  ;;  %v6475_v7 = vadd.f32 %v6474_v23, %v6473_v63 }
 0x311   : > { %v6476_v17 = vpop.f32.mrf.mxu1  ;;  %v8957_v10 = vpop.f32.mrf.mxu0 }
 0x312   : > { %5729 = vxpose.xlu1.b32.cont [9/16] (narrow) %v5090_v38, 8  ;;  %v6310_v38 = vadd.f32 %v8851_v47, %v8849_v9  ;;  %v5009_v21 = vadd.f32 %v8841_v44, %v4912_v2  ;;  %v9006_v44 = vld [vmem:[%s9097_s8] ss:$0 sm:$0xff] }
 0x313   : > { %v6477_v43 = vpop.f32.mrf.mxu1  ;;  %v8963_v24 = vpop.f32.mrf.mxu0 }
 0x314   : > { %v4915_v48 = vadd.f32 %v6310_v38, %v8868_v5  ;;  %v5106_v18 = vadd.f32 %v5105_v6, %v5009_v21  ;;  %v6411_v38 = vadd.f32 %v8872_v54, %v8861_v59 }
 0x315   : > { %v6479_v56 = vpop.f32.mrf.mxu1  ;;  %v8965_v12 = vpop.f32.mrf.mxu0 }
 0x316   : > { %5730 = vxpose.xlu1.b32.cont [10/16] (narrow) %v5093_v0, 8  ;;  %v6313_v0 = vadd.f32 %v8859_v46, %v8855_v36  ;;  %v5012_v36 = vadd.f32 %v8845_v14, %v4915_v48  ;;  %v5450_v59 = vadd.f32 %v6411_v38, %v9006_v44  ;;  %v6414_v14 = vadd.f32 %v8881_v11, %v8876_v42 }
 0x317   : > { %v6480_v53 = vpop.f32.mrf.mxu1  ;;  %v8971_v16 = vpop.f32.mrf.mxu0 }
 0x318   : > { %v4920_v39 = vadd.f32 %v6313_v0, %v8868_v5  ;;  %v5109_v2 = vadd.f32 %v5108_v34, %v5012_v36  ;;  %v5547_v34 = vadd.f32 %v6475_v7, %v5450_v59  ;;  %v5453_v36 = vadd.f32 %v6414_v14, %v9006_v44 }
 0x319   : > { %v8973_v50 = vpop.f32.mrf.mxu1  ;;  %v8975_v28 = vpop.f32.mrf.mxu0  ;;  %v6481_v38 = vadd.f32 %v6480_v53, %v6479_v56  ;;  %v6420_v7 = vadd.f32 %v8897_v52, %v8895_v27  ;;  %v6423_v56 = vadd.f32 %v8905_v60, %v8903_v37 }
 0x31a   : > { %5731 = vxpose.xlu1.b32.cont [11/16] (narrow) %v5098_v22, 8  ;;  %v6316_v22 = vadd.f32 %v8874_v1, %v8870_v61  ;;  %v5017_v54 = vadd.f32 %v8853_v33, %v4920_v39 }
 0x31b   : > { %v6483_v25 = vpop.f32.mrf.mxu1  ;;  %v8981_v40 = vpop.f32.mrf.mxu0 }
 0x31c   : > { %v4923_v61 = vadd.f32 %v6316_v22, %v8868_v5  ;;  %v5114_v21 = vadd.f32 %v8929_v4, %v5017_v54  ;;  %v6417_v5 = vadd.f32 %v8889_v19, %v8886_v29 }
 0x31d   : > { %v8983_v20 = vpop.f32.mrf.mxu1  ;;  %v8985_v26 = vpop.f32.mrf.mxu0 }
 0x31e   : > { %5732 = vxpose.xlu1.b32.cont [12/16] (narrow) %v5101_v58, 8  ;;  %v5020_v22 = vadd.f32 %v8857_v15, %v4923_v61  ;;  %v6484_v61 = vadd.f32 %v6483_v25, %v8973_v50  ;;  %v6426_v50 = vadd.f32 %v8913_v8, %v8911_v35  ;;  %v6432_v8 = vadd.f32 %v8931_v32, %v8927_v31 }
 0x31f   : > { %v6486_v9 = vpop.f32.mrf.mxu1  ;;  %v8991_v47 = vpop.f32.mrf.mxu0  ;;  %v6438_v31 = vadd.f32 %v8949_v51, %v8947_v13  ;;  %v6444_v13 = vadd.f32 %v8965_v12, %v8963_v24  ;;  %v6450_v24 = vadd.f32 %v8985_v26, %v8981_v40 }
 0x320   : > { %v5117_v39 = vadd.f32 %v8939_v30, %v5020_v22  ;;  %v5461_v30 = vadd.f32 %v6420_v7, %v9006_v44  ;;  %v5469_v60 = vadd.f32 %v6426_v50, %v9006_v44 }
 0x321   : > { %v8993_v3 = vpop.f32.mrf.mxu1  ;;  %v8995_v49 = vpop.f32.mrf.mxu0 }
 0x322   : > { %5733 = vxpose.xlu1.b32.cont [13/16] (narrow) %v5106_v18, 8  ;;  %v6478_v18 = vadd.f32 %v6477_v43, %v6476_v17  ;;  %v5558_v27 = vadd.f32 %v6484_v61, %v5461_v30 }
 0x323   : > { %v6489_v46 = vpop.f32.mrf.mxu1  ;;  %v9008_v6 = vpop.f32.mrf.mxu0 }
 0x324   : > { %v5550_v4 = vadd.f32 %v6478_v18, %v5453_v36  ;;  %v6487_v18 = vadd.f32 %v6486_v9, %v8983_v20  ;;  %v6429_v20 = vadd.f32 %v8921_v62, %v8919_v55  ;;  %v6435_v55 = vadd.f32 %v8941_v45, %v8937_v41 }
 0x325   : > { %v6491_v58 = vpop.f32.mrf.mxu1  ;;  %v9010_v0 = vpop.f32.mrf.mxu0  ;;  %v6441_v41 = vadd.f32 %v8957_v10, %v8955_v57  ;;  %v6447_v57 = vadd.f32 %v8975_v28, %v8971_v16  ;;  %v5501_v16 = vadd.f32 %v6450_v24, %v9006_v44 }
 0x326   : > { %5734 = vxpose.xlu1.b32.cont [14/16] (narrow) %v5109_v2, 8  ;;  %v5458_v2 = vadd.f32 %v6417_v5, %v9006_v44  ;;  %v6490_v5 = vadd.f32 %v6489_v46, %v8993_v3  ;;  %v5474_v35 = vadd.f32 %v6429_v20, %v9006_v44  ;;  %v5482_v61 = vadd.f32 %v6435_v55, %v9006_v44 }
 0x327   : > { %v6492_v1 = vpop.f32.mrf.mxu1  ;;  %v6597_v48 = vpop.f32.mrf.mxu0  ;;  %v6456_v40 = vadd.f32 %v9010_v0, %v9008_v6 }
 0x328   : > { %v5555_v59 = vadd.f32 %v6481_v38, %v5458_v2  ;;  %v5566_v38 = vadd.f32 %v6490_v5, %v5469_v60  ;;  %v5477_v2 = vadd.f32 %v6432_v8, %v9006_v44  ;;  %v5718_v6 = vpop.permute.xlu1 %5717  ;;  %v5711_v0 = vpop.permute.xlu0 %5710 }
 0x329   : > { %v6494_v63 = vpop.f32.mrf.mxu1  ;;  %v5643_v23 = vpop.f32.mrf.mxu0 }
 0x32a   : > { %5735 = vxpose.xlu1.b32.cont [15/16] (narrow) %v5114_v21, 8  ;;  %v5644_v42 = vadd.f32 %v5643_v23, %v5547_v34  ;;  %v5652_v53 = vadd.f32 %v6597_v48, %v5555_v59  ;;  %v5466_v34 = vadd.f32 %v6423_v56, %v9006_v44  ;;  %v5485_v56 = vadd.f32 %v6438_v31, %v9006_v44 }
 0x32b   : > { %v6495_v11 = vpop.f32.mrf.mxu1  ;;  %v6598_v33 = vpop.f32.mrf.mxu0 }
 0x32c   : > { %5755 = vxpose.xlu0.b32.start [1/16] (narrow) %v5644_v42, 8  ;;  %v5655_v25 = vadd.f32 %v6598_v33, %v5558_v27  ;;  %v5563_v22 = vadd.f32 %v6487_v18, %v5466_v34  ;;  %v5493_v34 = vadd.f32 %v6444_v13, %v9006_v44 }
 0x32d   : > { %v6497_v17 = vpop.f32.mrf.mxu1  ;;  %v5646_v43 = vpop.f32.mrf.mxu0 }
 0x32e   : > { %5736 = vxpose.xlu1.b32.end [16/16] (narrow) %v5117_v39, 8  ;;  %v5647_v29 = vadd.f32 %v5646_v43, %v5550_v4  ;;  %v6493_v39 = vadd.f32 %v6492_v1, %v6491_v58  ;;  %v6496_v4 = vadd.f32 %v6495_v11, %v6494_v63 }
 0x32f   : > { %v6498_v19 = vpop.f32.mrf.mxu1  ;;  %v6601_v15 = vpop.f32.mrf.mxu0 }
 0x330   : > { %5756 = vxpose.xlu0.b32.cont [2/16] (narrow) %v5647_v29, 8  ;;  %v5571_v43 = vadd.f32 %v6493_v39, %v5474_v35  ;;  %v6499_v7 = vadd.f32 %v6498_v19, %v6497_v17  ;;  %v5574_v29 = vadd.f32 %v6496_v4, %v5477_v2  ;;  %v5509_v35 = vadd.f32 %v6456_v40, %v9006_v44 }
 0x331   : > { %v6500_v14 = vpop.f32.mrf.mxu1  ;;  %v5659_v21 = vpop.f32.mrf.mxu0 }
 0x332   : > { %v5660_v9 = vadd.f32 %v5659_v21, %v5563_v22  ;;  %v5668_v62 = vadd.f32 %v6601_v15, %v5571_v43  ;;  %v5579_v30 = vadd.f32 %v6499_v7, %v5482_v61  ;;  %v5490_v21 = vadd.f32 %v6441_v41, %v9006_v44 }
 0x333   : > { %v6501_v54 = vpop.f32.mrf.mxu1  ;;  %v6602_v36 = vpop.f32.mrf.mxu0 }
 0x334   : > { %5757 = vxpose.xlu0.b32.cont [3/16] (narrow) %v5652_v53, 8  ;;  %v5671_v32 = vadd.f32 %v6602_v36, %v5574_v29  ;;  %v6502_v59 = vadd.f32 %v6501_v54, %v6500_v14  ;;  %v5498_v36 = vadd.f32 %v6447_v57, %v9006_v44 }
 0x335   : > { %v6503_v52 = vpop.f32.mrf.mxu1  ;;  %v5662_v42 = vpop.f32.mrf.mxu0 }
 0x336   : > { %v5663_v3 = vadd.f32 %v5662_v42, %v5566_v38  ;;  %v5582_v53 = vadd.f32 %v6502_v59, %v5485_v56 }
 0x337   : > { %v6504_v23 = vpop.f32.mrf.mxu1  ;;  %v6605_v33 = vpop.f32.mrf.mxu0 }
 0x338   : > { %5758 = vxpose.xlu0.b32.cont [4/16] (narrow) %v5655_v25, 8  ;;  %v6505_v15 = vadd.f32 %v6504_v23, %v6503_v52 }
 0x339   : > { %v6506_v37 = vpop.f32.mrf.mxu1  ;;  %v5675_v1 = vpop.f32.mrf.mxu0 }
 0x33a   : > { %v5676_v45 = vadd.f32 %v5675_v1, %v5579_v30  ;;  %v5587_v27 = vadd.f32 %v6505_v15, %v5490_v21 }
 0x33b   : > { %v6507_v48 = vpop.f32.mrf.mxu1  ;;  %v6606_v11 = vpop.f32.mrf.mxu0 }
 0x33c   : > { %5759 = vxpose.xlu0.b32.cont [5/16] (narrow) %v5660_v9, 8  ;;  %v6508_v18 = vadd.f32 %v6507_v48, %v6506_v37  ;;  %v5684_v10 = vadd.f32 %v6605_v33, %v5587_v27  ;;  %v6453_v37 = vadd.f32 %v8995_v49, %v8991_v47  ;;  %v5706_v33 = vld [vmem:[%s462_s14] sm:$0xf] }
 0x33d   : > { %v6509_v46 = vpop.f32.mrf.mxu1  ;;  %v5678_v19 = vpop.f32.mrf.mxu0  ;;  %v5713_v4 = vsub.f32 %v5706_v33, %v5711_v0 }
 0x33e   : > { %v5679_v51 = vadd.f32 %v5678_v19, %v5582_v53  ;;  %v5590_v23 = vadd.f32 %v6508_v18, %v5493_v34  ;;  %v5506_v39 = vadd.f32 %v6453_v37, %v9006_v44 }
 0x33f   : > { %v6510_v58 = vpop.f32.mrf.mxu1  ;;  %v6609_v54 = vpop.f32.mrf.mxu0  ;;  %v5720_v2 = vmul.f32 %v5718_v6, %v5713_v4 }
 0x340   : > { %5760 = vxpose.xlu0.b32.cont [6/16] (narrow) %v5663_v3, 8  ;;  %v6511_v25 = vadd.f32 %v6510_v58, %v6509_v46  ;;  %v5687_v12 = vadd.f32 %v6606_v11, %v5590_v23 }
 0x341   : > { %v6512_v63 = vpop.f32.mrf.mxu1  ;;  %v5691_v50 = vpop.f32.mrf.mxu0 }
 0x342   : > { %v5595_v20 = vadd.f32 %v6511_v25, %v5498_v36 }
 0x343   : > { %v6513_v17 = vpop.f32.mrf.mxu1  ;;  %v6610_v22 = vpop.f32.mrf.mxu0 }
 0x344   : > { %5761 = vxpose.xlu0.b32.cont [7/16] (narrow) %v5668_v62, 8  ;;  %v6514_v60 = vadd.f32 %v6513_v17, %v6512_v63  ;;  %v5692_v9 = vadd.f32 %v5691_v50, %v5595_v20 }
 0x345   : > { %v6515_v14 = vpop.f32.mrf.mxu1  ;;  %v5694_v42 = vpop.f32.mrf.mxu0 }
 0x346   : > { %v5598_v26 = vadd.f32 %v6514_v60, %v5501_v16 }
 0x347   : > { %v6516_v52 = vpop.f32.mrf.mxu1 }
 0x348   : > { %5762 = vxpose.xlu0.b32.cont [8/16] (narrow) %v5671_v32, 8  ;;  %v6517_v28 = vadd.f32 %v6516_v52, %v6515_v14  ;;  %v5695_v49 = vadd.f32 %v5694_v42, %v5598_v26 }
 0x349   : > { %v6518_v5 = vpop.f32.mrf.mxu1 }
 0x34a   : > { %v5603_v38 = vadd.f32 %v6517_v28, %v5506_v39 }
 0x34b   : > { %v6519_v48 = vpop.f32.mrf.mxu1 }
 0x34c   : > { %5763 = vxpose.xlu0.b32.cont [9/16] (narrow) %v5676_v45, 8  ;;  %v6520_v47 = vadd.f32 %v6519_v48, %v6518_v5  ;;  %v5700_v8 = vadd.f32 %v6609_v54, %v5603_v38 }
 0x34e   : > { %v5606_v3 = vadd.f32 %v6520_v47, %v5509_v35 }
 0x350   : > { %5764 = vxpose.xlu0.b32.cont [10/16] (narrow) %v5679_v51, 8  ;;  %v5703_v46 = vadd.f32 %v6610_v22, %v5606_v3 }
 0x354   : > { %5765 = vxpose.xlu0.b32.cont [11/16] (narrow) %v5684_v10, 8 }
 0x358   : > { %5766 = vxpose.xlu0.b32.cont [12/16] (narrow) %v5687_v12, 8 }
 0x35c   : > { %5767 = vxpose.xlu0.b32.cont [13/16] (narrow) %v5692_v9, 8 }
 0x360   : > { %5768 = vxpose.xlu0.b32.cont [14/16] (narrow) %v5695_v49, 8 }
 0x364   : > { %5769 = vxpose.xlu0.b32.cont [15/16] (narrow) %v5700_v8, 8 }
 0x368   : > { %5770 = vxpose.xlu0.b32.end [16/16] (narrow) %v5703_v46, 8 }
 0x36e   : > { %v5737_v43 = vpop.trf.xlu1 }
 0x36f   : > { %v5753_v44 = vadd.f32 1.0, %v5737_v43 }
 0x371   : > { %v5754_v55 = vmul.f32 %v5753_v44, %v5720_v2 }
 0x3a8   : > { %v5771_v62 = vpop.trf.xlu0 }
 0x3a9   : > { %v5787_v58 = vadd.f32 %v5771_v62, %v5754_v55 }
 0x3ab   : > { %5788 = vst [vmem:[%s490_s16] sm:$0xf] %v5787_v58 }
 0x3ac PF: > { %s21_s21 = sadd.s32 1, %s6832_s21   ;;  %s9217_s17 = smov %s6824_s19 }
 0x3ad   : > { %p18_p8 = scmp.ge.s32.totalorder %s21_s21, 6   ;;  %s9218_s18 = smov %s6828_s20 }
 0x3ae   : > { %s9219_s19 = smov %s9222_s22  ;;  %s9220_s20 = smov %s9226_s23 }
 0x3af   :  { %20 = sbr.rel (!%p18_p8) target bundleno = 3 (0x3), region = 102 }

</bundles_post_ra>
